<compile_context>
chip_gen: v7x
topology: tpu7x:2x2x1
jax: 0.10.0
libtpu: 0.0.40
codegen_flags: <defaults>
</compile_context>

<pallas_src>
import jax
import jax.numpy as jnp
from jax.experimental import pallas as pl
from jax.experimental.pallas import tpu as pltpu

# ----------------------------------------------------------------------------
# Config (scaled-down vs. module defaults embd_dim=4096, video_dim=4096;
# AUDIO_DIM=1024 is hard-coded in the module as DAVEnet's output channels).
# ----------------------------------------------------------------------------
EMBD_DIM = 256
VIDEO_DIM = 512
AUDIO_DIM = 1024

# Whole-array, VMEM-resident operand (weights / scales / biases): loaded once per call,
# not re-streamed per grid step, no double-buffer duplication.
_RESIDENT = pl.BlockSpec(memory_space=pltpu.MemorySpace.VMEM)


# ----------------------------------------------------------------------------
# Fused kernel: one batch-row tile of
#   temporal mean + GU_video + GU_audio + DAVEnet_projection
# ----------------------------------------------------------------------------
def _net_fused_kernel(
    video_ref, audio_ref,
    guv_w_ref, guv_s_ref, guv_b_ref,
    guv_wg_ref, guv_sg_ref, guv_bg_ref,
    gua_w_ref, gua_s_ref, gua_b_ref,
    gua_wg_ref, gua_sg_ref, gua_bg_ref,
    proj_w_ref, proj_s_ref, proj_b_ref,
    audio_out_ref, video_out_ref,
):
    def qmm(x_bf16, w_ref, s_ref, b_ref):
        # int8 weight -> bf16 on the VPU (free: kernel is DMA-bound), bf16 MXU matmul with
        # fp32 accumulation, per-output-channel dequant scale + bias applied in fp32 epilogue.
        w = w_ref[...].astype(jnp.float32).astype(jnp.bfloat16)
        acc = jnp.dot(x_bf16, w, preferred_element_type=jnp.float32)
        return acc * s_ref[...] + b_ref[...]

    def gated_embedding_unit(x_bf16, w, s, b, wg, sg, bg):
        # Gated_Embedding_Unit: y = Linear(x); Context_Gating cat+GLU == y * sigmoid(Linear(y)).
        y = qmm(x_bf16, w, s, b)
        g = qmm(y.astype(jnp.bfloat16), wg, sg, bg)
        return y * jax.nn.sigmoid(g)

    # ---- video branch: GU_video = Gated_Embedding_Unit(video_dim, embd_dim) ----
    v = gated_embedding_unit(video_ref[...],
                             guv_w_ref, guv_s_ref, guv_b_ref,
                             guv_wg_ref, guv_sg_ref, guv_bg_ref)
    video_out_ref[...] = v.astype(video_out_ref.dtype)

    # ---- audio branch ----
    # audio_ref is (BM, T, 1024): C lane-dense; training-mode mean over time (sublane reduce).
    t = audio_ref.shape[1]
    a = jnp.sum(audio_ref[...].astype(jnp.float32), axis=1) * (1.0 / t)   # (BM, 1024) fp32
    # GU_audio = Gated_Embedding_Unit(1024, 1024)
    a = gated_embedding_unit(a.astype(jnp.bfloat16),
                             gua_w_ref, gua_s_ref, gua_b_ref,
                             gua_wg_ref, gua_sg_ref, gua_bg_ref)
    # DAVEnet_projection = Linear(1024, embd_dim)
    a = qmm(a.astype(jnp.bfloat16), proj_w_ref, proj_s_ref, proj_b_ref)
    audio_out_ref[...] = a.astype(audio_out_ref.dtype)


# ----------------------------------------------------------------------------
# Wrapper: single fused pallas_call, grid over batch-row tiles, resident weights.
# ----------------------------------------------------------------------------
def net_forward_pallas(params, video, audio_feats_btc):
    B = video.shape[0]
    T = audio_feats_btc.shape[1]

    # bf16 activations into the kernel (matmul inputs are bf16 anyway) -> half the DMA.
    video_bf16 = video.astype(jnp.bfloat16)
    audio_bf16 = audio_feats_btc.astype(jnp.bfloat16)

    # Row tiling: large batches are streamed in BM-row blocks (double-buffered by Pallas)
    # while the int8 weights stay VMEM-resident for the entire call.
    BM = 128 if B >= 128 else 8
    B_pad = -(-B // BM) * BM
    if B_pad != B:
        video_bf16 = jnp.pad(video_bf16, ((0, B_pad - B), (0, 0)))
        audio_bf16 = jnp.pad(audio_bf16, ((0, B_pad - B), (0, 0), (0, 0)))

    weight_args = (
        params["guv_w"], params["guv_s"], params["guv_b"],
        params["guv_wg"], params["guv_sg"], params["guv_bg"],
        params["gua_w"], params["gua_s"], params["gua_b"],
        params["gua_wg"], params["gua_sg"], params["gua_bg"],
        params["proj_w"], params["proj_s"], params["proj_b"],
    )
    args = (video_bf16, audio_bf16) + weight_args

    in_specs = [
        pl.BlockSpec((BM, VIDEO_DIM), lambda i: (i, 0)),
        pl.BlockSpec((BM, T, AUDIO_DIM), lambda i: (i, 0, 0)),
    ] + [_RESIDENT] * len(weight_args)
    out_specs = (pl.BlockSpec((BM, EMBD_DIM), lambda i: (i, 0)),
                 pl.BlockSpec((BM, EMBD_DIM), lambda i: (i, 0)))

    # Explicit VMEM budget: resident weights + double-buffered activation/output tiles,
    # with headroom for in-kernel dequant temporaries.
    resident_bytes = sum(int(a.size) * a.dtype.itemsize for a in weight_args)
    tile_bytes = 2 * (BM * VIDEO_DIM * 2 + BM * T * AUDIO_DIM * 2 + 2 * BM * EMBD_DIM * 4)
    vmem_limit = int(max(32 * 1024 * 1024, 2 * (resident_bytes + tile_bytes)))

    flops = 2 * B_pad * (VIDEO_DIM * EMBD_DIM + EMBD_DIM * EMBD_DIM
                         + 2 * AUDIO_DIM * AUDIO_DIM + AUDIO_DIM * EMBD_DIM)
    transcendentals = B_pad * (EMBD_DIM + AUDIO_DIM)        # sigmoids
    bytes_accessed = (sum(int(a.size) * a.dtype.itemsize for a in args)
                      + 2 * B_pad * EMBD_DIM * 4)           # two fp32 outputs

    audio_out, video_out = pl.pallas_call(
        _net_fused_kernel,
        out_shape=(jax.ShapeDtypeStruct((B_pad, EMBD_DIM), jnp.float32),
                   jax.ShapeDtypeStruct((B_pad, EMBD_DIM), jnp.float32)),
        grid=(B_pad // BM,),
        in_specs=in_specs,
        out_specs=out_specs,
        compiler_params=pltpu.CompilerParams(
            dimension_semantics=("parallel",),          # batch tiles are independent
            vmem_limit_bytes=vmem_limit),
        cost_estimate=pl.CostEstimate(flops=flops,
                                      transcendentals=transcendentals,
                                      bytes_accessed=bytes_accessed),
    )(*args)

    if B_pad != B:
        audio_out = audio_out[:B]
        video_out = video_out[:B]
    return audio_out, video_out


net_forward = jax.jit(net_forward_pallas)


# ----------------------------------------------------------------------------
# Deterministic parameter init (mimics nn.Linear fan-in scaling), then int8
# per-output-channel symmetric quantization; scales & biases stay fp32.
# ----------------------------------------------------------------------------
def _quantize_per_out_channel(w):
    amax = jnp.max(jnp.abs(w), axis=0, keepdims=True)             # (1, d_out)
    scale = jnp.where(amax > 0.0, amax / 127.0, 1.0).astype(jnp.float32)
    w_i8 = jnp.clip(jnp.round(w / scale), -127.0, 127.0).astype(jnp.int8)
    return w_i8, scale


def _init_linear(key, d_in, d_out):
    kw, kb = jax.random.split(key)
    bound = 1.0 / jnp.sqrt(d_in)
    w = jax.random.uniform(kw, (d_in, d_out), jnp.float32, -bound, bound)
    b = jax.random.uniform(kb, (1, d_out), jnp.float32, -bound, bound)
    w_i8, scale = _quantize_per_out_channel(w)
    return w_i8, scale, b


def init_net_params(key):
    keys = jax.random.split(key, 5)
    p = {}
    # GU_video = Gated_Embedding_Unit(video_dim, embd_dim)
    p["guv_w"], p["guv_s"], p["guv_b"] = _init_linear(keys[0], VIDEO_DIM, EMBD_DIM)
    p["guv_wg"], p["guv_sg"], p["guv_bg"] = _init_linear(keys[1], EMBD_DIM, EMBD_DIM)
    # GU_audio = Gated_Embedding_Unit(1024, 1024)
    p["gua_w"], p["gua_s"], p["gua_b"] = _init_linear(keys[2], AUDIO_DIM, AUDIO_DIM)
    p["gua_wg"], p["gua_sg"], p["gua_bg"] = _init_linear(keys[3], AUDIO_DIM, AUDIO_DIM)
    # DAVEnet_projection = Linear(1024, embd_dim)
    p["proj_w"], p["proj_s"], p["proj_b"] = _init_linear(keys[4], AUDIO_DIM, EMBD_DIM)
    return p


# ----------------------------------------------------------------------------
# Pure-JAX reference with matching mixed precision / quantization, for a tight
# sanity check of the kernel's arithmetic.
# ----------------------------------------------------------------------------
def net_forward_ref(params, video, audio_feats_btc):
    def qmm(x_bf16, w_i8, s, b):
        w = w_i8.astype(jnp.float32).astype(jnp.bfloat16)
        return jnp.dot(x_bf16, w, preferred_element_type=jnp.float32) * s + b

    def geu(x_bf16, w, s, b, wg, sg, bg):
        y = qmm(x_bf16, w, s, b)
        return y * jax.nn.sigmoid(qmm(y.astype(jnp.bfloat16), wg, sg, bg))

    v = geu(video.astype(jnp.bfloat16),
            params["guv_w"], params["guv_s"], params["guv_b"],
            params["guv_wg"], params["guv_sg"], params["guv_bg"])
    a = jnp.mean(audio_feats_btc.astype(jnp.bfloat16).astype(jnp.float32), axis=1)
    a = geu(a.astype(jnp.bfloat16),
            params["gua_w"], params["gua_s"], params["gua_b"],
            params["gua_wg"], params["gua_sg"], params["gua_bg"])
    a = qmm(a.astype(jnp.bfloat16), params["proj_w"], params["proj_s"], params["proj_b"])
    return a, v


if __name__ == "__main__":
    B, T = 16, 16
    key = jax.random.PRNGKey(0)
    k_params, k_video, k_audio = jax.random.split(key, 3)

    params = init_net_params(k_params)
    video = jax.random.normal(k_video, (B, VIDEO_DIM), jnp.float32)
    # DAVEnet features, time-major (B, T, 1024) so the 1024 channels are lane-dense
    # (no transpose pass needed before the kernel).
    audio_feats = jax.random.normal(k_audio, (B, T, AUDIO_DIM), jnp.float32)
    nframes = jnp.full((B,), T, jnp.int32)  # unused in the training-mode path

    audio_out, video_out = net_forward(params, video, audio_feats)
    jax.block_until_ready((audio_out, video_out))

    a_ref, v_ref = net_forward_ref(params, video, audio_feats)
    assert audio_out.shape == (B, EMBD_DIM) and video_out.shape == (B, EMBD_DIM)
    assert jnp.allclose(video_out, v_ref, atol=2e-2, rtol=2e-2), \
        float(jnp.max(jnp.abs(video_out - v_ref)))
    assert jnp.allclose(audio_out, a_ref, atol=2e-2, rtol=2e-2), \
        float(jnp.max(jnp.abs(audio_out - a_ref)))

    print("KERNEL_OK")
</pallas_src>

<mosaic_0001>
module attributes {stable_mosaic.version = 11 : i64} {
  func.func @_net_fused_kernel(%arg0: i32, %arg1: memref<8x512xbf16, #tpu.memory_space<vmem>>, %arg2: memref<8x16x1024xbf16, #tpu.memory_space<vmem>>, %arg3: memref<512x256xi8, #tpu.memory_space<vmem>>, %arg4: memref<1x256xf32, #tpu.memory_space<vmem>>, %arg5: memref<1x256xf32, #tpu.memory_space<vmem>>, %arg6: memref<256x256xi8, #tpu.memory_space<vmem>>, %arg7: memref<1x256xf32, #tpu.memory_space<vmem>>, %arg8: memref<1x256xf32, #tpu.memory_space<vmem>>, %arg9: memref<1024x1024xi8, #tpu.memory_space<vmem>>, %arg10: memref<1x1024xf32, #tpu.memory_space<vmem>>, %arg11: memref<1x1024xf32, #tpu.memory_space<vmem>>, %arg12: memref<1024x1024xi8, #tpu.memory_space<vmem>>, %arg13: memref<1x1024xf32, #tpu.memory_space<vmem>>, %arg14: memref<1x1024xf32, #tpu.memory_space<vmem>>, %arg15: memref<1024x256xi8, #tpu.memory_space<vmem>>, %arg16: memref<1x256xf32, #tpu.memory_space<vmem>>, %arg17: memref<1x256xf32, #tpu.memory_space<vmem>>, %arg18: memref<8x256xf32, #tpu.memory_space<vmem>>, %arg19: memref<8x256xf32, #tpu.memory_space<vmem>>) attributes {dimension_semantics = [#tpu.dimension_semantics<parallel>], iteration_bounds = array<i64: 2>, scalar_prefetch = 0 : i64, scratch_operands = 0 : i64, tpu.core_type = #tpu.core_type<tc>, window_params = [{transform_indices = @transform_0, window_bounds = array<i64: 8, 512>}, {transform_indices = @transform_1, window_bounds = array<i64: 8, 16, 1024>}, {pipeline_mode = #tpu.pipeline_mode<synchronous>, transform_indices = @transform_2, window_bounds = array<i64: 512, 256>}, {pipeline_mode = #tpu.pipeline_mode<synchronous>, transform_indices = @transform_3, window_bounds = array<i64: 1, 256>}, {pipeline_mode = #tpu.pipeline_mode<synchronous>, transform_indices = @transform_4, window_bounds = array<i64: 1, 256>}, {pipeline_mode = #tpu.pipeline_mode<synchronous>, transform_indices = @transform_5, window_bounds = array<i64: 256, 256>}, {pipeline_mode = #tpu.pipeline_mode<synchronous>, transform_indices = @transform_6, window_bounds = array<i64: 1, 256>}, {pipeline_mode = #tpu.pipeline_mode<synchronous>, transform_indices = @transform_7, window_bounds = array<i64: 1, 256>}, {pipeline_mode = #tpu.pipeline_mode<synchronous>, transform_indices = @transform_8, window_bounds = array<i64: 1024, 1024>}, {pipeline_mode = #tpu.pipeline_mode<synchronous>, transform_indices = @transform_9, window_bounds = array<i64: 1, 1024>}, {pipeline_mode = #tpu.pipeline_mode<synchronous>, transform_indices = @transform_10, window_bounds = array<i64: 1, 1024>}, {pipeline_mode = #tpu.pipeline_mode<synchronous>, transform_indices = @transform_11, window_bounds = array<i64: 1024, 1024>}, {pipeline_mode = #tpu.pipeline_mode<synchronous>, transform_indices = @transform_12, window_bounds = array<i64: 1, 1024>}, {pipeline_mode = #tpu.pipeline_mode<synchronous>, transform_indices = @transform_13, window_bounds = array<i64: 1, 1024>}, {pipeline_mode = #tpu.pipeline_mode<synchronous>, transform_indices = @transform_14, window_bounds = array<i64: 1024, 256>}, {pipeline_mode = #tpu.pipeline_mode<synchronous>, transform_indices = @transform_15, window_bounds = array<i64: 1, 256>}, {pipeline_mode = #tpu.pipeline_mode<synchronous>, transform_indices = @transform_16, window_bounds = array<i64: 1, 256>}, {transform_indices = @transform_17, window_bounds = array<i64: 8, 256>}, {transform_indices = @transform_18, window_bounds = array<i64: 8, 256>}]} {
    %c0 = arith.constant 0 : index
    %c0_0 = arith.constant 0 : index
    %0 = vector.load %arg1[%c0, %c0_0] : memref<8x512xbf16, #tpu.memory_space<vmem>>, vector<8x512xbf16>
    %c0_1 = arith.constant 0 : index
    %c0_2 = arith.constant 0 : index
    %1 = vector.load %arg3[%c0_1, %c0_2] : memref<512x256xi8, #tpu.memory_space<vmem>>, vector<512x256xi8>
    %2 = arith.sitofp %1 : vector<512x256xi8> to vector<512x256xf32>
    %3 = arith.truncf %2 : vector<512x256xf32> to vector<512x256xbf16>
    %cst = arith.constant dense<0.000000e+00> : vector<8x256xf32>
    %4 = tpu.matmul %0, %3, %cst {dimension_numbers = #tpu.dot_dimension_numbers<[1], [0], [0], [1], [0, 0, 1, 1], [], []>} : vector<8x512xbf16>, vector<512x256xbf16>, vector<8x256xf32> -> vector<8x256xf32>
    %c0_3 = arith.constant 0 : index
    %c0_4 = arith.constant 0 : index
    %5 = vector.load %arg4[%c0_3, %c0_4] : memref<1x256xf32, #tpu.memory_space<vmem>>, vector<1x256xf32>
    %6 = vector.broadcast %5 : vector<1x256xf32> to vector<8x256xf32>
    %7 = arith.mulf %4, %6 : vector<8x256xf32>
    %c0_5 = arith.constant 0 : index
    %c0_6 = arith.constant 0 : index
    %8 = vector.load %arg5[%c0_5, %c0_6] : memref<1x256xf32, #tpu.memory_space<vmem>>, vector<1x256xf32>
    %9 = vector.broadcast %8 : vector<1x256xf32> to vector<8x256xf32>
    %10 = arith.addf %7, %9 : vector<8x256xf32>
    %11 = arith.truncf %10 : vector<8x256xf32> to vector<8x256xbf16>
    %c0_7 = arith.constant 0 : index
    %c0_8 = arith.constant 0 : index
    %12 = vector.load %arg6[%c0_7, %c0_8] : memref<256x256xi8, #tpu.memory_space<vmem>>, vector<256x256xi8>
    %13 = arith.sitofp %12 : vector<256x256xi8> to vector<256x256xf32>
    %14 = arith.truncf %13 : vector<256x256xf32> to vector<256x256xbf16>
    %cst_9 = arith.constant dense<0.000000e+00> : vector<8x256xf32>
    %15 = tpu.matmul %11, %14, %cst_9 {dimension_numbers = #tpu.dot_dimension_numbers<[1], [0], [0], [1], [0, 0, 1, 1], [], []>} : vector<8x256xbf16>, vector<256x256xbf16>, vector<8x256xf32> -> vector<8x256xf32>
    %c0_10 = arith.constant 0 : index
    %c0_11 = arith.constant 0 : index
    %16 = vector.load %arg7[%c0_10, %c0_11] : memref<1x256xf32, #tpu.memory_space<vmem>>, vector<1x256xf32>
    %17 = vector.broadcast %16 : vector<1x256xf32> to vector<8x256xf32>
    %18 = arith.mulf %15, %17 : vector<8x256xf32>
    %c0_12 = arith.constant 0 : index
    %c0_13 = arith.constant 0 : index
    %19 = vector.load %arg8[%c0_12, %c0_13] : memref<1x256xf32, #tpu.memory_space<vmem>>, vector<1x256xf32>
    %20 = vector.broadcast %19 : vector<1x256xf32> to vector<8x256xf32>
    %21 = arith.addf %18, %20 : vector<8x256xf32>
    %22 = arith.negf %21 : vector<8x256xf32>
    %23 = math.exp %22 : vector<8x256xf32>
    %cst_14 = arith.constant 1.000000e+00 : f32
    %24 = vector.broadcast %cst_14 : f32 to vector<8x256xf32>
    %25 = arith.addf %24, %23 : vector<8x256xf32>
    %26 = arith.divf %24, %25 : vector<8x256xf32>
    %27 = arith.mulf %10, %26 : vector<8x256xf32>
    %c0_15 = arith.constant 0 : index
    %c0_16 = arith.constant 0 : index
    %28 = vector.load %arg19[%c0_15, %c0_16] : memref<8x256xf32, #tpu.memory_space<vmem>>, vector<8x256xf32>
    tpu.vector_store %arg19[%c0_15, %c0_16], %27 {strides = array<i32>} : memref<8x256xf32, #tpu.memory_space<vmem>>, vector<8x256xf32>,
    %c0_17 = arith.constant 0 : index
    %c0_18 = arith.constant 0 : index
    %c0_19 = arith.constant 0 : index
    %29 = vector.load %arg2[%c0_17, %c0_18, %c0_19] : memref<8x16x1024xbf16, #tpu.memory_space<vmem>>, vector<8x16x1024xbf16>
    %30 = arith.extf %29 : vector<8x16x1024xbf16> to vector<8x16x1024xf32>
    %cst_20 = arith.constant dense<0.000000e+00> : vector<8x1024xf32>
    %31 = vector.multi_reduction <add>, %30, %cst_20 [1] : vector<8x16x1024xf32> to vector<8x1024xf32>
    %cst_21 = arith.constant 6.250000e-02 : f32
    %32 = vector.broadcast %cst_21 : f32 to vector<8x1024xf32>
    %33 = arith.mulf %31, %32 : vector<8x1024xf32>
    %34 = arith.truncf %33 : vector<8x1024xf32> to vector<8x1024xbf16>
    %c0_22 = arith.constant 0 : index
    %c0_23 = arith.constant 0 : index
    %35 = vector.load %arg9[%c0_22, %c0_23] : memref<1024x1024xi8, #tpu.memory_space<vmem>>, vector<1024x1024xi8>
    %36 = arith.sitofp %35 : vector<1024x1024xi8> to vector<1024x1024xf32>
    %37 = arith.truncf %36 : vector<1024x1024xf32> to vector<1024x1024xbf16>
    %cst_24 = arith.constant dense<0.000000e+00> : vector<8x1024xf32>
    %38 = tpu.matmul %34, %37, %cst_24 {dimension_numbers = #tpu.dot_dimension_numbers<[1], [0], [0], [1], [0, 0, 1, 1], [], []>} : vector<8x1024xbf16>, vector<1024x1024xbf16>, vector<8x1024xf32> -> vector<8x1024xf32>
    %c0_25 = arith.constant 0 : index
    %c0_26 = arith.constant 0 : index
    %39 = vector.load %arg10[%c0_25, %c0_26] : memref<1x1024xf32, #tpu.memory_space<vmem>>, vector<1x1024xf32>
    %40 = vector.broadcast %39 : vector<1x1024xf32> to vector<8x1024xf32>
    %41 = arith.mulf %38, %40 : vector<8x1024xf32>
    %c0_27 = arith.constant 0 : index
    %c0_28 = arith.constant 0 : index
    %42 = vector.load %arg11[%c0_27, %c0_28] : memref<1x1024xf32, #tpu.memory_space<vmem>>, vector<1x1024xf32>
    %43 = vector.broadcast %42 : vector<1x1024xf32> to vector<8x1024xf32>
    %44 = arith.addf %41, %43 : vector<8x1024xf32>
    %45 = arith.truncf %44 : vector<8x1024xf32> to vector<8x1024xbf16>
    %c0_29 = arith.constant 0 : index
    %c0_30 = arith.constant 0 : index
    %46 = vector.load %arg12[%c0_29, %c0_30] : memref<1024x1024xi8, #tpu.memory_space<vmem>>, vector<1024x1024xi8>
    %47 = arith.sitofp %46 : vector<1024x1024xi8> to vector<1024x1024xf32>
    %48 = arith.truncf %47 : vector<1024x1024xf32> to vector<1024x1024xbf16>
    %cst_31 = arith.constant dense<0.000000e+00> : vector<8x1024xf32>
    %49 = tpu.matmul %45, %48, %cst_31 {dimension_numbers = #tpu.dot_dimension_numbers<[1], [0], [0], [1], [0, 0, 1, 1], [], []>} : vector<8x1024xbf16>, vector<1024x1024xbf16>, vector<8x1024xf32> -> vector<8x1024xf32>
    %c0_32 = arith.constant 0 : index
    %c0_33 = arith.constant 0 : index
    %50 = vector.load %arg13[%c0_32, %c0_33] : memref<1x1024xf32, #tpu.memory_space<vmem>>, vector<1x1024xf32>
    %51 = vector.broadcast %50 : vector<1x1024xf32> to vector<8x1024xf32>
    %52 = arith.mulf %49, %51 : vector<8x1024xf32>
    %c0_34 = arith.constant 0 : index
    %c0_35 = arith.constant 0 : index
    %53 = vector.load %arg14[%c0_34, %c0_35] : memref<1x1024xf32, #tpu.memory_space<vmem>>, vector<1x1024xf32>
    %54 = vector.broadcast %53 : vector<1x1024xf32> to vector<8x1024xf32>
    %55 = arith.addf %52, %54 : vector<8x1024xf32>
    %56 = arith.negf %55 : vector<8x1024xf32>
    %57 = math.exp %56 : vector<8x1024xf32>
    %cst_36 = arith.constant 1.000000e+00 : f32
    %58 = vector.broadcast %cst_36 : f32 to vector<8x1024xf32>
    %59 = arith.addf %58, %57 : vector<8x1024xf32>
    %60 = arith.divf %58, %59 : vector<8x1024xf32>
    %61 = arith.mulf %44, %60 : vector<8x1024xf32>
    %62 = arith.truncf %61 : vector<8x1024xf32> to vector<8x1024xbf16>
    %c0_37 = arith.constant 0 : index
    %c0_38 = arith.constant 0 : index
    %63 = vector.load %arg15[%c0_37, %c0_38] : memref<1024x256xi8, #tpu.memory_space<vmem>>, vector<1024x256xi8>
    %64 = arith.sitofp %63 : vector<1024x256xi8> to vector<1024x256xf32>
    %65 = arith.truncf %64 : vector<1024x256xf32> to vector<1024x256xbf16>
    %cst_39 = arith.constant dense<0.000000e+00> : vector<8x256xf32>
    %66 = tpu.matmul %62, %65, %cst_39 {dimension_numbers = #tpu.dot_dimension_numbers<[1], [0], [0], [1], [0, 0, 1, 1], [], []>} : vector<8x1024xbf16>, vector<1024x256xbf16>, vector<8x256xf32> -> vector<8x256xf32>
    %c0_40 = arith.constant 0 : index
    %c0_41 = arith.constant 0 : index
    %67 = vector.load %arg16[%c0_40, %c0_41] : memref<1x256xf32, #tpu.memory_space<vmem>>, vector<1x256xf32>
    %68 = vector.broadcast %67 : vector<1x256xf32> to vector<8x256xf32>
    %69 = arith.mulf %66, %68 : vector<8x256xf32>
    %c0_42 = arith.constant 0 : index
    %c0_43 = arith.constant 0 : index
    %70 = vector.load %arg17[%c0_42, %c0_43] : memref<1x256xf32, #tpu.memory_space<vmem>>, vector<1x256xf32>
    %71 = vector.broadcast %70 : vector<1x256xf32> to vector<8x256xf32>
    %72 = arith.addf %69, %71 : vector<8x256xf32>
    %c0_44 = arith.constant 0 : index
    %c0_45 = arith.constant 0 : index
    %73 = vector.load %arg18[%c0_44, %c0_45] : memref<8x256xf32, #tpu.memory_space<vmem>>, vector<8x256xf32>
    tpu.vector_store %arg18[%c0_44, %c0_45], %72 {strides = array<i32>} : memref<8x256xf32, #tpu.memory_space<vmem>>, vector<8x256xf32>,
    return
  }
  func.func @transform_0(%arg0: i32) -> (i32, i32) {
    %c0_i32 = arith.constant 0 : i32
    %c0_i32_0 = arith.constant 0 : i32
    return %arg0, %c0_i32 : i32, i32
  }
  func.func @transform_1(%arg0: i32) -> (i32, i32, i32) {
    %c0_i32 = arith.constant 0 : i32
    %c0_i32_0 = arith.constant 0 : i32
    %c0_i32_1 = arith.constant 0 : i32
    return %arg0, %c0_i32, %c0_i32_0 : i32, i32, i32
  }
  func.func @transform_2(%arg0: i32) -> (i32, i32) {
    %c0_i32 = arith.constant 0 : i32
    %c0_i32_0 = arith.constant 0 : i32
    %c0_i32_1 = arith.constant 0 : i32
    return %c0_i32, %c0_i32_0 : i32, i32
  }
  func.func @transform_3(%arg0: i32) -> (i32, i32) {
    %c0_i32 = arith.constant 0 : i32
    %c0_i32_0 = arith.constant 0 : i32
    %c0_i32_1 = arith.constant 0 : i32
    return %c0_i32, %c0_i32_0 : i32, i32
  }
  func.func @transform_4(%arg0: i32) -> (i32, i32) {
    %c0_i32 = arith.constant 0 : i32
    %c0_i32_0 = arith.constant 0 : i32
    %c0_i32_1 = arith.constant 0 : i32
    return %c0_i32, %c0_i32_0 : i32, i32
  }
  func.func @transform_5(%arg0: i32) -> (i32, i32) {
    %c0_i32 = arith.constant 0 : i32
    %c0_i32_0 = arith.constant 0 : i32
    %c0_i32_1 = arith.constant 0 : i32
    return %c0_i32, %c0_i32_0 : i32, i32
  }
  func.func @transform_6(%arg0: i32) -> (i32, i32) {
    %c0_i32 = arith.constant 0 : i32
    %c0_i32_0 = arith.constant 0 : i32
    %c0_i32_1 = arith.constant 0 : i32
    return %c0_i32, %c0_i32_0 : i32, i32
  }
  func.func @transform_7(%arg0: i32) -> (i32, i32) {
    %c0_i32 = arith.constant 0 : i32
    %c0_i32_0 = arith.constant 0 : i32
    %c0_i32_1 = arith.constant 0 : i32
    return %c0_i32, %c0_i32_0 : i32, i32
  }
  func.func @transform_8(%arg0: i32) -> (i32, i32) {
    %c0_i32 = arith.constant 0 : i32
    %c0_i32_0 = arith.constant 0 : i32
    %c0_i32_1 = arith.constant 0 : i32
    return %c0_i32, %c0_i32_0 : i32, i32
  }
  func.func @transform_9(%arg0: i32) -> (i32, i32) {
    %c0_i32 = arith.constant 0 : i32
    %c0_i32_0 = arith.constant 0 : i32
    %c0_i32_1 = arith.constant 0 : i32
    return %c0_i32, %c0_i32_0 : i32, i32
  }
  func.func @transform_10(%arg0: i32) -> (i32, i32) {
    %c0_i32 = arith.constant 0 : i32
    %c0_i32_0 = arith.constant 0 : i32
    %c0_i32_1 = arith.constant 0 : i32
    return %c0_i32, %c0_i32_0 : i32, i32
  }
  func.func @transform_11(%arg0: i32) -> (i32, i32) {
    %c0_i32 = arith.constant 0 : i32
    %c0_i32_0 = arith.constant 0 : i32
    %c0_i32_1 = arith.constant 0 : i32
    return %c0_i32, %c0_i32_0 : i32, i32
  }
  func.func @transform_12(%arg0: i32) -> (i32, i32) {
    %c0_i32 = arith.constant 0 : i32
    %c0_i32_0 = arith.constant 0 : i32
    %c0_i32_1 = arith.constant 0 : i32
    return %c0_i32, %c0_i32_0 : i32, i32
  }
  func.func @transform_13(%arg0: i32) -> (i32, i32) {
    %c0_i32 = arith.constant 0 : i32
    %c0_i32_0 = arith.constant 0 : i32
    %c0_i32_1 = arith.constant 0 : i32
    return %c0_i32, %c0_i32_0 : i32, i32
  }
  func.func @transform_14(%arg0: i32) -> (i32, i32) {
    %c0_i32 = arith.constant 0 : i32
    %c0_i32_0 = arith.constant 0 : i32
    %c0_i32_1 = arith.constant 0 : i32
    return %c0_i32, %c0_i32_0 : i32, i32
  }
  func.func @transform_15(%arg0: i32) -> (i32, i32) {
    %c0_i32 = arith.constant 0 : i32
    %c0_i32_0 = arith.constant 0 : i32
    %c0_i32_1 = arith.constant 0 : i32
    return %c0_i32, %c0_i32_0 : i32, i32
  }
  func.func @transform_16(%arg0: i32) -> (i32, i32) {
    %c0_i32 = arith.constant 0 : i32
    %c0_i32_0 = arith.constant 0 : i32
    %c0_i32_1 = arith.constant 0 : i32
    return %c0_i32, %c0_i32_0 : i32, i32
  }
  func.func @transform_17(%arg0: i32) -> (i32, i32) {
    %c0_i32 = arith.constant 0 : i32
    %c0_i32_0 = arith.constant 0 : i32
    return %arg0, %c0_i32 : i32, i32
  }
  func.func @transform_18(%arg0: i32) -> (i32, i32) {
    %c0_i32 = arith.constant 0 : i32
    %c0_i32_0 = arith.constant 0 : i32
    return %arg0, %c0_i32 : i32, i32
  }
}

</mosaic_0001>

<bundles_post_ra>
// kernel: net_forward_pallas.1
= control target key start
LH: loop header
LB: loop body
LE: loop exit
PB: predicated region body
PF: predicated region fallthrough
CT: control target
= control target key end

     0   :  { %s8794_s0 = inlined_call_operand.vmem [shape: bf16[16,512], index: 0, kind: input, shape index: {}]   ;;  %s8795_s1 = inlined_call_operand.vmem [shape: bf16[16,16,1024], index: 1, kind: input, shape index: {}]   ;;  %s8796_s2 = inlined_call_operand.vmem [shape: s8[512,256], index: 2, kind: input, shape index: {}]   ;;  %s8797_s3 = inlined_call_operand.vmem [shape: f32[1,256], index: 3, kind: input, shape index: {}]   ;;  %s8798_s4 = inlined_call_operand.vmem [shape: f32[1,256], index: 4, kind: input, shape index: {}]   ;;  %s8799_s5 = inlined_call_operand.vmem [shape: s8[256,256], index: 5, kind: input, shape index: {}]   ;;  %s8800_s6 = inlined_call_operand.vmem [shape: f32[1,256], index: 6, kind: input, shape index: {}]   ;;  %s8801_s7 = inlined_call_operand.vmem [shape: f32[1,256], index: 7, kind: input, shape index: {}]   ;;  %s8802_s8 = inlined_call_operand.vmem [shape: s8[1024,1024], index: 8, kind: input, shape index: {}]   ;;  %s8803_s9 = inlined_call_operand.vmem [shape: f32[1,1024], index: 9, kind: input, shape index: {}]   ;;  %s8804_s10 = inlined_call_operand.vmem [shape: f32[1,1024], index: 10, kind: input, shape index: {}]   ;;  %s8805_s11 = inlined_call_operand.hbm [shape: s8[1024,1024], index: 11, kind: input, shape index: {}]   ;;  %s8806_s12 = inlined_call_operand.vmem [shape: f32[1,1024], index: 12, kind: input, shape index: {}]   ;;  %s8807_s13 = inlined_call_operand.vmem [shape: f32[1,1024], index: 13, kind: input, shape index: {}]   ;;  %s8808_s14 = inlined_call_operand.vmem [shape: s8[1024,256], index: 14, kind: input, shape index: {}]   ;;  %s8809_s15 = inlined_call_operand.vmem [shape: f32[1,256], index: 15, kind: input, shape index: {}]   ;;  %s8810_s16 = inlined_call_operand.vmem [shape: f32[1,256], index: 16, kind: input, shape index: {}]   ;;  %s8811_s17 = inlined_call_operand.hbm [shape: f32[16,256], index: 17, kind: output, shape index: {0}]   ;;  %s8812_s18 = inlined_call_operand.hbm [shape: f32[16,256], index: 18, kind: output, shape index: {1}]  }
   0x1   :  { %8859 = sst [smem:[#allocation26_spill]] %s8794_s0 }
   0x2   :  { %8860 = sst [smem:[#allocation27_spill]] %s8795_s1 }
   0x3   :  { %8861 = sst [smem:[#allocation28_spill]] %s8796_s2 }
   0x4   :  { %8862 = sst [smem:[#allocation29_spill]] %s8805_s11 }
   0x5   :  { %8863 = sst [smem:[#allocation30_spill]] %s8809_s15 }
   0x6   :  { %8864 = sst [smem:[#allocation31_spill]] %s8810_s16 }
   0x7   :  { %8865 = sst [smem:[#allocation32_spill]] %s8811_s17 }
   0x8   :  { %24 = vsyncpa [#allocation3], 0 }
   0x9   :  { %25 = vsyncpa [#allocation4], 0 }
   0xa   :  { %27 = vsyncpa [#allocation4 + $0x1], 0 }
   0xb   :  { %28 = vsyncpa [#allocation7], 0 }
   0xc   :  { %30 = vsyncpa [#allocation7 + $0x1], 0  ;;  %s6098_s27 = smov 0   ;;  %s6100_s28 = smov 0  }
   0xd   :  { %s6102_s29 = smov 0   ;;  %s6104_s30 = smov 0  }
   0xe LB: > { %8866 = sst [smem:[#allocation11_spill]] %s5984_s27  ;;  %s6119_s0 = sadd.s32 4294967295, %s5996_s30   ;;  %s5996_s30 = sphi %s6104_s30, %s9058_s30   ;;  %s5992_s29 = sphi %s6102_s29, %s9060_s29   ;;  %s5988_s28 = sphi %s6100_s28, %s9062_s28   ;;  %s5984_s27 = sphi %s6098_s27, %s9061_s27  }
   0xf   : > { %8867 = sst [smem:[#allocation12_spill]] %s5992_s29  ;;  %s5612_s19 = sadd.s32 4294967294, %s5996_s30  }
  0x10   : > { %8868 = sst [smem:[#allocation13_spill]] %s5996_s30  ;;  %s6123_s1 = sadd.s32 1, %s5996_s30  }
  0x11   : > { %8869 = sst [smem:[#allocation14_spill]] %s6123_s1  ;;  %s410_s20 = sadd.s32 1, %s5992_s29 }
  0x12   : > { %s407_s21 = ssub.s32 %s5996_s30, %s6123_s1  ;;  %p420_p0 = scmp.ne.s32.totalorder %s5992_s29, %s5988_s28 }
  0x13   : > { %p408_p1 = scmp.eq.s32.totalorder %s407_s21, 0  ;;  %p421_p2 = scmp.eq.s32.totalorder %s6119_s0, 1 }
  0x14   : > { %p426_p3 = scmp.ne.s32.totalorder %s5988_s28, %s5984_s27  ;;  %p427_p4 = scmp.eq.s32.totalorder %s5612_s19, 1 }
  0x15   : > { %s6134_s22 = scalar_select %p408_p1, %s5992_s29, %s410_s20  }
  0x16   : > { %p6136_p5 = por %p421_p2, %p420_p0  ;;  %p6140_p6 = por %p427_p4, %p426_p3 }
  0x17   : > { %8870 = sst [smem:[#allocation15_spill]] %s6134_s22  ;;  %p5613_p7 = scmp.ge.s32.totalorder %s5996_s30, 1 }
  0x18   : > { %s8871_s2 = scalar_select %p6136_p5, 1, 0 }
  0x19   : > { %s8872_s23 = scalar_select %p6140_p6, 1, 0 }
  0x1a   : > { %p460_p8 = scmp.lt.s32.totalorder %s5996_s30, 3  ;;  %p8819_p9 = scmp.eq.s32.totalorder %s6119_s0, 0 }
  0x1b   : > { %8873 = sst [smem:[#allocation16_spill]] %s8872_s23  ;;  %s5998_s25 = smov [#allocation2]  }
  0x1c   : > { %p6147_p10 = pnand %p5613_p7, %p460_p8  ;;  %s499_s26 = sshll.u32 %s5998_s25, 4  ;;  %s500_s26 = int_to_ptr.vmem [resolvable:$true] %s499_s26 }
  0x1d   : > { %s8876_s11 = sld [smem:[#allocation29_spill]] }
  0x1e   : > { %s8874_s24 = scalar_select %p6147_p10, 1, 0 }
  0x1f   : > { %p5771_p11 = pneg %p6147_p10 }
  0x21   : > { %p6155_p12 = pnand %p8819_p9, %p5771_p11 }
  0x23   : > { %s5870_s22 = scalar_lea.hbm %s8876_s11, 32768  ;;  %p5872_p0 = pneg %p6155_p12 }
  0x24   : > { %p5871_p13 = scmp.ne.s32.totalorder %s8876_s11, %s5870_s22  ;;  %p5877_p3 = scmp.lt.u32.totalorder %s5870_s22, %s8876_s11 }
  0x26   : > { %p5873_p1 = pnand %p5872_p0, %p5871_p13 }
  0x28   : > { %p5874_p2 = pneg %p5873_p1 }
  0x2a   : > { %p5879_p4 = pnand %p5877_p3, %p5874_p2 }
  0x2c   : > { %5882 = shalt.err (!%p5879_p4)
}
  0x2d   : > { %s5883_s27 = scalar_lea.vmem %s500_s26, 32768  ;;  %p5891_p9 = scmp.lt.s32.totalorder %s500_s26, %s500_s26 }
  0x2e   : > { %p5884_p7 = scmp.ne.s32.totalorder %s500_s26, %s5883_s27  ;;  %p5892_p6 = scmp.lt.s32.totalorder %s5883_s27, %s5883_s27 }
  0x30   : > { %p5886_p8 = pnand %p5884_p7, %p5872_p0  ;;  %p5893_p5 = por %p5892_p6, %p5891_p9 }
  0x32   : > { %p5887_p11 = pneg %p5886_p8 }
  0x34   : > { %p5894_p10 = pnand %p5893_p5, %p5887_p11 }
  0x36   : > { %5897 = shalt.err (!%p5894_p10)
}
  0x37   : > { %s5999_s29 = smov 1024   ;;  %s6000_s1 = smov 64  }
  0x38   : > { %5774 = dma.hbm_to_vmem [thread:$0]  (!%p6155_p12), %s8876_s11, 32768, %s500_s26, [#allocation3], %s5999_s29, %s5999_s29, %s6000_s1  }
  0x39   : > { %p8877_p13 = scmp.ne.s32.totalorder %s8874_s24, 0 }
  0x3b   : > { %548 = sbr.rel (%p8877_p13) target bundleno = 1972 (0x7b4), region = 88 }
  0x42   : > { %p8878_p1 = scmp.eq.s32.totalorder %s6119_s0, 0 }
  0x44   : > { %5971 = dma.done.wait (%p8878_p1), [#allocation3], 32768   ;;  %p8879_p0 = pmov %p8878_p1 }
  0x45   : > { %s5622_s27 = sshll.u32 %s6119_s0, 3  ;;  %p613_p5 = scmp.lt.s32.totalorder %s6119_s0, 1  ;;  %v1751_v1 = vld [vmem:[%s8802_s8 + $0x8] sm:$0xff]  ;;  %v1750_v7 = vld [vmem:[%s8802_s8] sm:$0xff]  ;;  %vm2646_vm0 = vcmask 1041409   ;;  %vm2648_vm1 = vcmask 1042434  }
  0x46   : > { %5973 = vsyncadd (%p8879_p0), [#allocation3], 4294934528  ;;  %p6183_p6 = scmp.lt.s32.totalorder %s5622_s27, 15  ;;  %s8881_s26 = sld [smem:[#allocation28_spill]]  ;;  %v2007_v5 = vunpack.c.l.s8.bf16 %v1751_v1  ;;  %v2015_v6 = vunpack.c.h.s8.bf16 %v1751_v1  ;;  %v6207_v9 = vld [vmem:[%s8802_s8 + $0x48] sm:$0xff]  ;;  %v2006_v12 = vunpack.c.l.s8.bf16 %v1750_v7  ;;  %v6217_v14 = vld [vmem:[%s8802_s8 + $0x40] sm:$0xff]  ;;  %v2014_v16 = vunpack.c.h.s8.bf16 %v1750_v7 }
  0x47   : > { %s6227_s24 = scalar_select %p613_p5, %s6119_s0, 1  ;;  %v2023_v18 = vunpack.c.l.s8.bf16 %v6207_v9  ;;  %v6235_v20 = vld [vmem:[%s8802_s8 + $0x88] sm:$0xff]  ;;  %v6245_v22 = vld [vmem:[%s8802_s8 + $0x80] sm:$0xff]  ;;  %v2022_v23 = vunpack.c.l.s8.bf16 %v6217_v14  ;;  %v2031_v25 = vunpack.c.h.s8.bf16 %v6207_v9  ;;  %v2030_v30 = vunpack.c.h.s8.bf16 %v6217_v14 }
  0x48   : > { %2725 = vmatprep.subr.bf16.mxu1 %v2007_v5  ;;  %s9064_s27 = smov (!%p6183_p6, %s5622_s27), 15  ;;  %v6263_v28 = vld [vmem:[%s8802_s8 + $0xc8] sm:$0xff]  ;;  %v2039_v32 = vunpack.c.l.s8.bf16 %v6235_v20  ;;  %v6277_v34 = vld [vmem:[%s8802_s8 + $0xc0] sm:$0xff]  ;;  %v2038_v35 = vunpack.c.l.s8.bf16 %v6245_v22  ;;  %v2047_v37 = vunpack.c.h.s8.bf16 %v6235_v20  ;;  %s8882_s11 = sld [smem:[#allocation26_spill]]  ;;  %v8892_v20 = vunpack.c.h.s8.bf16 %v6245_v22 }
  0x49   : > { %2726 = vmatpush1.bf16.msra.mxu1 %v2006_v12  ;;  %v6291_v40 = vld [vmem:[%s8802_s8 + $0x108] sm:$0xff]  ;;  %v6305_v46 = vld [vmem:[%s8802_s8 + $0x100] sm:$0xff]  ;;  %s5647_s19 = sshll.u32 %s6227_s24, 4  ;;  %s5648_s25 = sshll.u32 %s9064_s27, 6  ;;  %vm2650_vm2 = vcmask 1043459   ;;  %vm2652_vm3 = vcmask 1044484  }
  0x4a   : > { %2727 = vmatprep.subr.bf16.mxu1 %v2015_v6  ;;  %v6321_v52 = vld [vmem:[%s8802_s8 + $0x148] sm:$0xff]  ;;  %v6335_v58 = vld [vmem:[%s8802_s8 + $0x140] sm:$0xff]  ;;  %s8883_s15 = sld [smem:[#allocation27_spill]]  ;;  %vm2654_vm4 = vcmask 1045509   ;;  %vm2656_vm5 = vcmask 1046534   ;;  %vm2658_vm6 = vcmask 1047559  }
  0x4b   : > { %v6371_v6 = vld [vmem:[%s8802_s8 + $0x180] sm:$0xff]  ;;  %s8858_s27 = sshll.u32 %s6119_s0, 8  ;;  %p9048_p10 = scmp.ne.s32.totalorder %s8871_s2, 0 }
  0x4c   : > { %v628_v0 = vld [vmem:[%s8881_s26 + $0x8] sm:$0xff]  ;;  %v627_v2 = vld [vmem:[%s8881_s26] sm:$0xff]  ;;  %v6202_v8 = vld [vmem:[%s8881_s26 + $0x18] sm:$0xff]  ;;  %8884 = vst [vmem:[#allocation17_spill] sm:$0xff] %v6371_v6  ;;  %s8713_s21 = scalar_lea.hbm %s8812_s18, %s8858_s27 }
  0x4d   : > { %v660_v3 = vunpack.c.l.s8.bf16 %v628_v0  ;;  %v662_v4 = vunpack.c.h.s8.bf16 %v628_v0  ;;  %v659_v10 = vunpack.c.l.s8.bf16 %v627_v2  ;;  %v661_v11 = vunpack.c.h.s8.bf16 %v627_v2  ;;  %v6212_v13 = vld [vmem:[%s8881_s26 + $0x10] sm:$0xff]  ;;  %v6222_v15 = vld [vmem:[%s8881_s26 + $0x28] sm:$0xff]  ;;  %v6240_v21 = vld [vmem:[%s8881_s26 + $0x20] sm:$0xff]  ;;  %2728 = vmatpush1.bf16.msra.mxu1 %v2014_v16 }
  0x4e   : > { %v664_v17 = vunpack.c.l.s8.bf16 %v6202_v8  ;;  %v663_v19 = vunpack.c.l.s8.bf16 %v6212_v13  ;;  %v666_v24 = vunpack.c.h.s8.bf16 %v6202_v8  ;;  %v665_v26 = vunpack.c.h.s8.bf16 %v6212_v13  ;;  %v6258_v27 = vld [vmem:[%s8881_s26 + $0x38] sm:$0xff]  ;;  %v6268_v29 = vld [vmem:[%s8881_s26 + $0x30] sm:$0xff]  ;;  %v6286_v39 = vld [vmem:[%s8881_s26 + $0x48] sm:$0xff]  ;;  %2729 = vmatprep.subr.bf16.mxu1 %v2023_v18  ;;  %s617_s30 = scalar_lea.vmem %s8882_s11, %s5647_s19  ;;  %s8093_s19 = sand.u32 1, %s5988_s28  }
  0x4f   : > { %737 = vmatprep.subr.bf16.mxu0 %v660_v3  ;;  %v668_v31 = vunpack.c.l.s8.bf16 %v6222_v15  ;;  %v667_v33 = vunpack.c.l.s8.bf16 %v6240_v21  ;;  %v670_v36 = vunpack.c.h.s8.bf16 %v6222_v15  ;;  %v6296_v41 = vld [vmem:[%s8881_s26 + $0x40] sm:$0xff]  ;;  %v6316_v51 = vld [vmem:[%s8881_s26 + $0x58] sm:$0xff]  ;;  %v6326_v53 = vld [vmem:[%s8881_s26 + $0x50] sm:$0xff]  ;;  %v8893_v6 = vunpack.c.l.s8.bf16 %v6258_v27  ;;  %s5469_s22 = scalar_lea.sflag [#allocation7], %s8093_s19  ;;  %s6001_s11 = smov [#allocation6]  }
  0x50   : > { %738 = vmatpush1.bf16.msra.mxu0 %v659_v10  ;;  %v6344_v63 = vld [vmem:[%s8881_s26 + $0x68] sm:$0xff]  ;;  %v6354_v1 = vld [vmem:[%s8881_s26 + $0x60] sm:$0xff]  ;;  %s6362_s29 = scalar_lea.vmem %s8883_s15, %s5648_s25  ;;  %v6376_v7 = vld [vmem:[%s8881_s26 + $0x78] sm:$0xff]  ;;  %s5618_s25 = sshll.u32 %s8093_s19, 4 }
  0x51   : > { %739 = vmatprep.subr.bf16.mxu0 %v662_v4  ;;  %v6349_v0 = vld [vmem:[%s8802_s8 + $0x188] sm:$0xff]  ;;  %8885 = vst [vmem:[#allocation18_spill] sm:$0xff] %v6376_v7  ;;  %2730 = vmatpush1.bf16.msra.mxu1 %v2022_v23  ;;  %v6392_v18 = vld [vmem:[%s8881_s26 + $0x70] sm:$0xff]  ;;  %v6407_v10 = vld [vmem:[%s617_s30] sm:$0xff]  ;;  %s8113_s23 = scalar_lea.vmem [#allocation6], %s5618_s25 }
  0x52   : > { %8887 = vst [vmem:[#allocation20_spill] sm:$0xff] %v6392_v18  ;;  %2731 = vmatprep.subr.bf16.mxu1 %v2031_v25  ;;  %8889 = vst [vmem:[#allocation22_spill] sm:$0xff] %v6407_v10  ;;  %v6409_v5 = vld [vmem:[%s617_s30 + $0x8] sm:$0xff]  ;;  %v6412_v8 = vld [vmem:[%s6362_s29] sm:$0xff]  ;;  %v5626_v4 = vcombine.high %v6407_v10, %v6407_v10  ;;  %s5497_s1 = sshll.u32 %s8113_s23, 4  ;;  %s5498_s1 = int_to_ptr.vmem [resolvable:$true] %s5497_s1 }
  0x53   : > { %8890 = vst [vmem:[#allocation23_spill] sm:$0xff] %v6409_v5  ;;  %v6419_v12 = vld [vmem:[%s6362_s29 + $0x20] sm:$0xff]  ;;  %s5898_s20 = scalar_lea.vmem %s5498_s1, 256 }
  0x54   : > { %740 = vmatpush1.bf16.msra.mxu0 %v661_v11  ;;  %v6422_v11 = vld [vmem:[%s6362_s29 + $0x40] sm:$0xff]  ;;  %v1055_v60 = vunpack.c.h.bf16 %v6419_v12  ;;  %769 = vmatprep.mubr.bf16.mxu0 %v5626_v4  ;;  %p5899_p9 = scmp.ne.s32.totalorder %s5498_s1, %s5898_s20 }
  0x55   : > { %741 = vmatprep.subr.bf16.mxu0 %v664_v17  ;;  %v6387_v17 = vld [vmem:[%s8802_s8 + $0x1c8] sm:$0xff]  ;;  %v6425_v23 = vld [vmem:[%s6362_s29 + $0x60] sm:$0xff]  ;;  %2732 = vmatpush1.bf16.msra.mxu1 %v2030_v30  ;;  %v1047_v30 = vunpack.c.h.bf16 %v6412_v8  ;;  %v1063_v59 = vunpack.c.h.bf16 %v6422_v11 }
  0x56   : > { %8886 = vst [vmem:[#allocation19_spill] sm:$0xff] %v6387_v17  ;;  %v6432_v25 = vld [vmem:[%s6362_s29 + $0x80] sm:$0xff]  ;;  %2733 = vmatprep.subr.bf16.mxu1 %v2039_v32  ;;  %v1071_v9 = vunpack.c.h.bf16 %v6425_v23  ;;  %p5900_p12 = pnand %p5899_p9, %p9048_p10 }
  0x57   : > { %v6435_v16 = vld [vmem:[%s6362_s29 + $0xa0] sm:$0xff]  ;;  %v1079_v57 = vunpack.c.h.bf16 %v6432_v25  ;;  %v1181_v44 = vadd.f32 %v1055_v60, %v1047_v30 }
  0x58   : > { %742 = vmatpush1.bf16.msra.mxu0 %v663_v19  ;;  %v6397_v19 = vld [vmem:[%s8802_s8 + $0x1c0] sm:$0xff]  ;;  %v1087_v56 = vunpack.c.h.bf16 %v6435_v16  ;;  %v1237_v43 = vadd.f32 %v1071_v9, %v1063_v59  ;;  %v8895_v9 = vunpack.c.l.s8.bf16 %v6268_v29  ;;  %p5901_p2 = pneg %p5900_p12 }
  0x59   : > { %8888 = vst [vmem:[#allocation21_spill] sm:$0xff] %v6397_v19  ;;  %743 = vmatprep.subr.bf16.mxu0 %v666_v24  ;;  %v6438_v2 = vld [vmem:[%s6362_s29 + $0xc0] sm:$0xff]  ;;  %2734 = vmatpush1.bf16.msra.mxu1 %v2038_v35 }
  0x5a   : > { %v6449_v62 = vld [vmem:[%s6362_s29 + $0xe0] sm:$0xff]  ;;  %v1095_v55 = vunpack.c.h.bf16 %v6438_v2  ;;  %2735 = vmatprep.subr.bf16.mxu1 %v2047_v37  ;;  %v1293_v42 = vadd.f32 %v1087_v56, %v1079_v57  ;;  %v1182_v37 = vrot.slane %v1181_v44, 4  ;;  %v1238_v18 = vrot.slane %v1237_v43, 4 }
  0x5b   : > { %v6452_v13 = vld [vmem:[%s6362_s29 + $0x100] sm:$0xff]  ;;  %v1103_v54 = vunpack.c.h.bf16 %v6449_v62  ;;  %v8894_v56 = vunpack.c.l.s8.bf16 %v6263_v28 }
  0x5c   : > { %744 = vmatpush1.bf16.msra.mxu0 %v665_v26  ;;  %v6455_v26 = vld [vmem:[%s6362_s29 + $0x120] sm:$0xff]  ;;  %v1111_v50 = vunpack.c.h.bf16 %v6452_v13  ;;  %v1294_v17 = vrot.slane %v1293_v42, 4 }
  0x5d   : > { %745 = vmatprep.subr.bf16.mxu0 %v668_v31  ;;  %v6469_v24 = vld [vmem:[%s6362_s29 + $0x140] sm:$0xff]  ;;  %v1119_v49 = vunpack.c.h.bf16 %v6455_v26  ;;  %v1349_v38 = vadd.f32 %v1103_v54, %v1095_v55  ;;  %2736 = vmatpush1.bf16.msra.mxu1 %v8892_v20 }
  0x5e   : > { %v6472_v3 = vld [vmem:[%s6362_s29 + $0x160] sm:$0xff]  ;;  %v1127_v4 = vunpack.c.h.bf16 %v6469_v24  ;;  %2737 = vmatprep.subr.bf16.mxu1 %v8894_v56  ;;  %v1295_v54 = vadd.f32 %v1294_v17, %v1293_v42  ;;  %v8898_v42 = vunpack.c.h.s8.bf16 %v6263_v28  ;;  %v8899_v56 = vunpack.c.h.s8.bf16 %v6268_v29 }
  0x5f   : > { %v6475_v61 = vld [vmem:[%s6362_s29 + $0x180] sm:$0xff]  ;;  %v1135_v48 = vunpack.c.h.bf16 %v6472_v3  ;;  %v1405_v5 = vadd.f32 %v1119_v49, %v1111_v50  ;;  %v1350_v7 = vrot.slane %v1349_v38, 4  ;;  %v1183_v50 = vadd.f32 %v1182_v37, %v1181_v44 }
  0x60   : > { %v6478_v31 = vld [vmem:[%s6362_s29 + $0x1a0] sm:$0xff]  ;;  %746 = vmatpush1.bf16.msra.mxu0 %v667_v33  ;;  %v1143_v47 = vunpack.c.h.bf16 %v6475_v61 }
  0x61   : > { %v6481_v32 = vld [vmem:[%s6362_s29 + $0x1c0] sm:$0xff]  ;;  %747 = vmatprep.subr.bf16.mxu0 %v670_v36  ;;  %v1151_v33 = vunpack.c.h.bf16 %v6478_v31  ;;  %v1461_v10 = vadd.f32 %v1135_v48, %v1127_v4  ;;  %v8891_v36 = vunpack.c.h.s8.bf16 %v6240_v21  ;;  %v1406_v49 = vrot.slane %v1405_v5, 4 }
  0x62   : > { %v6484_v14 = vld [vmem:[%s6362_s29 + $0x1e0] sm:$0xff]  ;;  %v1159_v35 = vunpack.c.h.bf16 %v6481_v32  ;;  %v1239_v21 = vadd.f32 %v1238_v18, %v1237_v43  ;;  %v1351_v55 = vadd.f32 %v1350_v7, %v1349_v38  ;;  %v1184_v30 = vrot.slane %v1183_v50, 2 }
  0x63   : > { %v1167_v45 = vunpack.c.h.bf16 %v6484_v14  ;;  %v1517_v19 = vadd.f32 %v1151_v33, %v1143_v47  ;;  %v1462_v48 = vrot.slane %v1461_v10, 4  ;;  %v1407_v22 = vadd.f32 %v1406_v49, %v1405_v5 }
  0x64   : > { %748 = vmatpush1.bf16.msra.mxu0 %v8891_v36  ;;  %v1240_v4 = vrot.slane %v1239_v21, 2  ;;  %v1296_v33 = vrot.slane %v1295_v54, 2  ;;  %v8897_v36 = vunpack.c.h.s8.bf16 %v6258_v27  ;;  %v1185_v7 = vadd.f32 %v1184_v30, %v1183_v50 }
  0x65   : > { %v1573_v15 = vadd.f32 %v1167_v45, %v1159_v35  ;;  %749 = vmatprep.subr.bf16.mxu0 %v8893_v6  ;;  %v1518_v47 = vrot.slane %v1517_v19, 4  ;;  %v1463_v57 = vadd.f32 %v1462_v48, %v1461_v10  ;;  %v8896_v6 = vunpack.c.l.s8.bf16 %v6277_v34 }
  0x66   : > { %v1352_v35 = vrot.slane %v1351_v55, 2  ;;  %v1408_v38 = vrot.slane %v1407_v22, 2  ;;  %v1241_v10 = vadd.f32 %v1240_v4, %v1239_v21  ;;  %v1297_v17 = vadd.f32 %v1296_v33, %v1295_v54 }
  0x67   : > { %v1574_v45 = vrot.slane %v1573_v15, 4  ;;  %v1519_v59 = vadd.f32 %v1518_v47, %v1517_v19  ;;  %2738 = vmatpush1.bf16.msra.mxu1 %v8896_v6  ;;  %v1464_v43 = vrot.slane %v1463_v57, 2  ;;  %v8900_v27 = vunpack.c.h.s8.bf16 %v6277_v34 }
  0x68   : > { %750 = vmatpush1.bf16.msra.mxu0 %v8895_v9  ;;  %2739 = vmatprep.subr.bf16.mxu1 %v8898_v42  ;;  %v1353_v18 = vadd.f32 %v1352_v35, %v1351_v55  ;;  %v1409_v19 = vadd.f32 %v1408_v38, %v1407_v22  ;;  %v1186_v28 = vrot.slane %v1185_v7, 1  ;;  %v1242_v49 = vrot.slane %v1241_v10, 1 }
  0x69   : > { %v1575_v60 = vadd.f32 %v1574_v45, %v1573_v15  ;;  %751 = vmatprep.subr.bf16.mxu0 %v8897_v36  ;;  %v1520_v44 = vrot.slane %v1519_v59, 2  ;;  %v1465_v15 = vadd.f32 %v1464_v43, %v1463_v57  ;;  %v1298_v48 = vrot.slane %v1297_v17, 1 }
  0x6a   : > { %v1354_v47 = vrot.slane %v1353_v18, 1  ;;  %v8901_v45 = vunpack.c.l.s8.bf16 %v6286_v39  ;;  %v8902_v50 = vunpack.c.l.s8.bf16 %v6291_v40  ;;  %v1410_v21 = vrot.slane %v1409_v19, 1 }
  0x6b   : > { %v1576_v5 = vrot.slane %v1575_v60, 2  ;;  %v1521_v20 = vadd.f32 %v1520_v44, %v1519_v59  ;;  %2740 = vmatpush1.bf16.msra.mxu1 %v8900_v27  ;;  %v1466_v54 = vrot.slane %v1465_v15, 1  ;;  %v1187_v29 = vadd.f32 %v1186_v28, %v1185_v7 }
  0x6c   : > { %752 = vmatpush1.bf16.msra.mxu0 %v8899_v56  ;;  %2741 = vmatprep.subr.bf16.mxu1 %v8902_v50  ;;  %v1243_v57 = vadd.f32 %v1242_v49, %v1241_v10  ;;  %v1299_v34 = vadd.f32 %v1298_v48, %v1297_v17  ;;  %v1355_v59 = vadd.f32 %v1354_v47, %v1353_v18  ;;  %v8903_v4 = vunpack.c.l.s8.bf16 %v6296_v41  ;;  %v6545_v18 = vld [vmem:[%s8881_s26 + $0x88] sm:$0xff] }
  0x6d   : > { %v1577_v37 = vadd.f32 %v1576_v5, %v1575_v60  ;;  %753 = vmatprep.subr.bf16.mxu0 %v8901_v45  ;;  %v1522_v55 = vrot.slane %v1521_v20, 1  ;;  %v1411_v60 = vadd.f32 %v1410_v21, %v1409_v19  ;;  %v1467_v9 = vadd.f32 %v1466_v54, %v1465_v15 }
  0x6e   : > { %v8904_v33 = vunpack.c.l.s8.bf16 %v6305_v46  ;;  %v1623_v35 = vmul.f32 0.0625, %v1187_v29  ;;  %v1631_v36 = vmul.f32 0.0625, %v1243_v57  ;;  %v1639_v42 = vmul.f32 0.0625, %v1299_v34 }
  0x6f   : > { %v1578_v22 = vrot.slane %v1577_v37, 1  ;;  %v1523_v6 = vadd.f32 %v1522_v55, %v1521_v20  ;;  %v1647_v38 = vmul.f32 0.0625, %v1355_v59  ;;  %v8905_v43 = vunpack.c.h.s8.bf16 %v6286_v39 }
  0x70   : > { %754 = vmatpush1.bf16.msra.mxu0 %v8903_v4  ;;  %2742 = vmatpush1.bf16.msra.mxu1 %v8904_v33  ;;  %v8906_v44 = vunpack.c.h.s8.bf16 %v6291_v40  ;;  %v1655_v5 = vmul.f32 0.0625, %v1411_v60  ;;  %v1663_v7 = vmul.f32 0.0625, %v1467_v9  ;;  %v1687_v19 = vpack.c.bf16 %v1623_v35, %v1623_v35  ;;  %v6550_v40 = vld [vmem:[%s8802_s8 + $0x208] sm:$0xff] }
  0x71   : > { %v1579_v30 = vadd.f32 %v1578_v22, %v1577_v37  ;;  %755 = vmatprep.subr.bf16.mxu0 %v8905_v43  ;;  %v1671_v10 = vmul.f32 0.0625, %v1523_v6  ;;  %v1695_v15 = vpack.c.bf16 %v1631_v36, %v1631_v36  ;;  %v1703_v20 = vpack.c.bf16 %v1639_v42, %v1639_v42  ;;  %v6584_v43 = vld [vmem:[%s8881_s26 + $0x80] sm:$0xff] }
  0x72   : > { %2743 = vmatprep.subr.bf16.mxu1 %v8906_v44  ;;  %v1711_v37 = vpack.c.bf16 %v1647_v38, %v1647_v38  ;;  %v1719_v56 = vpack.c.bf16 %v1655_v5, %v1655_v5  ;;  %v1727_v39 = vpack.c.bf16 %v1663_v7, %v1663_v7  ;;  %v8907_v49 = vunpack.c.h.s8.bf16 %v6296_v41 }
  0x73   : > { %v1679_v17 = vmul.f32 0.0625, %v1579_v30  ;;  %v1735_v27 = vpack.c.bf16 %v1671_v10, %v1671_v10  ;;  %v8908_v48 = vunpack.c.h.s8.bf16 %v6305_v46  ;;  %v2583_v47 = vunpack.c.l.b16 %v1687_v19 }
  0x74   : > { %756 = vmatpush1.bf16.msra.mxu0 %v8907_v49  ;;  %v2591_v45 = vunpack.c.l.b16 %v1695_v15  ;;  %v2599_v50 = vunpack.c.l.b16 %v1703_v20  ;;  %v2607_v21 = vunpack.c.l.b16 %v1711_v37  ;;  %v8909_v54 = vunpack.c.l.s8.bf16 %v6316_v51 }
  0x75   : > { %v1743_v28 = vpack.c.bf16 %v1679_v17, %v1679_v17  ;;  %2744 = vmatpush1.bf16.msra.mxu1 %v8908_v48  ;;  %v8910_v55 = vunpack.c.l.s8.bf16 %v6321_v52  ;;  %v692_v22 = vunpack.c.l.s8.bf16 %v6545_v18  ;;  %v2615_v29 = vunpack.c.l.b16 %v1719_v56 }
  0x76   : > { %757 = vmatprep.subr.bf16.mxu0 %v8909_v54  ;;  %v2623_v57 = vunpack.c.l.b16 %v1727_v39  ;;  %v2631_v34 = vunpack.c.l.b16 %v1735_v27  ;;  %v2660_v59 = vsel %vm2646_vm0, %v2591_v45, %v2583_v47  ;;  %v2135_v46 = vunpack.c.l.s8.bf16 %v6550_v40  ;;  %v8921_v45 = vld [vmem:[#allocation17_spill] sm:$0xff] }
  0x77   : > { %2745 = vmatprep.subr.bf16.mxu1 %v8910_v55  ;;  %v2639_v41 = vunpack.c.l.b16 %v1743_v28  ;;  %v1046_v60 = vunpack.c.l.bf16 %v6412_v8  ;;  %v2661_v9 = vsel %vm2648_vm1, %v2599_v50, %v2660_v59  ;;  %v1054_v6 = vunpack.c.l.bf16 %v6419_v12 }
  0x78   : > { %v1062_v30 = vunpack.c.l.bf16 %v6422_v11  ;;  %v1070_v4 = vunpack.c.l.bf16 %v6425_v23  ;;  %v8911_v33 = vunpack.c.l.s8.bf16 %v6326_v53  ;;  %v8912_v35 = vunpack.c.l.s8.bf16 %v6335_v58 }
  0x79   : > { %v2662_v36 = vsel %vm2650_vm2, %v2607_v21, %v2661_v9  ;;  %v1078_v42 = vunpack.c.l.bf16 %v6432_v25  ;;  %v1086_v8 = vunpack.c.l.bf16 %v6435_v16  ;;  %v1094_v38 = vunpack.c.l.bf16 %v6438_v2 }
  0x7a   : > { %758 = vmatpush1.bf16.msra.mxu0 %v8911_v33  ;;  %2746 = vmatpush1.bf16.msra.mxu1 %v8912_v35  ;;  %v8913_v12 = vunpack.c.h.s8.bf16 %v6316_v51  ;;  %v8914_v11 = vunpack.c.h.s8.bf16 %v6321_v52  ;;  %v2663_v23 = vsel %vm2652_vm3, %v2615_v29, %v2662_v36  ;;  %v1102_v44 = vunpack.c.l.bf16 %v6449_v62 }
  0x7b   : > { %v1110_v25 = vunpack.c.l.bf16 %v6452_v13  ;;  %v1118_v16 = vunpack.c.l.bf16 %v6455_v26  ;;  %v2664_v2 = vsel %vm2654_vm4, %v2623_v57, %v2663_v23  ;;  %v1126_v51 = vunpack.c.l.bf16 %v6469_v24 }
  0x7c   : > { %759 = vmatprep.subr.bf16.mxu0 %v8913_v12  ;;  %2747 = vmatprep.subr.bf16.mxu1 %v8914_v11  ;;  %v1134_v52 = vunpack.c.l.bf16 %v6472_v3  ;;  %v1142_v5 = vunpack.c.l.bf16 %v6475_v61  ;;  %v2665_v7 = vsel %vm2656_vm5, %v2631_v34, %v2664_v2  ;;  %v1150_v10 = vunpack.c.l.bf16 %v6478_v31 }
  0x7d   : > { %v1158_v17 = vunpack.c.l.bf16 %v6481_v32  ;;  %v1166_v62 = vunpack.c.l.bf16 %v6484_v14  ;;  %v8915_v13 = vunpack.c.h.s8.bf16 %v6326_v53  ;;  %v8916_v26 = vunpack.c.h.s8.bf16 %v6335_v58 }
  0x7e   : > { %v2666_v24 = vsel %vm2658_vm6, %v2639_v41, %v2665_v7  ;;  %v691_v3 = vunpack.c.l.s8.bf16 %v6584_v43  ;;  %v1174_v19 = vadd.f32 %v1054_v6, %v1046_v60  ;;  %v1230_v61 = vadd.f32 %v1070_v4, %v1062_v30 }
  0x7f   : > { %760 = vmatpush1.bf16.msra.mxu0 %v8915_v13  ;;  %2748 = vmatpush1.bf16.msra.mxu1 %v8916_v26  ;;  %v8917_v15 = vunpack.c.l.s8.bf16 %v6344_v63  ;;  %v8918_v31 = vunpack.c.l.s8.bf16 %v6349_v0  ;;  %v6607_v32 = vpack.c.b16 %v2666_v24, %v2666_v24  ;;  %v1286_v14 = vadd.f32 %v1086_v8, %v1078_v42 }
  0x80   : > { %v1342_v53 = vadd.f32 %v1102_v44, %v1094_v38  ;;  %v694_v20 = vunpack.c.h.s8.bf16 %v6545_v18  ;;  %v1175_v58 = vrot.slane %v1174_v19, 4  ;;  %v1231_v37 = vrot.slane %v1230_v61, 4  ;;  %v8927_v44 = vld [vmem:[#allocation18_spill] sm:$0xff] }
  0x81   : > { %761 = vmatprep.subr.bf16.mxu0 %v8917_v15  ;;  %2749 = vmatprep.subr.bf16.mxu1 %v8918_v31  ;;  %8919 = vst [vmem:[#allocation24_spill] sm:$0xff] %v6607_v32  ;;  %v1398_v56 = vadd.f32 %v1118_v16, %v1110_v25  ;;  %v1454_v39 = vadd.f32 %v1134_v52, %v1126_v51  ;;  %v1287_v27 = vrot.slane %v1286_v14, 4  ;;  %v8920_v47 = vunpack.c.l.s8.bf16 %v6354_v1  ;;  %v8929_v16 = vld [vmem:[#allocation19_spill] sm:$0xff]  ;;  %v8933_v31 = vld [vmem:[#allocation21_spill] sm:$0xff]  ;;  %v6688_v18 = vld [vmem:[%s8802_s8 + $0x288] sm:$0xff] }
  0x82   : > { %2757 = vmatprep.mubr.bf16.mxu1 %v6607_v32  ;;  %v1343_v28 = vrot.slane %v1342_v53, 4  ;;  %v1510_v49 = vadd.f32 %v1150_v10, %v1142_v5  ;;  %v1566_v48 = vadd.f32 %v1166_v62, %v1158_v17  ;;  %v8922_v50 = vunpack.c.l.s8.bf16 %v8921_v45 }
  0x83   : > { %762 = vmatpush1.bf16.msra.mxu0 %v8920_v47  ;;  %v1176_v21 = vadd.f32 %v1175_v58, %v1174_v19  ;;  %v1232_v54 = vadd.f32 %v1231_v37, %v1230_v61  ;;  %v1399_v55 = vrot.slane %v1398_v56, 4  ;;  %v1455_v29 = vrot.slane %v1454_v39, 4  ;;  %v8931_v61 = vld [vmem:[#allocation20_spill] sm:$0xff] }
  0x84   : > { %2750 = vmatpush1.bf16.msra.mxu1 %v8922_v50  ;;  %v8923_v57 = vunpack.c.h.s8.bf16 %v6344_v63  ;;  %v8924_v34 = vunpack.c.h.s8.bf16 %v6349_v0  ;;  %v1288_v41 = vadd.f32 %v1287_v27, %v1286_v14  ;;  %v1344_v59 = vadd.f32 %v1343_v28, %v1342_v53 }
  0x85   : > { %v1511_v60 = vrot.slane %v1510_v49, 4  ;;  %v1567_v9 = vrot.slane %v1566_v48, 4  ;;  %v1177_v6 = vrot.slane %v1176_v21, 2  ;;  %v1233_v30 = vrot.slane %v1232_v54, 2 }
  0x86   : > { %763 = vmatprep.subr.bf16.mxu0 %v8923_v57  ;;  %2751 = vmatprep.subr.bf16.mxu1 %v8924_v34  ;;  %v1400_v4 = vadd.f32 %v1399_v55, %v1398_v56  ;;  %v1456_v33 = vadd.f32 %v1455_v29, %v1454_v39  ;;  %v1289_v35 = vrot.slane %v1288_v41, 2  ;;  %v1345_v36 = vrot.slane %v1344_v59, 2 }
  0x87   : > { %v1512_v42 = vadd.f32 %v1511_v60, %v1510_v49  ;;  %v1568_v8 = vadd.f32 %v1567_v9, %v1566_v48  ;;  %v8925_v38 = vunpack.c.h.s8.bf16 %v6354_v1  ;;  %v8926_v63 = vunpack.c.h.s8.bf16 %v8921_v45 }
  0x88   : > { %v1178_v0 = vadd.f32 %v1177_v6, %v1176_v21  ;;  %v1234_v12 = vadd.f32 %v1233_v30, %v1232_v54  ;;  %v1401_v11 = vrot.slane %v1400_v4, 2  ;;  %v1457_v23 = vrot.slane %v1456_v33, 2 }
  0x89   : > { %764 = vmatpush1.bf16.msra.mxu0 %v8925_v38  ;;  %2752 = vmatpush1.bf16.msra.mxu1 %v8926_v63  ;;  %v8928_v25 = vunpack.c.l.s8.bf16 %v8927_v44  ;;  %v8930_v2 = vunpack.c.l.s8.bf16 %v8929_v16  ;;  %v1290_v51 = vadd.f32 %v1289_v35, %v1288_v41  ;;  %v1346_v52 = vadd.f32 %v1345_v36, %v1344_v59 }
  0x8a   : > { %v1513_v5 = vrot.slane %v1512_v42, 2  ;;  %v1569_v7 = vrot.slane %v1568_v8, 2  ;;  %v1179_v10 = vrot.slane %v1178_v0, 1  ;;  %v1235_v1 = vrot.slane %v1234_v12, 1 }
  0x8b   : > { %765 = vmatprep.subr.bf16.mxu0 %v8928_v25  ;;  %2753 = vmatprep.subr.bf16.mxu1 %v8930_v2  ;;  %v1402_v17 = vadd.f32 %v1401_v11, %v1400_v4  ;;  %v1458_v62 = vadd.f32 %v1457_v23, %v1456_v33  ;;  %v1291_v13 = vrot.slane %v1290_v51, 1  ;;  %v1347_v26 = vrot.slane %v1346_v52, 1  ;;  %v646_v25 = vld [vmem:[%s8881_s26 + $0x98] sm:$0xff] }
  0x8c   : > { %v1514_v24 = vadd.f32 %v1513_v5, %v1512_v42  ;;  %v1570_v19 = vadd.f32 %v1569_v7, %v1568_v8  ;;  %v8932_v15 = vunpack.c.l.s8.bf16 %v8931_v61  ;;  %v8934_v14 = vunpack.c.l.s8.bf16 %v8933_v31  ;;  %v6646_v42 = vld [vmem:[%s8802_s8 + $0x200] sm:$0xff]  ;;  %v6661_v5 = vld [vmem:[%s8802_s8 + $0x248] sm:$0xff]  ;;  %v6666_v7 = vld [vmem:[%s8881_s26 + $0x90] sm:$0xff] }
  0x8d   : > { %v1180_v53 = vadd.f32 %v1179_v10, %v1178_v0  ;;  %v1236_v58 = vadd.f32 %v1235_v1, %v1234_v12  ;;  %v1403_v37 = vrot.slane %v1402_v17, 1  ;;  %v1459_v56 = vrot.slane %v1458_v62, 1  ;;  %v8939_v12 = vld [vmem:[#allocation22_spill] sm:$0xff] }
  0x8e   : > { %766 = vmatpush1.bf16.msra.mxu0 %v8932_v15  ;;  %2754 = vmatpush1.bf16.msra.mxu1 %v8934_v14  ;;  %v8935_v39 = vunpack.c.h.s8.bf16 %v8927_v44  ;;  %v8936_v27 = vunpack.c.h.s8.bf16 %v8929_v16  ;;  %v1292_v28 = vadd.f32 %v1291_v13, %v1290_v51  ;;  %v1348_v49 = vadd.f32 %v1347_v26, %v1346_v52  ;;  %v6702_v14 = vld [vmem:[%s8802_s8 + $0x280] sm:$0xff] }
  0x8f   : > { %v1515_v48 = vrot.slane %v1514_v24, 1  ;;  %v1571_v47 = vrot.slane %v1570_v19, 1  ;;  %v1404_v45 = vadd.f32 %v1403_v37, %v1402_v17  ;;  %v1460_v50 = vadd.f32 %v1459_v56, %v1458_v62 }
  0x90   : > { %767 = vmatprep.subr.bf16.mxu0 %v8935_v39  ;;  %2755 = vmatprep.subr.bf16.mxu1 %v8936_v27  ;;  %v1622_v21 = vmul.f32 0.0625, %v1180_v53  ;;  %v1630_v54 = vmul.f32 0.0625, %v1236_v58  ;;  %v1638_v57 = vmul.f32 0.0625, %v1292_v28  ;;  %v1646_v34 = vmul.f32 0.0625, %v1348_v49  ;;  %v6710_v39 = vld [vmem:[%s8881_s26 + $0xb8] sm:$0xff] }
  0x91   : > { %v1516_v55 = vadd.f32 %v1515_v48, %v1514_v24  ;;  %v1572_v29 = vadd.f32 %v1571_v47, %v1570_v19  ;;  %v8937_v41 = vunpack.c.h.s8.bf16 %v8931_v61  ;;  %v8938_v59 = vunpack.c.h.s8.bf16 %v8933_v31  ;;  %v6683_v61 = vld [vmem:[%s8881_s26 + $0xa8] sm:$0xff]  ;;  %v6697_v31 = vld [vmem:[%s8881_s26 + $0xa0] sm:$0xff] }
  0x92   : > { %v1654_v60 = vmul.f32 0.0625, %v1404_v45  ;;  %v1662_v9 = vmul.f32 0.0625, %v1460_v50  ;;  %v1686_v6 = vpack.c.bf16 %v1622_v21, %v1622_v21  ;;  %v1694_v30 = vpack.c.bf16 %v1630_v54, %v1630_v54  ;;  %v6719_v47 = vld [vmem:[%s8802_s8 + $0x2c8] sm:$0xff]  ;;  %v6724_v45 = vld [vmem:[%s8881_s26 + $0xb0] sm:$0xff]  ;;  %v6729_v50 = vld [vmem:[%s8802_s8 + $0x2c0] sm:$0xff] }
  0x93   : > { %768 = vmatpush1.bf16.msra.mxu0 %v8937_v41  ;;  %2756 = vmatpush1.bf16.msra.mxu1 %v8938_v59  ;;  %v1670_v4 = vmul.f32 0.0625, %v1516_v55  ;;  %v1678_v33 = vmul.f32 0.0625, %v1572_v29  ;;  %v1702_v35 = vpack.c.bf16 %v1638_v57, %v1638_v57  ;;  %v1710_v36 = vpack.c.bf16 %v1646_v34, %v1646_v34  ;;  %v6738_v57 = vld [vmem:[%s8881_s26 + $0xc8] sm:$0xff] }
  0x94   : > { %778 = vmatprep.subr.bf16.mxu0 %v692_v22  ;;  %2766 = vmatprep.subr.bf16.mxu1 %v2135_v46  ;;  %v1718_v8 = vpack.c.bf16 %v1654_v60, %v1654_v60  ;;  %v1726_v38 = vpack.c.bf16 %v1662_v9, %v1662_v9  ;;  %v2582_v63 = vunpack.c.l.b16 %v1686_v6  ;;  %v2590_v0 = vunpack.c.l.b16 %v1694_v30  ;;  %v6748_v9 = vld [vmem:[%s8802_s8 + $0x308] sm:$0xff]  ;;  %v6753_v6 = vld [vmem:[%s8881_s26 + $0xc0] sm:$0xff] }
  0x95   : > { %v8940_v11 = vcombine.low %v8939_v12, %v8939_v12  ;;  %v1734_v22 = vpack.c.bf16 %v1670_v4, %v1670_v4  ;;  %v1742_v23 = vpack.c.bf16 %v1678_v33, %v1678_v33  ;;  %v2598_v46 = vunpack.c.l.b16 %v1702_v35  ;;  %v6758_v30 = vld [vmem:[%s8802_s8 + $0x300] sm:$0xff]  ;;  %v6891_v12 = vld [vmem:[%s6362_s29 + $0x128] sm:$0xff] }
  0x96   : > { %v2606_v44 = vunpack.c.l.b16 %v1710_v36  ;;  %v2614_v16 = vunpack.c.l.b16 %v1718_v8  ;;  %v2622_v2 = vunpack.c.l.b16 %v1726_v38  ;;  %v2647_v51 = vsel %vm2646_vm0, %v2590_v0, %v2582_v63  ;;  %v6767_v8 = vld [vmem:[%s8881_s26 + $0xd8] sm:$0xff]  ;;  %v6907_v63 = vld [vmem:[%s6362_s29 + $0x188] sm:$0xff] }
  0x97   : > { %770 = vmatmul.mubr.bf16.vlgmr.msra.gmra.mrb[0].mxu0 %v8940_v11  ;;  %v2134_v52 = vunpack.c.l.s8.bf16 %v6646_v42  ;;  %v2630_v10 = vunpack.c.l.b16 %v1734_v22  ;;  %v2649_v1 = vsel %vm2648_vm1, %v2598_v46, %v2647_v51  ;;  %v2143_v17 = vunpack.c.h.s8.bf16 %v6550_v40  ;;  %v6777_v11 = vld [vmem:[%s8802_s8 + $0x348] sm:$0xff]  ;;  %v6782_v22 = vld [vmem:[%s8881_s26 + $0xd0] sm:$0xff] }
  0x98   : > { %779 = vmatpush1.bf16.msra.mxu0 %v691_v3  ;;  %v6671_v3 = vld [vmem:[%s8802_s8 + $0x240] sm:$0xff]  ;;  %v693_v62 = vunpack.c.h.s8.bf16 %v6584_v43  ;;  %v2638_v13 = vunpack.c.l.b16 %v1742_v23  ;;  %v2651_v26 = vsel %vm2650_vm2, %v2606_v44, %v2649_v1  ;;  %v2142_v24 = vunpack.c.h.s8.bf16 %v6646_v42  ;;  %v6805_v1 = vld [vmem:[%s8802_s8 + $0x388] sm:$0xff] }
  0x99   : > { %780 = vmatprep.subr.bf16.mxu0 %v694_v20  ;;  %v696_v19 = vunpack.c.l.s8.bf16 %v646_v25  ;;  %v2653_v40 = vsel %vm2652_vm3, %v2614_v16, %v2651_v26  ;;  %v2151_v43 = vunpack.c.l.s8.bf16 %v6661_v5  ;;  %v695_v20 = vunpack.c.l.s8.bf16 %v6666_v7  ;;  %v6787_v23 = vld [vmem:[%s8802_s8 + $0x340] sm:$0xff]  ;;  %8943 = vst [vmem:[#allocation19_spill] sm:$0xff] %v6805_v1  ;;  %v6858_v16 = vld [vmem:[%s6362_s29 + $0x48] sm:$0xff] }
  0x9a   : > { %v2150_v15 = vunpack.c.l.s8.bf16 %v6671_v3  ;;  %v2655_v53 = vsel %vm2654_vm4, %v2622_v2, %v2653_v40  ;;  %v698_v58 = vunpack.c.h.s8.bf16 %v646_v25  ;;  %v2159_v37 = vunpack.c.h.s8.bf16 %v6661_v5  ;;  %8942 = vst [vmem:[#allocation18_spill] sm:$0xff] %v6787_v23  ;;  %v6796_v2 = vld [vmem:[%s8881_s26 + $0xe8] sm:$0xff]  ;;  %v6838_v40 = vld [vmem:[%s8881_s26 + $0xf0] sm:$0xff]  ;;  %v6843_v26 = vld [vmem:[%s8802_s8 + $0x3c0] sm:$0xff] }
  0x9b   : > { %v697_v56 = vunpack.c.h.s8.bf16 %v6666_v7  ;;  %v2657_v27 = vsel %vm2656_vm5, %v2630_v10, %v2655_v53  ;;  %v2158_v28 = vunpack.c.h.s8.bf16 %v6671_v3  ;;  %v700_v49 = vunpack.c.l.s8.bf16 %v6683_v61  ;;  %v6829_v53 = vld [vmem:[%s8802_s8 + $0x3c8] sm:$0xff]  ;;  %8947 = vst [vmem:[#allocation25_spill] sm:$0xff] %v6838_v40 }
  0x9c   : > { %781 = vmatpush1.bf16.msra.mxu0 %v693_v62  ;;  %v2659_v21 = vsel %vm2658_vm6, %v2638_v13, %v2657_v27  ;;  %v699_v54 = vunpack.c.l.s8.bf16 %v6697_v31  ;;  %v702_v29 = vunpack.c.h.s8.bf16 %v6683_v61  ;;  %v701_v59 = vunpack.c.h.s8.bf16 %v6697_v31  ;;  %v6810_v62 = vld [vmem:[%s8881_s26 + $0xe0] sm:$0xff]  ;;  %8946 = vst [vmem:[#allocation22_spill] sm:$0xff] %v6829_v53  ;;  %v6855_v7 = vld [vmem:[%s6362_s29 + $0x28] sm:$0xff]  ;;  %v8948_v13 = vld [vmem:[#allocation23_spill] sm:$0xff] }
  0x9d   : > { %782 = vmatprep.subr.bf16.mxu0 %v696_v19  ;;  %v6740_v34 = vpack.c.b16 %v2659_v21, %v2659_v21  ;;  %v704_v4 = vunpack.c.l.s8.bf16 %v6710_v39  ;;  %v6870_v10 = vld [vmem:[%s6362_s29 + $0x88] sm:$0xff]  ;;  %v5628_v27 = vcombine.high %v8948_v13, %v8948_v13  ;;  %v1065_v36 = vunpack.c.h.bf16 %v6858_v16 }
  0x9e   : > { %v6873_v21 = vld [vmem:[%s6362_s29 + $0xa8] sm:$0xff]  ;;  %v1121_v0 = vunpack.c.h.bf16 %v6891_v12  ;;  %v8951_v3 = vunpack.c.h.s8.bf16 %v6710_v39  ;;  %v8954_v39 = vunpack.c.h.s8.bf16 %v6724_v45 }
  0x9f   : > { %8941 = vst [vmem:[#allocation17_spill] sm:$0xff] %v6740_v34  ;;  %2758 = vmatmul.mubr.bf16.vlgmr.msra.gmra.mrb[0].mxu1 %v6740_v34  ;;  %v6876_v19 = vld [vmem:[%s6362_s29 + $0xc8] sm:$0xff]  ;;  %810 = vmatprep.mubr.bf16.mxu0 %v5628_v27  ;;  %v1089_v25 = vunpack.c.h.bf16 %v6873_v21  ;;  %v8949_v34 = vunpack.c.l.s8.bf16 %v6688_v18 }
  0xa0   : > { %783 = vmatpush1.bf16.msra.mxu0 %v695_v20  ;;  %2767 = vmatpush1.bf16.msra.mxu1 %v2134_v52  ;;  %v6824_v20 = vld [vmem:[%s8881_s26 + $0xf8] sm:$0xff]  ;;  %v6885_v42 = vld [vmem:[%s6362_s29 + $0xe8] sm:$0xff]  ;;  %v1097_v33 = vunpack.c.h.bf16 %v6876_v19 }
  0xa1   : > { %784 = vmatprep.subr.bf16.mxu0 %v698_v58  ;;  %2768 = vmatprep.subr.bf16.mxu1 %v2143_v17  ;;  %v6815_v17 = vld [vmem:[%s8802_s8 + $0x380] sm:$0xff]  ;;  %8945 = vst [vmem:[#allocation21_spill] sm:$0xff] %v6824_v20  ;;  %v6861_v58 = vld [vmem:[%s6362_s29 + $0x68] sm:$0xff]  ;;  %v1105_v60 = vunpack.c.h.bf16 %v6885_v42 }
  0xa2   : > { %8944 = vst [vmem:[#allocation20_spill] sm:$0xff] %v6815_v17  ;;  %v6888_v44 = vld [vmem:[%s6362_s29 + $0x108] sm:$0xff]  ;;  %v1073_v51 = vunpack.c.h.bf16 %v6861_v58  ;;  %v8950_v17 = vunpack.c.l.s8.bf16 %v6724_v45  ;;  %v8957_v45 = vunpack.c.l.s8.bf16 %v6719_v47 }
  0xa3   : > { %v6901_v52 = vld [vmem:[%s6362_s29 + $0x148] sm:$0xff]  ;;  %v1113_v46 = vunpack.c.h.bf16 %v6888_v44  ;;  %v1363_v48 = vadd.f32 %v1105_v60, %v1097_v33 }
  0xa4   : > { %785 = vmatpush1.bf16.msra.mxu0 %v697_v56  ;;  %2769 = vmatpush1.bf16.msra.mxu1 %v2142_v24  ;;  %v6904_v56 = vld [vmem:[%s6362_s29 + $0x168] sm:$0xff]  ;;  %v1057_v24 = vunpack.c.h.bf16 %v6855_v7  ;;  %v1129_v41 = vunpack.c.h.bf16 %v6901_v52  ;;  %v1251_v38 = vadd.f32 %v1073_v51, %v1065_v36 }
  0xa5   : > { %786 = vmatprep.subr.bf16.mxu0 %v700_v49  ;;  %v6846_v49 = vld [vmem:[%s6362_s29 + $0x8] sm:$0xff]  ;;  %2770 = vmatprep.subr.bf16.mxu1 %v2151_v43  ;;  %v1137_v5 = vunpack.c.h.bf16 %v6904_v56  ;;  %v1419_v32 = vadd.f32 %v1121_v0, %v1113_v46  ;;  %v1364_v23 = vrot.slane %v1363_v48, 4 }
  0xa6   : > { %v6912_v61 = vld [vmem:[%s6362_s29 + $0x1a8] sm:$0xff]  ;;  %v1049_v43 = vunpack.c.h.bf16 %v6846_v49  ;;  %v1252_v1 = vrot.slane %v1251_v38, 4 }
  0xa7   : > { %v1153_v27 = vunpack.c.h.bf16 %v6912_v61  ;;  %v1365_v46 = vadd.f32 %v1364_v23, %v1363_v48 }
  0xa8   : > { %787 = vmatpush1.bf16.msra.mxu0 %v699_v54  ;;  %2771 = vmatpush1.bf16.msra.mxu1 %v2150_v15  ;;  %v6918_v54 = vld [vmem:[%s6362_s29 + $0x1e8] sm:$0xff]  ;;  %v1081_v15 = vunpack.c.h.bf16 %v6870_v10  ;;  %v1253_v0 = vadd.f32 %v1252_v1, %v1251_v38 }
  0xa9   : > { %788 = vmatprep.subr.bf16.mxu0 %v702_v29  ;;  %v6915_v29 = vld [vmem:[%s6362_s29 + $0x1c8] sm:$0xff]  ;;  %2772 = vmatprep.subr.bf16.mxu1 %v2159_v37  ;;  %v1145_v37 = vunpack.c.h.bf16 %v6907_v63  ;;  %v1169_v31 = vunpack.c.h.bf16 %v6918_v54 }
  0xaa   : > { %v1161_v55 = vunpack.c.h.bf16 %v6915_v29  ;;  %v1307_v35 = vadd.f32 %v1089_v25, %v1081_v15  ;;  %v8953_v25 = vunpack.c.h.s8.bf16 %v6688_v18  ;;  %v8956_v18 = vunpack.c.h.s8.bf16 %v6702_v14 }
  0xab   : > { %v1531_v13 = vadd.f32 %v1153_v27, %v1145_v37  ;;  %v1366_v27 = vrot.slane %v1365_v46, 2 }
  0xac   : > { %789 = vmatpush1.bf16.msra.mxu0 %v701_v59  ;;  %2773 = vmatpush1.bf16.msra.mxu1 %v2158_v28  ;;  %v1195_v59 = vadd.f32 %v1057_v24, %v1049_v43  ;;  %v1587_v53 = vadd.f32 %v1169_v31, %v1161_v55  ;;  %v1308_v20 = vrot.slane %v1307_v35, 4  ;;  %v1420_v28 = vrot.slane %v1419_v32, 4 }
  0xad   : > { %790 = vmatprep.subr.bf16.mxu0 %v704_v4  ;;  %2774 = vmatprep.subr.bf16.mxu1 %v8949_v34  ;;  %v1475_v4 = vadd.f32 %v1137_v5, %v1129_v41  ;;  %v1532_v60 = vrot.slane %v1531_v13, 4  ;;  %v8952_v34 = vunpack.c.l.s8.bf16 %v6702_v14  ;;  %v1254_v5 = vrot.slane %v1253_v0, 2 }
  0xae   : > { %v1196_v40 = vrot.slane %v1195_v59, 4  ;;  %v1588_v33 = vrot.slane %v1587_v53, 4  ;;  %v1309_v55 = vadd.f32 %v1308_v20, %v1307_v35  ;;  %v1421_v51 = vadd.f32 %v1420_v28, %v1419_v32 }
  0xaf   : > { %v1476_v36 = vrot.slane %v1475_v4, 4  ;;  %v1533_v24 = vadd.f32 %v1532_v60, %v1531_v13  ;;  %v8955_v31 = vunpack.c.l.s8.bf16 %v6738_v57  ;;  %v1255_v1 = vadd.f32 %v1254_v5, %v1253_v0 }
  0xb0   : > { %791 = vmatpush1.bf16.msra.mxu0 %v8950_v17  ;;  %2775 = vmatpush1.bf16.msra.mxu1 %v8952_v34  ;;  %v1197_v41 = vadd.f32 %v1196_v40, %v1195_v59  ;;  %v1589_v43 = vadd.f32 %v1588_v33, %v1587_v53  ;;  %v1310_v37 = vrot.slane %v1309_v55, 2  ;;  %v1422_v38 = vrot.slane %v1421_v51, 2 }
  0xb1   : > { %792 = vmatprep.subr.bf16.mxu0 %v8951_v3  ;;  %2776 = vmatprep.subr.bf16.mxu1 %v8953_v25  ;;  %v1477_v17 = vadd.f32 %v1476_v36, %v1475_v4  ;;  %v1534_v48 = vrot.slane %v1533_v24, 2  ;;  %v1367_v40 = vadd.f32 %v1366_v27, %v1365_v46  ;;  %v8958_v3 = vunpack.c.l.s8.bf16 %v6753_v6 }
  0xb2   : > { %v1198_v15 = vrot.slane %v1197_v41, 2  ;;  %v1590_v23 = vrot.slane %v1589_v43, 2  ;;  %v1311_v13 = vadd.f32 %v1310_v37, %v1309_v55  ;;  %v1423_v20 = vadd.f32 %v1422_v38, %v1421_v51 }
  0xb3   : > { %v1478_v35 = vrot.slane %v1477_v17, 2  ;;  %v1535_v59 = vadd.f32 %v1534_v48, %v1533_v24  ;;  %v1256_v36 = vrot.slane %v1255_v1, 1  ;;  %v1368_v33 = vrot.slane %v1367_v40, 1 }
  0xb4   : > { %793 = vmatpush1.bf16.msra.mxu0 %v8954_v39  ;;  %2777 = vmatpush1.bf16.msra.mxu1 %v8956_v18  ;;  %v1199_v32 = vadd.f32 %v1198_v15, %v1197_v41  ;;  %v1591_v4 = vadd.f32 %v1590_v23, %v1589_v43  ;;  %v1312_v60 = vrot.slane %v1311_v13, 1  ;;  %v8959_v14 = vunpack.c.h.s8.bf16 %v6738_v57 }
  0xb5   : > { %794 = vmatprep.subr.bf16.mxu0 %v8955_v31  ;;  %2778 = vmatprep.subr.bf16.mxu1 %v8957_v45  ;;  %v1479_v53 = vadd.f32 %v1478_v35, %v1477_v17  ;;  %v1424_v34 = vrot.slane %v1423_v20, 1  ;;  %v1536_v0 = vrot.slane %v1535_v59, 1  ;;  %v8960_v46 = vunpack.c.l.s8.bf16 %v6729_v50 }
  0xb6   : > { %v1200_v28 = vrot.slane %v1199_v32, 1  ;;  %v1592_v55 = vrot.slane %v1591_v4, 1  ;;  %v1257_v51 = vadd.f32 %v1256_v36, %v1255_v1  ;;  %v1313_v17 = vadd.f32 %v1312_v60, %v1311_v13 }
  0xb7   : > { %v1480_v41 = vrot.slane %v1479_v53, 1  ;;  %v1369_v24 = vadd.f32 %v1368_v33, %v1367_v40  ;;  %v8961_v43 = vunpack.c.h.s8.bf16 %v6719_v47  ;;  %v1425_v39 = vadd.f32 %v1424_v34, %v1423_v20 }
  0xb8   : > { %795 = vmatpush1.bf16.msra.mxu0 %v8958_v3  ;;  %2779 = vmatpush1.bf16.msra.mxu1 %v8960_v46  ;;  %v1201_v25 = vadd.f32 %v1200_v28, %v1199_v32  ;;  %v1537_v5 = vadd.f32 %v1536_v0, %v1535_v59  ;;  %v1593_v37 = vadd.f32 %v1592_v55, %v1591_v4  ;;  %v8962_v57 = vunpack.c.h.s8.bf16 %v6753_v6 }
  0xb9   : > { %796 = vmatprep.subr.bf16.mxu0 %v8959_v14  ;;  %2780 = vmatprep.subr.bf16.mxu1 %v8961_v43  ;;  %v1481_v15 = vadd.f32 %v1480_v41, %v1479_v53  ;;  %v1633_v31 = vmul.f32 0.0625, %v1257_v51  ;;  %v1641_v38 = vmul.f32 0.0625, %v1313_v17  ;;  %v1649_v35 = vmul.f32 0.0625, %v1369_v24 }
  0xba   : > { %v1625_v27 = vmul.f32 0.0625, %v1201_v25  ;;  %v8963_v48 = vunpack.c.l.s8.bf16 %v6767_v8  ;;  %v1657_v23 = vmul.f32 0.0625, %v1425_v39  ;;  %v1673_v32 = vmul.f32 0.0625, %v1537_v5 }
  0xbb   : > { %v1665_v18 = vmul.f32 0.0625, %v1481_v15  ;;  %v1681_v1 = vmul.f32 0.0625, %v1593_v37  ;;  %v8964_v47 = vunpack.c.h.s8.bf16 %v6729_v50  ;;  %v1697_v40 = vpack.c.bf16 %v1633_v31, %v1633_v31 }
  0xbc   : > { %797 = vmatpush1.bf16.msra.mxu0 %v8962_v57  ;;  %v1689_v13 = vpack.c.bf16 %v1625_v27, %v1625_v27  ;;  %v1705_v45 = vpack.c.bf16 %v1641_v38, %v1641_v38  ;;  %v1713_v20 = vpack.c.bf16 %v1649_v35, %v1649_v35  ;;  %v8965_v6 = vunpack.c.l.s8.bf16 %v6748_v9 }
  0xbd   : > { %798 = vmatprep.subr.bf16.mxu0 %v8963_v48  ;;  %2781 = vmatpush1.bf16.msra.mxu1 %v8964_v47  ;;  %v1721_v53 = vpack.c.bf16 %v1657_v23, %v1657_v23  ;;  %v1729_v59 = vpack.c.bf16 %v1665_v18, %v1665_v18  ;;  %v1737_v4 = vpack.c.bf16 %v1673_v32, %v1673_v32  ;;  %v8966_v28 = vunpack.c.l.s8.bf16 %v6782_v22 }
  0xbe   : > { %2782 = vmatprep.subr.bf16.mxu1 %v8965_v6  ;;  %v1745_v3 = vpack.c.bf16 %v1681_v1, %v1681_v1  ;;  %v2585_v36 = vunpack.c.l.b16 %v1689_v13  ;;  %v2593_v60 = vunpack.c.l.b16 %v1697_v40  ;;  %v2601_v33 = vunpack.c.l.b16 %v1705_v45 }
  0xbf   : > { %v2609_v14 = vunpack.c.l.b16 %v1713_v20  ;;  %v8967_v50 = vunpack.c.h.s8.bf16 %v6767_v8  ;;  %v2254_v34 = vunpack.c.h.s8.bf16 %v6843_v26  ;;  %v2617_v41 = vunpack.c.l.b16 %v1721_v53 }
  0xc0   : > { %799 = vmatpush1.bf16.msra.mxu0 %v8966_v28  ;;  %v2625_v0 = vunpack.c.l.b16 %v1729_v59  ;;  %v2633_v55 = vunpack.c.l.b16 %v1737_v4  ;;  %v8968_v46 = vunpack.c.l.s8.bf16 %v6758_v30  ;;  %v2641_v25 = vunpack.c.l.b16 %v1745_v3 }
  0xc1   : > { %800 = vmatprep.subr.bf16.mxu0 %v8967_v50  ;;  %v2674_v51 = vsel %vm2646_vm0, %v2593_v60, %v2585_v36  ;;  %v1048_v17 = vunpack.c.l.bf16 %v6846_v49  ;;  %v1056_v24 = vunpack.c.l.bf16 %v6855_v7  ;;  %v8969_v43 = vunpack.c.h.s8.bf16 %v6748_v9  ;;  %v8980_v50 = vld [vmem:[#allocation21_spill] sm:$0xff] }
  0xc2   : > { %2783 = vmatpush1.bf16.msra.mxu1 %v8968_v46  ;;  %v2675_v8 = vsel %vm2648_vm1, %v2601_v33, %v2674_v51  ;;  %v1064_v39 = vunpack.c.l.bf16 %v6858_v16  ;;  %v1072_v15 = vunpack.c.l.bf16 %v6861_v58  ;;  %v1080_v5 = vunpack.c.l.bf16 %v6870_v10 }
  0xc3   : > { %2784 = vmatprep.subr.bf16.mxu1 %v8969_v43  ;;  %v8970_v37 = vunpack.c.h.s8.bf16 %v6782_v22  ;;  %v2676_v57 = vsel %vm2650_vm2, %v2609_v14, %v2675_v8  ;;  %v1088_v49 = vunpack.c.l.bf16 %v6873_v21  ;;  %v1096_v7 = vunpack.c.l.bf16 %v6876_v19 }
  0xc4   : > { %v1104_v9 = vunpack.c.l.bf16 %v6885_v42  ;;  %v8971_v27 = vunpack.c.l.s8.bf16 %v6796_v2  ;;  %v2677_v16 = vsel %vm2652_vm3, %v2617_v41, %v2676_v57  ;;  %v1112_v58 = vunpack.c.l.bf16 %v6888_v44  ;;  %v8985_v57 = vld [vmem:[#allocation25_spill] sm:$0xff] }
  0xc5   : > { %801 = vmatpush1.bf16.msra.mxu0 %v8970_v37  ;;  %v1120_v10 = vunpack.c.l.bf16 %v6891_v12  ;;  %v1128_v22 = vunpack.c.l.bf16 %v6901_v52  ;;  %v8972_v31 = vunpack.c.h.s8.bf16 %v6758_v30  ;;  %v2678_v21 = vsel %vm2654_vm4, %v2625_v0, %v2677_v16 }
  0xc6   : > { %802 = vmatprep.subr.bf16.mxu0 %v8971_v27  ;;  %v1136_v19 = vunpack.c.l.bf16 %v6904_v56  ;;  %v1144_v42 = vunpack.c.l.bf16 %v6907_v63  ;;  %v1152_v38 = vunpack.c.l.bf16 %v6912_v61  ;;  %v8973_v35 = vunpack.c.l.s8.bf16 %v6777_v11 }
  0xc7   : > { %2785 = vmatpush1.bf16.msra.mxu1 %v8972_v31  ;;  %v2679_v44 = vsel %vm2656_vm5, %v2633_v55, %v2678_v21  ;;  %v1160_v12 = vunpack.c.l.bf16 %v6915_v29  ;;  %v1168_v52 = vunpack.c.l.bf16 %v6918_v54  ;;  %v1188_v48 = vadd.f32 %v1056_v24, %v1048_v17  ;;  %v8976_v29 = vld [vmem:[#allocation18_spill] sm:$0xff] }
  0xc8   : > { %2786 = vmatprep.subr.bf16.mxu1 %v8973_v35  ;;  %v8974_v30 = vunpack.c.l.s8.bf16 %v6810_v62  ;;  %v2680_v23 = vsel %vm2658_vm6, %v2641_v25, %v2679_v44  ;;  %v1244_v56 = vadd.f32 %v1072_v15, %v1064_v39  ;;  %v1300_v18 = vadd.f32 %v1088_v49, %v1080_v5 }
  0xc9   : > { %v1356_v63 = vadd.f32 %v1104_v9, %v1096_v7  ;;  %v8975_v61 = vunpack.c.h.s8.bf16 %v6796_v2  ;;  %v7022_v32 = vpack.c.b16 %v2680_v23, %v2680_v23  ;;  %v1189_v1 = vrot.slane %v1188_v48, 4 }
  0xca   : > { %803 = vmatpush1.bf16.msra.mxu0 %v8974_v30  ;;  %v1412_v47 = vadd.f32 %v1120_v10, %v1112_v58  ;;  %v1468_v13 = vadd.f32 %v1136_v19, %v1128_v22  ;;  %v8977_v40 = vunpack.c.l.s8.bf16 %v8976_v29  ;;  %v1245_v54 = vrot.slane %v1244_v56, 4  ;;  %v8988_v19 = vld [vmem:[#allocation20_spill] sm:$0xff] }
  0xcb   : > { %804 = vmatprep.subr.bf16.mxu0 %v8975_v61  ;;  %v1301_v45 = vrot.slane %v1300_v18, 4  ;;  %v1357_v20 = vrot.slane %v1356_v63, 4  ;;  %v1524_v6 = vadd.f32 %v1152_v38, %v1144_v42  ;;  %v8978_v53 = vunpack.c.h.s8.bf16 %v6777_v11  ;;  %2798 = vmatprep.mubr.bf16.mxu1 %v7022_v32 }
  0xcc   : > { %2787 = vmatpush1.bf16.msra.mxu1 %v8977_v40  ;;  %v1190_v59 = vadd.f32 %v1189_v1, %v1188_v48  ;;  %v1413_v2 = vrot.slane %v1412_v47, 4  ;;  %v1469_v4 = vrot.slane %v1468_v13, 4  ;;  %v1580_v3 = vadd.f32 %v1168_v52, %v1160_v12 }
  0xcd   : > { %2788 = vmatprep.subr.bf16.mxu1 %v8978_v53  ;;  %v8979_v28 = vunpack.c.h.s8.bf16 %v6810_v62  ;;  %v1246_v36 = vadd.f32 %v1245_v54, %v1244_v56  ;;  %v1302_v60 = vadd.f32 %v1301_v45, %v1300_v18  ;;  %v1358_v33 = vadd.f32 %v1357_v20, %v1356_v63  ;;  %v8983_v62 = vld [vmem:[#allocation19_spill] sm:$0xff] }
  0xce   : > { %v1525_v14 = vrot.slane %v1524_v6, 4  ;;  %v8981_v41 = vunpack.c.l.s8.bf16 %v8980_v50  ;;  %v1191_v0 = vrot.slane %v1190_v59, 2  ;;  %v1414_v55 = vadd.f32 %v1413_v2, %v1412_v47  ;;  %v8993_v2 = vld [vmem:[#allocation22_spill] sm:$0xff] }
  0xcf   : > { %805 = vmatpush1.bf16.msra.mxu0 %v8979_v28  ;;  %v1470_v11 = vadd.f32 %v1469_v4, %v1468_v13  ;;  %v1581_v46 = vrot.slane %v1580_v3, 4  ;;  %v8982_v25 = vunpack.c.h.s8.bf16 %v8976_v29  ;;  %v1247_v51 = vrot.slane %v1246_v36, 2 }
  0xd0   : > { %806 = vmatprep.subr.bf16.mxu0 %v8981_v41  ;;  %v1303_v17 = vrot.slane %v1302_v60, 2  ;;  %v1359_v24 = vrot.slane %v1358_v33, 2  ;;  %v1526_v43 = vadd.f32 %v1525_v14, %v1524_v6  ;;  %v8984_v8 = vunpack.c.l.s8.bf16 %v8983_v62 }
  0xd1   : > { %2789 = vmatpush1.bf16.msra.mxu1 %v8982_v25  ;;  %v1192_v39 = vadd.f32 %v1191_v0, %v1190_v59  ;;  %v1415_v15 = vrot.slane %v1414_v55, 2  ;;  %v1471_v5 = vrot.slane %v1470_v11, 2  ;;  %v1582_v37 = vadd.f32 %v1581_v46, %v1580_v3  ;;  %v8995_v3 = vld [vmem:[#allocation23_spill] sm:$0xff] }
  0xd2   : > { %2790 = vmatprep.subr.bf16.mxu1 %v8984_v8  ;;  %v8986_v49 = vunpack.c.l.s8.bf16 %v8985_v57  ;;  %v1248_v7 = vadd.f32 %v1247_v51, %v1246_v36  ;;  %v1304_v9 = vadd.f32 %v1303_v17, %v1302_v60  ;;  %v1360_v27 = vadd.f32 %v1359_v24, %v1358_v33 }
  0xd3   : > { %v1527_v16 = vrot.slane %v1526_v43, 2  ;;  %v8987_v58 = vunpack.c.h.s8.bf16 %v8980_v50  ;;  %v1193_v10 = vrot.slane %v1192_v39, 1  ;;  %v1416_v22 = vadd.f32 %v1415_v15, %v1414_v55  ;;  %v7057_v50 = vld [vmem:[%s8802_s8 + $0x408] sm:$0xff]  ;;  %v7064_v15 = vld [vmem:[%s8802_s8 + $0x400] sm:$0xff] }
  0xd4   : > { %807 = vmatpush1.bf16.msra.mxu0 %v8986_v49  ;;  %v1472_v31 = vadd.f32 %v1471_v5, %v1470_v11  ;;  %v1583_v21 = vrot.slane %v1582_v37, 2  ;;  %v8989_v42 = vunpack.c.l.s8.bf16 %v8988_v19  ;;  %v1249_v38 = vrot.slane %v1248_v7, 1 }
  0xd5   : > { %808 = vmatprep.subr.bf16.mxu0 %v8987_v58  ;;  %v1305_v35 = vrot.slane %v1304_v9, 1  ;;  %v1361_v44 = vrot.slane %v1360_v27, 1  ;;  %v1528_v12 = vadd.f32 %v1527_v16, %v1526_v43  ;;  %v8990_v52 = vunpack.c.h.s8.bf16 %v8983_v62  ;;  %v7078_v16 = vld [vmem:[%s8802_s8 + $0x440] sm:$0xff] }
  0xd6   : > { %2791 = vmatpush1.bf16.msra.mxu1 %v8989_v42  ;;  %v1194_v48 = vadd.f32 %v1193_v10, %v1192_v39  ;;  %v1417_v30 = vrot.slane %v1416_v22, 1  ;;  %v1473_v23 = vrot.slane %v1472_v31, 1  ;;  %v1584_v56 = vadd.f32 %v1583_v21, %v1582_v37  ;;  %v7090_v21 = vld [vmem:[%s8802_s8 + $0x480] sm:$0xff] }
  0xd7   : > { %2792 = vmatprep.subr.bf16.mxu1 %v8990_v52  ;;  %v8991_v18 = vunpack.c.h.s8.bf16 %v8985_v57  ;;  %v1250_v63 = vadd.f32 %v1249_v38, %v1248_v7  ;;  %v1306_v61 = vadd.f32 %v1305_v35, %v1304_v9  ;;  %v1362_v1 = vadd.f32 %v1361_v44, %v1360_v27  ;;  %v7073_v27 = vld [vmem:[%s8802_s8 + $0x448] sm:$0xff] }
  0xd8   : > { %v1529_v47 = vrot.slane %v1528_v12, 1  ;;  %v1418_v13 = vadd.f32 %v1417_v30, %v1416_v22  ;;  %v1474_v29 = vadd.f32 %v1473_v23, %v1472_v31  ;;  %v1585_v40 = vrot.slane %v1584_v56, 1  ;;  %v7085_v31 = vld [vmem:[%s8802_s8 + $0x488] sm:$0xff] }
  0xd9   : > { %809 = vmatpush1.bf16.msra.mxu0 %v8991_v18  ;;  %v1624_v54 = vmul.f32 0.0625, %v1194_v48  ;;  %v8992_v45 = vunpack.c.h.s8.bf16 %v8988_v19  ;;  %v1632_v6 = vmul.f32 0.0625, %v1250_v63  ;;  %v1640_v53 = vmul.f32 0.0625, %v1306_v61  ;;  %v7100_v44 = vld [vmem:[%s8802_s8 + $0x4c8] sm:$0xff]  ;;  %v7109_v48 = vld [vmem:[%s8802_s8 + $0x4c0] sm:$0xff] }
  0xda   : > { %v1530_v20 = vadd.f32 %v1529_v47, %v1528_v12  ;;  %v1648_v59 = vmul.f32 0.0625, %v1362_v1  ;;  %v8994_v4 = vunpack.c.l.s8.bf16 %v8993_v2  ;;  %v8996_v28 = vcombine.low %v8995_v3, %v8995_v3  ;;  %v7118_v63 = vld [vmem:[%s8802_s8 + $0x508] sm:$0xff]  ;;  %v7123_v61 = vld [vmem:[%s8802_s8 + $0x500] sm:$0xff] }
  0xdb   : > { %2793 = vmatpush1.bf16.msra.mxu1 %v8992_v45  ;;  %v1586_v36 = vadd.f32 %v1585_v40, %v1584_v56  ;;  %v1656_v60 = vmul.f32 0.0625, %v1418_v13  ;;  %v1664_v33 = vmul.f32 0.0625, %v1474_v29  ;;  %v1688_v14 = vpack.c.bf16 %v1624_v54, %v1624_v54  ;;  %v7132_v40 = vld [vmem:[%s8802_s8 + $0x548] sm:$0xff]  ;;  %v7137_v54 = vld [vmem:[%s8802_s8 + $0x540] sm:$0xff]  ;;  %v7140_v45 = vld [vmem:[%s6362_s29 + $0x10] sm:$0xff] }
  0xdc   : > { %2794 = vmatprep.subr.bf16.mxu1 %v8994_v4  ;;  %811 = vmatmul.mubr.bf16.vlgmr.msra.gmra.mrb[0].mxu0 %v8996_v28  ;;  %v1672_v41 = vmul.f32 0.0625, %v1530_v20  ;;  %v1696_v0 = vpack.c.bf16 %v1632_v6, %v1632_v6  ;;  %v1704_v55 = vpack.c.bf16 %v1640_v53, %v1640_v53  ;;  %v1712_v11 = vpack.c.bf16 %v1648_v59, %v1648_v59  ;;  %v7143_v20 = vld [vmem:[%s6362_s29 + $0x30] sm:$0xff]  ;;  %v7155_v3 = vld [vmem:[%s8802_s8 + $0x588] sm:$0xff]  ;;  %v7160_v28 = vld [vmem:[%s8802_s8 + $0x580] sm:$0xff] }
  0xdd   : > { %v1680_v46 = vmul.f32 0.0625, %v1586_v36  ;;  %v1720_v25 = vpack.c.bf16 %v1656_v60, %v1656_v60  ;;  %v1728_v51 = vpack.c.bf16 %v1664_v33, %v1664_v33  ;;  %v2584_v17 = vunpack.c.l.b16 %v1688_v14  ;;  %v7146_v6 = vld [vmem:[%s6362_s29 + $0x50] sm:$0xff] }
  0xde   : > { %v8997_v24 = vunpack.c.l.s8.bf16 %v6843_v26  ;;  %v1736_v43 = vpack.c.bf16 %v1672_v41, %v1672_v41  ;;  %v2592_v62 = vunpack.c.l.b16 %v1696_v0  ;;  %v2600_v8 = vunpack.c.l.b16 %v1704_v55  ;;  %v7163_v36 = vld [vmem:[%s6362_s29 + $0x70] sm:$0xff] }
  0xdf   : > { %v2608_v39 = vunpack.c.l.b16 %v1712_v11  ;;  %v8998_v5 = vunpack.c.h.s8.bf16 %v8993_v2  ;;  %v2263_v37 = vunpack.c.l.s8.bf16 %v7057_v50  ;;  %v1744_v57 = vpack.c.bf16 %v1680_v46, %v1680_v46  ;;  %v7171_v41 = vld [vmem:[%s6362_s29 + $0x90] sm:$0xff] }
  0xe0   : > { %2795 = vmatpush1.bf16.msra.mxu1 %v8997_v24  ;;  %v2616_v49 = vunpack.c.l.b16 %v1720_v25  ;;  %v2624_v7 = vunpack.c.l.b16 %v1728_v51  ;;  %v2667_v9 = vsel %vm2646_vm0, %v2592_v62, %v2584_v17  ;;  %v2632_v58 = vunpack.c.l.b16 %v1736_v43  ;;  %v7174_v0 = vld [vmem:[%s6362_s29 + $0xb0] sm:$0xff] }
  0xe1   : > { %2796 = vmatprep.subr.bf16.mxu1 %v8998_v5  ;;  %v2668_v10 = vsel %vm2648_vm1, %v2600_v8, %v2667_v9  ;;  %v2262_v22 = vunpack.c.l.s8.bf16 %v7064_v15  ;;  %v2640_v19 = vunpack.c.l.b16 %v1744_v57  ;;  %v2271_v38 = vunpack.c.h.s8.bf16 %v7057_v50  ;;  %v7177_v55 = vld [vmem:[%s6362_s29 + $0xd0] sm:$0xff] }
  0xe2   : > { %v2669_v42 = vsel %vm2650_vm2, %v2608_v39, %v2668_v10  ;;  %v2270_v35 = vunpack.c.h.s8.bf16 %v7064_v15  ;;  %v2279_v52 = vunpack.c.l.s8.bf16 %v7073_v27  ;;  %v7184_v17 = vld [vmem:[%s6362_s29 + $0xf0] sm:$0xff]  ;;  %v1051_v10 = vunpack.c.h.bf16 %v7140_v45 }
  0xe3   : > { %v2670_v12 = vsel %vm2652_vm3, %v2616_v49, %v2669_v42  ;;  %v7187_v24 = vld [vmem:[%s6362_s29 + $0x110] sm:$0xff]  ;;  %v1067_v42 = vunpack.c.h.bf16 %v7146_v6 }
  0xe4   : > { %2797 = vmatpush1.bf16.msra.mxu1 %v2254_v34  ;;  %v2671_v30 = vsel %vm2654_vm4, %v2624_v7, %v2670_v12  ;;  %v7190_v43 = vld [vmem:[%s6362_s29 + $0x130] sm:$0xff]  ;;  %v1075_v12 = vunpack.c.h.bf16 %v7163_v36  ;;  %v1115_v5 = vunpack.c.h.bf16 %v7187_v24 }
  0xe5   : > { %2807 = vmatprep.subr.bf16.mxu1 %v2263_v37  ;;  %v2672_v1 = vsel %vm2656_vm5, %v2632_v58, %v2671_v30  ;;  %v7198_v37 = vld [vmem:[%s6362_s29 + $0x150] sm:$0xff]  ;;  %v1083_v30 = vunpack.c.h.bf16 %v7171_v41  ;;  %v1123_v39 = vunpack.c.h.bf16 %v7190_v43 }
  0xe6   : > { %v2673_v53 = vsel %vm2658_vm6, %v2640_v19, %v2672_v1  ;;  %v7201_v57 = vld [vmem:[%s6362_s29 + $0x170] sm:$0xff]  ;;  %v1059_v19 = vunpack.c.h.bf16 %v7143_v20  ;;  %v1091_v1 = vunpack.c.h.bf16 %v7174_v0  ;;  %v1131_v8 = vunpack.c.h.bf16 %v7198_v37 }
  0xe7   : > { %v7165_v60 = vpack.c.b16 %v2673_v53, %v2673_v53  ;;  %v7204_v49 = vld [vmem:[%s6362_s29 + $0x190] sm:$0xff]  ;;  %v1107_v53 = vunpack.c.h.bf16 %v7184_v17  ;;  %v1139_v62 = vunpack.c.h.bf16 %v7201_v57  ;;  %v1265_v50 = vadd.f32 %v1075_v12, %v1067_v42 }
  0xe8   : > { %v7207_v7 = vld [vmem:[%s6362_s29 + $0x1b0] sm:$0xff]  ;;  %v1147_v51 = vunpack.c.h.bf16 %v7204_v49  ;;  %v1209_v11 = vadd.f32 %v1059_v19, %v1051_v10  ;;  %v1321_v14 = vadd.f32 %v1091_v1, %v1083_v30  ;;  %v1433_v4 = vadd.f32 %v1123_v39, %v1115_v5 }
  0xe9   : > { %2799 = vmatmul.mubr.bf16.vlgmr.msra.gmra.mrb[0].mxu1 %v7165_v60  ;;  %v7210_v9 = vld [vmem:[%s6362_s29 + $0x1d0] sm:$0xff]  ;;  %v1489_v2 = vadd.f32 %v1139_v62, %v1131_v8  ;;  %v1266_v47 = vrot.slane %v1265_v50, 4 }
  0xea   : > { %2808 = vmatpush1.bf16.msra.mxu1 %v2262_v22  ;;  %v7213_v58 = vld [vmem:[%s6362_s29 + $0x1f0] sm:$0xff]  ;;  %v1099_v22 = vunpack.c.h.bf16 %v7177_v55  ;;  %v1163_v25 = vunpack.c.h.bf16 %v7210_v9  ;;  %v1210_v13 = vrot.slane %v1209_v11, 4  ;;  %v1322_v18 = vrot.slane %v1321_v14, 4 }
  0xeb   : > { %2809 = vmatprep.subr.bf16.mxu1 %v2271_v38  ;;  %v1155_v38 = vunpack.c.h.bf16 %v7207_v7  ;;  %v1171_v46 = vunpack.c.h.bf16 %v7213_v58  ;;  %v1434_v23 = vrot.slane %v1433_v4, 4  ;;  %v1490_v34 = vrot.slane %v1489_v2, 4 }
  0xec   : > { %v1377_v33 = vadd.f32 %v1107_v53, %v1099_v22  ;;  %v1211_v10 = vadd.f32 %v1210_v13, %v1209_v11  ;;  %v1267_v19 = vadd.f32 %v1266_v47, %v1265_v50  ;;  %v1323_v42 = vadd.f32 %v1322_v18, %v1321_v14 }
  0xed   : > { %v1545_v59 = vadd.f32 %v1155_v38, %v1147_v51  ;;  %v1601_v29 = vadd.f32 %v1171_v46, %v1163_v25  ;;  %v1435_v51 = vadd.f32 %v1434_v23, %v1433_v4  ;;  %v1491_v46 = vadd.f32 %v1490_v34, %v1489_v2 }
  0xee   : > { %2810 = vmatpush1.bf16.msra.mxu1 %v2270_v35  ;;  %v1378_v56 = vrot.slane %v1377_v33, 4  ;;  %v8999_v35 = vunpack.c.l.s8.bf16 %v7078_v16  ;;  %v1212_v8 = vrot.slane %v1211_v10, 2  ;;  %v1268_v39 = vrot.slane %v1267_v19, 2 }
  0xef   : > { %2811 = vmatprep.subr.bf16.mxu1 %v2279_v52  ;;  %v1546_v26 = vrot.slane %v1545_v59, 4  ;;  %v1602_v15 = vrot.slane %v1601_v29, 4  ;;  %v9000_v52 = vunpack.c.h.s8.bf16 %v7073_v27  ;;  %v1324_v5 = vrot.slane %v1323_v42, 2 }
  0xf0   : > { %v1379_v12 = vadd.f32 %v1378_v56, %v1377_v33  ;;  %v1436_v1 = vrot.slane %v1435_v51, 2  ;;  %v1492_v22 = vrot.slane %v1491_v46, 2  ;;  %v9001_v13 = vunpack.c.h.s8.bf16 %v7078_v16 }
  0xf1   : > { %v1547_v25 = vadd.f32 %v1546_v26, %v1545_v59  ;;  %v1603_v62 = vadd.f32 %v1602_v15, %v1601_v29  ;;  %v1213_v18 = vadd.f32 %v1212_v8, %v1211_v10  ;;  %v1269_v56 = vadd.f32 %v1268_v39, %v1267_v19 }
  0xf2   : > { %2812 = vmatpush1.bf16.msra.mxu1 %v8999_v35  ;;  %v1380_v30 = vrot.slane %v1379_v12, 2  ;;  %v1325_v47 = vadd.f32 %v1324_v5, %v1323_v42  ;;  %v9002_v23 = vunpack.c.l.s8.bf16 %v7085_v31  ;;  %v1437_v26 = vadd.f32 %v1436_v1, %v1435_v51 }
  0xf3   : > { %2813 = vmatprep.subr.bf16.mxu1 %v9000_v52  ;;  %v1548_v53 = vrot.slane %v1547_v25, 2  ;;  %v1604_v38 = vrot.slane %v1603_v62, 2  ;;  %v1493_v34 = vadd.f32 %v1492_v22, %v1491_v46  ;;  %v1214_v2 = vrot.slane %v1213_v18, 1 }
  0xf4   : > { %v1381_v27 = vadd.f32 %v1380_v30, %v1379_v12  ;;  %v1270_v4 = vrot.slane %v1269_v56, 1  ;;  %v1326_v33 = vrot.slane %v1325_v47, 1  ;;  %v1438_v50 = vrot.slane %v1437_v26, 1 }
  0xf5   : > { %v1549_v29 = vadd.f32 %v1548_v53, %v1547_v25  ;;  %v1605_v59 = vadd.f32 %v1604_v38, %v1603_v62  ;;  %v1494_v11 = vrot.slane %v1493_v34, 1  ;;  %v9003_v35 = vunpack.c.l.s8.bf16 %v7090_v21 }
  0xf6   : > { %2814 = vmatpush1.bf16.msra.mxu1 %v9001_v13  ;;  %v1382_v14 = vrot.slane %v1381_v27, 1  ;;  %v1215_v10 = vadd.f32 %v1214_v2, %v1213_v18  ;;  %v1271_v19 = vadd.f32 %v1270_v4, %v1269_v56  ;;  %v1327_v42 = vadd.f32 %v1326_v33, %v1325_v47 }
  0xf7   : > { %2815 = vmatprep.subr.bf16.mxu1 %v9002_v23  ;;  %v1550_v15 = vrot.slane %v1549_v29, 1  ;;  %v1606_v16 = vrot.slane %v1605_v59, 1  ;;  %v9004_v52 = vunpack.c.h.s8.bf16 %v7085_v31  ;;  %v1439_v51 = vadd.f32 %v1438_v50, %v1437_v26 }
  0xf8   : > { %v1383_v12 = vadd.f32 %v1382_v14, %v1381_v27  ;;  %v1495_v46 = vadd.f32 %v1494_v11, %v1493_v34  ;;  %v1627_v8 = vmul.f32 0.0625, %v1215_v10  ;;  %v1635_v39 = vmul.f32 0.0625, %v1271_v19 }
  0xf9   : > { %v1551_v25 = vadd.f32 %v1550_v15, %v1549_v29  ;;  %v1607_v62 = vadd.f32 %v1606_v16, %v1605_v59  ;;  %v1643_v5 = vmul.f32 0.0625, %v1327_v42  ;;  %v1659_v1 = vmul.f32 0.0625, %v1439_v51 }
  0xfa   : > { %2816 = vmatpush1.bf16.msra.mxu1 %v9003_v35  ;;  %v1651_v30 = vmul.f32 0.0625, %v1383_v12  ;;  %v1667_v22 = vmul.f32 0.0625, %v1495_v46  ;;  %v9005_v13 = vunpack.c.h.s8.bf16 %v7090_v21  ;;  %v1691_v18 = vpack.c.bf16 %v1627_v8, %v1627_v8 }
  0xfb   : > { %2817 = vmatprep.subr.bf16.mxu1 %v9004_v52  ;;  %v1675_v53 = vmul.f32 0.0625, %v1551_v25  ;;  %v1683_v38 = vmul.f32 0.0625, %v1607_v62  ;;  %v1699_v56 = vpack.c.bf16 %v1635_v39, %v1635_v39  ;;  %v1707_v47 = vpack.c.bf16 %v1643_v5, %v1643_v5 }
  0xfc   : > { %v1715_v31 = vpack.c.bf16 %v1651_v30, %v1651_v30  ;;  %v9006_v27 = vunpack.c.l.s8.bf16 %v7100_v44  ;;  %v1723_v23 = vpack.c.bf16 %v1659_v1, %v1659_v1  ;;  %v1731_v26 = vpack.c.bf16 %v1667_v22, %v1667_v22 }
  0xfd   : > { %v1739_v34 = vpack.c.bf16 %v1675_v53, %v1675_v53  ;;  %v1747_v29 = vpack.c.bf16 %v1683_v38, %v1683_v38  ;;  %v2587_v59 = vunpack.c.l.b16 %v1691_v18  ;;  %v2595_v2 = vunpack.c.l.b16 %v1699_v56 }
  0xfe   : > { %2818 = vmatpush1.bf16.msra.mxu1 %v9005_v13  ;;  %v2603_v4 = vunpack.c.l.b16 %v1707_v47  ;;  %v2611_v33 = vunpack.c.l.b16 %v1715_v31  ;;  %v2366_v14 = vunpack.c.h.s8.bf16 %v7160_v28  ;;  %v2619_v50 = vunpack.c.l.b16 %v1723_v23 }
  0xff   : > { %2819 = vmatprep.subr.bf16.mxu1 %v9006_v27  ;;  %v2627_v21 = vunpack.c.l.b16 %v1731_v26  ;;  %v2635_v11 = vunpack.c.l.b16 %v1739_v34  ;;  %v9007_v15 = vunpack.c.l.s8.bf16 %v7109_v48  ;;  %v2643_v16 = vunpack.c.l.b16 %v1747_v29 }
 0x100   : > { %v2688_v35 = vsel %vm2646_vm0, %v2595_v2, %v2587_v59  ;;  %v1050_v10 = vunpack.c.l.bf16 %v7140_v45  ;;  %v1058_v19 = vunpack.c.l.bf16 %v7143_v20  ;;  %v9008_v42 = vunpack.c.h.s8.bf16 %v7100_v44 }
 0x101   : > { %v2689_v12 = vsel %vm2648_vm1, %v2603_v4, %v2688_v35  ;;  %v1066_v52 = vunpack.c.l.bf16 %v7146_v6  ;;  %v1074_v51 = vunpack.c.l.bf16 %v7163_v36  ;;  %v1082_v46 = vunpack.c.l.bf16 %v7171_v41 }
 0x102   : > { %2820 = vmatpush1.bf16.msra.mxu1 %v9007_v15  ;;  %v2690_v25 = vsel %vm2650_vm2, %v2611_v33, %v2689_v12  ;;  %v1090_v62 = vunpack.c.l.bf16 %v7174_v0  ;;  %v1098_v8 = vunpack.c.l.bf16 %v7177_v55  ;;  %v1106_v45 = vunpack.c.l.bf16 %v7184_v17 }
 0x103   : > { %2821 = vmatprep.subr.bf16.mxu1 %v9008_v42  ;;  %v2691_v20 = vsel %vm2652_vm3, %v2619_v50, %v2690_v25  ;;  %v1114_v44 = vunpack.c.l.bf16 %v7187_v24  ;;  %v1122_v39 = vunpack.c.l.bf16 %v7190_v43  ;;  %v1130_v6 = vunpack.c.l.bf16 %v7198_v37 }
 0x104   : > { %v9009_v36 = vunpack.c.h.s8.bf16 %v7109_v48  ;;  %v2692_v41 = vsel %vm2654_vm4, %v2627_v21, %v2691_v20  ;;  %v1138_v5 = vunpack.c.l.bf16 %v7201_v57  ;;  %v1146_v0 = vunpack.c.l.bf16 %v7204_v49 }
 0x105   : > { %v1154_v55 = vunpack.c.l.bf16 %v7207_v7  ;;  %v9010_v17 = vunpack.c.l.s8.bf16 %v7118_v63  ;;  %v2693_v24 = vsel %vm2656_vm5, %v2635_v11, %v2692_v41  ;;  %v1162_v43 = vunpack.c.l.bf16 %v7210_v9 }
 0x106   : > { %2822 = vmatpush1.bf16.msra.mxu1 %v9009_v36  ;;  %v1170_v37 = vunpack.c.l.bf16 %v7213_v58  ;;  %v1202_v30 = vadd.f32 %v1058_v19, %v1050_v10  ;;  %v2694_v48 = vsel %vm2658_vm6, %v2643_v16, %v2693_v24  ;;  %v1258_v1 = vadd.f32 %v1074_v51, %v1066_v52 }
 0x107   : > { %2823 = vmatprep.subr.bf16.mxu1 %v9010_v17  ;;  %v1314_v22 = vadd.f32 %v1090_v62, %v1082_v46  ;;  %v1370_v53 = vadd.f32 %v1106_v45, %v1098_v8  ;;  %v7283_v57 = vpack.c.b16 %v2694_v48, %v2694_v48  ;;  %v1426_v38 = vadd.f32 %v1122_v39, %v1114_v44 }
 0x108   : > { %v1203_v49 = vrot.slane %v1202_v30, 4  ;;  %v1482_v7 = vadd.f32 %v1138_v5, %v1130_v6  ;;  %v9012_v13 = vunpack.c.l.s8.bf16 %v7123_v61  ;;  %v1259_v18 = vrot.slane %v1258_v1, 4 }
 0x109   : > { %9011 = vst [vmem:[#allocation18_spill] sm:$0xff] %v7283_v57  ;;  %v1315_v56 = vrot.slane %v1314_v22, 4  ;;  %v1371_v47 = vrot.slane %v1370_v53, 4  ;;  %v1538_v9 = vadd.f32 %v1154_v55, %v1146_v0  ;;  %v9013_v58 = vunpack.c.h.s8.bf16 %v7118_v63  ;;  %2839 = vmatprep.mubr.bf16.mxu1 %v7283_v57 }
 0x10a   : > { %2824 = vmatpush1.bf16.msra.mxu1 %v9012_v13  ;;  %v1204_v31 = vadd.f32 %v1203_v49, %v1202_v30  ;;  %v1427_v27 = vrot.slane %v1426_v38, 4  ;;  %v1483_v23 = vrot.slane %v1482_v7, 4  ;;  %v1594_v26 = vadd.f32 %v1170_v37, %v1162_v43 }
 0x10b   : > { %2825 = vmatprep.subr.bf16.mxu1 %v9013_v58  ;;  %v1260_v34 = vadd.f32 %v1259_v18, %v1258_v1  ;;  %v1316_v29 = vadd.f32 %v1315_v56, %v1314_v22  ;;  %v1372_v59 = vadd.f32 %v1371_v47, %v1370_v53  ;;  %v1539_v2 = vrot.slane %v1538_v9, 4 }
 0x10c   : > { %v1205_v4 = vrot.slane %v1204_v31, 2  ;;  %v1428_v33 = vadd.f32 %v1427_v27, %v1426_v38  ;;  %v1484_v50 = vadd.f32 %v1483_v23, %v1482_v7  ;;  %v1595_v21 = vrot.slane %v1594_v26, 4  ;;  %v7305_v27 = vld [vmem:[%s8802_s8 + $0x5c8] sm:$0xff] }
 0x10d   : > { %v9014_v11 = vunpack.c.h.s8.bf16 %v7123_v61  ;;  %v1261_v15 = vrot.slane %v1260_v34, 2  ;;  %v1317_v63 = vrot.slane %v1316_v29, 2  ;;  %v1373_v16 = vrot.slane %v1372_v59, 2 }
 0x10e   : > { %v1540_v35 = vadd.f32 %v1539_v2, %v1538_v9  ;;  %v9015_v10 = vunpack.c.l.s8.bf16 %v7132_v40  ;;  %v1206_v19 = vadd.f32 %v1205_v4, %v1204_v31  ;;  %v1429_v42 = vrot.slane %v1428_v33, 2 }
 0x10f   : > { %2826 = vmatpush1.bf16.msra.mxu1 %v9014_v11  ;;  %v1485_v12 = vrot.slane %v1484_v50, 2  ;;  %v1596_v52 = vadd.f32 %v1595_v21, %v1594_v26  ;;  %v1262_v51 = vadd.f32 %v1261_v15, %v1260_v34  ;;  %v1318_v46 = vadd.f32 %v1317_v63, %v1316_v29 }
 0x110   : > { %2827 = vmatprep.subr.bf16.mxu1 %v9015_v10  ;;  %v1374_v25 = vadd.f32 %v1373_v16, %v1372_v59  ;;  %v1541_v62 = vrot.slane %v1540_v35, 2  ;;  %v1207_v8 = vrot.slane %v1206_v19, 1  ;;  %v1430_v45 = vadd.f32 %v1429_v42, %v1428_v33  ;;  %v7320_v10 = vld [vmem:[%s8802_s8 + $0x608] sm:$0xff] }
 0x111   : > { %v1486_v20 = vadd.f32 %v1485_v12, %v1484_v50  ;;  %v1597_v61 = vrot.slane %v1596_v52, 2  ;;  %v9016_v44 = vunpack.c.l.s8.bf16 %v7137_v54  ;;  %v1263_v39 = vrot.slane %v1262_v51, 1  ;;  %v7312_v50 = vld [vmem:[%s8802_s8 + $0x5c0] sm:$0xff] }
 0x112   : > { %v1319_v6 = vrot.slane %v1318_v46, 1  ;;  %v1375_v36 = vrot.slane %v1374_v25, 1  ;;  %v1542_v41 = vadd.f32 %v1541_v62, %v1540_v35  ;;  %v9017_v5 = vunpack.c.h.s8.bf16 %v7132_v40 }
 0x113   : > { %2828 = vmatpush1.bf16.msra.mxu1 %v9016_v44  ;;  %v1208_v0 = vadd.f32 %v1207_v8, %v1206_v19  ;;  %v1431_v55 = vrot.slane %v1430_v45, 1  ;;  %v1487_v17 = vrot.slane %v1486_v20, 1  ;;  %v1598_v24 = vadd.f32 %v1597_v61, %v1596_v52  ;;  %v7334_v8 = vld [vmem:[%s8802_s8 + $0x648] sm:$0xff] }
 0x114   : > { %2829 = vmatprep.subr.bf16.mxu1 %v9017_v5  ;;  %v1264_v43 = vadd.f32 %v1263_v39, %v1262_v51  ;;  %v1320_v37 = vadd.f32 %v1319_v6, %v1318_v46  ;;  %v1376_v30 = vadd.f32 %v1375_v36, %v1374_v25  ;;  %v1543_v48 = vrot.slane %v1542_v41, 1  ;;  %v7326_v51 = vld [vmem:[%s8802_s8 + $0x600] sm:$0xff]  ;;  %v7349_v6 = vld [vmem:[%s8802_s8 + $0x688] sm:$0xff] }
 0x115   : > { %v1432_v1 = vadd.f32 %v1431_v55, %v1430_v45  ;;  %v1488_v22 = vadd.f32 %v1487_v17, %v1486_v20  ;;  %v1599_v53 = vrot.slane %v1598_v24, 1  ;;  %v1626_v49 = vmul.f32 0.0625, %v1208_v0  ;;  %v7339_v45 = vld [vmem:[%s8802_s8 + $0x640] sm:$0xff]  ;;  %v7363_v0 = vld [vmem:[%s8802_s8 + $0x6c8] sm:$0xff] }
 0x116   : > { %v9018_v38 = vunpack.c.h.s8.bf16 %v7137_v54  ;;  %v1544_v7 = vadd.f32 %v1543_v48, %v1542_v41  ;;  %v1634_v13 = vmul.f32 0.0625, %v1264_v43  ;;  %v1642_v18 = vmul.f32 0.0625, %v1320_v37  ;;  %v7354_v36 = vld [vmem:[%s8802_s8 + $0x680] sm:$0xff] }
 0x117   : > { %v1650_v40 = vmul.f32 0.0625, %v1376_v30  ;;  %v9019_v56 = vunpack.c.l.s8.bf16 %v7155_v3  ;;  %v1600_v47 = vadd.f32 %v1599_v53, %v1598_v24  ;;  %v1658_v9 = vmul.f32 0.0625, %v1432_v1  ;;  %v7372_v37 = vld [vmem:[%s8802_s8 + $0x6c0] sm:$0xff]  ;;  %v7377_v30 = vld [vmem:[%s8802_s8 + $0x708] sm:$0xff] }
 0x118   : > { %2830 = vmatpush1.bf16.msra.mxu1 %v9018_v38  ;;  %v1666_v58 = vmul.f32 0.0625, %v1488_v22  ;;  %v1690_v31 = vpack.c.bf16 %v1626_v49, %v1626_v49  ;;  %v1674_v23 = vmul.f32 0.0625, %v1544_v7  ;;  %v1698_v26 = vpack.c.bf16 %v1634_v13, %v1634_v13  ;;  %v7382_v48 = vld [vmem:[%s8802_s8 + $0x700] sm:$0xff]  ;;  %v7391_v38 = vld [vmem:[%s8802_s8 + $0x748] sm:$0xff]  ;;  %v7394_v7 = vld [vmem:[%s6362_s29 + $0x18] sm:$0xff] }
 0x119   : > { %2831 = vmatprep.subr.bf16.mxu1 %v9019_v56  ;;  %v1706_v54 = vpack.c.bf16 %v1642_v18, %v1642_v18  ;;  %v1714_v34 = vpack.c.bf16 %v1650_v40, %v1650_v40  ;;  %v1682_v29 = vmul.f32 0.0625, %v1600_v47  ;;  %v1722_v59 = vpack.c.bf16 %v1658_v9, %v1658_v9  ;;  %v7397_v13 = vld [vmem:[%s6362_s29 + $0x38] sm:$0xff]  ;;  %v7406_v9 = vld [vmem:[%s8802_s8 + $0x740] sm:$0xff] }
 0x11a   : > { %v1730_v2 = vpack.c.bf16 %v1666_v58, %v1666_v58  ;;  %v2586_v4 = vunpack.c.l.b16 %v1690_v31  ;;  %v9020_v33 = vunpack.c.l.s8.bf16 %v7160_v28  ;;  %v1738_v21 = vpack.c.bf16 %v1674_v23, %v1674_v23  ;;  %v7409_v58 = vld [vmem:[%s6362_s29 + $0x58] sm:$0xff] }
 0x11b   : > { %v2594_v11 = vunpack.c.l.b16 %v1698_v26  ;;  %v2602_v15 = vunpack.c.l.b16 %v1706_v54  ;;  %v2610_v63 = vunpack.c.l.b16 %v1714_v34  ;;  %v9021_v16 = vunpack.c.h.s8.bf16 %v7155_v3  ;;  %v7412_v31 = vld [vmem:[%s6362_s29 + $0x78] sm:$0xff] }
 0x11c   : > { %2832 = vmatpush1.bf16.msra.mxu1 %v9020_v33  ;;  %v2375_v35 = vunpack.c.l.s8.bf16 %v7305_v27  ;;  %v1746_v19 = vpack.c.bf16 %v1682_v29, %v1682_v29  ;;  %v2618_v42 = vunpack.c.l.b16 %v1722_v59  ;;  %v2626_v12 = vunpack.c.l.b16 %v1730_v2  ;;  %v7419_v34 = vld [vmem:[%s6362_s29 + $0x98] sm:$0xff] }
 0x11d   : > { %2833 = vmatprep.subr.bf16.mxu1 %v9021_v16  ;;  %v2681_v52 = vsel %vm2646_vm0, %v2594_v11, %v2586_v4  ;;  %v2374_v3 = vunpack.c.l.s8.bf16 %v7312_v50  ;;  %v2383_v46 = vunpack.c.h.s8.bf16 %v7305_v27  ;;  %v2634_v25 = vunpack.c.l.b16 %v1738_v21  ;;  %v7422_v29 = vld [vmem:[%s6362_s29 + $0xb8] sm:$0xff] }
 0x11e   : > { %v2682_v62 = vsel %vm2648_vm1, %v2602_v15, %v2681_v52  ;;  %v2382_v20 = vunpack.c.h.s8.bf16 %v7312_v50  ;;  %v2391_v61 = vunpack.c.l.s8.bf16 %v7320_v10  ;;  %v2642_v44 = vunpack.c.l.b16 %v1746_v19  ;;  %v7425_v59 = vld [vmem:[%s6362_s29 + $0xd8] sm:$0xff] }
 0x11f   : > { %v2683_v39 = vsel %vm2650_vm2, %v2610_v63, %v2682_v62  ;;  %v2399_v41 = vunpack.c.h.s8.bf16 %v7320_v10  ;;  %v7432_v21 = vld [vmem:[%s6362_s29 + $0xf8] sm:$0xff]  ;;  %v1053_v62 = vunpack.c.h.bf16 %v7394_v7 }
 0x120   : > { %2834 = vmatpush1.bf16.msra.mxu1 %v2366_v14  ;;  %v2684_v28 = vsel %vm2652_vm3, %v2618_v42, %v2683_v39  ;;  %v2390_v14 = vunpack.c.l.s8.bf16 %v7326_v51  ;;  %v7435_v11 = vld [vmem:[%s6362_s29 + $0x118] sm:$0xff]  ;;  %v1069_v39 = vunpack.c.h.bf16 %v7409_v58 }
 0x121   : > { %2835 = vmatprep.subr.bf16.mxu1 %v2375_v35  ;;  %v2685_v55 = vsel %vm2654_vm4, %v2626_v12, %v2684_v28  ;;  %v7438_v15 = vld [vmem:[%s6362_s29 + $0x138] sm:$0xff]  ;;  %v1077_v28 = vunpack.c.h.bf16 %v7412_v31  ;;  %v1117_v19 = vunpack.c.h.bf16 %v7435_v11 }
 0x122   : > { %v2686_v1 = vsel %vm2656_vm5, %v2634_v25, %v2685_v55  ;;  %v7446_v42 = vld [vmem:[%s6362_s29 + $0x158] sm:$0xff]  ;;  %v1085_v55 = vunpack.c.h.bf16 %v7419_v34  ;;  %v1125_v35 = vunpack.c.h.bf16 %v7438_v15 }
 0x123   : > { %v2687_v18 = vsel %vm2658_vm6, %v2642_v44, %v2686_v1  ;;  %v7449_v12 = vld [vmem:[%s6362_s29 + $0x178] sm:$0xff]  ;;  %v1061_v44 = vunpack.c.h.bf16 %v7397_v13  ;;  %v1093_v1 = vunpack.c.h.bf16 %v7422_v29  ;;  %v1133_v16 = vunpack.c.h.bf16 %v7446_v42 }
 0x124   : > { %2836 = vmatpush1.bf16.msra.mxu1 %v2374_v3  ;;  %v7440_v63 = vpack.c.b16 %v2687_v18, %v2687_v18  ;;  %v7452_v52 = vld [vmem:[%s6362_s29 + $0x198] sm:$0xff]  ;;  %v1109_v18 = vunpack.c.h.bf16 %v7432_v21  ;;  %v1141_v50 = vunpack.c.h.bf16 %v7449_v12  ;;  %v1279_v26 = vadd.f32 %v1077_v28, %v1069_v39 }
 0x125   : > { %2837 = vmatprep.subr.bf16.mxu1 %v2383_v46  ;;  %v7455_v3 = vld [vmem:[%s6362_s29 + $0x1b8] sm:$0xff]  ;;  %v1223_v54 = vadd.f32 %v1061_v44, %v1053_v62  ;;  %v1335_v23 = vadd.f32 %v1093_v1, %v1085_v55  ;;  %v1447_v47 = vadd.f32 %v1125_v35, %v1117_v19 }
 0x126   : > { %9022 = vst [vmem:[#allocation21_spill] sm:$0xff] %v7440_v63  ;;  %v7458_v46 = vld [vmem:[%s6362_s29 + $0x1d8] sm:$0xff]  ;;  %v1157_v33 = vunpack.c.h.bf16 %v7455_v3  ;;  %v1503_v56 = vadd.f32 %v1141_v50, %v1133_v16  ;;  %v1280_v22 = vrot.slane %v1279_v26, 4 }
 0x127   : > { %v7461_v25 = vld [vmem:[%s6362_s29 + $0x1f8] sm:$0xff]  ;;  %v1165_v4 = vunpack.c.h.bf16 %v7458_v46  ;;  %v1224_v53 = vrot.slane %v1223_v54, 4  ;;  %v1336_v43 = vrot.slane %v1335_v23, 4  ;;  %v1448_v17 = vrot.slane %v1447_v47, 4  ;;  %s5902_s29 = sshll.u32 %s6001_s11, 4  ;;  %s5903_s29 = int_to_ptr.vmem [resolvable:$false] %s5902_s29 }
 0x128   : > { %2838 = vmatpush1.bf16.msra.mxu1 %v2382_v20  ;;  %v1101_v20 = vunpack.c.h.bf16 %v7425_v59  ;;  %v1173_v2 = vunpack.c.h.bf16 %v7461_v25  ;;  %v1504_v5 = vrot.slane %v1503_v56, 4  ;;  %v1281_v44 = vadd.f32 %v1280_v22, %v1279_v26  ;;  %s5904_s15 = scalar_lea.vmem %s5903_s29, 512  ;;  %p5905_p3 = scmp.lt.s32.totalorder %s5498_s1, %s5903_s29 }
 0x129   : > { %2848 = vmatprep.subr.bf16.mxu1 %v2391_v61  ;;  %v1149_v61 = vunpack.c.h.bf16 %v7452_v52  ;;  %v1225_v62 = vadd.f32 %v1224_v53, %v1223_v54  ;;  %v1337_v39 = vadd.f32 %v1336_v43, %v1335_v23  ;;  %v9025_v53 = vunpack.c.l.s8.bf16 %v7339_v45  ;;  %p5906_p4 = scmp.lt.s32.totalorder %s5904_s15, %s5898_s20 }
 0x12a   : > { %v1391_v27 = vadd.f32 %v1109_v18, %v1101_v20  ;;  %v1615_v49 = vadd.f32 %v1173_v2, %v1165_v4  ;;  %v1505_v2 = vadd.f32 %v1504_v5, %v1503_v56  ;;  %v1282_v35 = vrot.slane %v1281_v44, 2 }
 0x12b   : > { %2840 = vmatmul.mubr.bf16.vlgmr.msra.gmra.mrb[0].mxu1 %v7440_v63  ;;  %v1559_v40 = vadd.f32 %v1157_v33, %v1149_v61  ;;  %v1449_v33 = vadd.f32 %v1448_v17, %v1447_v47  ;;  %v1226_v16 = vrot.slane %v1225_v62, 2  ;;  %v1338_v19 = vrot.slane %v1337_v39, 2  ;;  %p5907_p7 = por %p5906_p4, %p5905_p3 }
 0x12c   : > { %2849 = vmatpush1.bf16.msra.mxu1 %v2390_v14  ;;  %v1392_v24 = vrot.slane %v1391_v27, 4  ;;  %v1616_v57 = vrot.slane %v1615_v49, 4  ;;  %v9023_v14 = vunpack.c.h.s8.bf16 %v7326_v51  ;;  %v1506_v1 = vrot.slane %v1505_v2, 2 }
 0x12d   : > { %2850 = vmatprep.subr.bf16.mxu1 %v2399_v41  ;;  %v1560_v63 = vrot.slane %v1559_v40, 4  ;;  %v9024_v41 = vunpack.c.l.s8.bf16 %v7334_v8  ;;  %v1450_v55 = vrot.slane %v1449_v33, 2  ;;  %v1227_v43 = vadd.f32 %v1226_v16, %v1225_v62  ;;  %p5908_p8 = pnand %p5907_p7, %p5901_p2 }
 0x12e   : > { %v1393_v10 = vadd.f32 %v1392_v24, %v1391_v27  ;;  %v1617_v50 = vadd.f32 %v1616_v57, %v1615_v49  ;;  %v1283_v24 = vadd.f32 %v1282_v35, %v1281_v44  ;;  %v1339_v22 = vadd.f32 %v1338_v19, %v1337_v39 }
 0x12f   : > { %v1561_v4 = vadd.f32 %v1560_v63, %v1559_v40  ;;  %v9026_v17 = vunpack.c.h.s8.bf16 %v7334_v8  ;;  %v1451_v5 = vadd.f32 %v1450_v55, %v1449_v33  ;;  %v1507_v57 = vadd.f32 %v1506_v1, %v1505_v2 }
 0x130   : > { %2851 = vmatpush1.bf16.msra.mxu1 %v9023_v14  ;;  %v1394_v28 = vrot.slane %v1393_v10, 2  ;;  %v1618_v51 = vrot.slane %v1617_v50, 2  ;;  %v1228_v56 = vrot.slane %v1227_v43, 1  ;;  %v1284_v47 = vrot.slane %v1283_v24, 1 }
 0x131   : > { %2852 = vmatprep.subr.bf16.mxu1 %v9024_v41  ;;  %v1562_v20 = vrot.slane %v1561_v4, 2  ;;  %v1340_v23 = vrot.slane %v1339_v22, 1  ;;  %v1452_v54 = vrot.slane %v1451_v5, 1  ;;  %v1508_v63 = vrot.slane %v1507_v57, 1 }
 0x132   : > { %v1395_v27 = vadd.f32 %v1394_v28, %v1393_v10  ;;  %v1619_v40 = vadd.f32 %v1618_v51, %v1617_v50  ;;  %v9027_v14 = vunpack.c.h.s8.bf16 %v7339_v45  ;;  %v1229_v62 = vadd.f32 %v1228_v56, %v1227_v43  ;;  %v7501_v51 = vld [vmem:[%s8802_s8 + $0x788] sm:$0xff] }
 0x133   : > { %v1563_v49 = vadd.f32 %v1562_v20, %v1561_v4  ;;  %v1285_v44 = vadd.f32 %v1284_v47, %v1283_v24  ;;  %v1341_v39 = vadd.f32 %v1340_v23, %v1339_v22  ;;  %v9028_v10 = vunpack.c.l.s8.bf16 %v7349_v6 }
 0x134   : > { %2853 = vmatpush1.bf16.msra.mxu1 %v9025_v53  ;;  %v1396_v26 = vrot.slane %v1395_v27, 1  ;;  %v1620_v61 = vrot.slane %v1619_v40, 1  ;;  %v1453_v41 = vadd.f32 %v1452_v54, %v1451_v5  ;;  %v1509_v33 = vadd.f32 %v1508_v63, %v1507_v57 }
 0x135   : > { %2854 = vmatprep.subr.bf16.mxu1 %v9026_v17  ;;  %v1564_v18 = vrot.slane %v1563_v49, 1  ;;  %v1629_v50 = vmul.f32 0.0625, %v1229_v62  ;;  %v1637_v16 = vmul.f32 0.0625, %v1285_v44  ;;  %v1645_v35 = vmul.f32 0.0625, %v1341_v39 }
 0x136   : > { %v1397_v8 = vadd.f32 %v1396_v26, %v1395_v27  ;;  %v1621_v4 = vadd.f32 %v1620_v61, %v1619_v40  ;;  %v1661_v28 = vmul.f32 0.0625, %v1453_v41  ;;  %v1669_v55 = vmul.f32 0.0625, %v1509_v33 }
 0x137   : > { %v1565_v2 = vadd.f32 %v1564_v18, %v1563_v49  ;;  %v9029_v20 = vunpack.c.l.s8.bf16 %v7354_v36  ;;  %v1693_v53 = vpack.c.bf16 %v1629_v50, %v1629_v50  ;;  %v1701_v43 = vpack.c.bf16 %v1637_v16, %v1637_v16 }
 0x138   : > { %2855 = vmatpush1.bf16.msra.mxu1 %v9027_v14  ;;  %v1653_v19 = vmul.f32 0.0625, %v1397_v8  ;;  %v1685_v45 = vmul.f32 0.0625, %v1621_v4  ;;  %v1709_v24 = vpack.c.bf16 %v1645_v35, %v1645_v35  ;;  %v9030_v27 = vunpack.c.h.s8.bf16 %v7349_v6 }
 0x139   : > { %2856 = vmatprep.subr.bf16.mxu1 %v9028_v10  ;;  %v1677_v1 = vmul.f32 0.0625, %v1565_v2  ;;  %v1725_v17 = vpack.c.bf16 %v1661_v28, %v1661_v28  ;;  %v1733_v5 = vpack.c.bf16 %v1669_v55, %v1669_v55  ;;  %v2589_v40 = vunpack.c.l.b16 %v1693_v53 }
 0x13a   : > { %v1717_v22 = vpack.c.bf16 %v1653_v19, %v1653_v19  ;;  %v1749_v49 = vpack.c.bf16 %v1685_v45, %v1685_v45  ;;  %v2597_v56 = vunpack.c.l.b16 %v1701_v43  ;;  %v2605_v47 = vunpack.c.l.b16 %v1709_v24 }
 0x13b   : > { %v1741_v57 = vpack.c.bf16 %v1677_v1, %v1677_v1  ;;  %v2487_v26 = vunpack.c.l.s8.bf16 %v7501_v51  ;;  %v2621_v54 = vunpack.c.l.b16 %v1725_v17  ;;  %v2629_v63 = vunpack.c.l.b16 %v1733_v5 }
 0x13c   : > { %2857 = vmatpush1.bf16.msra.mxu1 %v9029_v20  ;;  %v2613_v23 = vunpack.c.l.b16 %v1717_v22  ;;  %v9031_v61 = vunpack.c.h.s8.bf16 %v7354_v36  ;;  %v2645_v14 = vunpack.c.l.b16 %v1749_v49  ;;  %v2702_v6 = vsel %vm2646_vm0, %v2597_v56, %v2589_v40 }
 0x13d   : > { %2858 = vmatprep.subr.bf16.mxu1 %v9030_v27  ;;  %v2637_v18 = vunpack.c.l.b16 %v1741_v57  ;;  %v1052_v62 = vunpack.c.l.bf16 %v7394_v7  ;;  %v1060_v44 = vunpack.c.l.bf16 %v7397_v13  ;;  %v9032_v39 = vunpack.c.l.s8.bf16 %v7363_v0 }
 0x13e   : > { %v2703_v8 = vsel %vm2648_vm1, %v2605_v47, %v2702_v6  ;;  %v1068_v10 = vunpack.c.l.bf16 %v7409_v58  ;;  %v1076_v41 = vunpack.c.l.bf16 %v7412_v31  ;;  %v1084_v33 = vunpack.c.l.bf16 %v7419_v34 }
 0x13f   : > { %v2704_v36 = vsel %vm2650_vm2, %v2613_v23, %v2703_v8  ;;  %v1092_v2 = vunpack.c.l.bf16 %v7422_v29  ;;  %v1100_v4 = vunpack.c.l.bf16 %v7425_v59  ;;  %v1108_v7 = vunpack.c.l.bf16 %v7432_v21 }
 0x140   : > { %2859 = vmatpush1.bf16.msra.mxu1 %v9031_v61  ;;  %v2705_v13 = vsel %vm2652_vm3, %v2621_v54, %v2704_v36  ;;  %v1116_v50 = vunpack.c.l.bf16 %v7435_v11  ;;  %v1124_v16 = vunpack.c.l.bf16 %v7438_v15  ;;  %v1132_v58 = vunpack.c.l.bf16 %v7446_v42 }
 0x141   : > { %2860 = vmatprep.subr.bf16.mxu1 %v9032_v39  ;;  %v9033_v31 = vunpack.c.l.s8.bf16 %v7372_v37  ;;  %v2706_v34 = vsel %vm2654_vm4, %v2629_v63, %v2705_v13  ;;  %v1140_v35 = vunpack.c.l.bf16 %v7449_v12  ;;  %v1148_v29 = vunpack.c.l.bf16 %v7452_v52 }
 0x142   : > { %v1156_v59 = vunpack.c.l.bf16 %v7455_v3  ;;  %v9034_v21 = vunpack.c.h.s8.bf16 %v7363_v0  ;;  %v2707_v11 = vsel %vm2656_vm5, %v2637_v18, %v2706_v34  ;;  %v1164_v15 = vunpack.c.l.bf16 %v7458_v46 }
 0x143   : > { %v1172_v42 = vunpack.c.l.bf16 %v7461_v25  ;;  %v1216_v19 = vadd.f32 %v1060_v44, %v1052_v62  ;;  %v2708_v28 = vsel %vm2658_vm6, %v2645_v14, %v2707_v11  ;;  %v1272_v55 = vadd.f32 %v1076_v41, %v1068_v10 }
 0x144   : > { %2861 = vmatpush1.bf16.msra.mxu1 %v9033_v31  ;;  %v1328_v1 = vadd.f32 %v1092_v2, %v1084_v33  ;;  %v1384_v45 = vadd.f32 %v1108_v7, %v1100_v4  ;;  %v7537_v12 = vpack.c.b16 %v2708_v28, %v2708_v28  ;;  %v1440_v20 = vadd.f32 %v1124_v16, %v1116_v50 }
 0x145   : > { %2862 = vmatprep.subr.bf16.mxu1 %v9034_v21  ;;  %v1217_v52 = vrot.slane %v1216_v19, 4  ;;  %v1496_v3 = vadd.f32 %v1140_v35, %v1132_v58  ;;  %v9035_v0 = vunpack.c.h.s8.bf16 %v7372_v37  ;;  %v1273_v53 = vrot.slane %v1272_v55, 4 }
 0x146   : > { %v1329_v43 = vrot.slane %v1328_v1, 4  ;;  %v1385_v24 = vrot.slane %v1384_v45, 4  ;;  %v1552_v46 = vadd.f32 %v1156_v59, %v1148_v29  ;;  %v9036_v25 = vunpack.c.l.s8.bf16 %v7377_v30  ;;  %2880 = vmatprep.mubr.bf16.mxu1 %v7537_v12 }
 0x147   : > { %v1218_v22 = vadd.f32 %v1217_v52, %v1216_v19  ;;  %v1441_v27 = vrot.slane %v1440_v20, 4  ;;  %v1497_v17 = vrot.slane %v1496_v3, 4  ;;  %v1608_v5 = vadd.f32 %v1172_v42, %v1164_v15 }
 0x148   : > { %2863 = vmatpush1.bf16.msra.mxu1 %v9035_v0  ;;  %v1274_v57 = vadd.f32 %v1273_v53, %v1272_v55  ;;  %v1330_v49 = vadd.f32 %v1329_v43, %v1328_v1  ;;  %v1386_v40 = vadd.f32 %v1385_v24, %v1384_v45  ;;  %v1553_v56 = vrot.slane %v1552_v46, 4 }
 0x149   : > { %2864 = vmatprep.subr.bf16.mxu1 %v9036_v25  ;;  %v1219_v47 = vrot.slane %v1218_v22, 2  ;;  %v1442_v37 = vadd.f32 %v1441_v27, %v1440_v20  ;;  %v1498_v23 = vadd.f32 %v1497_v17, %v1496_v3  ;;  %v1609_v54 = vrot.slane %v1608_v5, 4  ;;  %v1990_v20 = vld [vmem:[%s8802_s8 + $0x780] sm:$0xff] }
 0x14a   : > { %v9037_v63 = vunpack.c.l.s8.bf16 %v7382_v48  ;;  %v1275_v18 = vrot.slane %v1274_v57, 2  ;;  %v1331_v61 = vrot.slane %v1330_v49, 2  ;;  %v1387_v14 = vrot.slane %v1386_v40, 2 }
 0x14b   : > { %v1554_v6 = vadd.f32 %v1553_v56, %v1552_v46  ;;  %v9038_v62 = vunpack.c.h.s8.bf16 %v7377_v30  ;;  %v1220_v44 = vadd.f32 %v1219_v47, %v1218_v22  ;;  %v1443_v39 = vrot.slane %v1442_v37, 2 }
 0x14c   : > { %2865 = vmatpush1.bf16.msra.mxu1 %v9037_v63  ;;  %v1499_v8 = vrot.slane %v1498_v23, 2  ;;  %v1610_v10 = vadd.f32 %v1609_v54, %v1608_v5  ;;  %v1276_v41 = vadd.f32 %v1275_v18, %v1274_v57  ;;  %v1332_v33 = vadd.f32 %v1331_v61, %v1330_v49 }
 0x14d   : > { %2866 = vmatprep.subr.bf16.mxu1 %v9038_v62  ;;  %v1388_v36 = vadd.f32 %v1387_v14, %v1386_v40  ;;  %v1555_v2 = vrot.slane %v1554_v6, 2  ;;  %v1221_v4 = vrot.slane %v1220_v44, 1  ;;  %v1444_v7 = vadd.f32 %v1443_v39, %v1442_v37  ;;  %v1999_v62 = vld [vmem:[%s8802_s8 + $0x7c8] sm:$0xff] }
 0x14e   : > { %v1500_v13 = vadd.f32 %v1499_v8, %v1498_v23  ;;  %v1611_v50 = vrot.slane %v1610_v10, 2  ;;  %v9039_v16 = vunpack.c.h.s8.bf16 %v7382_v48  ;;  %v1277_v58 = vrot.slane %v1276_v41, 1  ;;  %v850_v8 = vld [vmem:[%s8799_s5 + $0x8] sm:$0xff] }
 0x14f   : > { %v1333_v31 = vrot.slane %v1332_v33, 1  ;;  %v1389_v34 = vrot.slane %v1388_v36, 1  ;;  %v1556_v30 = vadd.f32 %v1555_v2, %v1554_v6  ;;  %v9040_v35 = vunpack.c.l.s8.bf16 %v7391_v38 }
 0x150   : > { %2867 = vmatpush1.bf16.msra.mxu1 %v9039_v16  ;;  %v1222_v29 = vadd.f32 %v1221_v4, %v1220_v44  ;;  %v1445_v59 = vrot.slane %v1444_v7, 1  ;;  %v1501_v21 = vrot.slane %v1500_v13, 1  ;;  %v1612_v11 = vadd.f32 %v1611_v50, %v1610_v10  ;;  %v852_v16 = vld [vmem:[%s8799_s5 + $0x18] sm:$0xff] }
 0x151   : > { %2868 = vmatprep.subr.bf16.mxu1 %v9040_v35  ;;  %v1278_v15 = vadd.f32 %v1277_v58, %v1276_v41  ;;  %v1334_v42 = vadd.f32 %v1333_v31, %v1332_v33  ;;  %v1390_v19 = vadd.f32 %v1389_v34, %v1388_v36  ;;  %v1557_v28 = vrot.slane %v1556_v30, 1  ;;  %v849_v41 = vld [vmem:[%s8799_s5] sm:$0xff] }
 0x152   : > { %v1446_v55 = vadd.f32 %v1445_v59, %v1444_v7  ;;  %v1502_v1 = vadd.f32 %v1501_v21, %v1500_v13  ;;  %v1613_v45 = vrot.slane %v1612_v11, 1  ;;  %v1628_v48 = vmul.f32 0.0625, %v1222_v29  ;;  %v1998_v36 = vld [vmem:[%s8802_s8 + $0x7c0] sm:$0xff]  ;;  %v1755_v59 = vld [vmem:[%s8802_s8 + $0x28] sm:$0xff] }
 0x153   : > { %v9041_v52 = vunpack.c.l.s8.bf16 %v7406_v9  ;;  %v1558_v3 = vadd.f32 %v1557_v28, %v1556_v30  ;;  %v1636_v0 = vmul.f32 0.0625, %v1278_v15  ;;  %v1644_v53 = vmul.f32 0.0625, %v1334_v42  ;;  %v1754_v28 = vld [vmem:[%s8802_s8 + $0x20] sm:$0xff] }
 0x154   : > { %v1652_v43 = vmul.f32 0.0625, %v1390_v19  ;;  %v9042_v24 = vunpack.c.h.s8.bf16 %v7391_v38  ;;  %v1614_v46 = vadd.f32 %v1613_v45, %v1612_v11  ;;  %v1660_v25 = vmul.f32 0.0625, %v1446_v55  ;;  %v851_v11 = vld [vmem:[%s8799_s5 + $0x10] sm:$0xff] }
 0x155   : > { %2869 = vmatpush1.bf16.msra.mxu1 %v9041_v52  ;;  %v1668_v22 = vmul.f32 0.0625, %v1502_v1  ;;  %v1692_v27 = vpack.c.bf16 %v1628_v48, %v1628_v48  ;;  %v1676_v17 = vmul.f32 0.0625, %v1558_v3  ;;  %v1700_v5 = vpack.c.bf16 %v1636_v0, %v1636_v0  ;;  %v854_v48 = vld [vmem:[%s8799_s5 + $0x28] sm:$0xff] }
 0x156   : > { %2870 = vmatprep.subr.bf16.mxu1 %v9042_v24  ;;  %v1708_v57 = vpack.c.bf16 %v1644_v53, %v1644_v53  ;;  %v1716_v49 = vpack.c.bf16 %v1652_v43, %v1652_v43  ;;  %v2486_v40 = vunpack.c.l.s8.bf16 %v1990_v20  ;;  %v1724_v56 = vpack.c.bf16 %v1660_v25, %v1660_v25  ;;  %v1763_v0 = vld [vmem:[%s8802_s8 + $0x68] sm:$0xff]  ;;  %v853_v43 = vld [vmem:[%s8799_s5 + $0x20] sm:$0xff] }
 0x157   : > { %v1732_v47 = vpack.c.bf16 %v1668_v22, %v1668_v22  ;;  %v2588_v37 = vunpack.c.l.b16 %v1692_v27  ;;  %v9043_v23 = vunpack.c.h.s8.bf16 %v7406_v9  ;;  %v1684_v54 = vmul.f32 0.0625, %v1614_v46  ;;  %v9044_v46 = vld [vmem:[#allocation24_spill] sm:$0xff]  ;;  %v1762_v22 = vld [vmem:[%s8802_s8 + $0x60] sm:$0xff] }
 0x158   : > { %v2596_v63 = vunpack.c.l.b16 %v1700_v5  ;;  %v2604_v18 = vunpack.c.l.b16 %v1708_v57  ;;  %v2612_v38 = vunpack.c.l.b16 %v1716_v49  ;;  %v2495_v61 = vunpack.c.h.s8.bf16 %v7501_v51  ;;  %v856_v5 = vld [vmem:[%s8799_s5 + $0x38] sm:$0xff] }
 0x159   : > { %2871 = vmatpush1.bf16.msra.mxu1 %v9043_v23  ;;  %v1740_v14 = vpack.c.bf16 %v1676_v17, %v1676_v17  ;;  %v2620_v6 = vunpack.c.l.b16 %v1724_v56  ;;  %v2628_v44 = vunpack.c.l.b16 %v1732_v47  ;;  %v2494_v10 = vunpack.c.h.s8.bf16 %v1990_v20  ;;  %v1771_v56 = vld [vmem:[%s8802_s8 + $0xa8] sm:$0xff] }
 0x15a   : > { %2872 = vmatprep.subr.bf16.mxu1 %v2487_v26  ;;  %v2695_v39 = vsel %vm2646_vm0, %v2596_v63, %v2588_v37  ;;  %v1748_v26 = vpack.c.bf16 %v1684_v54, %v1684_v54  ;;  %v2503_v33 = vunpack.c.l.s8.bf16 %v1999_v62  ;;  %v866_v13 = vunpack.c.l.s8.bf16 %v850_v8  ;;  %v855_v37 = vld [vmem:[%s8799_s5 + $0x30] sm:$0xff]  ;;  %v1770_v63 = vld [vmem:[%s8802_s8 + $0xa0] sm:$0xff] }
 0x15b   : > { %v2696_v9 = vsel %vm2648_vm1, %v2604_v18, %v2695_v39  ;;  %v2636_v2 = vunpack.c.l.b16 %v1740_v14  ;;  %v865_v50 = vunpack.c.l.s8.bf16 %v849_v41  ;;  %v2502_v58 = vunpack.c.l.s8.bf16 %v1998_v36 }
 0x15c   : > { %v2697_v51 = vsel %vm2650_vm2, %v2612_v38, %v2696_v9  ;;  %v2644_v31 = vunpack.c.l.b16 %v1748_v26  ;;  %897 = vmatprep.subr.bf16.mxu0 %v866_v13  ;;  %v868_v34 = vunpack.c.h.s8.bf16 %v850_v8  ;;  %v2511_v30 = vunpack.c.h.s8.bf16 %v1999_v62  ;;  %v857_v9 = vld [vmem:[%s8799_s5 + $0x40] sm:$0xff] }
 0x15d   : > { %2873 = vmatpush1.bf16.msra.mxu1 %v2486_v40  ;;  %v2698_v4 = vsel %vm2652_vm3, %v2620_v6, %v2697_v51  ;;  %898 = vmatpush1.bf16.msra.mxu0 %v865_v50  ;;  %v867_v29 = vunpack.c.h.s8.bf16 %v849_v41  ;;  %v870_v21 = vunpack.c.l.s8.bf16 %v852_v16  ;;  %v2510_v15 = vunpack.c.h.s8.bf16 %v1998_v36  ;;  %v1778_v26 = vld [vmem:[%s8802_s8 + $0xe0] sm:$0xff]  ;;  %v859_v50 = vld [vmem:[%s8799_s5 + $0x50] sm:$0xff] }
 0x15e   : > { %2874 = vmatprep.subr.bf16.mxu1 %v2495_v61  ;;  %v2699_v7 = vsel %vm2654_vm4, %v2628_v44, %v2698_v4  ;;  %899 = vmatprep.subr.bf16.mxu0 %v868_v34  ;;  %v2011_v19 = vunpack.c.l.s8.bf16 %v1755_v59  ;;  %v869_v55 = vunpack.c.l.s8.bf16 %v851_v11  ;;  %v872_v1 = vunpack.c.h.s8.bf16 %v852_v16  ;;  %v858_v61 = vld [vmem:[%s8799_s5 + $0x48] sm:$0xff] }
 0x15f   : > { %v2700_v35 = vsel %vm2656_vm5, %v2636_v2, %v2699_v7  ;;  %v2010_v52 = vunpack.c.l.s8.bf16 %v1754_v28  ;;  %v2019_v20 = vunpack.c.h.s8.bf16 %v1755_v59  ;;  %v871_v3 = vunpack.c.h.s8.bf16 %v851_v11  ;;  %v1779_v44 = vld [vmem:[%s8802_s8 + $0xe8] sm:$0xff] }
 0x160   : > { %v2701_v42 = vsel %vm2658_vm6, %v2644_v31, %v2700_v35  ;;  %v874_v53 = vunpack.c.l.s8.bf16 %v854_v48  ;;  %v2018_v24 = vunpack.c.h.s8.bf16 %v1754_v28  ;;  %v2027_v25 = vunpack.c.l.s8.bf16 %v1763_v0  ;;  %v1787_v7 = vld [vmem:[%s8802_s8 + $0x128] sm:$0xff]  ;;  %v1786_v31 = vld [vmem:[%s8802_s8 + $0x120] sm:$0xff] }
 0x161   : > { %2875 = vmatpush1.bf16.msra.mxu1 %v2494_v10  ;;  %900 = vmatpush1.bf16.msra.mxu0 %v867_v29  ;;  %v7595_v45 = vpack.c.b16 %v2701_v42, %v2701_v42  ;;  %v873_v27 = vunpack.c.l.s8.bf16 %v853_v43  ;;  %v876_v17 = vunpack.c.h.s8.bf16 %v854_v48  ;;  %v2026_v57 = vunpack.c.l.s8.bf16 %v1762_v22  ;;  %v862_v35 = vld [vmem:[%s8799_s5 + $0x68] sm:$0xff]  ;;  %v861_v42 = vld [vmem:[%s8799_s5 + $0x60] sm:$0xff] }
 0x162   : > { %2876 = vmatprep.subr.bf16.mxu1 %v2503_v33  ;;  %901 = vmatprep.subr.bf16.mxu0 %v870_v21  ;;  %v2035_v49 = vunpack.c.h.s8.bf16 %v1763_v0  ;;  %v875_v40 = vunpack.c.h.s8.bf16 %v853_v43  ;;  %v878_v47 = vunpack.c.l.s8.bf16 %v856_v5  ;;  %v2034_v23 = vunpack.c.h.s8.bf16 %v1762_v22  ;;  %v860_v33 = vld [vmem:[%s8799_s5 + $0x58] sm:$0xff]  ;;  %v1795_v11 = vld [vmem:[%s8802_s8 + $0x168] sm:$0xff] }
 0x163   : > { %v2043_v54 = vunpack.c.l.s8.bf16 %v1771_v56  ;;  %v877_v18 = vunpack.c.l.s8.bf16 %v855_v37  ;;  %v880_v38 = vunpack.c.h.s8.bf16 %v856_v5  ;;  %v2042_v14 = vunpack.c.l.s8.bf16 %v1770_v63 }
 0x164   : > { %v2051_v6 = vunpack.c.h.s8.bf16 %v1771_v56  ;;  %v879_v62 = vunpack.c.h.s8.bf16 %v855_v37  ;;  %v882_v39 = vunpack.c.l.s8.bf16 %v858_v61  ;;  %v2050_v8 = vunpack.c.h.s8.bf16 %v1770_v63  ;;  %v1810_v63 = vld [vmem:[%s8802_s8 + $0x1e0] sm:$0xff] }
 0x165   : > { %2877 = vmatpush1.bf16.msra.mxu1 %v2502_v58  ;;  %902 = vmatpush1.bf16.msra.mxu0 %v869_v55  ;;  %v2059_v10 = vunpack.c.l.s8.bf16 %v1779_v44  ;;  %v881_v51 = vunpack.c.l.s8.bf16 %v857_v9  ;;  %v884_v41 = vunpack.c.h.s8.bf16 %v858_v61  ;;  %v2058_v36 = vunpack.c.l.s8.bf16 %v1778_v26  ;;  %v1794_v55 = vld [vmem:[%s8802_s8 + $0x160] sm:$0xff] }
 0x166   : > { %2878 = vmatprep.subr.bf16.mxu1 %v2511_v30  ;;  %903 = vmatprep.subr.bf16.mxu0 %v872_v1  ;;  %v2067_v2 = vunpack.c.h.s8.bf16 %v1779_v44  ;;  %v883_v4 = vunpack.c.h.s8.bf16 %v857_v9  ;;  %v886_v13 = vunpack.c.l.s8.bf16 %v860_v33  ;;  %v2066_v16 = vunpack.c.h.s8.bf16 %v1778_v26  ;;  %v1818_v44 = vld [vmem:[%s8802_s8 + $0x220] sm:$0xff]  ;;  %v1827_v26 = vld [vmem:[%s8802_s8 + $0x268] sm:$0xff] }
 0x167   : > { %v2075_v58 = vunpack.c.l.s8.bf16 %v1787_v7  ;;  %v885_v34 = vunpack.c.l.s8.bf16 %v859_v50  ;;  %v888_v30 = vunpack.c.h.s8.bf16 %v860_v33  ;;  %v2074_v29 = vunpack.c.l.s8.bf16 %v1786_v31  ;;  %v9045_v33 = vld [vmem:[#allocation17_spill] sm:$0xff] }
 0x168   : > { %v2083_v59 = vunpack.c.h.s8.bf16 %v1787_v7  ;;  %v887_v21 = vunpack.c.h.s8.bf16 %v859_v50  ;;  %v2091_v28 = vunpack.c.l.s8.bf16 %v1795_v11  ;;  %v889_v1 = vunpack.c.l.s8.bf16 %v861_v42  ;;  %v1826_v7 = vld [vmem:[%s8802_s8 + $0x260] sm:$0xff] }
 0x169   : > { %2879 = vmatpush1.bf16.msra.mxu1 %v2510_v15  ;;  %904 = vmatpush1.bf16.msra.mxu0 %v871_v3  ;;  %v890_v15 = vunpack.c.l.s8.bf16 %v862_v35  ;;  %v892_v48 = vunpack.c.h.s8.bf16 %v862_v35  ;;  %v2099_v3 = vunpack.c.h.s8.bf16 %v1795_v11  ;;  %v891_v0 = vunpack.c.h.s8.bf16 %v861_v42 }
 0x16a   : > { %3053 = vmatprep.subr.bf16.mxu1 %v2011_v19  ;;  %905 = vmatprep.subr.bf16.mxu0 %v874_v53  ;;  %v2082_v19 = vunpack.c.h.s8.bf16 %v1786_v31  ;;  %v1803_v53 = vld [vmem:[%s8802_s8 + $0x1a8] sm:$0xff]  ;;  %v821_v61 = vlaneseq  ;;  %v2138_v9 = vunpack.c.l.s8.bf16 %v1818_v44 }
 0x16b   : > { %v2107_v22 = vunpack.c.l.s8.bf16 %v1803_v53 }
 0x16c   : > { %2881 = vmatmul.mubr.bf16.vlgmr.msra.gmra.mrb[0].mxu1 %v7595_v45 }
 0x16d   : > { %3054 = vmatpush1.bf16.msra.mxu1 %v2010_v52  ;;  %3085 = vmatprep.mubr.bf16.mxu1 %v9044_v46  ;;  %v864_v52 = vld [vmem:[%s8799_s5 + $0x78] sm:$0xff] }
 0x16e   : > { %3055 = vmatprep.subr.bf16.mxu1 %v2019_v20  ;;  %906 = vmatpush1.bf16.msra.mxu0 %v873_v27  ;;  %v2090_v20 = vunpack.c.l.s8.bf16 %v1794_v55  ;;  %v894_v43 = vunpack.c.l.s8.bf16 %v864_v52  ;;  %v1802_v27 = vld [vmem:[%s8802_s8 + $0x1a0] sm:$0xff]  ;;  %v896_v5 = vunpack.c.h.s8.bf16 %v864_v52 }
 0x16f   : > { %907 = vmatprep.subr.bf16.mxu0 %v876_v17 }
 0x171   : > { %3056 = vmatpush1.bf16.msra.mxu1 %v2018_v24  ;;  %v863_v24 = vld [vmem:[%s8799_s5 + $0x70] sm:$0xff] }
 0x172   : > { %3057 = vmatprep.subr.bf16.mxu1 %v2027_v25  ;;  %908 = vmatpush1.bf16.msra.mxu0 %v875_v40  ;;  %v2098_v25 = vunpack.c.h.s8.bf16 %v1794_v55  ;;  %v893_v17 = vunpack.c.l.s8.bf16 %v863_v24  ;;  %v2115_v40 = vunpack.c.h.s8.bf16 %v1803_v53  ;;  %v895_v56 = vunpack.c.h.s8.bf16 %v863_v24 }
 0x173   : > { %909 = vmatprep.subr.bf16.mxu0 %v878_v47  ;;  %v1811_v47 = vld [vmem:[%s8802_s8 + $0x1e8] sm:$0xff] }
 0x175   : > { %3058 = vmatpush1.bf16.msra.mxu1 %v2026_v57  ;;  %v7674_v57 = vld [vmem:[%s8802_s8 + $0x18] sm:$0xff] }
 0x176   : > { %3059 = vmatprep.subr.bf16.mxu1 %v2035_v49  ;;  %910 = vmatpush1.bf16.msra.mxu0 %v877_v18  ;;  %v2106_v49 = vunpack.c.l.s8.bf16 %v1802_v27  ;;  %v2009_v37 = vunpack.c.l.s8.bf16 %v7674_v57  ;;  %v2122_v18 = vunpack.c.l.s8.bf16 %v1810_v63 }
 0x177   : > { %911 = vmatprep.subr.bf16.mxu0 %v880_v38  ;;  %v2131_v38 = vunpack.c.h.s8.bf16 %v1811_v47 }
 0x179   : > { %3060 = vmatpush1.bf16.msra.mxu1 %v2034_v23  ;;  %v2114_v23 = vunpack.c.h.s8.bf16 %v1802_v27 }
 0x17a   : > { %3061 = vmatprep.subr.bf16.mxu1 %v2043_v54  ;;  %912 = vmatpush1.bf16.msra.mxu0 %v879_v62  ;;  %v2123_v54 = vunpack.c.l.s8.bf16 %v1811_v47 }
 0x17b   : > { %913 = vmatprep.subr.bf16.mxu0 %v882_v39  ;;  %v7689_v39 = vshrl.u32 %v821_v61, 7 }
 0x17d   : > { %3062 = vmatpush1.bf16.msra.mxu1 %v2042_v14  ;;  %v1819_v14 = vld [vmem:[%s8802_s8 + $0x228] sm:$0xff] }
 0x17e   : > { %3063 = vmatprep.subr.bf16.mxu1 %v2051_v6  ;;  %914 = vmatpush1.bf16.msra.mxu0 %v881_v51  ;;  %v2130_v6 = vunpack.c.h.s8.bf16 %v1810_v63  ;;  %v2139_v62 = vunpack.c.l.s8.bf16 %v1819_v14  ;;  %v819_v51 = vld [vmem:[%s8797_s3] sm:$0x3] }
 0x17f   : > { %915 = vmatprep.subr.bf16.mxu0 %v884_v41  ;;  %v7701_v41 = vsub.s32 1, %v7689_v39 }
 0x181   : > { %3064 = vmatpush1.bf16.msra.mxu1 %v2050_v8  ;;  %v2147_v8 = vunpack.c.h.s8.bf16 %v1819_v14  ;;  %v828_v50 = vrot.slane %v819_v51, %v7701_v41 }
 0x182   : > { %3065 = vmatprep.subr.bf16.mxu1 %v2059_v10  ;;  %916 = vmatpush1.bf16.msra.mxu0 %v883_v4  ;;  %v7692_v10 = vsub.s32 0, %v7689_v39  ;;  %v2155_v4 = vunpack.c.l.s8.bf16 %v1827_v26 }
 0x183   : > { %917 = vmatprep.subr.bf16.mxu0 %v886_v13 }
 0x184   : > { %v824_v13 = vrot.slane %v819_v51, %v7692_v10  ;;  %v1859_v51 = vld [vmem:[%s8802_s8 + $0x368] sm:$0xff] }
 0x185   : > { %3066 = vmatpush1.bf16.msra.mxu1 %v2058_v36  ;;  %v2146_v36 = vunpack.c.h.s8.bf16 %v1818_v44 }
 0x186   : > { %3067 = vmatprep.subr.bf16.mxu1 %v2067_v2  ;;  %918 = vmatpush1.bf16.msra.mxu0 %v885_v34  ;;  %v833_v2 = vld [vmem:[%s8798_s4] sm:$0x3] }
 0x187   : > { %919 = vmatprep.subr.bf16.mxu0 %v888_v30  ;;  %v842_v34 = vrot.slane %v833_v2, %v7701_v41  ;;  %v2163_v30 = vunpack.c.h.s8.bf16 %v1827_v26 }
 0x189   : > { %3068 = vmatpush1.bf16.msra.mxu1 %v2066_v16  ;;  %v838_v16 = vrot.slane %v833_v2, %v7692_v10 }
 0x18a   : > { %3069 = vmatprep.subr.bf16.mxu1 %v2075_v58  ;;  %920 = vmatpush1.bf16.msra.mxu0 %v887_v21  ;;  %v2154_v58 = vunpack.c.l.s8.bf16 %v1826_v7 }
 0x18b   : > { %921 = vmatprep.subr.bf16.mxu0 %v890_v15 }
 0x18d   : > { %3070 = vmatpush1.bf16.msra.mxu1 %v2074_v29 }
 0x18e   : > { %3071 = vmatprep.subr.bf16.mxu1 %v2083_v59  ;;  %922 = vmatpush1.bf16.msra.mxu0 %v889_v1  ;;  %v1835_v59 = vld [vmem:[%s8802_s8 + $0x2a8] sm:$0xff] }
 0x18f   : > { %923 = vmatprep.subr.bf16.mxu0 %v892_v48  ;;  %v2171_v1 = vunpack.c.l.s8.bf16 %v1835_v59  ;;  %v1834_v48 = vld [vmem:[%s8802_s8 + $0x2a0] sm:$0xff]  ;;  %v2179_v24 = vunpack.c.h.s8.bf16 %v1835_v59 }
 0x190   : > { %v2170_v53 = vunpack.c.l.s8.bf16 %v1834_v48 }
 0x191   : > { %3072 = vmatpush1.bf16.msra.mxu1 %v2082_v19  ;;  %v1752_v19 = vld [vmem:[%s8802_s8 + $0x10] sm:$0xff] }
 0x192   : > { %3073 = vmatprep.subr.bf16.mxu1 %v2091_v28  ;;  %924 = vmatpush1.bf16.msra.mxu0 %v891_v0  ;;  %v2162_v28 = vunpack.c.h.s8.bf16 %v1826_v7  ;;  %v2017_v0 = vunpack.c.h.s8.bf16 %v7674_v57 }
 0x193   : > { %925 = vmatprep.subr.bf16.mxu0 %v894_v43  ;;  %v1761_v43 = vld [vmem:[%s8802_s8 + $0x58] sm:$0xff] }
 0x194   : > { %v2025_v27 = vunpack.c.l.s8.bf16 %v1761_v43 }
 0x195   : > { %3074 = vmatpush1.bf16.msra.mxu1 %v2090_v20  ;;  %v2008_v20 = vunpack.c.l.s8.bf16 %v1752_v19 }
 0x196   : > { %3075 = vmatprep.subr.bf16.mxu1 %v2099_v3  ;;  %926 = vmatpush1.bf16.msra.mxu0 %v893_v17  ;;  %v1760_v17 = vld [vmem:[%s8802_s8 + $0x50] sm:$0xff] }
 0x197   : > { %927 = vmatprep.subr.bf16.mxu0 %v896_v5  ;;  %v2178_v5 = vunpack.c.h.s8.bf16 %v1834_v48  ;;  %v2032_v63 = vunpack.c.h.s8.bf16 %v1760_v17 }
 0x199   : > { %3076 = vmatpush1.bf16.msra.mxu1 %v2098_v25  ;;  %v1843_v25 = vld [vmem:[%s8802_s8 + $0x2e8] sm:$0xff] }
 0x19a   : > { %3077 = vmatprep.subr.bf16.mxu1 %v2107_v22  ;;  %928 = vmatpush1.bf16.msra.mxu0 %v895_v56  ;;  %v2016_v22 = vunpack.c.h.s8.bf16 %v1752_v19  ;;  %v2187_v57 = vunpack.c.l.s8.bf16 %v1843_v25  ;;  %v2033_v56 = vunpack.c.h.s8.bf16 %v1761_v43  ;;  %v1866_v19 = vld [vmem:[%s8802_s8 + $0x3a0] sm:$0xff]  ;;  %v1792_v43 = vld [vmem:[%s8802_s8 + $0x150] sm:$0xff] }
 0x19b   : > { %2889 = vmatprep.subr.bf16.mxu0 %v2009_v37  ;;  %v1769_v37 = vld [vmem:[%s8802_s8 + $0x98] sm:$0xff]  ;;  %v2234_v48 = vunpack.c.l.s8.bf16 %v1866_v19 }
 0x19c   : > { %v2049_v44 = vunpack.c.h.s8.bf16 %v1769_v37 }
 0x19d   : > { %3078 = vmatpush1.bf16.msra.mxu1 %v2106_v49  ;;  %v1842_v49 = vld [vmem:[%s8802_s8 + $0x2e0] sm:$0xff] }
 0x19e   : > { %3079 = vmatprep.subr.bf16.mxu1 %v2115_v40  ;;  %v2024_v40 = vunpack.c.l.s8.bf16 %v1760_v17  ;;  %v2186_v47 = vunpack.c.l.s8.bf16 %v1842_v49  ;;  %v2194_v61 = vunpack.c.h.s8.bf16 %v1842_v49 }
 0x1a1   : > { %3080 = vmatpush1.bf16.msra.mxu1 %v2114_v23  ;;  %v2195_v23 = vunpack.c.h.s8.bf16 %v1843_v25 }
 0x1a2   : > { %3081 = vmatprep.subr.bf16.mxu1 %v2123_v54  ;;  %v1851_v54 = vld [vmem:[%s8802_s8 + $0x328] sm:$0xff] }
 0x1a3   : > { %v2203_v14 = vunpack.c.l.s8.bf16 %v1851_v54  ;;  %v2211_v26 = vunpack.c.h.s8.bf16 %v1851_v54 }
 0x1a5   : > { %3082 = vmatpush1.bf16.msra.mxu1 %v2122_v18  ;;  %v2041_v18 = vunpack.c.l.s8.bf16 %v1769_v37  ;;  %v1800_v37 = vld [vmem:[%s8802_s8 + $0x190] sm:$0xff] }
 0x1a6   : > { %3083 = vmatprep.subr.bf16.mxu1 %v2131_v38  ;;  %v1768_v38 = vld [vmem:[%s8802_s8 + $0x90] sm:$0xff] }
 0x1a9   : > { %3084 = vmatpush1.bf16.msra.mxu1 %v2130_v6  ;;  %v1850_v6 = vld [vmem:[%s8802_s8 + $0x320] sm:$0xff] }
 0x1aa   : > { %3094 = vmatprep.subr.bf16.mxu1 %v2139_v62  ;;  %v2040_v62 = vunpack.c.l.s8.bf16 %v1768_v38  ;;  %v2210_v7 = vunpack.c.h.s8.bf16 %v1850_v6 }
 0x1ac   : > { %3086 = vmatmul.mubr.bf16.vlgmr.msra.gmra.mrb[4].mxu1 %v9045_v33 }
 0x1ad   : > { %3095 = vmatpush1.bf16.msra.mxu1 %v2138_v9  ;;  %3126 = vmatprep.mubr.bf16.mxu1 %v7022_v32  ;;  %v2202_v9 = vunpack.c.l.s8.bf16 %v1850_v6 }
 0x1ae   : > { %3096 = vmatprep.subr.bf16.mxu1 %v2147_v8  ;;  %v1777_v8 = vld [vmem:[%s8802_s8 + $0xd8] sm:$0xff] }
 0x1af   : > { %v812_v31 = vpop.f32.mrb[0].mxu0  ;;  %v2057_v2 = vunpack.c.l.s8.bf16 %v1777_v8 }
 0x1b0   : > { %v831_v35 = vmul.f32 %v824_v13, %v812_v31  ;;  %v814_v29 = vpop.f32.mrb[1].mxu0  ;;  %v2219_v13 = vunpack.c.l.s8.bf16 %v1859_v51 }
 0x1b1   : > { %3097 = vmatpush1.bf16.msra.mxu1 %v2146_v36  ;;  %v832_v21 = vmul.f32 %v828_v50, %v814_v29  ;;  %v816_v11 = vpop.f32.mrb[2].mxu0  ;;  %v2048_v36 = vunpack.c.h.s8.bf16 %v1768_v38  ;;  %v1858_v50 = vld [vmem:[%s8802_s8 + $0x360] sm:$0xff] }
 0x1b2   : > { %3098 = vmatprep.subr.bf16.mxu1 %v2155_v4  ;;  %v7718_v15 = vadd.f32 %v838_v16, %v831_v35  ;;  %v817_v42 = vpop.f32.mrb[3].mxu0  ;;  %v1776_v4 = vld [vmem:[%s8802_s8 + $0xd0] sm:$0xff]  ;;  %v2218_v31 = vunpack.c.l.s8.bf16 %v1858_v50  ;;  %v1867_v35 = vld [vmem:[%s8802_s8 + $0x3a8] sm:$0xff]  ;;  %v2226_v11 = vunpack.c.h.s8.bf16 %v1858_v50  ;;  %v1817_v50 = vld [vmem:[%s8802_s8 + $0x218] sm:$0xff] }
 0x1b3   : > { %v7723_v55 = vadd.f32 %v842_v34, %v832_v21  ;;  %v2056_v16 = vunpack.c.l.s8.bf16 %v1776_v4  ;;  %v1785_v34 = vld [vmem:[%s8802_s8 + $0x118] sm:$0xff]  ;;  %v2064_v29 = vunpack.c.h.s8.bf16 %v1776_v4  ;;  %v1784_v21 = vld [vmem:[%s8802_s8 + $0x110] sm:$0xff]  ;;  %v2235_v42 = vunpack.c.l.s8.bf16 %v1867_v35 }
 0x1b4   : > { %v847_v3 = vpack.c.bf16 %v7718_v15, %v7718_v15  ;;  %v2073_v59 = vunpack.c.l.s8.bf16 %v1785_v34 }
 0x1b5   : > { %3099 = vmatpush1.bf16.msra.mxu1 %v2154_v58  ;;  %v848_v52 = vpack.c.bf16 %v7723_v55, %v7723_v55  ;;  %v2065_v58 = vunpack.c.h.s8.bf16 %v1777_v8  ;;  %v1808_v8 = vld [vmem:[%s8802_s8 + $0x1d0] sm:$0xff] }
 0x1b6   : > { %3100 = vmatprep.subr.bf16.mxu1 %v2163_v30  ;;  %v2227_v30 = vunpack.c.h.s8.bf16 %v1859_v51  ;;  %v9046_v51 = vld [vmem:[#allocation18_spill] sm:$0xff]  ;;  %v2120_v4 = vunpack.c.l.s8.bf16 %v1808_v8 }
 0x1b7   : > { %929 = vmatprep.mubr.bf16.mxu0 %v848_v52  ;;  %v1793_v52 = vld [vmem:[%s8802_s8 + $0x158] sm:$0xff] }
 0x1b8   : > { %930 = vmatmul.mubr.bf16.vlgmr.msra.gmra.mrb[4].mxu0 %v847_v3  ;;  %v1875_v3 = vld [vmem:[%s8802_s8 + $0x3e8] sm:$0xff]  ;;  %v2097_v17 = vunpack.c.h.s8.bf16 %v1793_v52 }
 0x1b9   : > { %3101 = vmatpush1.bf16.msra.mxu1 %v2162_v28  ;;  %2890 = vmatpush1.bf16.msra.mxu0 %v2008_v20  ;;  %v2072_v28 = vunpack.c.l.s8.bf16 %v1784_v21  ;;  %v2243_v20 = vunpack.c.h.s8.bf16 %v1867_v35  ;;  %v2251_v25 = vunpack.c.l.s8.bf16 %v1875_v3  ;;  %v2259_v49 = vunpack.c.h.s8.bf16 %v1875_v3 }
 0x1ba   : > { %3102 = vmatprep.subr.bf16.mxu1 %v2171_v1  ;;  %2921 = vmatprep.mubr.bf16.mxu0 %v9044_v46  ;;  %v2081_v1 = vunpack.c.h.s8.bf16 %v1785_v34  ;;  %v2137_v34 = vunpack.c.l.s8.bf16 %v1817_v50 }
 0x1bb   : > { %2891 = vmatprep.subr.bf16.mxu0 %v2017_v0  ;;  %v2080_v0 = vunpack.c.h.s8.bf16 %v1784_v21 }
 0x1bd   : > { %3103 = vmatpush1.bf16.msra.mxu1 %v2170_v53  ;;  %2892 = vmatpush1.bf16.msra.mxu0 %v2016_v22  ;;  %v2089_v53 = vunpack.c.l.s8.bf16 %v1793_v52  ;;  %v1874_v22 = vld [vmem:[%s8802_s8 + $0x3e0] sm:$0xff] }
 0x1be   : > { %3104 = vmatprep.subr.bf16.mxu1 %v2179_v24  ;;  %2893 = vmatprep.subr.bf16.mxu0 %v2025_v27  ;;  %v2242_v24 = vunpack.c.h.s8.bf16 %v1866_v19  ;;  %v2088_v27 = vunpack.c.l.s8.bf16 %v1792_v43  ;;  %v1825_v19 = vld [vmem:[%s8802_s8 + $0x258] sm:$0xff] }
 0x1bf   : > { %v2153_v52 = vunpack.c.l.s8.bf16 %v1825_v19 }
 0x1c1   : > { %3105 = vmatpush1.bf16.msra.mxu1 %v2178_v5  ;;  %2894 = vmatpush1.bf16.msra.mxu0 %v2024_v40  ;;  %v2250_v5 = vunpack.c.l.s8.bf16 %v1874_v22  ;;  %v1883_v40 = vld [vmem:[%s8802_s8 + $0x428] sm:$0xff] }
 0x1c2   : > { %3106 = vmatprep.subr.bf16.mxu1 %v2187_v57  ;;  %2895 = vmatprep.subr.bf16.mxu0 %v2033_v56  ;;  %v1801_v57 = vld [vmem:[%s8802_s8 + $0x198] sm:$0xff]  ;;  %v2096_v56 = vunpack.c.h.s8.bf16 %v1792_v43  ;;  %v2267_v54 = vunpack.c.l.s8.bf16 %v1883_v40  ;;  %v2275_v6 = vunpack.c.h.s8.bf16 %v1883_v40 }
 0x1c3   : > { %v2113_v38 = vunpack.c.h.s8.bf16 %v1801_v57 }
 0x1c5   : > { %3107 = vmatpush1.bf16.msra.mxu1 %v2186_v47  ;;  %2896 = vmatpush1.bf16.msra.mxu0 %v2032_v63  ;;  %v2105_v47 = vunpack.c.l.s8.bf16 %v1801_v57  ;;  %v1882_v63 = vld [vmem:[%s8802_s8 + $0x420] sm:$0xff] }
 0x1c6   : > { %3108 = vmatprep.subr.bf16.mxu1 %v2195_v23  ;;  %2897 = vmatprep.subr.bf16.mxu0 %v2041_v18  ;;  %v2258_v23 = vunpack.c.h.s8.bf16 %v1874_v22  ;;  %v2104_v18 = vunpack.c.l.s8.bf16 %v1800_v37  ;;  %v1833_v22 = vld [vmem:[%s8802_s8 + $0x298] sm:$0xff] }
 0x1c7   : > { %v2169_v57 = vunpack.c.l.s8.bf16 %v1833_v22 }
 0x1c9   : > { %3109 = vmatpush1.bf16.msra.mxu1 %v2194_v61  ;;  %2898 = vmatpush1.bf16.msra.mxu0 %v2040_v62  ;;  %v2266_v61 = vunpack.c.l.s8.bf16 %v1882_v63  ;;  %v1891_v62 = vld [vmem:[%s8802_s8 + $0x468] sm:$0xff] }
 0x1ca   : > { %3110 = vmatprep.subr.bf16.mxu1 %v2203_v14  ;;  %2899 = vmatprep.subr.bf16.mxu0 %v2049_v44  ;;  %v1809_v14 = vld [vmem:[%s8802_s8 + $0x1d8] sm:$0xff]  ;;  %v2112_v44 = vunpack.c.h.s8.bf16 %v1800_v37 }
 0x1cd   : > { %3111 = vmatpush1.bf16.msra.mxu1 %v2202_v9  ;;  %2900 = vmatpush1.bf16.msra.mxu0 %v2048_v36  ;;  %v2121_v9 = vunpack.c.l.s8.bf16 %v1809_v14  ;;  %v2283_v36 = vunpack.c.l.s8.bf16 %v1891_v62 }
 0x1ce   : > { %3112 = vmatprep.subr.bf16.mxu1 %v2211_v26  ;;  %2901 = vmatprep.subr.bf16.mxu0 %v2057_v2  ;;  %v2274_v26 = vunpack.c.h.s8.bf16 %v1882_v63  ;;  %v1890_v2 = vld [vmem:[%s8802_s8 + $0x460] sm:$0xff]  ;;  %v1841_v63 = vld [vmem:[%s8802_s8 + $0x2d8] sm:$0xff] }
 0x1cf   : > { %v2290_v35 = vunpack.c.h.s8.bf16 %v1890_v2 }
 0x1d1   : > { %3113 = vmatpush1.bf16.msra.mxu1 %v2210_v7  ;;  %2902 = vmatpush1.bf16.msra.mxu0 %v2056_v16  ;;  %v2129_v7 = vunpack.c.h.s8.bf16 %v1809_v14  ;;  %v2291_v16 = vunpack.c.h.s8.bf16 %v1891_v62  ;;  %v2185_v14 = vunpack.c.l.s8.bf16 %v1841_v63 }
 0x1d2   : > { %3114 = vmatprep.subr.bf16.mxu1 %v2219_v13  ;;  %2903 = vmatprep.subr.bf16.mxu0 %v2065_v58  ;;  %v2282_v13 = vunpack.c.l.s8.bf16 %v1890_v2  ;;  %v1899_v58 = vld [vmem:[%s8802_s8 + $0x4a8] sm:$0xff]  ;;  %v1849_v2 = vld [vmem:[%s8802_s8 + $0x318] sm:$0xff] }
 0x1d5   : > { %3115 = vmatpush1.bf16.msra.mxu1 %v2218_v31  ;;  %2904 = vmatpush1.bf16.msra.mxu0 %v2064_v29  ;;  %v2128_v31 = vunpack.c.h.s8.bf16 %v1808_v8  ;;  %v2299_v29 = vunpack.c.l.s8.bf16 %v1899_v58 }
 0x1d6   : > { %3116 = vmatprep.subr.bf16.mxu1 %v2227_v30  ;;  %2905 = vmatprep.subr.bf16.mxu0 %v2073_v59  ;;  %v1816_v30 = vld [vmem:[%s8802_s8 + $0x210] sm:$0xff]  ;;  %v1898_v59 = vld [vmem:[%s8802_s8 + $0x4a0] sm:$0xff] }
 0x1d7   : > { %v2136_v21 = vunpack.c.l.s8.bf16 %v1816_v30  ;;  %v2306_v3 = vunpack.c.h.s8.bf16 %v1898_v59 }
 0x1d9   : > { %3117 = vmatpush1.bf16.msra.mxu1 %v2226_v11  ;;  %2906 = vmatpush1.bf16.msra.mxu0 %v2072_v28  ;;  %v2145_v11 = vunpack.c.h.s8.bf16 %v1817_v50  ;;  %v2307_v28 = vunpack.c.h.s8.bf16 %v1899_v58  ;;  %v2201_v50 = vunpack.c.l.s8.bf16 %v1849_v2 }
 0x1da   : > { %3118 = vmatprep.subr.bf16.mxu1 %v2235_v42  ;;  %2907 = vmatprep.subr.bf16.mxu0 %v2081_v1  ;;  %v2298_v42 = vunpack.c.l.s8.bf16 %v1898_v59  ;;  %v1907_v1 = vld [vmem:[%s8802_s8 + $0x4e8] sm:$0xff]  ;;  %v1857_v59 = vld [vmem:[%s8802_s8 + $0x358] sm:$0xff] }
 0x1dd   : > { %3119 = vmatpush1.bf16.msra.mxu1 %v2234_v48  ;;  %2908 = vmatpush1.bf16.msra.mxu0 %v2080_v0  ;;  %v2144_v48 = vunpack.c.h.s8.bf16 %v1816_v30  ;;  %v2315_v0 = vunpack.c.l.s8.bf16 %v1907_v1 }
 0x1de   : > { %3120 = vmatprep.subr.bf16.mxu1 %v2243_v20  ;;  %2909 = vmatprep.subr.bf16.mxu0 %v2089_v53  ;;  %v1824_v20 = vld [vmem:[%s8802_s8 + $0x250] sm:$0xff]  ;;  %v1906_v53 = vld [vmem:[%s8802_s8 + $0x4e0] sm:$0xff] }
 0x1df   : > { %v2152_v43 = vunpack.c.l.s8.bf16 %v1824_v20  ;;  %v2322_v40 = vunpack.c.h.s8.bf16 %v1906_v53 }
 0x1e1   : > { %3121 = vmatpush1.bf16.msra.mxu1 %v2242_v24  ;;  %2910 = vmatpush1.bf16.msra.mxu0 %v2088_v27  ;;  %v2161_v24 = vunpack.c.h.s8.bf16 %v1825_v19  ;;  %v2323_v27 = vunpack.c.h.s8.bf16 %v1907_v1  ;;  %v2217_v19 = vunpack.c.l.s8.bf16 %v1857_v59 }
 0x1e2   : > { %3122 = vmatprep.subr.bf16.mxu1 %v2251_v25  ;;  %2911 = vmatprep.subr.bf16.mxu0 %v2097_v17  ;;  %v2314_v25 = vunpack.c.l.s8.bf16 %v1906_v53  ;;  %v1915_v17 = vld [vmem:[%s8802_s8 + $0x528] sm:$0xff]  ;;  %v1865_v53 = vld [vmem:[%s8802_s8 + $0x398] sm:$0xff] }
 0x1e5   : > { %3123 = vmatpush1.bf16.msra.mxu1 %v2250_v5  ;;  %2912 = vmatpush1.bf16.msra.mxu0 %v2096_v56  ;;  %v2160_v5 = vunpack.c.h.s8.bf16 %v1824_v20  ;;  %v2331_v56 = vunpack.c.l.s8.bf16 %v1915_v17 }
 0x1e6   : > { %3124 = vmatprep.subr.bf16.mxu1 %v2259_v49  ;;  %2913 = vmatprep.subr.bf16.mxu0 %v2105_v47  ;;  %v1832_v49 = vld [vmem:[%s8802_s8 + $0x290] sm:$0xff]  ;;  %v1914_v47 = vld [vmem:[%s8802_s8 + $0x520] sm:$0xff] }
 0x1e7   : > { %v2168_v37 = vunpack.c.l.s8.bf16 %v1832_v49  ;;  %v2338_v62 = vunpack.c.h.s8.bf16 %v1914_v47 }
 0x1e9   : > { %3125 = vmatpush1.bf16.msra.mxu1 %v2258_v23  ;;  %2914 = vmatpush1.bf16.msra.mxu0 %v2104_v18  ;;  %v2177_v23 = vunpack.c.h.s8.bf16 %v1833_v22  ;;  %v2339_v18 = vunpack.c.h.s8.bf16 %v1915_v17  ;;  %v2233_v22 = vunpack.c.l.s8.bf16 %v1865_v53 }
 0x1ea   : > { %3135 = vmatprep.subr.bf16.mxu1 %v2267_v54  ;;  %2915 = vmatprep.subr.bf16.mxu0 %v2113_v38  ;;  %v2330_v54 = vunpack.c.l.s8.bf16 %v1914_v47  ;;  %v1923_v38 = vld [vmem:[%s8802_s8 + $0x568] sm:$0xff]  ;;  %v1873_v47 = vld [vmem:[%s8802_s8 + $0x3d8] sm:$0xff] }
 0x1ec   : > { %3127 = vmatmul.mubr.bf16.vlgmr.msra.gmra.mrb[4].mxu1 %v7165_v60 }
 0x1ed   : > { %3136 = vmatpush1.bf16.msra.mxu1 %v2266_v61  ;;  %3167 = vmatprep.mubr.bf16.mxu1 %v9046_v51  ;;  %v2176_v61 = vunpack.c.h.s8.bf16 %v1832_v49 }
 0x1ee   : > { %3137 = vmatprep.subr.bf16.mxu1 %v2275_v6  ;;  %2916 = vmatpush1.bf16.msra.mxu0 %v2112_v44  ;;  %v1840_v6 = vld [vmem:[%s8802_s8 + $0x2d0] sm:$0xff]  ;;  %v2347_v44 = vunpack.c.l.s8.bf16 %v1923_v38 }
 0x1ef   : > { %2917 = vmatprep.subr.bf16.mxu0 %v2121_v9  ;;  %v1922_v9 = vld [vmem:[%s8802_s8 + $0x560] sm:$0xff]  ;;  %v2184_v8 = vunpack.c.l.s8.bf16 %v1840_v6 }
 0x1f0   : > { %v2354_v58 = vunpack.c.h.s8.bf16 %v1922_v9 }
 0x1f1   : > { %3138 = vmatpush1.bf16.msra.mxu1 %v2274_v26  ;;  %v2193_v26 = vunpack.c.h.s8.bf16 %v1841_v63  ;;  %v9047_v63 = vld [vmem:[#allocation21_spill] sm:$0xff] }
 0x1f2   : > { %3139 = vmatprep.subr.bf16.mxu1 %v2283_v36  ;;  %2918 = vmatpush1.bf16.msra.mxu0 %v2120_v4  ;;  %v2346_v36 = vunpack.c.l.s8.bf16 %v1922_v9  ;;  %v2355_v4 = vunpack.c.h.s8.bf16 %v1923_v38  ;;  %v1872_v38 = vld [vmem:[%s8802_s8 + $0x3d0] sm:$0xff] }
 0x1f3   : > { %2919 = vmatprep.subr.bf16.mxu0 %v2129_v7  ;;  %v1931_v7 = vld [vmem:[%s8802_s8 + $0x5a8] sm:$0xff] }
 0x1f5   : > { %3140 = vmatpush1.bf16.msra.mxu1 %v2282_v13  ;;  %v2192_v13 = vunpack.c.h.s8.bf16 %v1840_v6  ;;  %v1954_v6 = vld [vmem:[%s8802_s8 + $0x660] sm:$0xff] }
 0x1f6   : > { %3141 = vmatprep.subr.bf16.mxu1 %v2291_v16  ;;  %2920 = vmatpush1.bf16.msra.mxu0 %v2128_v31  ;;  %v1848_v16 = vld [vmem:[%s8802_s8 + $0x310] sm:$0xff]  ;;  %v2363_v31 = vunpack.c.l.s8.bf16 %v1931_v7  ;;  %v2410_v9 = vunpack.c.l.s8.bf16 %v1954_v6 }
 0x1f7   : > { %2930 = vmatprep.subr.bf16.mxu0 %v2137_v34  ;;  %v1930_v34 = vld [vmem:[%s8802_s8 + $0x5a0] sm:$0xff]  ;;  %v2200_v30 = vunpack.c.l.s8.bf16 %v1848_v16 }
 0x1f8   : > { %v2370_v1 = vunpack.c.h.s8.bf16 %v1930_v34 }
 0x1f9   : > { %3142 = vmatpush1.bf16.msra.mxu1 %v2290_v35  ;;  %2922 = vmatmul.mubr.bf16.vlgmr.msra.gmra.mrb[8].mxu0 %v9045_v33  ;;  %v2209_v35 = vunpack.c.h.s8.bf16 %v1849_v2  ;;  %v2256_v2 = vunpack.c.h.s8.bf16 %v1872_v38 }
 0x1fa   : > { %3143 = vmatprep.subr.bf16.mxu1 %v2299_v29  ;;  %2931 = vmatpush1.bf16.msra.mxu0 %v2136_v21  ;;  %v2362_v29 = vunpack.c.l.s8.bf16 %v1930_v34  ;;  %v2371_v21 = vunpack.c.h.s8.bf16 %v1931_v7  ;;  %v1880_v7 = vld [vmem:[%s8802_s8 + $0x410] sm:$0xff] }
 0x1fb   : > { %2962 = vmatprep.mubr.bf16.mxu0 %v7022_v32  ;;  %2932 = vmatprep.subr.bf16.mxu0 %v2145_v11  ;;  %v1939_v11 = vld [vmem:[%s8802_s8 + $0x5e8] sm:$0xff] }
 0x1fd   : > { %3144 = vmatpush1.bf16.msra.mxu1 %v2298_v42  ;;  %v2208_v42 = vunpack.c.h.s8.bf16 %v1848_v16  ;;  %v1962_v16 = vld [vmem:[%s8802_s8 + $0x6a0] sm:$0xff] }
 0x1fe   : > { %3145 = vmatprep.subr.bf16.mxu1 %v2307_v28  ;;  %2933 = vmatpush1.bf16.msra.mxu0 %v2144_v48  ;;  %v1856_v28 = vld [vmem:[%s8802_s8 + $0x350] sm:$0xff]  ;;  %v2379_v48 = vunpack.c.l.s8.bf16 %v1939_v11  ;;  %v2426_v34 = vunpack.c.l.s8.bf16 %v1962_v16 }
 0x1ff   : > { %2934 = vmatprep.subr.bf16.mxu0 %v2153_v52  ;;  %v1938_v52 = vld [vmem:[%s8802_s8 + $0x5e0] sm:$0xff]  ;;  %v2216_v20 = vunpack.c.l.s8.bf16 %v1856_v28 }
 0x200   : > { %v2386_v17 = vunpack.c.h.s8.bf16 %v1938_v52 }
 0x201   : > { %3146 = vmatpush1.bf16.msra.mxu1 %v2306_v3  ;;  %v2225_v3 = vunpack.c.h.s8.bf16 %v1857_v59  ;;  %v2272_v59 = vunpack.c.h.s8.bf16 %v1880_v7 }
 0x202   : > { %3147 = vmatprep.subr.bf16.mxu1 %v2315_v0  ;;  %2935 = vmatpush1.bf16.msra.mxu0 %v2152_v43  ;;  %v2378_v0 = vunpack.c.l.s8.bf16 %v1938_v52  ;;  %v2387_v43 = vunpack.c.h.s8.bf16 %v1939_v11  ;;  %v1888_v11 = vld [vmem:[%s8802_s8 + $0x450] sm:$0xff] }
 0x203   : > { %2936 = vmatprep.subr.bf16.mxu0 %v2161_v24  ;;  %v1947_v24 = vld [vmem:[%s8802_s8 + $0x628] sm:$0xff] }
 0x205   : > { %3148 = vmatpush1.bf16.msra.mxu1 %v2314_v25  ;;  %v2224_v25 = vunpack.c.h.s8.bf16 %v1856_v28  ;;  %v1970_v28 = vld [vmem:[%s8802_s8 + $0x6e0] sm:$0xff] }
 0x206   : > { %3149 = vmatprep.subr.bf16.mxu1 %v2323_v27  ;;  %2937 = vmatpush1.bf16.msra.mxu0 %v2160_v5  ;;  %v1864_v27 = vld [vmem:[%s8802_s8 + $0x390] sm:$0xff]  ;;  %v2395_v5 = vunpack.c.l.s8.bf16 %v1947_v24 }
 0x207   : > { %2938 = vmatprep.subr.bf16.mxu0 %v2169_v57  ;;  %v1946_v57 = vld [vmem:[%s8802_s8 + $0x620] sm:$0xff]  ;;  %v2232_v49 = vunpack.c.l.s8.bf16 %v1864_v27 }
 0x209   : > { %3150 = vmatpush1.bf16.msra.mxu1 %v2322_v40  ;;  %v2241_v40 = vunpack.c.h.s8.bf16 %v1865_v53 }
 0x20a   : > { %3151 = vmatprep.subr.bf16.mxu1 %v2331_v56  ;;  %2939 = vmatpush1.bf16.msra.mxu0 %v2168_v37  ;;  %v2394_v56 = vunpack.c.l.s8.bf16 %v1946_v57  ;;  %v2403_v37 = vunpack.c.h.s8.bf16 %v1947_v24 }
 0x20b   : > { %2940 = vmatprep.subr.bf16.mxu0 %v2177_v23  ;;  %v1955_v23 = vld [vmem:[%s8802_s8 + $0x668] sm:$0xff] }
 0x20d   : > { %3152 = vmatpush1.bf16.msra.mxu1 %v2330_v54  ;;  %v2240_v54 = vunpack.c.h.s8.bf16 %v1864_v27 }
 0x20e   : > { %3153 = vmatprep.subr.bf16.mxu1 %v2339_v18  ;;  %2941 = vmatpush1.bf16.msra.mxu0 %v2176_v61  ;;  %v2249_v18 = vunpack.c.l.s8.bf16 %v1873_v47  ;;  %v2402_v61 = vunpack.c.h.s8.bf16 %v1946_v57 }
 0x20f   : > { %2942 = vmatprep.subr.bf16.mxu0 %v2185_v14  ;;  %v2411_v14 = vunpack.c.l.s8.bf16 %v1955_v23 }
 0x211   : > { %3154 = vmatpush1.bf16.msra.mxu1 %v2338_v62  ;;  %v2248_v62 = vunpack.c.l.s8.bf16 %v1872_v38 }
 0x212   : > { %3155 = vmatprep.subr.bf16.mxu1 %v2347_v44  ;;  %2943 = vmatpush1.bf16.msra.mxu0 %v2184_v8  ;;  %v2257_v44 = vunpack.c.h.s8.bf16 %v1873_v47  ;;  %v1881_v8 = vld [vmem:[%s8802_s8 + $0x418] sm:$0xff] }
 0x213   : > { %2944 = vmatprep.subr.bf16.mxu0 %v2193_v26  ;;  %v2419_v26 = vunpack.c.h.s8.bf16 %v1955_v23 }
 0x215   : > { %3156 = vmatpush1.bf16.msra.mxu1 %v2346_v36  ;;  %v1963_v36 = vld [vmem:[%s8802_s8 + $0x6a8] sm:$0xff] }
 0x216   : > { %3157 = vmatprep.subr.bf16.mxu1 %v2355_v4  ;;  %2945 = vmatpush1.bf16.msra.mxu0 %v2192_v13  ;;  %v2265_v4 = vunpack.c.l.s8.bf16 %v1881_v8  ;;  %v2418_v13 = vunpack.c.h.s8.bf16 %v1954_v6 }
 0x217   : > { %2946 = vmatprep.subr.bf16.mxu0 %v2201_v50  ;;  %v2427_v50 = vunpack.c.l.s8.bf16 %v1963_v36 }
 0x219   : > { %3158 = vmatpush1.bf16.msra.mxu1 %v2354_v58  ;;  %v2264_v58 = vunpack.c.l.s8.bf16 %v1880_v7 }
 0x21a   : > { %3159 = vmatprep.subr.bf16.mxu1 %v2363_v31  ;;  %2947 = vmatpush1.bf16.msra.mxu0 %v2200_v30  ;;  %v2273_v31 = vunpack.c.h.s8.bf16 %v1881_v8  ;;  %v1889_v30 = vld [vmem:[%s8802_s8 + $0x458] sm:$0xff] }
 0x21b   : > { %2948 = vmatprep.subr.bf16.mxu0 %v2209_v35  ;;  %v2435_v35 = vunpack.c.h.s8.bf16 %v1963_v36  ;;  %v2289_v52 = vunpack.c.h.s8.bf16 %v1889_v30 }
 0x21d   : > { %3160 = vmatpush1.bf16.msra.mxu1 %v2362_v29  ;;  %v1971_v29 = vld [vmem:[%s8802_s8 + $0x6e8] sm:$0xff] }
 0x21e   : > { %3161 = vmatprep.subr.bf16.mxu1 %v2371_v21  ;;  %2949 = vmatpush1.bf16.msra.mxu0 %v2208_v42  ;;  %v2281_v21 = vunpack.c.l.s8.bf16 %v1889_v30  ;;  %v2434_v42 = vunpack.c.h.s8.bf16 %v1962_v16 }
 0x21f   : > { %2950 = vmatprep.subr.bf16.mxu0 %v2217_v19  ;;  %v2443_v19 = vunpack.c.l.s8.bf16 %v1971_v29 }
 0x221   : > { %3162 = vmatpush1.bf16.msra.mxu1 %v2370_v1  ;;  %v2280_v1 = vunpack.c.l.s8.bf16 %v1888_v11 }
 0x222   : > { %3163 = vmatprep.subr.bf16.mxu1 %v2379_v48  ;;  %2951 = vmatpush1.bf16.msra.mxu0 %v2216_v20 }
 0x223   : > { %2952 = vmatprep.subr.bf16.mxu0 %v2225_v3  ;;  %v2442_v3 = vunpack.c.l.s8.bf16 %v1970_v28 }
 0x225   : > { %3164 = vmatpush1.bf16.msra.mxu1 %v2378_v0  ;;  %v1897_v0 = vld [vmem:[%s8802_s8 + $0x498] sm:$0xff] }
 0x226   : > { %3165 = vmatprep.subr.bf16.mxu1 %v2387_v43  ;;  %2953 = vmatpush1.bf16.msra.mxu0 %v2224_v25  ;;  %v2451_v43 = vunpack.c.h.s8.bf16 %v1971_v29  ;;  %v1979_v25 = vld [vmem:[%s8802_s8 + $0x728] sm:$0xff]  ;;  %v2297_v27 = vunpack.c.l.s8.bf16 %v1897_v0 }
 0x227   : > { %2954 = vmatprep.subr.bf16.mxu0 %v2233_v22  ;;  %v2288_v22 = vunpack.c.h.s8.bf16 %v1888_v11  ;;  %v2459_v57 = vunpack.c.l.s8.bf16 %v1979_v25  ;;  %v2467_v23 = vunpack.c.h.s8.bf16 %v1979_v25  ;;  %v1929_v25 = vld [vmem:[%s8802_s8 + $0x598] sm:$0xff] }
 0x229   : > { %3166 = vmatpush1.bf16.msra.mxu1 %v2386_v17  ;;  %v1896_v17 = vld [vmem:[%s8802_s8 + $0x490] sm:$0xff] }
 0x22a   : > { %3176 = vmatprep.subr.bf16.mxu1 %v2395_v5  ;;  %2955 = vmatpush1.bf16.msra.mxu0 %v2232_v49  ;;  %v2450_v5 = vunpack.c.h.s8.bf16 %v1970_v28  ;;  %v1978_v49 = vld [vmem:[%s8802_s8 + $0x720] sm:$0xff] }
 0x22b   : > { %2956 = vmatprep.subr.bf16.mxu0 %v2241_v40  ;;  %v2296_v40 = vunpack.c.l.s8.bf16 %v1896_v17  ;;  %v2458_v47 = vunpack.c.l.s8.bf16 %v1978_v49 }
 0x22c   : > { %3168 = vmatmul.mubr.bf16.vlgmr.msra.gmra.mrb[4].mxu1 %v9047_v63 }
 0x22d   : > { %3177 = vmatpush1.bf16.msra.mxu1 %v2394_v56  ;;  %3208 = vmatprep.mubr.bf16.mxu1 %v7537_v12  ;;  %v2305_v56 = vunpack.c.h.s8.bf16 %v1897_v0  ;;  %v8008_v0 = vld [vmem:[%s8804_s10] sm:$0xff] }
 0x22e   : > { %3178 = vmatprep.subr.bf16.mxu1 %v2403_v37  ;;  %2957 = vmatpush1.bf16.msra.mxu0 %v2240_v54  ;;  %v1905_v37 = vld [vmem:[%s8802_s8 + $0x4d8] sm:$0xff]  ;;  %v1987_v54 = vld [vmem:[%s8802_s8 + $0x768] sm:$0xff] }
 0x22f   : > { %2958 = vmatprep.subr.bf16.mxu0 %v2249_v18  ;;  %v2304_v18 = vunpack.c.h.s8.bf16 %v1896_v17  ;;  %v2313_v38 = vunpack.c.l.s8.bf16 %v1905_v37  ;;  %v2475_v6 = vunpack.c.l.s8.bf16 %v1987_v54  ;;  %v2483_v36 = vunpack.c.h.s8.bf16 %v1987_v54 }
 0x230   : > { %v2369_v54 = vunpack.c.h.s8.bf16 %v1929_v25 }
 0x231   : > { %3179 = vmatpush1.bf16.msra.mxu1 %v2402_v61  ;;  %v1904_v61 = vld [vmem:[%s8802_s8 + $0x4d0] sm:$0xff] }
 0x232   : > { %3180 = vmatprep.subr.bf16.mxu1 %v2411_v14  ;;  %2959 = vmatpush1.bf16.msra.mxu0 %v2248_v62  ;;  %v2466_v14 = vunpack.c.h.s8.bf16 %v1978_v49  ;;  %v1986_v62 = vld [vmem:[%s8802_s8 + $0x760] sm:$0xff]  ;;  %v2361_v49 = vunpack.c.l.s8.bf16 %v1929_v25 }
 0x233   : > { %2960 = vmatprep.subr.bf16.mxu0 %v2257_v44  ;;  %v2312_v44 = vunpack.c.l.s8.bf16 %v1904_v61  ;;  %v2474_v8 = vunpack.c.l.s8.bf16 %v1986_v62  ;;  %v3513_v25 = vld [vmem:[#allocation2 + $0xc0] sm:$0xff] }
 0x235   : > { %3181 = vmatpush1.bf16.msra.mxu1 %v2410_v9  ;;  %v2321_v9 = vunpack.c.h.s8.bf16 %v1905_v37  ;;  %v3489_v37 = vld [vmem:[#allocation2] sm:$0xff] }
 0x236   : > { %3182 = vmatprep.subr.bf16.mxu1 %v2419_v26  ;;  %2961 = vmatpush1.bf16.msra.mxu0 %v2256_v2  ;;  %v1913_v26 = vld [vmem:[%s8802_s8 + $0x518] sm:$0xff]  ;;  %v1995_v2 = vld [vmem:[%s8802_s8 + $0x7a8] sm:$0xff] }
 0x237   : > { %2971 = vmatprep.subr.bf16.mxu0 %v2265_v4  ;;  %v2320_v4 = vunpack.c.h.s8.bf16 %v1904_v61  ;;  %v2329_v7 = vunpack.c.l.s8.bf16 %v1913_v26  ;;  %v2491_v16 = vunpack.c.l.s8.bf16 %v1995_v2  ;;  %v2499_v29 = vunpack.c.h.s8.bf16 %v1995_v2 }
 0x239   : > { %3183 = vmatpush1.bf16.msra.mxu1 %v2418_v13  ;;  %2963 = vmatmul.mubr.bf16.vlgmr.msra.gmra.mrb[8].mxu0 %v7165_v60  ;;  %v1912_v13 = vld [vmem:[%s8802_s8 + $0x510] sm:$0xff] }
 0x23a   : > { %3184 = vmatprep.subr.bf16.mxu1 %v2427_v50  ;;  %2972 = vmatpush1.bf16.msra.mxu0 %v2264_v58  ;;  %v2482_v50 = vunpack.c.h.s8.bf16 %v1986_v62  ;;  %v1994_v58 = vld [vmem:[%s8802_s8 + $0x7a0] sm:$0xff]  ;;  %v2336_v11 = vunpack.c.h.s8.bf16 %v1912_v13 }
 0x23b   : > { %3003 = vmatprep.mubr.bf16.mxu0 %v9046_v51  ;;  %2973 = vmatprep.subr.bf16.mxu0 %v2273_v31  ;;  %v2328_v31 = vunpack.c.l.s8.bf16 %v1912_v13  ;;  %v2490_v30 = vunpack.c.l.s8.bf16 %v1994_v58  ;;  %v2498_v28 = vunpack.c.h.s8.bf16 %v1994_v58  ;;  %v1945_v13 = vld [vmem:[%s8802_s8 + $0x618] sm:$0xff] }
 0x23d   : > { %3185 = vmatpush1.bf16.msra.mxu1 %v2426_v34  ;;  %v2337_v34 = vunpack.c.h.s8.bf16 %v1913_v26 }
 0x23e   : > { %3186 = vmatprep.subr.bf16.mxu1 %v2435_v35  ;;  %2974 = vmatpush1.bf16.msra.mxu0 %v2272_v59  ;;  %v1921_v35 = vld [vmem:[%s8802_s8 + $0x558] sm:$0xff]  ;;  %v7992_v59 = vld [vmem:[%s8803_s9] sm:$0xff] }
 0x23f   : > { %v7946_v48 = vpop.f32.mrb[0].mxu1  ;;  %2975 = vmatprep.subr.bf16.mxu0 %v2281_v21  ;;  %v2003_v21 = vld [vmem:[%s8802_s8 + $0x7e8] sm:$0xff] }
 0x240   : > { %v7948_v20 = vpop.f32.mrb[1].mxu1  ;;  %v2515_v17 = vunpack.c.h.s8.bf16 %v2003_v21 }
 0x241   : > { %3187 = vmatpush1.bf16.msra.mxu1 %v2434_v42  ;;  %v2886_v53 = vpop.f32.mrb[2].mxu1  ;;  %v2345_v42 = vunpack.c.l.s8.bf16 %v1921_v35 }
 0x242   : > { %3188 = vmatprep.subr.bf16.mxu1 %v2443_v19  ;;  %v2887_v24 = vpop.f32.mrb[3].mxu1  ;;  %2976 = vmatpush1.bf16.msra.mxu0 %v2280_v1  ;;  %v1920_v19 = vld [vmem:[%s8802_s8 + $0x550] sm:$0xff]  ;;  %v3390_v1 = vrot.slane %v7992_v59, %v7701_v41 }
 0x243   : > { %2977 = vmatprep.subr.bf16.mxu0 %v2289_v52  ;;  %v2507_v52 = vunpack.c.l.s8.bf16 %v2003_v21  ;;  %v2344_v53 = vunpack.c.l.s8.bf16 %v1920_v19 }
 0x245   : > { %3189 = vmatpush1.bf16.msra.mxu1 %v2442_v3  ;;  %v2002_v3 = vld [vmem:[%s8802_s8 + $0x7e0] sm:$0xff] }
 0x246   : > { %3190 = vmatprep.subr.bf16.mxu1 %v2451_v43  ;;  %2978 = vmatpush1.bf16.msra.mxu0 %v2288_v22  ;;  %v2353_v43 = vunpack.c.h.s8.bf16 %v1921_v35  ;;  %v2506_v24 = vunpack.c.l.s8.bf16 %v2002_v3  ;;  %v3424_v22 = vmul.f32 %v3390_v1, %v7948_v20  ;;  %v3514_v1 = vld [vmem:[#allocation2 + $0xc8] sm:$0xff] }
 0x247   : > { %2979 = vmatprep.subr.bf16.mxu0 %v2297_v27  ;;  %v3440_v27 = vrot.slane %v8008_v0, %v7701_v41 }
 0x249   : > { %3191 = vmatpush1.bf16.msra.mxu1 %v2450_v5  ;;  %v3490_v5 = vld [vmem:[#allocation2 + $0x8] sm:$0xff] }
 0x24a   : > { %3192 = vmatprep.subr.bf16.mxu1 %v2459_v57  ;;  %2980 = vmatpush1.bf16.msra.mxu0 %v2296_v40  ;;  %v2352_v57 = vunpack.c.h.s8.bf16 %v1920_v19  ;;  %v1928_v40 = vld [vmem:[%s8802_s8 + $0x590] sm:$0xff]  ;;  %v3746_v20 = vunpack.c.l.s8.bf16 %v3490_v5  ;;  %v1953_v19 = vld [vmem:[%s8802_s8 + $0x658] sm:$0xff] }
 0x24b   : > { %2981 = vmatprep.subr.bf16.mxu0 %v2305_v56  ;;  %v2514_v56 = vunpack.c.h.s8.bf16 %v2002_v3  ;;  %v2368_v62 = vunpack.c.h.s8.bf16 %v1928_v40  ;;  %v2409_v3 = vunpack.c.l.s8.bf16 %v1953_v19 }
 0x24d   : > { %3193 = vmatpush1.bf16.msra.mxu1 %v2458_v47  ;;  %v8019_v47 = vadd.f32 %v3440_v27, %v3424_v22  ;;  %v2417_v27 = vunpack.c.h.s8.bf16 %v1953_v19 }
 0x24e   : > { %3194 = vmatprep.subr.bf16.mxu1 %v2467_v23  ;;  %2982 = vmatpush1.bf16.msra.mxu0 %v2304_v18  ;;  %v2360_v23 = vunpack.c.l.s8.bf16 %v1928_v40  ;;  %v3745_v18 = vunpack.c.l.s8.bf16 %v3489_v37 }
 0x24f   : > { %2983 = vmatprep.subr.bf16.mxu0 %v2313_v38  ;;  %v1937_v38 = vld [vmem:[%s8802_s8 + $0x5d8] sm:$0xff]  ;;  %v8026_v61 = vpack.c.bf16 %v8019_v47, %v8019_v47 }
 0x251   : > { %3195 = vmatpush1.bf16.msra.mxu1 %v2466_v14  ;;  %v3754_v14 = vunpack.c.h.s8.bf16 %v3490_v5  ;;  %v1961_v5 = vld [vmem:[%s8802_s8 + $0x698] sm:$0xff] }
 0x252   : > { %3196 = vmatprep.subr.bf16.mxu1 %v2475_v6  ;;  %2984 = vmatpush1.bf16.msra.mxu0 %v2312_v44  ;;  %v3498_v6 = vld [vmem:[#allocation2 + $0x48] sm:$0xff]  ;;  %v2377_v44 = vunpack.c.l.s8.bf16 %v1937_v38 }
 0x253   : > { %2985 = vmatprep.subr.bf16.mxu0 %v2321_v9  ;;  %v1936_v9 = vld [vmem:[%s8802_s8 + $0x5d0] sm:$0xff]  ;;  %v3762_v26 = vunpack.c.l.s8.bf16 %v3498_v6 }
 0x254   : > { %v2376_v2 = vunpack.c.l.s8.bf16 %v1936_v9  ;;  %v2384_v58 = vunpack.c.h.s8.bf16 %v1936_v9 }
 0x255   : > { %3197 = vmatpush1.bf16.msra.mxu1 %v2474_v8  ;;  %v3753_v8 = vunpack.c.h.s8.bf16 %v3489_v37  ;;  %v3801_v37 = vunpack.c.h.s8.bf16 %v3513_v25 }
 0x256   : > { %3198 = vmatprep.subr.bf16.mxu1 %v2483_v36  ;;  %2986 = vmatpush1.bf16.msra.mxu0 %v2320_v4  ;;  %v3497_v36 = vld [vmem:[#allocation2 + $0x40] sm:$0xff]  ;;  %v2385_v4 = vunpack.c.h.s8.bf16 %v1937_v38 }
 0x257   : > { %2987 = vmatprep.subr.bf16.mxu0 %v2329_v7  ;;  %v3761_v7 = vunpack.c.l.s8.bf16 %v3497_v36  ;;  %v938_v38 = vld [vmem:[%s8800_s6] sm:$0x3] }
 0x259   : > { %3199 = vmatpush1.bf16.msra.mxu1 %v2482_v50  ;;  %v3770_v50 = vunpack.c.h.s8.bf16 %v3498_v6 }
 0x25a   : > { %3200 = vmatprep.subr.bf16.mxu1 %v2491_v16  ;;  %2988 = vmatpush1.bf16.msra.mxu0 %v2328_v31  ;;  %v3506_v16 = vld [vmem:[#allocation2 + $0x88] sm:$0xff]  ;;  %v2393_v31 = vunpack.c.l.s8.bf16 %v1945_v13 }
 0x25b   : > { %2989 = vmatprep.subr.bf16.mxu0 %v2337_v34  ;;  %v1944_v34 = vld [vmem:[%s8802_s8 + $0x610] sm:$0xff]  ;;  %v3778_v35 = vunpack.c.l.s8.bf16 %v3506_v16 }
 0x25c   : > { %v2392_v21 = vunpack.c.l.s8.bf16 %v1944_v34 }
 0x25d   : > { %3201 = vmatpush1.bf16.msra.mxu1 %v2490_v30  ;;  %v3769_v30 = vunpack.c.h.s8.bf16 %v3497_v36  ;;  %v947_v36 = vrot.slane %v938_v38, %v7701_v41 }
 0x25e   : > { %3202 = vmatprep.subr.bf16.mxu1 %v2499_v29  ;;  %2990 = vmatpush1.bf16.msra.mxu0 %v2336_v11  ;;  %v3505_v29 = vld [vmem:[#allocation2 + $0x80] sm:$0xff]  ;;  %v2401_v11 = vunpack.c.h.s8.bf16 %v1945_v13  ;;  %v1968_v13 = vld [vmem:[%s8802_s8 + $0x6d0] sm:$0xff] }
 0x25f   : > { %2991 = vmatprep.subr.bf16.mxu0 %v2345_v42  ;;  %v3777_v42 = vunpack.c.l.s8.bf16 %v3505_v29 }
 0x261   : > { %3203 = vmatpush1.bf16.msra.mxu1 %v2498_v28  ;;  %v3786_v28 = vunpack.c.h.s8.bf16 %v3506_v16 }
 0x262   : > { %3204 = vmatprep.subr.bf16.mxu1 %v2507_v52  ;;  %2992 = vmatpush1.bf16.msra.mxu0 %v2344_v53  ;;  %v2400_v52 = vunpack.c.h.s8.bf16 %v1944_v34  ;;  %v1952_v53 = vld [vmem:[%s8802_s8 + $0x650] sm:$0xff]  ;;  %v3529_v34 = vld [vmem:[#allocation2 + $0x140] sm:$0xff] }
 0x263   : > { %2993 = vmatprep.subr.bf16.mxu0 %v2353_v43  ;;  %v3785_v43 = vunpack.c.h.s8.bf16 %v3505_v29  ;;  %v2408_v22 = vunpack.c.l.s8.bf16 %v1952_v53  ;;  %v2416_v40 = vunpack.c.h.s8.bf16 %v1952_v53 }
 0x265   : > { %3205 = vmatpush1.bf16.msra.mxu1 %v2506_v24  ;;  %v3794_v24 = vunpack.c.l.s8.bf16 %v3514_v1 }
 0x266   : > { %3206 = vmatprep.subr.bf16.mxu1 %v2515_v17  ;;  %2994 = vmatpush1.bf16.msra.mxu0 %v2352_v57  ;;  %v3793_v17 = vunpack.c.l.s8.bf16 %v3513_v25  ;;  %v3802_v57 = vunpack.c.h.s8.bf16 %v3514_v1  ;;  %v3825_v1 = vunpack.c.l.s8.bf16 %v3529_v34  ;;  %v3538_v25 = vld [vmem:[#allocation2 + $0x188] sm:$0xff] }
 0x267   : > { %2995 = vmatprep.subr.bf16.mxu0 %v2361_v49  ;;  %v3522_v49 = vld [vmem:[#allocation2 + $0x108] sm:$0xff] }
 0x268   : > { %v3818_v9 = vunpack.c.h.s8.bf16 %v3522_v49 }
 0x269   : > { %3207 = vmatpush1.bf16.msra.mxu1 %v2514_v56  ;;  %v2425_v56 = vunpack.c.l.s8.bf16 %v1961_v5 }
 0x26a   : > { %4257 = vmatprep.subr.bf16.mxu1 %v3746_v20  ;;  %2996 = vmatpush1.bf16.msra.mxu0 %v2360_v23  ;;  %v1960_v20 = vld [vmem:[%s8802_s8 + $0x690] sm:$0xff]  ;;  %v3810_v23 = vunpack.c.l.s8.bf16 %v3522_v49  ;;  %v3537_v49 = vld [vmem:[#allocation2 + $0x180] sm:$0xff] }
 0x26b   : > { %2997 = vmatprep.subr.bf16.mxu0 %v2369_v54  ;;  %v3521_v54 = vld [vmem:[#allocation2 + $0x100] sm:$0xff] }
 0x26c   : > { %3209 = vmatmul.mubr.bf16.vlgmr.msra.gmra.mrb[4].mxu1 %v7595_v45  ;;  %v3809_v6 = vunpack.c.l.s8.bf16 %v3521_v54 }
 0x26d   : > { %4258 = vmatpush1.bf16.msra.mxu1 %v3745_v18  ;;  %4289 = vmatprep.mubr.bf16.mxu1 %v8026_v61  ;;  %v2424_v18 = vunpack.c.l.s8.bf16 %v1960_v20 }
 0x26e   : > { %4259 = vmatprep.subr.bf16.mxu1 %v3754_v14  ;;  %2998 = vmatpush1.bf16.msra.mxu0 %v2368_v62  ;;  %v2433_v14 = vunpack.c.h.s8.bf16 %v1961_v5  ;;  %v952_v62 = vld [vmem:[%s8801_s7] sm:$0x3]  ;;  %v3833_v5 = vunpack.c.h.s8.bf16 %v3529_v34 }
 0x26f   : > { %2999 = vmatprep.subr.bf16.mxu0 %v2377_v44  ;;  %v1969_v44 = vld [vmem:[%s8802_s8 + $0x6d8] sm:$0xff] }
 0x271   : > { %4260 = vmatpush1.bf16.msra.mxu1 %v3753_v8  ;;  %v943_v8 = vrot.slane %v938_v38, %v7692_v10 }
 0x272   : > { %4261 = vmatprep.subr.bf16.mxu1 %v3762_v26  ;;  %3000 = vmatpush1.bf16.msra.mxu0 %v2376_v2  ;;  %v3530_v26 = vld [vmem:[#allocation2 + $0x148] sm:$0xff]  ;;  %v2432_v2 = vunpack.c.h.s8.bf16 %v1960_v20  ;;  %v3841_v20 = vunpack.c.l.s8.bf16 %v3537_v49 }
 0x273   : > { %3001 = vmatprep.subr.bf16.mxu0 %v2385_v4  ;;  %v957_v4 = vrot.slane %v952_v62, %v7692_v10  ;;  %v3834_v53 = vunpack.c.h.s8.bf16 %v3530_v26 }
 0x275   : > { %4262 = vmatpush1.bf16.msra.mxu1 %v3761_v7  ;;  %v2441_v7 = vunpack.c.l.s8.bf16 %v1969_v44 }
 0x276   : > { %4263 = vmatprep.subr.bf16.mxu1 %v3770_v50  ;;  %3002 = vmatpush1.bf16.msra.mxu0 %v2384_v58  ;;  %v3817_v50 = vunpack.c.h.s8.bf16 %v3521_v54  ;;  %v961_v58 = vrot.slane %v952_v62, %v7701_v41  ;;  %v3546_v54 = vld [vmem:[#allocation2 + $0x1c8] sm:$0xff] }
 0x277   : > { %3012 = vmatprep.subr.bf16.mxu0 %v2393_v31  ;;  %v3826_v31 = vunpack.c.l.s8.bf16 %v3530_v26 }
 0x279   : > { %4264 = vmatpush1.bf16.msra.mxu1 %v3769_v30  ;;  %3004 = vmatmul.mubr.bf16.vlgmr.msra.gmra.mrb[8].mxu0 %v9047_v63 }
 0x27a   : > { %4265 = vmatprep.subr.bf16.mxu1 %v3778_v35  ;;  %3013 = vmatpush1.bf16.msra.mxu0 %v2392_v21 }
 0x27b   : > { %3044 = vmatprep.mubr.bf16.mxu0 %v7537_v12  ;;  %3014 = vmatprep.subr.bf16.mxu0 %v2401_v11  ;;  %v2440_v11 = vunpack.c.l.s8.bf16 %v1968_v13 }
 0x27d   : > { %4266 = vmatpush1.bf16.msra.mxu1 %v3777_v42 }
 0x27e   : > { %4267 = vmatprep.subr.bf16.mxu1 %v3786_v28  ;;  %3015 = vmatpush1.bf16.msra.mxu0 %v2400_v52  ;;  %v2449_v28 = vunpack.c.h.s8.bf16 %v1969_v44  ;;  %v3386_v44 = vrot.slane %v7992_v59, %v7692_v10 }
 0x27f   : > { %3016 = vmatprep.subr.bf16.mxu0 %v2409_v3  ;;  %v1977_v3 = vld [vmem:[%s8802_s8 + $0x718] sm:$0xff] }
 0x280   : > { %v3423_v59 = vmul.f32 %v3386_v44, %v7946_v48  ;;  %v1780_v44 = vld [vmem:[%s8802_s8 + $0xf0] sm:$0xff] }
 0x281   : > { %4268 = vmatpush1.bf16.msra.mxu1 %v3785_v43 }
 0x282   : > { %4269 = vmatprep.subr.bf16.mxu1 %v3794_v24  ;;  %3017 = vmatpush1.bf16.msra.mxu0 %v2408_v22  ;;  %v2448_v22 = vunpack.c.h.s8.bf16 %v1968_v13 }
 0x283   : > { %3018 = vmatprep.subr.bf16.mxu0 %v2417_v27  ;;  %v2457_v27 = vunpack.c.l.s8.bf16 %v1977_v3 }
 0x285   : > { %4270 = vmatpush1.bf16.msra.mxu1 %v3793_v17  ;;  %v1976_v17 = vld [vmem:[%s8802_s8 + $0x710] sm:$0xff] }
 0x286   : > { %4271 = vmatprep.subr.bf16.mxu1 %v3802_v57  ;;  %3019 = vmatpush1.bf16.msra.mxu0 %v2416_v40  ;;  %v3842_v57 = vunpack.c.l.s8.bf16 %v3538_v25  ;;  %v2456_v40 = vunpack.c.l.s8.bf16 %v1976_v17 }
 0x287   : > { %3020 = vmatprep.subr.bf16.mxu0 %v2425_v56  ;;  %v2465_v56 = vunpack.c.h.s8.bf16 %v1977_v3 }
 0x289   : > { %4272 = vmatpush1.bf16.msra.mxu1 %v3801_v37  ;;  %v1985_v37 = vld [vmem:[%s8802_s8 + $0x758] sm:$0xff] }
 0x28a   : > { %4273 = vmatprep.subr.bf16.mxu1 %v3810_v23  ;;  %3021 = vmatpush1.bf16.msra.mxu0 %v2424_v18  ;;  %v3850_v23 = vunpack.c.h.s8.bf16 %v3538_v25  ;;  %v2464_v18 = vunpack.c.h.s8.bf16 %v1976_v17  ;;  %v2473_v38 = vunpack.c.l.s8.bf16 %v1985_v37  ;;  %v1757_v25 = vld [vmem:[%s8802_s8 + $0x38] sm:$0xff] }
 0x28b   : > { %3022 = vmatprep.subr.bf16.mxu0 %v2433_v14  ;;  %v931_v16 = vpop.f32.mrb[4].mxu0  ;;  %v1984_v14 = vld [vmem:[%s8802_s8 + $0x750] sm:$0xff]  ;;  %v2021_v17 = vunpack.c.h.s8.bf16 %v1757_v25 }
 0x28c   : > { %v950_v30 = vmul.f32 %v943_v8, %v931_v16  ;;  %v933_v35 = vpop.f32.mrb[5].mxu0  ;;  %v3545_v8 = vld [vmem:[#allocation2 + $0x1c0] sm:$0xff]  ;;  %v3436_v16 = vrot.slane %v8008_v0, %v7692_v10 }
 0x28d   : > { %4274 = vmatpush1.bf16.msra.mxu1 %v3809_v6  ;;  %v951_v29 = vmul.f32 %v947_v36, %v933_v35  ;;  %v935_v21 = vpop.f32.mrb[6].mxu0  ;;  %v3849_v6 = vunpack.c.h.s8.bf16 %v3537_v49  ;;  %v3857_v13 = vunpack.c.l.s8.bf16 %v3545_v8  ;;  %v3865_v35 = vunpack.c.h.s8.bf16 %v3545_v8 }
 0x28e   : > { %4275 = vmatprep.subr.bf16.mxu1 %v3818_v9  ;;  %3023 = vmatpush1.bf16.msra.mxu0 %v2432_v2  ;;  %v964_v42 = vadd.f32 %v957_v4, %v950_v30  ;;  %v936_v19 = vpop.f32.mrb[7].mxu0  ;;  %v3858_v9 = vunpack.c.l.s8.bf16 %v3546_v54  ;;  %v2472_v2 = vunpack.c.l.s8.bf16 %v1984_v14  ;;  %v1992_v30 = vld [vmem:[%s8802_s8 + $0x790] sm:$0xff]  ;;  %v8095_v48 = vadd.f32 %v3436_v16, %v3423_v59  ;;  %v2001_v21 = vld [vmem:[%s8802_s8 + $0x7d8] sm:$0xff] }
 0x28f   : > { %3024 = vmatprep.subr.bf16.mxu0 %v2441_v7  ;;  %v965_v52 = vadd.f32 %v961_v58, %v951_v29  ;;  %v2481_v7 = vunpack.c.h.s8.bf16 %v1985_v37  ;;  %v3866_v58 = vunpack.c.h.s8.bf16 %v3546_v54  ;;  %v2488_v0 = vunpack.c.l.s8.bf16 %v1992_v30  ;;  %v1773_v37 = vld [vmem:[%s8802_s8 + $0xb8] sm:$0xff] }
 0x290   : > { %v5629_v43 = vmul.f32 -1.442695, %v964_v42  ;;  %v2496_v19 = vunpack.c.h.s8.bf16 %v1992_v30  ;;  %v2045_v54 = vunpack.c.l.s8.bf16 %v1773_v37  ;;  %v1797_v30 = vld [vmem:[%s8802_s8 + $0x178] sm:$0xff] }
 0x291   : > { %4276 = vmatpush1.bf16.msra.mxu1 %v3817_v50  ;;  %v5630_v24 = vmul.f32 -1.442695, %v965_v52  ;;  %v1993_v50 = vld [vmem:[%s8802_s8 + $0x798] sm:$0xff]  ;;  %v2000_v52 = vld [vmem:[%s8802_s8 + $0x7d0] sm:$0xff] }
 0x292   : > { %4277 = vmatprep.subr.bf16.mxu1 %v3826_v31  ;;  %3025 = vmatpush1.bf16.msra.mxu0 %v2440_v11  ;;  %5824 = vpow2.f32 %v5629_v43  ;;  %v2480_v31 = vunpack.c.h.s8.bf16 %v1984_v14  ;;  %v2489_v34 = vunpack.c.l.s8.bf16 %v1993_v50  ;;  %v2497_v29 = vunpack.c.h.s8.bf16 %v1993_v50  ;;  %v1781_v14 = vld [vmem:[%s8802_s8 + $0xf8] sm:$0xff]  ;;  %v3553_v50 = vld [vmem:[#allocation2 + $0x200] sm:$0xff] }
 0x293   : > { %3026 = vmatprep.subr.bf16.mxu0 %v2449_v28  ;;  %5826 = vpow2.f32 %v5630_v24  ;;  %v8103_v11 = vpack.c.bf16 %v8095_v48, %v8095_v48  ;;  %v2504_v43 = vunpack.c.l.s8.bf16 %v2000_v52  ;;  %v2513_v24 = vunpack.c.h.s8.bf16 %v2001_v21 }
 0x294   : > { %v2069_v8 = vunpack.c.h.s8.bf16 %v1781_v14  ;;  %v3873_v59 = vunpack.c.l.s8.bf16 %v3553_v50 }
 0x295   : > { %4278 = vmatpush1.bf16.msra.mxu1 %v3825_v1  ;;  %v2505_v1 = vunpack.c.l.s8.bf16 %v2001_v21  ;;  %v1796_v21 = vld [vmem:[%s8802_s8 + $0x170] sm:$0xff] }
 0x296   : > { %4279 = vmatprep.subr.bf16.mxu1 %v3834_v53  ;;  %3027 = vmatpush1.bf16.msra.mxu0 %v2448_v22  ;;  %v2512_v22 = vunpack.c.h.s8.bf16 %v2000_v52 }
 0x297   : > { %3028 = vmatprep.subr.bf16.mxu0 %v2457_v27 }
 0x299   : > { %4280 = vmatpush1.bf16.msra.mxu1 %v3833_v5  ;;  %v1765_v5 = vld [vmem:[%s8802_s8 + $0x78] sm:$0xff] }
 0x29a   : > { %4281 = vmatprep.subr.bf16.mxu1 %v3842_v57  ;;  %3029 = vmatpush1.bf16.msra.mxu0 %v2456_v40  ;;  %v2029_v49 = vunpack.c.l.s8.bf16 %v1765_v5  ;;  %v1764_v40 = vld [vmem:[%s8802_s8 + $0x70] sm:$0xff] }
 0x29b   : > { %3030 = vmatprep.subr.bf16.mxu0 %v2465_v56  ;;  %v2028_v56 = vunpack.c.l.s8.bf16 %v1764_v40 }
 0x29c   : > { %v5825_v62 = vpop.eup %5824 }
 0x29d   : > { %4282 = vmatpush1.bf16.msra.mxu1 %v3841_v20  ;;  %v5827_v26 = vpop.eup %5826  ;;  %v972_v36 = vadd.f32 1.0, %v5825_v62  ;;  %v2037_v20 = vunpack.c.h.s8.bf16 %v1765_v5  ;;  %v2061_v62 = vunpack.c.l.s8.bf16 %v1781_v14 }
 0x29e   : > { %4283 = vmatprep.subr.bf16.mxu1 %v3850_v23  ;;  %3031 = vmatpush1.bf16.msra.mxu0 %v2464_v18  ;;  %v973_v4 = vadd.f32 1.0, %v5827_v26  ;;  %v2036_v23 = vunpack.c.h.s8.bf16 %v1764_v40  ;;  %v1789_v26 = vld [vmem:[%s8802_s8 + $0x138] sm:$0xff] }
 0x29f   : > { %3032 = vmatprep.subr.bf16.mxu0 %v2473_v38  ;;  %5828 = vrcp.f32 %v972_v36  ;;  %v2053_v38 = vunpack.c.h.s8.bf16 %v1773_v37  ;;  %v2068_v36 = vunpack.c.h.s8.bf16 %v1780_v44  ;;  %v3578_v37 = vld [vmem:[#allocation2 + $0x2c8] sm:$0xff] }
 0x2a0   : > { %5830 = vrcp.f32 %v973_v4  ;;  %v2077_v4 = vunpack.c.l.s8.bf16 %v1789_v26 }
 0x2a1   : > { %4284 = vmatpush1.bf16.msra.mxu1 %v3849_v6 }
 0x2a2   : > { %4285 = vmatprep.subr.bf16.mxu1 %v3858_v9  ;;  %3033 = vmatpush1.bf16.msra.mxu0 %v2472_v2  ;;  %v2060_v9 = vunpack.c.l.s8.bf16 %v1780_v44  ;;  %v3554_v2 = vld [vmem:[#allocation2 + $0x208] sm:$0xff] }
 0x2a3   : > { %3034 = vmatprep.subr.bf16.mxu0 %v2481_v7  ;;  %v1788_v7 = vld [vmem:[%s8802_s8 + $0x130] sm:$0xff] }
 0x2a4   : > { %v2076_v16 = vunpack.c.l.s8.bf16 %v1788_v7 }
 0x2a5   : > { %4286 = vmatpush1.bf16.msra.mxu1 %v3857_v13  ;;  %v3874_v13 = vunpack.c.l.s8.bf16 %v3554_v2 }
 0x2a6   : > { %4287 = vmatprep.subr.bf16.mxu1 %v3866_v58  ;;  %3035 = vmatpush1.bf16.msra.mxu0 %v2480_v31  ;;  %v3882_v58 = vunpack.c.h.s8.bf16 %v3554_v2  ;;  %v2085_v31 = vunpack.c.h.s8.bf16 %v1789_v26  ;;  %v3586_v26 = vld [vmem:[#allocation2 + $0x308] sm:$0xff]  ;;  %v1820_v2 = vld [vmem:[%s8802_s8 + $0x230] sm:$0xff] }
 0x2a7   : > { %3036 = vmatprep.subr.bf16.mxu0 %v2489_v34  ;;  %v3881_v34 = vunpack.c.h.s8.bf16 %v3553_v50  ;;  %v2140_v50 = vunpack.c.l.s8.bf16 %v1820_v2 }
 0x2a9   : > { %4288 = vmatpush1.bf16.msra.mxu1 %v3865_v35  ;;  %v5829_v42 = vpop.eup %5828  ;;  %v2084_v35 = vunpack.c.h.s8.bf16 %v1788_v7  ;;  %v3585_v7 = vld [vmem:[#allocation2 + $0x300] sm:$0xff] }
 0x2aa   : > { %3037 = vmatpush1.bf16.msra.mxu0 %v2488_v0  ;;  %v5831_v28 = vpop.eup %5830  ;;  %v978_v3 = vmul.f32 %v5829_v42, %v7718_v15  ;;  %v2013_v15 = vunpack.c.l.s8.bf16 %v1757_v25  ;;  %4298 = vmatprep.subr.bf16.mxu1 %v3874_v13  ;;  %v3562_v0 = vld [vmem:[#allocation2 + $0x248] sm:$0xff]  ;;  %v3937_v13 = vunpack.c.l.s8.bf16 %v3585_v7 }
 0x2ab   : > { %3038 = vmatprep.subr.bf16.mxu0 %v2497_v29  ;;  %v979_v53 = vmul.f32 %v5831_v28, %v7723_v55  ;;  %v1756_v55 = vld [vmem:[%s8802_s8 + $0x30] sm:$0xff]  ;;  %v2093_v29 = vunpack.c.l.s8.bf16 %v1797_v30  ;;  %v3890_v42 = vunpack.c.l.s8.bf16 %v3562_v0  ;;  %v3898_v52 = vunpack.c.h.s8.bf16 %v3562_v0  ;;  %v3570_v25 = vld [vmem:[#allocation2 + $0x288] sm:$0xff] }
 0x2ac   : > { %4290 = vmatmul.mubr.bf16.vlgmr.msra.gmra.mrb[8].mxu1 %v8103_v11  ;;  %980 = vst [vmem:[%s8113_s23] sm:$0xff] %v978_v3  ;;  %v2012_v27 = vunpack.c.l.s8.bf16 %v1756_v55  ;;  %v2020_v57 = vunpack.c.h.s8.bf16 %v1756_v55  ;;  %v2101_v3 = vunpack.c.h.s8.bf16 %v1797_v30  ;;  %v3906_v55 = vunpack.c.l.s8.bf16 %v3570_v25  ;;  %v3594_v30 = vld [vmem:[#allocation2 + $0x348] sm:$0xff]  ;;  %v1828_v0 = vld [vmem:[%s8802_s8 + $0x270] sm:$0xff] }
 0x2ad   : > { %981 = vst [vmem:[%s8113_s23 + $0x8] sm:$0xff] %v979_v53  ;;  %4299 = vmatpush1.bf16.msra.mxu1 %v3873_v59  ;;  %v3946_v59 = vunpack.c.h.s8.bf16 %v3586_v26 }
 0x2ae   : > { %3039 = vmatpush1.bf16.msra.mxu0 %v2496_v19  ;;  %4300 = vmatprep.subr.bf16.mxu1 %v3882_v58  ;;  %v3561_v19 = vld [vmem:[#allocation2 + $0x240] sm:$0xff]  ;;  %v3945_v58 = vunpack.c.h.s8.bf16 %v3585_v7 }
 0x2af   : > { %3040 = vmatprep.subr.bf16.mxu0 %v2505_v1  ;;  %v3889_v28 = vunpack.c.l.s8.bf16 %v3561_v19  ;;  %v2092_v1 = vunpack.c.l.s8.bf16 %v1796_v21  ;;  %v3897_v53 = vunpack.c.h.s8.bf16 %v3561_v19  ;;  %v2156_v19 = vunpack.c.l.s8.bf16 %v1828_v0 }
 0x2b1   : > { %4301 = vmatpush1.bf16.msra.mxu1 %v3881_v34  ;;  %v2148_v34 = vunpack.c.h.s8.bf16 %v1820_v2  ;;  %v1861_v2 = vld [vmem:[%s8802_s8 + $0x378] sm:$0xff] }
 0x2b2   : > { %3041 = vmatpush1.bf16.msra.mxu0 %v2504_v43  ;;  %4302 = vmatprep.subr.bf16.mxu1 %v3890_v42  ;;  %v1805_v43 = vld [vmem:[%s8802_s8 + $0x1b8] sm:$0xff]  ;;  %v2221_v7 = vunpack.c.l.s8.bf16 %v1861_v2 }
 0x2b3   : > { %3042 = vmatprep.subr.bf16.mxu0 %v2513_v24  ;;  %v2100_v24 = vunpack.c.h.s8.bf16 %v1796_v21  ;;  %v3593_v21 = vld [vmem:[#allocation2 + $0x340] sm:$0xff] }
 0x2b4   : > { %v3953_v42 = vunpack.c.l.s8.bf16 %v3593_v21 }
 0x2b5   : > { %4303 = vmatpush1.bf16.msra.mxu1 %v3889_v28  ;;  %v3962_v28 = vunpack.c.h.s8.bf16 %v3594_v30 }
 0x2b6   : > { %3043 = vmatpush1.bf16.msra.mxu0 %v2512_v22  ;;  %4304 = vmatprep.subr.bf16.mxu1 %v3898_v52  ;;  %v2109_v22 = vunpack.c.l.s8.bf16 %v1805_v43  ;;  %v2164_v52 = vunpack.c.h.s8.bf16 %v1828_v0  ;;  %v1877_v0 = vld [vmem:[%s8802_s8 + $0x3f8] sm:$0xff] }
 0x2b7   : > { %3217 = vmatprep.subr.bf16.mxu0 %v2013_v15  ;;  %v1804_v15 = vld [vmem:[%s8802_s8 + $0x1b0] sm:$0xff] }
 0x2b8   : > { %v2108_v5 = vunpack.c.l.s8.bf16 %v1804_v15 }
 0x2b9   : > { %3045 = vmatmul.mubr.bf16.vlgmr.msra.gmra.mrb[8].mxu0 %v7595_v45  ;;  %4305 = vmatpush1.bf16.msra.mxu1 %v3897_v53 }
 0x2ba   : > { %3218 = vmatpush1.bf16.msra.mxu0 %v2012_v27  ;;  %3249 = vmatprep.mubr.bf16.mxu0 %v9044_v46  ;;  %v1772_v46 = vld [vmem:[%s8802_s8 + $0xb0] sm:$0xff]  ;;  %v3569_v27 = vld [vmem:[#allocation2 + $0x280] sm:$0xff] }
 0x2bb   : > { %3219 = vmatprep.subr.bf16.mxu0 %v2021_v17  ;;  %v2044_v18 = vunpack.c.l.s8.bf16 %v1772_v46  ;;  %v2052_v6 = vunpack.c.h.s8.bf16 %v1772_v46  ;;  %v3905_v17 = vunpack.c.l.s8.bf16 %v3569_v27  ;;  %4306 = vmatprep.subr.bf16.mxu1 %v3906_v55  ;;  %v3913_v40 = vunpack.c.h.s8.bf16 %v3569_v27 }
 0x2bc   : > { %v3922_v46 = vunpack.c.l.s8.bf16 %v3578_v37 }
 0x2bd   : > { %4307 = vmatpush1.bf16.msra.mxu1 %v3905_v17 }
 0x2be   : > { %3220 = vmatpush1.bf16.msra.mxu0 %v2020_v57  ;;  %v3914_v57 = vunpack.c.h.s8.bf16 %v3570_v25  ;;  %v3601_v25 = vld [vmem:[#allocation2 + $0x380] sm:$0xff] }
 0x2bf   : > { %3221 = vmatprep.subr.bf16.mxu0 %v2029_v49  ;;  %v2117_v49 = vunpack.c.h.s8.bf16 %v1805_v43  ;;  %v1836_v43 = vld [vmem:[%s8802_s8 + $0x2b0] sm:$0xff]  ;;  %v3977_v17 = vunpack.c.h.s8.bf16 %v3601_v25 }
 0x2c0   : > { %4308 = vmatprep.subr.bf16.mxu1 %v3914_v57  ;;  %v2180_v57 = vunpack.c.h.s8.bf16 %v1836_v43 }
 0x2c1   : > { %4309 = vmatpush1.bf16.msra.mxu1 %v3913_v40  ;;  %v1844_v40 = vld [vmem:[%s8802_s8 + $0x2f0] sm:$0xff] }
 0x2c2   : > { %3222 = vmatpush1.bf16.msra.mxu0 %v2028_v56  ;;  %v1813_v56 = vld [vmem:[%s8802_s8 + $0x1f8] sm:$0xff]  ;;  %4310 = vmatprep.subr.bf16.mxu1 %v3922_v46 }
 0x2c3   : > { %3223 = vmatprep.subr.bf16.mxu0 %v2037_v20  ;;  %v2116_v20 = vunpack.c.h.s8.bf16 %v1804_v15  ;;  %v2172_v15 = vunpack.c.l.s8.bf16 %v1836_v43  ;;  %v1893_v43 = vld [vmem:[%s8802_s8 + $0x478] sm:$0xff] }
 0x2c6   : > { %3224 = vmatpush1.bf16.msra.mxu0 %v2036_v23  ;;  %v2125_v23 = vunpack.c.l.s8.bf16 %v1813_v56 }
 0x2c7   : > { %3225 = vmatprep.subr.bf16.mxu0 %v2045_v54  ;;  %v1812_v54 = vld [vmem:[%s8802_s8 + $0x1f0] sm:$0xff] }
 0x2c8   : > { %v2124_v14 = vunpack.c.l.s8.bf16 %v1812_v54 }
 0x2ca   : > { %3226 = vmatpush1.bf16.msra.mxu0 %v2044_v18  ;;  %v3577_v18 = vld [vmem:[#allocation2 + $0x2c0] sm:$0xff] }
 0x2cb   : > { %3227 = vmatprep.subr.bf16.mxu0 %v2053_v38  ;;  %v3921_v38 = vunpack.c.l.s8.bf16 %v3577_v18  ;;  %v3929_v44 = vunpack.c.h.s8.bf16 %v3577_v18  ;;  %v3609_v18 = vld [vmem:[#allocation2 + $0x3c0] sm:$0xff] }
 0x2cd   : > { %4311 = vmatpush1.bf16.msra.mxu1 %v3921_v38 }
 0x2ce   : > { %3228 = vmatpush1.bf16.msra.mxu0 %v2052_v6  ;;  %v3930_v6 = vunpack.c.h.s8.bf16 %v3578_v37  ;;  %v1853_v37 = vld [vmem:[%s8802_s8 + $0x338] sm:$0xff] }
 0x2cf   : > { %3229 = vmatprep.subr.bf16.mxu0 %v2061_v62  ;;  %v2133_v62 = vunpack.c.h.s8.bf16 %v1813_v56  ;;  %v2188_v56 = vunpack.c.l.s8.bf16 %v1844_v40 }
 0x2d0   : > { %4312 = vmatprep.subr.bf16.mxu1 %v3930_v6  ;;  %v1852_v6 = vld [vmem:[%s8802_s8 + $0x330] sm:$0xff] }
 0x2d1   : > { %4313 = vmatpush1.bf16.msra.mxu1 %v3929_v44  ;;  %v8199_v44 = vld [vmem:[#allocation2 + $0x408] sm:$0xff] }
 0x2d2   : > { %3230 = vmatpush1.bf16.msra.mxu0 %v2060_v9  ;;  %v1821_v9 = vld [vmem:[%s8802_s8 + $0x238] sm:$0xff] }
 0x2d3   : > { %3231 = vmatprep.subr.bf16.mxu0 %v2069_v8  ;;  %v2132_v8 = vunpack.c.h.s8.bf16 %v1812_v54  ;;  %v2196_v54 = vunpack.c.h.s8.bf16 %v1844_v40  ;;  %v1900_v40 = vld [vmem:[%s8802_s8 + $0x4b0] sm:$0xff] }
 0x2d6   : > { %3232 = vmatpush1.bf16.msra.mxu0 %v2068_v36  ;;  %v2141_v36 = vunpack.c.l.s8.bf16 %v1821_v9 }
 0x2d7   : > { %3233 = vmatprep.subr.bf16.mxu0 %v2077_v4  ;;  %v3938_v4 = vunpack.c.l.s8.bf16 %v3586_v26  ;;  %v4002_v26 = vunpack.c.l.s8.bf16 %v8199_v44 }
 0x2d9   : > { %4314 = vmatprep.subr.bf16.mxu1 %v3938_v4  ;;  %v2212_v4 = vunpack.c.h.s8.bf16 %v1852_v6 }
 0x2da   : > { %3234 = vmatpush1.bf16.msra.mxu0 %v2076_v16  ;;  %4315 = vmatpush1.bf16.msra.mxu1 %v3937_v13  ;;  %v2149_v16 = vunpack.c.h.s8.bf16 %v1821_v9  ;;  %v3993_v9 = vunpack.c.h.s8.bf16 %v3609_v18  ;;  %v1860_v13 = vld [vmem:[%s8802_s8 + $0x370] sm:$0xff] }
 0x2db   : > { %3235 = vmatprep.subr.bf16.mxu0 %v2085_v31  ;;  %v1829_v31 = vld [vmem:[%s8802_s8 + $0x278] sm:$0xff]  ;;  %4316 = vmatprep.subr.bf16.mxu1 %v3946_v59  ;;  %v2229_v59 = vunpack.c.h.s8.bf16 %v1861_v2 }
 0x2de   : > { %3236 = vmatpush1.bf16.msra.mxu0 %v2084_v35  ;;  %v2157_v35 = vunpack.c.l.s8.bf16 %v1829_v31  ;;  %4317 = vmatpush1.bf16.msra.mxu1 %v3945_v58  ;;  %v2228_v58 = vunpack.c.h.s8.bf16 %v1860_v13 }
 0x2df   : > { %3237 = vmatprep.subr.bf16.mxu0 %v2093_v29  ;;  %v3954_v29 = vunpack.c.l.s8.bf16 %v3594_v30 }
 0x2e1   : > { %4318 = vmatprep.subr.bf16.mxu1 %v3954_v29 }
 0x2e2   : > { %3238 = vmatpush1.bf16.msra.mxu0 %v2092_v1  ;;  %4319 = vmatpush1.bf16.msra.mxu1 %v3953_v42  ;;  %v3961_v1 = vunpack.c.h.s8.bf16 %v3593_v21  ;;  %v2253_v21 = vunpack.c.l.s8.bf16 %v1877_v0  ;;  %v1876_v42 = vld [vmem:[%s8802_s8 + $0x3f0] sm:$0xff] }
 0x2e3   : > { %3239 = vmatprep.subr.bf16.mxu0 %v2101_v3  ;;  %4320 = vmatprep.subr.bf16.mxu1 %v3962_v28  ;;  %v3602_v3 = vld [vmem:[#allocation2 + $0x388] sm:$0xff]  ;;  %v2261_v28 = vunpack.c.h.s8.bf16 %v1877_v0 }
 0x2e4   : > { %v3978_v55 = vunpack.c.h.s8.bf16 %v3602_v3 }
 0x2e6   : > { %3240 = vmatpush1.bf16.msra.mxu0 %v2100_v24  ;;  %4321 = vmatpush1.bf16.msra.mxu1 %v3961_v1  ;;  %v3970_v24 = vunpack.c.l.s8.bf16 %v3602_v3  ;;  %v2260_v1 = vunpack.c.h.s8.bf16 %v1876_v42 }
 0x2e7   : > { %3241 = vmatprep.subr.bf16.mxu0 %v2109_v22  ;;  %v3969_v22 = vunpack.c.l.s8.bf16 %v3601_v25  ;;  %v2285_v25 = vunpack.c.l.s8.bf16 %v1893_v43 }
 0x2e8   : > { %4322 = vmatprep.subr.bf16.mxu1 %v3970_v24 }
 0x2ea   : > { %3242 = vmatpush1.bf16.msra.mxu0 %v2108_v5  ;;  %4323 = vmatpush1.bf16.msra.mxu1 %v3969_v22  ;;  %v1845_v5 = vld [vmem:[%s8802_s8 + $0x2f8] sm:$0xff]  ;;  %v1892_v22 = vld [vmem:[%s8802_s8 + $0x470] sm:$0xff] }
 0x2eb   : > { %3243 = vmatprep.subr.bf16.mxu0 %v2117_v49  ;;  %4324 = vmatprep.subr.bf16.mxu1 %v3978_v55  ;;  %v2189_v49 = vunpack.c.l.s8.bf16 %v1845_v5 }
 0x2ee   : > { %3244 = vmatpush1.bf16.msra.mxu0 %v2116_v20  ;;  %4325 = vmatpush1.bf16.msra.mxu1 %v3977_v17  ;;  %v2197_v20 = vunpack.c.h.s8.bf16 %v1845_v5 }
 0x2ef   : > { %3245 = vmatprep.subr.bf16.mxu0 %v2125_v23  ;;  %v3610_v23 = vld [vmem:[#allocation2 + $0x3c8] sm:$0xff] }
 0x2f0   : > { %v3986_v46 = vunpack.c.l.s8.bf16 %v3610_v23  ;;  %v3994_v38 = vunpack.c.h.s8.bf16 %v3610_v23  ;;  %v2308_v23 = vunpack.c.h.s8.bf16 %v1900_v40 }
 0x2f2   : > { %3246 = vmatpush1.bf16.msra.mxu0 %v2124_v14  ;;  %v2205_v14 = vunpack.c.l.s8.bf16 %v1853_v37  ;;  %4326 = vmatprep.subr.bf16.mxu1 %v3986_v46  ;;  %v1908_v46 = vld [vmem:[%s8802_s8 + $0x4f0] sm:$0xff] }
 0x2f3   : > { %3247 = vmatprep.subr.bf16.mxu0 %v2133_v62  ;;  %v3985_v62 = vunpack.c.l.s8.bf16 %v3609_v18  ;;  %v2316_v18 = vunpack.c.l.s8.bf16 %v1908_v46 }
 0x2f5   : > { %4327 = vmatpush1.bf16.msra.mxu1 %v3985_v62 }
 0x2f6   : > { %3248 = vmatpush1.bf16.msra.mxu0 %v2132_v8  ;;  %v2204_v8 = vunpack.c.l.s8.bf16 %v1852_v6  ;;  %4328 = vmatprep.subr.bf16.mxu1 %v3994_v38  ;;  %v2324_v6 = vunpack.c.h.s8.bf16 %v1908_v46 }
 0x2f7   : > { %3258 = vmatprep.subr.bf16.mxu0 %v2141_v36  ;;  %v2213_v36 = vunpack.c.h.s8.bf16 %v1853_v37  ;;  %v1909_v37 = vld [vmem:[%s8802_s8 + $0x4f8] sm:$0xff] }
 0x2f8   : > { %v2325_v38 = vunpack.c.h.s8.bf16 %v1909_v37 }
 0x2f9   : > { %3250 = vmatmul.mubr.bf16.vlgmr.msra.gmra.mrb[12].mxu0 %v9045_v33  ;;  %v2165_v33 = vunpack.c.h.s8.bf16 %v1829_v31  ;;  %4329 = vmatpush1.bf16.msra.mxu1 %v3993_v9  ;;  %v1916_v9 = vld [vmem:[%s8802_s8 + $0x530] sm:$0xff] }
 0x2fa   : > { %3259 = vmatpush1.bf16.msra.mxu0 %v2140_v50  ;;  %3290 = vmatprep.mubr.bf16.mxu0 %v7022_v32  ;;  %v1837_v32 = vld [vmem:[%s8802_s8 + $0x2b8] sm:$0xff]  ;;  %v2220_v50 = vunpack.c.l.s8.bf16 %v1860_v13  ;;  %v2340_v2 = vunpack.c.h.s8.bf16 %v1916_v9 }
 0x2fb   : > { %3260 = vmatprep.subr.bf16.mxu0 %v2149_v16  ;;  %v2173_v53 = vunpack.c.l.s8.bf16 %v1837_v32  ;;  %v2181_v27 = vunpack.c.h.s8.bf16 %v1837_v32  ;;  %4339 = vmatprep.subr.bf16.mxu1 %v4002_v26  ;;  %v1869_v16 = vld [vmem:[%s8802_s8 + $0x3b8] sm:$0xff] }
 0x2fc   : > { %v2237_v31 = vunpack.c.l.s8.bf16 %v1869_v16 }
 0x2fe   : > { %3261 = vmatpush1.bf16.msra.mxu0 %v2148_v34  ;;  %v1868_v34 = vld [vmem:[%s8802_s8 + $0x3b0] sm:$0xff] }
 0x2ff   : > { %3262 = vmatprep.subr.bf16.mxu0 %v2157_v35  ;;  %v2236_v30 = vunpack.c.l.s8.bf16 %v1868_v34  ;;  %v2245_v35 = vunpack.c.h.s8.bf16 %v1869_v16  ;;  %v2244_v29 = vunpack.c.h.s8.bf16 %v1868_v34 }
 0x302   : > { %3263 = vmatpush1.bf16.msra.mxu0 %v2156_v19  ;;  %v2252_v19 = vunpack.c.l.s8.bf16 %v1876_v42 }
 0x303   : > { %3264 = vmatprep.subr.bf16.mxu0 %v2165_v33  ;;  %v1885_v33 = vld [vmem:[%s8802_s8 + $0x438] sm:$0xff] }
 0x304   : > { %v2269_v32 = vunpack.c.l.s8.bf16 %v1885_v33 }
 0x306   : > { %3265 = vmatpush1.bf16.msra.mxu0 %v2164_v52  ;;  %v1884_v52 = vld [vmem:[%s8802_s8 + $0x430] sm:$0xff] }
 0x307   : > { %3266 = vmatprep.subr.bf16.mxu0 %v2173_v53  ;;  %v2268_v3 = vunpack.c.l.s8.bf16 %v1884_v52  ;;  %v2277_v53 = vunpack.c.h.s8.bf16 %v1885_v33  ;;  %v2276_v24 = vunpack.c.h.s8.bf16 %v1884_v52 }
 0x30a   : > { %3267 = vmatpush1.bf16.msra.mxu0 %v2172_v15  ;;  %v2284_v15 = vunpack.c.l.s8.bf16 %v1892_v22 }
 0x30b   : > { %3268 = vmatprep.subr.bf16.mxu0 %v2181_v27  ;;  %v2293_v27 = vunpack.c.h.s8.bf16 %v1893_v43 }
 0x30e   : > { %3269 = vmatpush1.bf16.msra.mxu0 %v2180_v57  ;;  %v2292_v57 = vunpack.c.h.s8.bf16 %v1892_v22 }
 0x30f   : > { %3270 = vmatprep.subr.bf16.mxu0 %v2189_v49 }
 0x312   : > { %3271 = vmatpush1.bf16.msra.mxu0 %v2188_v56  ;;  %v2300_v56 = vunpack.c.l.s8.bf16 %v1900_v40 }
 0x313   : > { %3272 = vmatprep.subr.bf16.mxu0 %v2197_v20 }
 0x316   : > { %3273 = vmatpush1.bf16.msra.mxu0 %v2196_v54  ;;  %v2317_v54 = vunpack.c.l.s8.bf16 %v1909_v37 }
 0x317   : > { %3274 = vmatprep.subr.bf16.mxu0 %v2205_v14  ;;  %v1917_v14 = vld [vmem:[%s8802_s8 + $0x538] sm:$0xff] }
 0x318   : > { %v2333_v62 = vunpack.c.l.s8.bf16 %v1917_v14  ;;  %v2341_v26 = vunpack.c.h.s8.bf16 %v1917_v14 }
 0x31a   : > { %3275 = vmatpush1.bf16.msra.mxu0 %v2204_v8  ;;  %v2332_v8 = vunpack.c.l.s8.bf16 %v1916_v9 }
 0x31b   : > { %3276 = vmatprep.subr.bf16.mxu0 %v2213_v36  ;;  %v1925_v36 = vld [vmem:[%s8802_s8 + $0x578] sm:$0xff] }
 0x31e   : > { %3277 = vmatpush1.bf16.msra.mxu0 %v2212_v4  ;;  %v2349_v4 = vunpack.c.l.s8.bf16 %v1925_v36 }
 0x31f   : > { %3278 = vmatprep.subr.bf16.mxu0 %v2221_v7  ;;  %v1924_v7 = vld [vmem:[%s8802_s8 + $0x570] sm:$0xff] }
 0x320   : > { %v2348_v13 = vunpack.c.l.s8.bf16 %v1924_v7  ;;  %v2356_v16 = vunpack.c.h.s8.bf16 %v1924_v7 }
 0x322   : > { %3279 = vmatpush1.bf16.msra.mxu0 %v2220_v50  ;;  %v2357_v50 = vunpack.c.h.s8.bf16 %v1925_v36 }
 0x323   : > { %3280 = vmatprep.subr.bf16.mxu0 %v2229_v59  ;;  %v1933_v59 = vld [vmem:[%s8802_s8 + $0x5b8] sm:$0xff] }
 0x326   : > { %3281 = vmatpush1.bf16.msra.mxu0 %v2228_v58  ;;  %v2365_v58 = vunpack.c.l.s8.bf16 %v1933_v59 }
 0x327   : > { %3282 = vmatprep.subr.bf16.mxu0 %v2237_v31  ;;  %v1932_v31 = vld [vmem:[%s8802_s8 + $0x5b0] sm:$0xff] }
 0x328   : > { %v2364_v34 = vunpack.c.l.s8.bf16 %v1932_v31  ;;  %v2372_v0 = vunpack.c.h.s8.bf16 %v1932_v31 }
 0x32a   : > { %3283 = vmatpush1.bf16.msra.mxu0 %v2236_v30  ;;  %v2373_v30 = vunpack.c.h.s8.bf16 %v1933_v59 }
 0x32b   : > { %3284 = vmatprep.subr.bf16.mxu0 %v2245_v35  ;;  %v1941_v35 = vld [vmem:[%s8802_s8 + $0x5f8] sm:$0xff] }
 0x32e   : > { %3285 = vmatpush1.bf16.msra.mxu0 %v2244_v29  ;;  %v2381_v29 = vunpack.c.l.s8.bf16 %v1941_v35 }
 0x32f   : > { %3286 = vmatprep.subr.bf16.mxu0 %v2253_v21  ;;  %v1940_v21 = vld [vmem:[%s8802_s8 + $0x5f0] sm:$0xff] }
 0x330   : > { %v2380_v42 = vunpack.c.l.s8.bf16 %v1940_v21  ;;  %v2388_v33 = vunpack.c.h.s8.bf16 %v1940_v21  ;;  %v4010_v21 = vunpack.c.h.s8.bf16 %v8199_v44 }
 0x332   : > { %3287 = vmatpush1.bf16.msra.mxu0 %v2252_v19  ;;  %v2389_v19 = vunpack.c.h.s8.bf16 %v1941_v35 }
 0x333   : > { %3288 = vmatprep.subr.bf16.mxu0 %v2261_v28  ;;  %v1949_v28 = vld [vmem:[%s8802_s8 + $0x638] sm:$0xff] }
 0x336   : > { %3289 = vmatpush1.bf16.msra.mxu0 %v2260_v1  ;;  %v2397_v1 = vunpack.c.l.s8.bf16 %v1949_v28 }
 0x337   : > { %3299 = vmatprep.subr.bf16.mxu0 %v2269_v32  ;;  %v1948_v32 = vld [vmem:[%s8802_s8 + $0x630] sm:$0xff] }
 0x338   : > { %v2396_v52 = vunpack.c.l.s8.bf16 %v1948_v32  ;;  %v2404_v43 = vunpack.c.h.s8.bf16 %v1948_v32 }
 0x339   : > { %3291 = vmatmul.mubr.bf16.vlgmr.msra.gmra.mrb[12].mxu0 %v7165_v60  ;;  %v1901_v60 = vld [vmem:[%s8802_s8 + $0x4b8] sm:$0xff] }
 0x33a   : > { %3300 = vmatpush1.bf16.msra.mxu0 %v2268_v3  ;;  %3331 = vmatprep.mubr.bf16.mxu0 %v9046_v51  ;;  %v2301_v49 = vunpack.c.l.s8.bf16 %v1901_v60  ;;  %v2309_v20 = vunpack.c.h.s8.bf16 %v1901_v60  ;;  %v2405_v3 = vunpack.c.h.s8.bf16 %v1949_v28  ;;  %v3626_v28 = vld [vmem:[#allocation2 + $0x448] sm:$0xff] }
 0x33b   : > { %3301 = vmatprep.subr.bf16.mxu0 %v2277_v53  ;;  %v1957_v53 = vld [vmem:[%s8802_s8 + $0x678] sm:$0xff]  ;;  %v4018_v44 = vunpack.c.l.s8.bf16 %v3626_v28 }
 0x33e   : > { %3302 = vmatpush1.bf16.msra.mxu0 %v2276_v24  ;;  %v2413_v24 = vunpack.c.l.s8.bf16 %v1957_v53 }
 0x33f   : > { %v8234_v55 = vpop.f32.mrb[4].mxu1  ;;  %3303 = vmatprep.subr.bf16.mxu0 %v2285_v25  ;;  %v1956_v25 = vld [vmem:[%s8802_s8 + $0x670] sm:$0xff] }
 0x340   : > { %v8236_v17 = vpop.f32.mrb[5].mxu1  ;;  %v2412_v22 = vunpack.c.l.s8.bf16 %v1956_v25 }
 0x341   : > { %v3214_v5 = vpop.f32.mrb[6].mxu1 }
 0x342   : > { %v3215_v51 = vpop.f32.mrb[7].mxu1  ;;  %3304 = vmatpush1.bf16.msra.mxu0 %v2284_v15  ;;  %v2421_v15 = vunpack.c.h.s8.bf16 %v1957_v53  ;;  %v8295_v5 = vsub.s32 5, %v7689_v39  ;;  %v1989_v53 = vld [vmem:[%s8802_s8 + $0x778] sm:$0xff] }
 0x343   : > { %3305 = vmatprep.subr.bf16.mxu0 %v2293_v27  ;;  %v1965_v27 = vld [vmem:[%s8802_s8 + $0x6b8] sm:$0xff]  ;;  %v8298_v51 = vsub.s32 2, %v7689_v39 }
 0x344   : > { %v2429_v60 = vunpack.c.l.s8.bf16 %v1965_v27  ;;  %v2437_v40 = vunpack.c.h.s8.bf16 %v1965_v27  ;;  %v3634_v27 = vld [vmem:[#allocation2 + $0x488] sm:$0xff] }
 0x346   : > { %3306 = vmatpush1.bf16.msra.mxu0 %v2292_v57 }
 0x347   : > { %3307 = vmatprep.subr.bf16.mxu0 %v2301_v49  ;;  %v8301_v49 = vsub.s32 3, %v7689_v39 }
 0x34a   : > { %3308 = vmatpush1.bf16.msra.mxu0 %v2300_v56  ;;  %v1973_v56 = vld [vmem:[%s8802_s8 + $0x6f8] sm:$0xff] }
 0x34b   : > { %3309 = vmatprep.subr.bf16.mxu0 %v2309_v20  ;;  %v8309_v20 = vld [vmem:[%s8803_s9] sm:$0xff]  ;;  %v2445_v14 = vunpack.c.l.s8.bf16 %v1973_v56 }
 0x34c   : > { %v3406_v37 = vrot.slane %v8309_v20, %v8295_v5 }
 0x34e   : > { %3310 = vmatpush1.bf16.msra.mxu0 %v2308_v23  ;;  %v3394_v23 = vrot.slane %v8309_v20, %v8298_v51 }
 0x34f   : > { %3311 = vmatprep.subr.bf16.mxu0 %v2317_v54  ;;  %v3398_v54 = vrot.slane %v8309_v20, %v8301_v49 }
 0x352   : > { %3312 = vmatpush1.bf16.msra.mxu0 %v2316_v18  ;;  %v8320_v18 = vld [vmem:[%s8804_s10] sm:$0xff] }
 0x353   : > { %3313 = vmatprep.subr.bf16.mxu0 %v2325_v38  ;;  %v3444_v38 = vrot.slane %v8320_v18, %v8298_v51  ;;  %v3448_v9 = vrot.slane %v8320_v18, %v8301_v49 }
 0x356   : > { %3314 = vmatpush1.bf16.msra.mxu0 %v2324_v6  ;;  %v1972_v6 = vld [vmem:[%s8802_s8 + $0x6f0] sm:$0xff] }
 0x357   : > { %3315 = vmatprep.subr.bf16.mxu0 %v2333_v62 }
 0x35a   : > { %3316 = vmatpush1.bf16.msra.mxu0 %v2332_v8  ;;  %v3428_v8 = vmul.f32 %v3406_v37, %v8236_v17  ;;  %v1981_v17 = vld [vmem:[%s8802_s8 + $0x738] sm:$0xff] }
 0x35b   : > { %3317 = vmatprep.subr.bf16.mxu0 %v2341_v26  ;;  %v3456_v26 = vrot.slane %v8320_v18, %v8295_v5 }
 0x35e   : > { %3318 = vmatpush1.bf16.msra.mxu0 %v2340_v2 }
 0x35f   : > { %3319 = vmatprep.subr.bf16.mxu0 %v2349_v4 }
 0x362   : > { %3320 = vmatpush1.bf16.msra.mxu0 %v2348_v13  ;;  %v2444_v13 = vunpack.c.l.s8.bf16 %v1972_v6 }
 0x363   : > { %3321 = vmatprep.subr.bf16.mxu0 %v2357_v50 }
 0x366   : > { %3322 = vmatpush1.bf16.msra.mxu0 %v2356_v16  ;;  %v2453_v16 = vunpack.c.h.s8.bf16 %v1973_v56  ;;  %v1997_v56 = vld [vmem:[%s8802_s8 + $0x7b8] sm:$0xff] }
 0x367   : > { %3323 = vmatprep.subr.bf16.mxu0 %v2365_v58  ;;  %v3617_v58 = vld [vmem:[#allocation2 + $0x400] sm:$0xff] }
 0x368   : > { %v4001_v35 = vunpack.c.l.s8.bf16 %v3617_v58 }
 0x36a   : > { %3324 = vmatpush1.bf16.msra.mxu0 %v2364_v34  ;;  %v8336_v34 = vadd.f32 %v3456_v26, %v3428_v8  ;;  %v2501_v8 = vunpack.c.h.s8.bf16 %v1997_v56  ;;  %v3641_v26 = vld [vmem:[#allocation2 + $0x4c0] sm:$0xff] }
 0x36b   : > { %3325 = vmatprep.subr.bf16.mxu0 %v2373_v30 }
 0x36e   : > { %3326 = vmatpush1.bf16.msra.mxu0 %v2372_v0  ;;  %v2452_v0 = vunpack.c.h.s8.bf16 %v1972_v6 }
 0x36f   : > { %3327 = vmatprep.subr.bf16.mxu0 %v2381_v29 }
 0x372   : > { %3328 = vmatpush1.bf16.msra.mxu0 %v2380_v42  ;;  %v1980_v42 = vld [vmem:[%s8802_s8 + $0x730] sm:$0xff] }
 0x373   : > { %3329 = vmatprep.subr.bf16.mxu0 %v2389_v19  ;;  %v2461_v19 = vunpack.c.l.s8.bf16 %v1981_v17  ;;  %v2460_v32 = vunpack.c.l.s8.bf16 %v1980_v42 }
 0x376   : > { %3330 = vmatpush1.bf16.msra.mxu0 %v2388_v33  ;;  %v8356_v33 = vpack.c.bf16 %v8336_v34, %v8336_v34 }
 0x377   : > { %3340 = vmatprep.subr.bf16.mxu0 %v2397_v1  ;;  %v4009_v1 = vunpack.c.h.s8.bf16 %v3617_v58  ;;  %v4057_v58 = vunpack.c.h.s8.bf16 %v3641_v26 }
 0x379   : > { %3332 = vmatmul.mubr.bf16.vlgmr.msra.gmra.mrb[12].mxu0 %v9047_v63  ;;  %v2420_v63 = vunpack.c.h.s8.bf16 %v1956_v25  ;;  %v4026_v25 = vunpack.c.h.s8.bf16 %v3626_v28 }
 0x37a   : > { %3341 = vmatpush1.bf16.msra.mxu0 %v2396_v52  ;;  %3372 = vmatprep.mubr.bf16.mxu0 %v7537_v12  ;;  %v1964_v12 = vld [vmem:[%s8802_s8 + $0x6b0] sm:$0xff]  ;;  %v2469_v52 = vunpack.c.h.s8.bf16 %v1981_v17 }
 0x37b   : > { %3342 = vmatprep.subr.bf16.mxu0 %v2405_v3  ;;  %v2428_v57 = vunpack.c.l.s8.bf16 %v1964_v12  ;;  %v2436_v46 = vunpack.c.h.s8.bf16 %v1964_v12  ;;  %v3625_v3 = vld [vmem:[#allocation2 + $0x440] sm:$0xff]  ;;  %v4034_v12 = vunpack.c.l.s8.bf16 %v3634_v27 }
 0x37e   : > { %3343 = vmatpush1.bf16.msra.mxu0 %v2404_v43  ;;  %v4017_v43 = vunpack.c.l.s8.bf16 %v3625_v3 }
 0x37f   : > { %3344 = vmatprep.subr.bf16.mxu0 %v2413_v24  ;;  %v2468_v24 = vunpack.c.h.s8.bf16 %v1980_v42  ;;  %v3492_v42 = vld [vmem:[#allocation2 + $0x18] sm:$0xff] }
 0x382   : > { %3345 = vmatpush1.bf16.msra.mxu0 %v2412_v22  ;;  %v2477_v22 = vunpack.c.l.s8.bf16 %v1989_v53 }
 0x383   : > { %3346 = vmatprep.subr.bf16.mxu0 %v2421_v15  ;;  %v1988_v15 = vld [vmem:[%s8802_s8 + $0x770] sm:$0xff] }
 0x386   : > { %3347 = vmatpush1.bf16.msra.mxu0 %v2420_v63  ;;  %v4025_v63 = vunpack.c.h.s8.bf16 %v3625_v3 }
 0x387   : > { %3348 = vmatprep.subr.bf16.mxu0 %v2429_v60  ;;  %v2476_v60 = vunpack.c.l.s8.bf16 %v1988_v15 }
 0x38a   : > { %3349 = vmatpush1.bf16.msra.mxu0 %v2428_v57  ;;  %v2485_v57 = vunpack.c.h.s8.bf16 %v1989_v53 }
 0x38b   : > { %3350 = vmatprep.subr.bf16.mxu0 %v2437_v40  ;;  %v3633_v40 = vld [vmem:[#allocation2 + $0x480] sm:$0xff] }
 0x38c   : > { %v3046_v62 = vpop.f32.mrb[8].mxu0  ;;  %v4033_v37 = vunpack.c.l.s8.bf16 %v3633_v40  ;;  %v4041_v6 = vunpack.c.h.s8.bf16 %v3633_v40 }
 0x38d   : > { %v3425_v36 = vmul.f32 %v3394_v23, %v3046_v62  ;;  %v3048_v2 = vpop.f32.mrb[9].mxu0  ;;  %v2484_v23 = vunpack.c.h.s8.bf16 %v1988_v15 }
 0x38e   : > { %v3426_v4 = vmul.f32 %v3398_v54, %v3048_v2  ;;  %v3050_v7 = vpop.f32.mrb[10].mxu0  ;;  %3351 = vmatpush1.bf16.msra.mxu0 %v2436_v46  ;;  %v4042_v54 = vunpack.c.h.s8.bf16 %v3634_v27  ;;  %v2493_v46 = vunpack.c.l.s8.bf16 %v1997_v56  ;;  %v4049_v2 = vunpack.c.l.s8.bf16 %v3641_v26 }
 0x38f   : > { %v8332_v50 = vadd.f32 %v3444_v38, %v3425_v36  ;;  %v3051_v59 = vpop.f32.mrb[11].mxu0  ;;  %3352 = vmatprep.subr.bf16.mxu0 %v2445_v14  ;;  %v1996_v38 = vld [vmem:[%s8802_s8 + $0x7b0] sm:$0xff]  ;;  %v3642_v14 = vld [vmem:[#allocation2 + $0x4c8] sm:$0xff]  ;;  %v2005_v36 = vld [vmem:[%s8802_s8 + $0x7f8] sm:$0xff] }
 0x390   : > { %v8334_v31 = vadd.f32 %v3448_v9, %v3426_v4  ;;  %v2492_v62 = vunpack.c.l.s8.bf16 %v1996_v38  ;;  %v4050_v9 = vunpack.c.l.s8.bf16 %v3642_v14  ;;  %v2500_v4 = vunpack.c.h.s8.bf16 %v1996_v38  ;;  %v2004_v59 = vld [vmem:[%s8802_s8 + $0x7f0] sm:$0xff] }
 0x391   : > { %v8347_v29 = vpack.c.bf16 %v8332_v50, %v8332_v50  ;;  %v4058_v7 = vunpack.c.h.s8.bf16 %v3642_v14  ;;  %v2508_v17 = vunpack.c.l.s8.bf16 %v2004_v59  ;;  %v2516_v28 = vunpack.c.h.s8.bf16 %v2004_v59  ;;  %v3516_v59 = vld [vmem:[#allocation2 + $0xd8] sm:$0xff] }
 0x392   : > { %v8343_v30 = vpack.c.bf16 %v8334_v31, %v8334_v31  ;;  %3353 = vmatpush1.bf16.msra.mxu0 %v2444_v13  ;;  %v2509_v13 = vunpack.c.l.s8.bf16 %v2005_v36  ;;  %v8381_v14 = vsub.s32 4, %v7689_v39 }
 0x393   : > { %3354 = vmatprep.subr.bf16.mxu0 %v2453_v16  ;;  %v3650_v16 = vld [vmem:[#allocation2 + $0x508] sm:$0xff] }
 0x394   : > { %4330 = vmatprep.mubr.bf16.mxu1 %v8343_v30 }
 0x395   : > { %4331 = vmatmul.mubr.bf16.vlgmr.msra.gmra.mrb[8].mxu1 %v8347_v29 }
 0x396   : > { %4340 = vmatpush1.bf16.msra.mxu1 %v4001_v35  ;;  %3355 = vmatpush1.bf16.msra.mxu0 %v2452_v0  ;;  %v4066_v35 = vunpack.c.l.s8.bf16 %v3650_v16  ;;  %v2517_v0 = vunpack.c.h.s8.bf16 %v2005_v36 }
 0x397   : > { %4371 = vmatprep.mubr.bf16.mxu1 %v8356_v33  ;;  %4341 = vmatprep.subr.bf16.mxu1 %v4010_v21  ;;  %v3649_v21 = vld [vmem:[#allocation2 + $0x500] sm:$0xff] }
 0x398   : > { %3356 = vmatprep.subr.bf16.mxu0 %v2461_v19  ;;  %v4065_v19 = vunpack.c.l.s8.bf16 %v3649_v21  ;;  %v4073_v3 = vunpack.c.h.s8.bf16 %v3649_v21  ;;  %v3796_v21 = vunpack.c.l.s8.bf16 %v3516_v59 }
 0x39a   : > { %4342 = vmatpush1.bf16.msra.mxu1 %v4009_v1  ;;  %3357 = vmatpush1.bf16.msra.mxu0 %v2460_v32  ;;  %v4074_v1 = vunpack.c.h.s8.bf16 %v3650_v16  ;;  %v3748_v32 = vunpack.c.l.s8.bf16 %v3492_v42 }
 0x39b   : > { %4343 = vmatprep.subr.bf16.mxu1 %v4018_v44  ;;  %3358 = vmatprep.subr.bf16.mxu0 %v2469_v52  ;;  %v3491_v44 = vld [vmem:[#allocation2 + $0x10] sm:$0xff]  ;;  %v3658_v52 = vld [vmem:[#allocation2 + $0x548] sm:$0xff] }
 0x39c   : > { %v3747_v53 = vunpack.c.l.s8.bf16 %v3491_v44  ;;  %v3755_v27 = vunpack.c.h.s8.bf16 %v3491_v44  ;;  %v3682_v44 = vld [vmem:[#allocation2 + $0x608] sm:$0xff] }
 0x39e   : > { %4344 = vmatpush1.bf16.msra.mxu1 %v4017_v43  ;;  %3359 = vmatpush1.bf16.msra.mxu0 %v2468_v24  ;;  %v4082_v43 = vunpack.c.l.s8.bf16 %v3658_v52  ;;  %v3657_v24 = vld [vmem:[#allocation2 + $0x540] sm:$0xff] }
 0x39f   : > { %4345 = vmatprep.subr.bf16.mxu1 %v4026_v25  ;;  %3360 = vmatprep.subr.bf16.mxu0 %v2477_v22  ;;  %v3756_v25 = vunpack.c.h.s8.bf16 %v3492_v42  ;;  %v3500_v22 = vld [vmem:[#allocation2 + $0x58] sm:$0xff]  ;;  %v4081_v15 = vunpack.c.l.s8.bf16 %v3657_v24  ;;  %v4089_v40 = vunpack.c.h.s8.bf16 %v3657_v24 }
 0x3a2   : > { %4346 = vmatpush1.bf16.msra.mxu1 %v4025_v63  ;;  %3361 = vmatpush1.bf16.msra.mxu0 %v2476_v60  ;;  %v4090_v63 = vunpack.c.h.s8.bf16 %v3658_v52  ;;  %v3764_v60 = vunpack.c.l.s8.bf16 %v3500_v22 }
 0x3a3   : > { %4347 = vmatprep.subr.bf16.mxu1 %v4034_v12  ;;  %3362 = vmatprep.subr.bf16.mxu0 %v2485_v57  ;;  %v3499_v12 = vld [vmem:[#allocation2 + $0x50] sm:$0xff]  ;;  %v3666_v57 = vld [vmem:[#allocation2 + $0x588] sm:$0xff] }
 0x3a4   : > { %v3763_v56 = vunpack.c.l.s8.bf16 %v3499_v12  ;;  %v3771_v38 = vunpack.c.h.s8.bf16 %v3499_v12  ;;  %v3690_v12 = vld [vmem:[#allocation2 + $0x648] sm:$0xff] }
 0x3a6   : > { %4348 = vmatpush1.bf16.msra.mxu1 %v4033_v37  ;;  %3363 = vmatpush1.bf16.msra.mxu0 %v2484_v23  ;;  %v4098_v37 = vunpack.c.l.s8.bf16 %v3666_v57  ;;  %v3772_v23 = vunpack.c.h.s8.bf16 %v3500_v22  ;;  %v4138_v22 = vunpack.c.h.s8.bf16 %v3682_v44 }
 0x3a7   : > { %4349 = vmatprep.subr.bf16.mxu1 %v4042_v54  ;;  %3364 = vmatprep.subr.bf16.mxu0 %v2493_v46  ;;  %v3508_v54 = vld [vmem:[#allocation2 + $0x98] sm:$0xff] }
 0x3aa   : > { %4350 = vmatpush1.bf16.msra.mxu1 %v4041_v6  ;;  %3365 = vmatpush1.bf16.msra.mxu0 %v2492_v62  ;;  %v4106_v6 = vunpack.c.h.s8.bf16 %v3666_v57  ;;  %v3780_v62 = vunpack.c.l.s8.bf16 %v3508_v54  ;;  %v3689_v57 = vld [vmem:[#allocation2 + $0x640] sm:$0xff] }
 0x3ab   : > { %4351 = vmatprep.subr.bf16.mxu1 %v4050_v9  ;;  %3366 = vmatprep.subr.bf16.mxu0 %v2501_v8  ;;  %v3507_v9 = vld [vmem:[#allocation2 + $0x90] sm:$0xff]  ;;  %v3674_v8 = vld [vmem:[#allocation2 + $0x5c8] sm:$0xff] }
 0x3ac   : > { %v3779_v36 = vunpack.c.l.s8.bf16 %v3507_v9 }
 0x3ae   : > { %4352 = vmatpush1.bf16.msra.mxu1 %v4049_v2  ;;  %3367 = vmatpush1.bf16.msra.mxu0 %v2500_v4  ;;  %v3402_v2 = vrot.slane %v8309_v20, %v8381_v14  ;;  %v4114_v4 = vunpack.c.l.s8.bf16 %v3674_v8  ;;  %v3515_v20 = vld [vmem:[#allocation2 + $0xd0] sm:$0xff] }
 0x3af   : > { %4353 = vmatprep.subr.bf16.mxu1 %v4058_v7  ;;  %3368 = vmatprep.subr.bf16.mxu0 %v2509_v13  ;;  %v3673_v7 = vld [vmem:[#allocation2 + $0x5c0] sm:$0xff]  ;;  %v3788_v13 = vunpack.c.h.s8.bf16 %v3508_v54  ;;  %v4154_v54 = vunpack.c.h.s8.bf16 %v3690_v12 }
 0x3b0   : > { %v4113_v16 = vunpack.c.l.s8.bf16 %v3673_v7  ;;  %v4121_v42 = vunpack.c.h.s8.bf16 %v3673_v7 }
 0x3b2   : > { %4354 = vmatpush1.bf16.msra.mxu1 %v4057_v58  ;;  %3369 = vmatpush1.bf16.msra.mxu0 %v2508_v17  ;;  %v3787_v58 = vunpack.c.h.s8.bf16 %v3507_v9  ;;  %v3427_v17 = vmul.f32 %v3402_v2, %v8234_v55  ;;  %v3803_v55 = vunpack.c.h.s8.bf16 %v3515_v20  ;;  %v3698_v9 = vld [vmem:[#allocation2 + $0x688] sm:$0xff] }
 0x3b3   : > { %4355 = vmatprep.subr.bf16.mxu1 %v4066_v35  ;;  %3370 = vmatprep.subr.bf16.mxu0 %v2517_v0  ;;  %v3452_v35 = vrot.slane %v8320_v18, %v8381_v14  ;;  %v4122_v0 = vunpack.c.h.s8.bf16 %v3674_v8  ;;  %v3681_v18 = vld [vmem:[#allocation2 + $0x600] sm:$0xff]  ;;  %v4162_v2 = vunpack.c.l.s8.bf16 %v3698_v9 }
 0x3b4   : > { %v4129_v24 = vunpack.c.l.s8.bf16 %v3681_v18  ;;  %v3697_v8 = vld [vmem:[#allocation2 + $0x680] sm:$0xff] }
 0x3b6   : > { %4356 = vmatpush1.bf16.msra.mxu1 %v4065_v19  ;;  %3371 = vmatpush1.bf16.msra.mxu0 %v2516_v28  ;;  %v3795_v19 = vunpack.c.l.s8.bf16 %v3515_v20  ;;  %v8388_v28 = vadd.f32 %v3452_v35, %v3427_v17  ;;  %v3706_v35 = vld [vmem:[#allocation2 + $0x6c8] sm:$0xff]  ;;  %v3547_v20 = vld [vmem:[#allocation2 + $0x1d0] sm:$0xff] }
 0x3b7   : > { %4357 = vmatprep.subr.bf16.mxu1 %v4074_v1  ;;  %4421 = vmatprep.subr.bf16.mxu0 %v3748_v32  ;;  %v3804_v1 = vunpack.c.h.s8.bf16 %v3516_v59  ;;  %v3524_v32 = vld [vmem:[#allocation2 + $0x118] sm:$0xff]  ;;  %v4169_v59 = vunpack.c.h.s8.bf16 %v3697_v8 }
 0x3b8   : > { %v8392_v52 = vpack.c.bf16 %v8388_v28, %v8388_v28 }
 0x3b9   : > { %3373 = vmatmul.mubr.bf16.vlgmr.msra.gmra.mrb[12].mxu0 %v7595_v45  ;;  %v3665_v45 = vld [vmem:[#allocation2 + $0x580] sm:$0xff] }
 0x3ba   : > { %4358 = vmatpush1.bf16.msra.mxu1 %v4073_v3  ;;  %4422 = vmatpush1.bf16.msra.mxu0 %v3747_v53  ;;  %v4097_v46 = vunpack.c.l.s8.bf16 %v3665_v45  ;;  %v4105_v26 = vunpack.c.h.s8.bf16 %v3665_v45  ;;  %v3812_v3 = vunpack.c.l.s8.bf16 %v3524_v32  ;;  %v3523_v53 = vld [vmem:[#allocation2 + $0x110] sm:$0xff]  ;;  %v4145_v45 = vunpack.c.l.s8.bf16 %v3689_v57 }
 0x3bb   : > { %4453 = vmatprep.mubr.bf16.mxu0 %v8026_v61  ;;  %4359 = vmatprep.subr.bf16.mxu1 %v4082_v43  ;;  %v4130_v43 = vunpack.c.l.s8.bf16 %v3682_v44 }
 0x3bc   : > { %4423 = vmatprep.subr.bf16.mxu0 %v3756_v25  ;;  %v3811_v25 = vunpack.c.l.s8.bf16 %v3523_v53 }
 0x3be   : > { %4360 = vmatpush1.bf16.msra.mxu1 %v4081_v15  ;;  %4424 = vmatpush1.bf16.msra.mxu0 %v3755_v27  ;;  %v4137_v15 = vunpack.c.h.s8.bf16 %v3681_v18  ;;  %v3820_v27 = vunpack.c.h.s8.bf16 %v3524_v32  ;;  %v4186_v32 = vunpack.c.h.s8.bf16 %v3706_v35  ;;  %v3556_v18 = vld [vmem:[#allocation2 + $0x218] sm:$0xff] }
 0x3bf   : > { %4361 = vmatprep.subr.bf16.mxu1 %v4090_v63  ;;  %4425 = vmatprep.subr.bf16.mxu0 %v3764_v60  ;;  %v3532_v63 = vld [vmem:[#allocation2 + $0x158] sm:$0xff]  ;;  %v3819_v60 = vunpack.c.h.s8.bf16 %v3523_v53  ;;  %v3714_v53 = vld [vmem:[#allocation2 + $0x708] sm:$0xff] }
 0x3c2   : > { %4362 = vmatpush1.bf16.msra.mxu1 %v4089_v40  ;;  %4426 = vmatpush1.bf16.msra.mxu0 %v3763_v56  ;;  %v3828_v40 = vunpack.c.l.s8.bf16 %v3532_v63  ;;  %v3531_v56 = vld [vmem:[#allocation2 + $0x150] sm:$0xff] }
 0x3c3   : > { %4363 = vmatprep.subr.bf16.mxu1 %v4098_v37  ;;  %4427 = vmatprep.subr.bf16.mxu0 %v3772_v23  ;;  %v4146_v37 = vunpack.c.l.s8.bf16 %v3690_v12  ;;  %v3827_v23 = vunpack.c.l.s8.bf16 %v3531_v56 }
 0x3c6   : > { %4364 = vmatpush1.bf16.msra.mxu1 %v4097_v46  ;;  %4428 = vmatpush1.bf16.msra.mxu0 %v3771_v38  ;;  %v4153_v46 = vunpack.c.h.s8.bf16 %v3689_v57  ;;  %v3836_v38 = vunpack.c.h.s8.bf16 %v3532_v63  ;;  %v4202_v63 = vunpack.c.h.s8.bf16 %v3714_v53  ;;  %v3564_v57 = vld [vmem:[#allocation2 + $0x258] sm:$0xff] }
 0x3c7   : > { %4365 = vmatprep.subr.bf16.mxu1 %v4106_v6  ;;  %4429 = vmatprep.subr.bf16.mxu0 %v3780_v62  ;;  %v3540_v6 = vld [vmem:[#allocation2 + $0x198] sm:$0xff]  ;;  %v3835_v62 = vunpack.c.h.s8.bf16 %v3531_v56  ;;  %v3722_v56 = vld [vmem:[#allocation2 + $0x748] sm:$0xff] }
 0x3ca   : > { %4366 = vmatpush1.bf16.msra.mxu1 %v4105_v26  ;;  %4430 = vmatpush1.bf16.msra.mxu0 %v3779_v36  ;;  %v3844_v26 = vunpack.c.l.s8.bf16 %v3540_v6  ;;  %v3539_v36 = vld [vmem:[#allocation2 + $0x190] sm:$0xff] }
 0x3cb   : > { %4367 = vmatprep.subr.bf16.mxu1 %v4114_v4  ;;  %4431 = vmatprep.subr.bf16.mxu0 %v3788_v13  ;;  %v4161_v4 = vunpack.c.l.s8.bf16 %v3697_v8  ;;  %v3843_v7 = vunpack.c.l.s8.bf16 %v3539_v36  ;;  %v4170_v13 = vunpack.c.h.s8.bf16 %v3698_v9  ;;  %v3851_v17 = vunpack.c.h.s8.bf16 %v3539_v36  ;;  %v3572_v8 = vld [vmem:[#allocation2 + $0x298] sm:$0xff]  ;;  %v3730_v36 = vld [vmem:[#allocation2 + $0x788] sm:$0xff] }
 0x3ce   : > { %4368 = vmatpush1.bf16.msra.mxu1 %v4113_v16  ;;  %4432 = vmatpush1.bf16.msra.mxu0 %v3787_v58  ;;  %v3852_v16 = vunpack.c.h.s8.bf16 %v3540_v6  ;;  %v3548_v58 = vld [vmem:[#allocation2 + $0x1d8] sm:$0xff]  ;;  %v4218_v6 = vunpack.c.h.s8.bf16 %v3722_v56 }
 0x3cf   : > { %4369 = vmatprep.subr.bf16.mxu1 %v4122_v0  ;;  %4433 = vmatprep.subr.bf16.mxu0 %v3796_v21  ;;  %v3705_v0 = vld [vmem:[#allocation2 + $0x6c0] sm:$0xff]  ;;  %v3860_v21 = vunpack.c.l.s8.bf16 %v3548_v58  ;;  %v3868_v44 = vunpack.c.h.s8.bf16 %v3548_v58  ;;  %v4234_v58 = vunpack.c.h.s8.bf16 %v3730_v36 }
 0x3d2   : > { %4370 = vmatpush1.bf16.msra.mxu1 %v4121_v42  ;;  %4434 = vmatpush1.bf16.msra.mxu0 %v3795_v19  ;;  %v4178_v42 = vunpack.c.l.s8.bf16 %v3706_v35  ;;  %v4177_v19 = vunpack.c.l.s8.bf16 %v3705_v0 }
 0x3d3   : > { %4435 = vmatprep.subr.bf16.mxu0 %v3804_v1  ;;  %4380 = vmatprep.subr.bf16.mxu1 %v4130_v43  ;;  %v3859_v1 = vunpack.c.l.s8.bf16 %v3547_v20  ;;  %v3713_v43 = vld [vmem:[#allocation2 + $0x700] sm:$0xff] }
 0x3d4   : > { %v4201_v12 = vunpack.c.h.s8.bf16 %v3713_v43 }
 0x3d5   : > { %4372 = vmatmul.mubr.bf16.vlgmr.msra.gmra.mrb[8].mxu1 %v8392_v52 }
 0x3d6   : > { %4436 = vmatpush1.bf16.msra.mxu0 %v3803_v55  ;;  %4381 = vmatpush1.bf16.msra.mxu1 %v4129_v24  ;;  %v4185_v55 = vunpack.c.h.s8.bf16 %v3705_v0  ;;  %v3876_v24 = vunpack.c.l.s8.bf16 %v3556_v18  ;;  %v3580_v0 = vld [vmem:[#allocation2 + $0x2d8] sm:$0xff] }
 0x3d7   : > { %4437 = vmatprep.subr.bf16.mxu0 %v3812_v3  ;;  %4382 = vmatprep.subr.bf16.mxu1 %v4138_v22  ;;  %v3867_v3 = vunpack.c.h.s8.bf16 %v3547_v20  ;;  %v4194_v22 = vunpack.c.l.s8.bf16 %v3714_v53  ;;  %v3924_v20 = vunpack.c.l.s8.bf16 %v3580_v0 }
 0x3da   : > { %4438 = vmatpush1.bf16.msra.mxu0 %v3811_v25  ;;  %4383 = vmatpush1.bf16.msra.mxu1 %v4137_v15  ;;  %v3555_v25 = vld [vmem:[#allocation2 + $0x210] sm:$0xff]  ;;  %v4193_v15 = vunpack.c.l.s8.bf16 %v3713_v43 }
 0x3db   : > { %4439 = vmatprep.subr.bf16.mxu0 %v3820_v27  ;;  %4384 = vmatprep.subr.bf16.mxu1 %v4146_v37  ;;  %v3875_v27 = vunpack.c.l.s8.bf16 %v3555_v25  ;;  %v3721_v37 = vld [vmem:[#allocation2 + $0x740] sm:$0xff] }
 0x3dc   : > { %v4217_v9 = vunpack.c.h.s8.bf16 %v3721_v37 }
 0x3de   : > { %4440 = vmatpush1.bf16.msra.mxu0 %v3819_v60  ;;  %4385 = vmatpush1.bf16.msra.mxu1 %v4145_v45  ;;  %v3884_v60 = vunpack.c.h.s8.bf16 %v3556_v18  ;;  %v3892_v45 = vunpack.c.l.s8.bf16 %v3564_v57 }
 0x3df   : > { %4441 = vmatprep.subr.bf16.mxu0 %v3828_v40  ;;  %4386 = vmatprep.subr.bf16.mxu1 %v4154_v54  ;;  %v3883_v40 = vunpack.c.h.s8.bf16 %v3555_v25  ;;  %v4210_v54 = vunpack.c.l.s8.bf16 %v3722_v56  ;;  %v3595_v56 = vld [vmem:[#allocation2 + $0x350] sm:$0xff] }
 0x3e2   : > { %4442 = vmatpush1.bf16.msra.mxu0 %v3827_v23  ;;  %4387 = vmatpush1.bf16.msra.mxu1 %v4153_v46  ;;  %v3563_v23 = vld [vmem:[#allocation2 + $0x250] sm:$0xff]  ;;  %v4209_v46 = vunpack.c.l.s8.bf16 %v3721_v37  ;;  %v3955_v37 = vunpack.c.l.s8.bf16 %v3595_v56 }
 0x3e3   : > { %4443 = vmatprep.subr.bf16.mxu0 %v3836_v38  ;;  %4388 = vmatprep.subr.bf16.mxu1 %v4162_v2  ;;  %v3891_v38 = vunpack.c.l.s8.bf16 %v3563_v23  ;;  %v3729_v2 = vld [vmem:[#allocation2 + $0x780] sm:$0xff] }
 0x3e4   : > { %v4233_v35 = vunpack.c.h.s8.bf16 %v3729_v2 }
 0x3e6   : > { %4444 = vmatpush1.bf16.msra.mxu0 %v3835_v62  ;;  %4389 = vmatpush1.bf16.msra.mxu1 %v4161_v4  ;;  %v3900_v62 = vunpack.c.h.s8.bf16 %v3564_v57  ;;  %v3908_v4 = vunpack.c.l.s8.bf16 %v3572_v8 }
 0x3e7   : > { %4445 = vmatprep.subr.bf16.mxu0 %v3844_v26  ;;  %4390 = vmatprep.subr.bf16.mxu1 %v4170_v13  ;;  %v3899_v26 = vunpack.c.h.s8.bf16 %v3563_v23  ;;  %v4226_v13 = vunpack.c.l.s8.bf16 %v3730_v36  ;;  %v3604_v23 = vld [vmem:[#allocation2 + $0x398] sm:$0xff]  ;;  %v3611_v36 = vld [vmem:[#allocation2 + $0x3d0] sm:$0xff] }
 0x3ea   : > { %4446 = vmatpush1.bf16.msra.mxu0 %v3843_v7  ;;  %4391 = vmatpush1.bf16.msra.mxu1 %v4169_v59  ;;  %v3571_v7 = vld [vmem:[#allocation2 + $0x290] sm:$0xff]  ;;  %v4225_v59 = vunpack.c.l.s8.bf16 %v3729_v2  ;;  %v3987_v2 = vunpack.c.l.s8.bf16 %v3611_v36 }
 0x3eb   : > { %4447 = vmatprep.subr.bf16.mxu0 %v3852_v16  ;;  %4392 = vmatprep.subr.bf16.mxu1 %v4178_v42  ;;  %v3907_v16 = vunpack.c.l.s8.bf16 %v3571_v7  ;;  %v3579_v42 = vld [vmem:[#allocation2 + $0x2d0] sm:$0xff] }
 0x3ee   : > { %4448 = vmatpush1.bf16.msra.mxu0 %v3851_v17  ;;  %4393 = vmatpush1.bf16.msra.mxu1 %v4177_v19  ;;  %v3916_v17 = vunpack.c.h.s8.bf16 %v3572_v8  ;;  %v3923_v19 = vunpack.c.l.s8.bf16 %v3579_v42 }
 0x3ef   : > { %4449 = vmatprep.subr.bf16.mxu0 %v3860_v21  ;;  %4394 = vmatprep.subr.bf16.mxu1 %v4186_v32  ;;  %v3915_v21 = vunpack.c.h.s8.bf16 %v3571_v7  ;;  %v3588_v32 = vld [vmem:[#allocation2 + $0x318] sm:$0xff] }
 0x3f0   : > { %v3940_v43 = vunpack.c.l.s8.bf16 %v3588_v32  ;;  %v3620_v7 = vld [vmem:[#allocation2 + $0x418] sm:$0xff] }
 0x3f2   : > { %4450 = vmatpush1.bf16.msra.mxu0 %v3859_v1  ;;  %4395 = vmatpush1.bf16.msra.mxu1 %v4185_v55  ;;  %v3932_v1 = vunpack.c.h.s8.bf16 %v3580_v0  ;;  %v3738_v55 = vld [vmem:[#allocation2 + $0x7c8] sm:$0xff] }
 0x3f3   : > { %4451 = vmatprep.subr.bf16.mxu0 %v3868_v44  ;;  %4396 = vmatprep.subr.bf16.mxu1 %v4194_v22  ;;  %v3931_v44 = vunpack.c.h.s8.bf16 %v3579_v42  ;;  %v4242_v18 = vunpack.c.l.s8.bf16 %v3738_v55  ;;  %v4250_v53 = vunpack.c.h.s8.bf16 %v3738_v55  ;;  %v8397_v22 = vld [vmem:[#allocation2 + $0x28] sm:$0xff] }
 0x3f6   : > { %4452 = vmatpush1.bf16.msra.mxu0 %v3867_v3  ;;  %4397 = vmatpush1.bf16.msra.mxu1 %v4193_v15  ;;  %v3737_v3 = vld [vmem:[#allocation2 + $0x7c0] sm:$0xff] }
 0x3f7   : > { %4462 = vmatprep.subr.bf16.mxu0 %v3876_v24  ;;  %4398 = vmatprep.subr.bf16.mxu1 %v4202_v63  ;;  %v3587_v24 = vld [vmem:[#allocation2 + $0x310] sm:$0xff]  ;;  %v4241_v25 = vunpack.c.l.s8.bf16 %v3737_v3  ;;  %v4249_v15 = vunpack.c.h.s8.bf16 %v3737_v3  ;;  %v3750_v63 = vunpack.c.l.s8.bf16 %v8397_v22 }
 0x3f8   : > { %v3947_v57 = vunpack.c.h.s8.bf16 %v3587_v24 }
 0x3f9   : > { %4454 = vmatmul.mubr.bf16.vlgmr.msra.gmra.mrb[16].mxu0 %v8103_v11 }
 0x3fa   : > { %4463 = vmatpush1.bf16.msra.mxu0 %v3875_v27  ;;  %4494 = vmatprep.mubr.bf16.mxu0 %v8343_v30  ;;  %v3939_v27 = vunpack.c.l.s8.bf16 %v3587_v24 }
 0x3fb   : > { %4464 = vmatprep.subr.bf16.mxu0 %v3884_v60  ;;  %4399 = vmatpush1.bf16.msra.mxu1 %v4201_v12  ;;  %v3948_v60 = vunpack.c.h.s8.bf16 %v3588_v32  ;;  %v3596_v12 = vld [vmem:[#allocation2 + $0x358] sm:$0xff] }
 0x3fc   : > { %4400 = vmatprep.subr.bf16.mxu1 %v4210_v54  ;;  %v3963_v54 = vunpack.c.h.s8.bf16 %v3595_v56 }
 0x3fe   : > { %4465 = vmatpush1.bf16.msra.mxu0 %v3883_v40  ;;  %v3956_v40 = vunpack.c.l.s8.bf16 %v3596_v12 }
 0x3ff   : > { %4466 = vmatprep.subr.bf16.mxu0 %v3892_v45  ;;  %4401 = vmatpush1.bf16.msra.mxu1 %v4209_v46  ;;  %v3964_v45 = vunpack.c.h.s8.bf16 %v3596_v12  ;;  %v3972_v46 = vunpack.c.l.s8.bf16 %v3604_v23 }
 0x400   : > { %4402 = vmatprep.subr.bf16.mxu1 %v4218_v6 }
 0x402   : > { %4467 = vmatpush1.bf16.msra.mxu0 %v3891_v38  ;;  %v3603_v38 = vld [vmem:[#allocation2 + $0x390] sm:$0xff] }
 0x403   : > { %4468 = vmatprep.subr.bf16.mxu0 %v3900_v62  ;;  %4403 = vmatpush1.bf16.msra.mxu1 %v4217_v9  ;;  %v3971_v6 = vunpack.c.l.s8.bf16 %v3603_v38  ;;  %v3980_v62 = vunpack.c.h.s8.bf16 %v3604_v23  ;;  %v3612_v9 = vld [vmem:[#allocation2 + $0x3d8] sm:$0xff]  ;;  %v3979_v8 = vunpack.c.h.s8.bf16 %v3603_v38 }
 0x404   : > { %4404 = vmatprep.subr.bf16.mxu1 %v4226_v13  ;;  %v3995_v13 = vunpack.c.h.s8.bf16 %v3611_v36 }
 0x406   : > { %4469 = vmatpush1.bf16.msra.mxu0 %v3899_v26  ;;  %v3988_v26 = vunpack.c.l.s8.bf16 %v3612_v9 }
 0x407   : > { %4470 = vmatprep.subr.bf16.mxu0 %v3908_v4  ;;  %4405 = vmatpush1.bf16.msra.mxu1 %v4225_v59  ;;  %v3996_v4 = vunpack.c.h.s8.bf16 %v3612_v9  ;;  %v4004_v59 = vunpack.c.l.s8.bf16 %v3620_v7 }
 0x408   : > { %4406 = vmatprep.subr.bf16.mxu1 %v4234_v58 }
 0x40a   : > { %4471 = vmatpush1.bf16.msra.mxu0 %v3907_v16  ;;  %v3619_v16 = vld [vmem:[#allocation2 + $0x410] sm:$0xff] }
 0x40b   : > { %4472 = vmatprep.subr.bf16.mxu0 %v3916_v17  ;;  %4407 = vmatpush1.bf16.msra.mxu1 %v4233_v35  ;;  %v4003_v58 = vunpack.c.l.s8.bf16 %v3619_v16  ;;  %v4012_v17 = vunpack.c.h.s8.bf16 %v3620_v7  ;;  %v3628_v35 = vld [vmem:[#allocation2 + $0x458] sm:$0xff]  ;;  %v4011_v0 = vunpack.c.h.s8.bf16 %v3619_v16 }
 0x40c   : > { %4408 = vmatprep.subr.bf16.mxu1 %v4242_v18 }
 0x40e   : > { %4473 = vmatpush1.bf16.msra.mxu0 %v3915_v21  ;;  %v4020_v21 = vunpack.c.l.s8.bf16 %v3628_v35 }
 0x40f   : > { %4474 = vmatprep.subr.bf16.mxu0 %v3924_v20  ;;  %4409 = vmatpush1.bf16.msra.mxu1 %v4241_v25  ;;  %v3627_v20 = vld [vmem:[#allocation2 + $0x450] sm:$0xff] }
 0x410   : > { %4410 = vmatprep.subr.bf16.mxu1 %v4250_v53  ;;  %v4019_v42 = vunpack.c.l.s8.bf16 %v3627_v20  ;;  %v4027_v32 = vunpack.c.h.s8.bf16 %v3627_v20  ;;  %v3644_v53 = vld [vmem:[#allocation2 + $0x4d8] sm:$0xff]  ;;  %v3643_v25 = vld [vmem:[#allocation2 + $0x4d0] sm:$0xff] }
 0x411   : > { %v4052_v24 = vunpack.c.l.s8.bf16 %v3644_v53 }
 0x412   : > { %4475 = vmatpush1.bf16.msra.mxu0 %v3923_v19  ;;  %v4028_v19 = vunpack.c.h.s8.bf16 %v3628_v35 }
 0x413   : > { %4476 = vmatprep.subr.bf16.mxu0 %v3932_v1  ;;  %4411 = vmatpush1.bf16.msra.mxu1 %v4249_v15  ;;  %v3636_v1 = vld [vmem:[#allocation2 + $0x498] sm:$0xff]  ;;  %v4051_v15 = vunpack.c.l.s8.bf16 %v3643_v25 }
 0x414   : > { %4585 = vmatprep.subr.bf16.mxu1 %v3750_v63  ;;  %v4036_v55 = vunpack.c.l.s8.bf16 %v3636_v1  ;;  %v4044_v3 = vunpack.c.h.s8.bf16 %v3636_v1  ;;  %v3652_v63 = vld [vmem:[#allocation2 + $0x518] sm:$0xff] }
 0x415   : > { %v4068_v12 = vunpack.c.l.s8.bf16 %v3652_v63  ;;  %v4076_v56 = vunpack.c.h.s8.bf16 %v3652_v63  ;;  %v3708_v63 = vld [vmem:[#allocation2 + $0x6d8] sm:$0xff] }
 0x416   : > { %4477 = vmatpush1.bf16.msra.mxu0 %v3931_v44  ;;  %v3635_v44 = vld [vmem:[#allocation2 + $0x490] sm:$0xff] }
 0x417   : > { %4478 = vmatprep.subr.bf16.mxu0 %v3940_v43  ;;  %v4035_v18 = vunpack.c.l.s8.bf16 %v3635_v44  ;;  %v4043_v43 = vunpack.c.h.s8.bf16 %v3635_v44 }
 0x41a   : > { %4479 = vmatpush1.bf16.msra.mxu0 %v3939_v27  ;;  %v4060_v27 = vunpack.c.h.s8.bf16 %v3644_v53 }
 0x41b   : > { %4480 = vmatprep.subr.bf16.mxu0 %v3948_v60  ;;  %v4059_v60 = vunpack.c.h.s8.bf16 %v3643_v25 }
 0x41e   : > { %4481 = vmatpush1.bf16.msra.mxu0 %v3947_v57  ;;  %v3651_v57 = vld [vmem:[#allocation2 + $0x510] sm:$0xff] }
 0x41f   : > { %4482 = vmatprep.subr.bf16.mxu0 %v3956_v40  ;;  %v4067_v40 = vunpack.c.l.s8.bf16 %v3651_v57 }
 0x422   : > { %4483 = vmatpush1.bf16.msra.mxu0 %v3955_v37  ;;  %v3660_v37 = vld [vmem:[#allocation2 + $0x558] sm:$0xff] }
 0x423   : > { %4484 = vmatprep.subr.bf16.mxu0 %v3964_v45  ;;  %v4075_v45 = vunpack.c.h.s8.bf16 %v3651_v57  ;;  %v4084_v23 = vunpack.c.l.s8.bf16 %v3660_v37  ;;  %v4092_v38 = vunpack.c.h.s8.bf16 %v3660_v37  ;;  %v4180_v37 = vunpack.c.l.s8.bf16 %v3708_v63 }
 0x426   : > { %4485 = vmatpush1.bf16.msra.mxu0 %v3963_v54  ;;  %v3659_v54 = vld [vmem:[#allocation2 + $0x550] sm:$0xff] }
 0x427   : > { %4486 = vmatprep.subr.bf16.mxu0 %v3972_v46  ;;  %v4083_v46 = vunpack.c.l.s8.bf16 %v3659_v54 }
 0x42a   : > { %4487 = vmatpush1.bf16.msra.mxu0 %v3971_v6  ;;  %v3668_v6 = vld [vmem:[#allocation2 + $0x598] sm:$0xff] }
 0x42b   : > { %4488 = vmatprep.subr.bf16.mxu0 %v3980_v62  ;;  %v4091_v62 = vunpack.c.h.s8.bf16 %v3659_v54  ;;  %v4100_v9 = vunpack.c.l.s8.bf16 %v3668_v6  ;;  %v4108_v36 = vunpack.c.h.s8.bf16 %v3668_v6 }
 0x42e   : > { %4489 = vmatpush1.bf16.msra.mxu0 %v3979_v8  ;;  %v3667_v8 = vld [vmem:[#allocation2 + $0x590] sm:$0xff] }
 0x42f   : > { %4490 = vmatprep.subr.bf16.mxu0 %v3988_v26  ;;  %v4099_v26 = vunpack.c.l.s8.bf16 %v3667_v8 }
 0x432   : > { %4491 = vmatpush1.bf16.msra.mxu0 %v3987_v2  ;;  %v3676_v2 = vld [vmem:[#allocation2 + $0x5d8] sm:$0xff] }
 0x433   : > { %4492 = vmatprep.subr.bf16.mxu0 %v3996_v4  ;;  %v4107_v4 = vunpack.c.h.s8.bf16 %v3667_v8  ;;  %v4116_v7 = vunpack.c.l.s8.bf16 %v3676_v2  ;;  %v4124_v16 = vunpack.c.h.s8.bf16 %v3676_v2  ;;  %v3493_v2 = vld [vmem:[#allocation2 + $0x20] sm:$0xff] }
 0x436   : > { %4493 = vmatpush1.bf16.msra.mxu0 %v3995_v13  ;;  %v3675_v13 = vld [vmem:[#allocation2 + $0x5d0] sm:$0xff] }
 0x437   : > { %4503 = vmatprep.subr.bf16.mxu0 %v4004_v59  ;;  %v4115_v59 = vunpack.c.l.s8.bf16 %v3675_v13 }
 0x439   : > { %4495 = vmatmul.mubr.bf16.vlgmr.msra.gmra.mrb[16].mxu0 %v8347_v29 }
 0x43a   : > { %4504 = vmatpush1.bf16.msra.mxu0 %v4003_v58  ;;  %4535 = vmatprep.mubr.bf16.mxu0 %v8356_v33  ;;  %v3684_v58 = vld [vmem:[#allocation2 + $0x618] sm:$0xff] }
 0x43b   : > { %4505 = vmatprep.subr.bf16.mxu0 %v4012_v17  ;;  %v4123_v17 = vunpack.c.h.s8.bf16 %v3675_v13  ;;  %v4132_v35 = vunpack.c.l.s8.bf16 %v3684_v58  ;;  %v4140_v20 = vunpack.c.h.s8.bf16 %v3684_v58 }
 0x43e   : > { %4506 = vmatpush1.bf16.msra.mxu0 %v4011_v0  ;;  %v3683_v0 = vld [vmem:[#allocation2 + $0x610] sm:$0xff] }
 0x43f   : > { %4507 = vmatprep.subr.bf16.mxu0 %v4020_v21  ;;  %v4131_v21 = vunpack.c.l.s8.bf16 %v3683_v0 }
 0x442   : > { %4508 = vmatpush1.bf16.msra.mxu0 %v4019_v42  ;;  %v3692_v42 = vld [vmem:[#allocation2 + $0x658] sm:$0xff] }
 0x443   : > { %4509 = vmatprep.subr.bf16.mxu0 %v4028_v19  ;;  %v4139_v19 = vunpack.c.h.s8.bf16 %v3683_v0  ;;  %v4148_v1 = vunpack.c.l.s8.bf16 %v3692_v42  ;;  %v4156_v44 = vunpack.c.h.s8.bf16 %v3692_v42 }
 0x446   : > { %4510 = vmatpush1.bf16.msra.mxu0 %v4027_v32  ;;  %v3691_v32 = vld [vmem:[#allocation2 + $0x650] sm:$0xff] }
 0x447   : > { %4511 = vmatprep.subr.bf16.mxu0 %v4036_v55  ;;  %v4147_v55 = vunpack.c.l.s8.bf16 %v3691_v32 }
 0x44a   : > { %4512 = vmatpush1.bf16.msra.mxu0 %v4035_v18  ;;  %v3700_v18 = vld [vmem:[#allocation2 + $0x698] sm:$0xff] }
 0x44b   : > { %4513 = vmatprep.subr.bf16.mxu0 %v4044_v3  ;;  %v4155_v3 = vunpack.c.h.s8.bf16 %v3691_v32  ;;  %v4164_v53 = vunpack.c.l.s8.bf16 %v3700_v18  ;;  %v3501_v32 = vld [vmem:[#allocation2 + $0x60] sm:$0xff] }
 0x44e   : > { %4514 = vmatpush1.bf16.msra.mxu0 %v4043_v43  ;;  %v3699_v43 = vld [vmem:[#allocation2 + $0x690] sm:$0xff] }
 0x44f   : > { %4515 = vmatprep.subr.bf16.mxu0 %v4052_v24  ;;  %v8404_v24 = vsub.s32 6, %v7689_v39  ;;  %v4163_v25 = vunpack.c.l.s8.bf16 %v3699_v43 }
 0x452   : > { %4516 = vmatpush1.bf16.msra.mxu0 %v4051_v15  ;;  %v8407_v15 = vsub.s32 7, %v7689_v39 }
 0x453   : > { %4517 = vmatprep.subr.bf16.mxu0 %v4060_v27  ;;  %v4172_v27 = vunpack.c.h.s8.bf16 %v3700_v18 }
 0x456   : > { %4518 = vmatpush1.bf16.msra.mxu0 %v4059_v60  ;;  %v5866_v60 = vld [vmem:[%s8803_s9] sm:$0xff] }
 0x457   : > { %4519 = vmatprep.subr.bf16.mxu0 %v4068_v12  ;;  %v3410_v12 = vrot.slane %v5866_v60, %v8404_v24  ;;  %v3414_v57 = vrot.slane %v5866_v60, %v8407_v15 }
 0x45a   : > { %4520 = vmatpush1.bf16.msra.mxu0 %v4067_v40  ;;  %v4171_v40 = vunpack.c.h.s8.bf16 %v3699_v43  ;;  %v3510_v43 = vld [vmem:[#allocation2 + $0xa8] sm:$0xff] }
 0x45b   : > { %4521 = vmatprep.subr.bf16.mxu0 %v4076_v56  ;;  %v5867_v56 = vld [vmem:[%s8804_s10] sm:$0xff] }
 0x45c   : > { %v3460_v39 = vrot.slane %v5867_v56, %v8404_v24  ;;  %v3464_v54 = vrot.slane %v5867_v56, %v8407_v15 }
 0x45e   : > { %4522 = vmatpush1.bf16.msra.mxu0 %v4075_v45  ;;  %v3707_v45 = vld [vmem:[#allocation2 + $0x6d0] sm:$0xff] }
 0x45f   : > { %4523 = vmatprep.subr.bf16.mxu0 %v4084_v23 }
 0x462   : > { %4524 = vmatpush1.bf16.msra.mxu0 %v4083_v46 }
 0x463   : > { %4525 = vmatprep.subr.bf16.mxu0 %v4092_v38 }
 0x466   : > { %4526 = vmatpush1.bf16.msra.mxu0 %v4091_v62 }
 0x467   : > { %4527 = vmatprep.subr.bf16.mxu0 %v4100_v9  ;;  %v4179_v9 = vunpack.c.l.s8.bf16 %v3707_v45 }
 0x46a   : > { %4528 = vmatpush1.bf16.msra.mxu0 %v4099_v26 }
 0x46b   : > { %4529 = vmatprep.subr.bf16.mxu0 %v4108_v36  ;;  %v4188_v36 = vunpack.c.h.s8.bf16 %v3708_v63  ;;  %v3782_v63 = vunpack.c.l.s8.bf16 %v3510_v43 }
 0x46e   : > { %4530 = vmatpush1.bf16.msra.mxu0 %v4107_v4 }
 0x46f   : > { %4531 = vmatprep.subr.bf16.mxu0 %v4116_v7  ;;  %v3716_v7 = vld [vmem:[#allocation2 + $0x718] sm:$0xff] }
 0x470   : > { %v4196_v0 = vunpack.c.l.s8.bf16 %v3716_v7 }
 0x472   : > { %4532 = vmatpush1.bf16.msra.mxu0 %v4115_v59  ;;  %v3749_v59 = vunpack.c.l.s8.bf16 %v3493_v2 }
 0x473   : > { %4533 = vmatprep.subr.bf16.mxu0 %v4124_v16  ;;  %v4187_v16 = vunpack.c.h.s8.bf16 %v3707_v45  ;;  %v3731_v45 = vld [vmem:[#allocation2 + $0x790] sm:$0xff] }
 0x476   : > { %4534 = vmatpush1.bf16.msra.mxu0 %v4123_v17  ;;  %v3758_v17 = vunpack.c.h.s8.bf16 %v8397_v22  ;;  %v3724_v22 = vld [vmem:[#allocation2 + $0x758] sm:$0xff] }
 0x477   : > { %4544 = vmatprep.subr.bf16.mxu0 %v4132_v35  ;;  %v3715_v35 = vld [vmem:[#allocation2 + $0x710] sm:$0xff]  ;;  %v4220_v60 = vunpack.c.h.s8.bf16 %v3724_v22 }
 0x478   : > { %v4195_v42 = vunpack.c.l.s8.bf16 %v3715_v35 }
 0x479   : > { %4536 = vmatmul.mubr.bf16.vlgmr.msra.gmra.mrb[16].mxu0 %v8392_v52 }
 0x47a   : > { %4545 = vmatpush1.bf16.msra.mxu0 %v4131_v21  ;;  %v3502_v21 = vld [vmem:[#allocation2 + $0x68] sm:$0xff] }
 0x47b   : > { %4546 = vmatprep.subr.bf16.mxu0 %v4140_v20  ;;  %v3757_v20 = vunpack.c.h.s8.bf16 %v3493_v2  ;;  %v3774_v18 = vunpack.c.h.s8.bf16 %v3502_v21 }
 0x47e   : > { %4547 = vmatpush1.bf16.msra.mxu0 %v4139_v19  ;;  %v3766_v19 = vunpack.c.l.s8.bf16 %v3502_v21 }
 0x47f   : > { %4548 = vmatprep.subr.bf16.mxu0 %v4148_v1  ;;  %v4204_v1 = vunpack.c.h.s8.bf16 %v3716_v7 }
 0x482   : > { %4549 = vmatpush1.bf16.msra.mxu0 %v4147_v55  ;;  %v3765_v55 = vunpack.c.l.s8.bf16 %v3501_v32 }
 0x483   : > { %4550 = vmatprep.subr.bf16.mxu0 %v4156_v44  ;;  %v4203_v44 = vunpack.c.h.s8.bf16 %v3715_v35 }
 0x486   : > { %4551 = vmatpush1.bf16.msra.mxu0 %v4155_v3  ;;  %v4212_v3 = vunpack.c.l.s8.bf16 %v3724_v22 }
 0x487   : > { %4552 = vmatprep.subr.bf16.mxu0 %v4164_v53  ;;  %v3723_v53 = vld [vmem:[#allocation2 + $0x750] sm:$0xff] }
 0x488   : > { %v4219_v56 = vunpack.c.h.s8.bf16 %v3723_v53 }
 0x48a   : > { %4553 = vmatpush1.bf16.msra.mxu0 %v4163_v25  ;;  %v3773_v25 = vunpack.c.h.s8.bf16 %v3501_v32 }
 0x48b   : > { %4554 = vmatprep.subr.bf16.mxu0 %v4172_v27  ;;  %v4211_v27 = vunpack.c.l.s8.bf16 %v3723_v53 }
 0x48c   : > { %v3374_v23 = vpop.f32.mrb[12].mxu0 }
 0x48d   : > { %v3429_v46 = vmul.f32 %v3410_v12, %v3374_v23  ;;  %v3376_v38 = vpop.f32.mrb[13].mxu0  ;;  %v3509_v12 = vld [vmem:[#allocation2 + $0xa0] sm:$0xff]  ;;  %v3518_v23 = vld [vmem:[#allocation2 + $0xe8] sm:$0xff] }
 0x48e   : > { %v3430_v6 = vmul.f32 %v3414_v57, %v3376_v38  ;;  %v3378_v62 = vpop.f32.mrb[14].mxu0  ;;  %4555 = vmatpush1.bf16.msra.mxu0 %v4171_v40  ;;  %v3732_v57 = vld [vmem:[#allocation2 + $0x798] sm:$0xff]  ;;  %v3781_v40 = vunpack.c.l.s8.bf16 %v3509_v12  ;;  %v3798_v38 = vunpack.c.l.s8.bf16 %v3518_v23  ;;  %v3806_v2 = vunpack.c.h.s8.bf16 %v3518_v23  ;;  %v3541_v23 = vld [vmem:[#allocation2 + $0x1a0] sm:$0xff] }
 0x48f   : > { %v8419_v8 = vadd.f32 %v3460_v39, %v3429_v46  ;;  %v3379_v26 = vpop.f32.mrb[15].mxu0  ;;  %4556 = vmatprep.subr.bf16.mxu0 %v4180_v37  ;;  %v3790_v39 = vunpack.c.h.s8.bf16 %v3510_v43  ;;  %v4228_v37 = vunpack.c.l.s8.bf16 %v3732_v57  ;;  %v4227_v46 = vunpack.c.l.s8.bf16 %v3731_v45  ;;  %v3517_v62 = vld [vmem:[#allocation2 + $0xe0] sm:$0xff] }
 0x490   : > { %v8421_v4 = vadd.f32 %v3464_v54, %v3430_v6  ;;  %v3789_v54 = vunpack.c.h.s8.bf16 %v3509_v12  ;;  %v4236_v6 = vunpack.c.h.s8.bf16 %v3732_v57  ;;  %v3797_v26 = vunpack.c.l.s8.bf16 %v3517_v62  ;;  %v3533_v43 = vld [vmem:[#allocation2 + $0x160] sm:$0xff] }
 0x491   : > { %v8429_v58 = vpack.c.bf16 %v8419_v8, %v8419_v8 }
 0x492   : > { %v8425_v13 = vpack.c.bf16 %v8421_v4, %v8421_v4  ;;  %4557 = vmatpush1.bf16.msra.mxu0 %v4179_v9  ;;  %v3740_v9 = vld [vmem:[#allocation2 + $0x7d8] sm:$0xff] }
 0x493   : > { %4558 = vmatprep.subr.bf16.mxu0 %v4188_v36  ;;  %v4235_v36 = vunpack.c.h.s8.bf16 %v3731_v45  ;;  %v4244_v7 = vunpack.c.l.s8.bf16 %v3740_v9  ;;  %v4252_v21 = vunpack.c.h.s8.bf16 %v3740_v9  ;;  %v3511_v9 = vld [vmem:[#allocation2 + $0xb0] sm:$0xff] }
 0x494   : > { %4412 = vmatprep.mubr.bf16.mxu1 %v8425_v13  ;;  %4576 = vmatprep.mubr.bf16.mxu0 %v8425_v13 }
 0x495   : > { %4413 = vmatmul.mubr.bf16.vlgmr.msra.gmra.mrb[8].mxu1 %v8429_v58 }
 0x496   : > { %4586 = vmatpush1.bf16.msra.mxu1 %v3749_v59  ;;  %4559 = vmatpush1.bf16.msra.mxu0 %v4187_v16  ;;  %v3739_v59 = vld [vmem:[#allocation2 + $0x7d0] sm:$0xff]  ;;  %v3526_v16 = vld [vmem:[#allocation2 + $0x128] sm:$0xff] }
 0x497   : > { %4617 = vmatprep.mubr.bf16.mxu1 %v8026_v61  ;;  %4587 = vmatprep.subr.bf16.mxu1 %v3758_v17  ;;  %v3805_v17 = vunpack.c.h.s8.bf16 %v3517_v62  ;;  %v4243_v35 = vunpack.c.l.s8.bf16 %v3739_v59  ;;  %v3822_v32 = vunpack.c.h.s8.bf16 %v3526_v16 }
 0x498   : > { %4560 = vmatprep.subr.bf16.mxu0 %v4196_v0  ;;  %v3814_v0 = vunpack.c.l.s8.bf16 %v3526_v16 }
 0x49a   : > { %4588 = vmatpush1.bf16.msra.mxu1 %v3757_v20  ;;  %4561 = vmatpush1.bf16.msra.mxu0 %v4195_v42  ;;  %v3525_v20 = vld [vmem:[#allocation2 + $0x120] sm:$0xff]  ;;  %v3496_v42 = vld [vmem:[#allocation2 + $0x38] sm:$0xff] }
 0x49b   : > { %4589 = vmatprep.subr.bf16.mxu1 %v3766_v19  ;;  %4562 = vmatprep.subr.bf16.mxu0 %v4204_v1  ;;  %v3813_v19 = vunpack.c.l.s8.bf16 %v3525_v20  ;;  %v4251_v1 = vunpack.c.h.s8.bf16 %v3739_v59  ;;  %v3752_v22 = vunpack.c.l.s8.bf16 %v3496_v42  ;;  %v3549_v59 = vld [vmem:[#allocation2 + $0x1e0] sm:$0xff] }
 0x49e   : > { %4590 = vmatpush1.bf16.msra.mxu1 %v3765_v55  ;;  %4563 = vmatpush1.bf16.msra.mxu0 %v4203_v44  ;;  %v3495_v55 = vld [vmem:[#allocation2 + $0x30] sm:$0xff]  ;;  %v3534_v44 = vld [vmem:[#allocation2 + $0x168] sm:$0xff] }
 0x49f   : > { %4591 = vmatprep.subr.bf16.mxu1 %v3774_v18  ;;  %4564 = vmatprep.subr.bf16.mxu0 %v4212_v3  ;;  %v3821_v18 = vunpack.c.h.s8.bf16 %v3525_v20  ;;  %v3751_v3 = vunpack.c.l.s8.bf16 %v3495_v55  ;;  %v3830_v53 = vunpack.c.l.s8.bf16 %v3534_v44  ;;  %v3838_v12 = vunpack.c.h.s8.bf16 %v3534_v44 }
 0x4a2   : > { %4592 = vmatpush1.bf16.msra.mxu1 %v3773_v25  ;;  %4565 = vmatpush1.bf16.msra.mxu0 %v4211_v27  ;;  %v3760_v25 = vunpack.c.h.s8.bf16 %v3496_v42  ;;  %v3504_v27 = vld [vmem:[#allocation2 + $0x78] sm:$0xff]  ;;  %v3519_v42 = vld [vmem:[#allocation2 + $0xf0] sm:$0xff] }
 0x4a3   : > { %4593 = vmatprep.subr.bf16.mxu1 %v3782_v63  ;;  %4566 = vmatprep.subr.bf16.mxu0 %v4220_v60  ;;  %v3829_v63 = vunpack.c.l.s8.bf16 %v3533_v43  ;;  %v3759_v60 = vunpack.c.h.s8.bf16 %v3495_v55  ;;  %v3768_v57 = vunpack.c.l.s8.bf16 %v3504_v27  ;;  %v3557_v55 = vld [vmem:[#allocation2 + $0x220] sm:$0xff] }
 0x4a6   : > { %4594 = vmatpush1.bf16.msra.mxu1 %v3781_v40  ;;  %4567 = vmatpush1.bf16.msra.mxu0 %v4219_v56  ;;  %v3503_v40 = vld [vmem:[#allocation2 + $0x70] sm:$0xff]  ;;  %v3542_v56 = vld [vmem:[#allocation2 + $0x1a8] sm:$0xff] }
 0x4a7   : > { %4595 = vmatprep.subr.bf16.mxu1 %v3790_v39  ;;  %4568 = vmatprep.subr.bf16.mxu0 %v4228_v37  ;;  %v3837_v39 = vunpack.c.h.s8.bf16 %v3533_v43  ;;  %v3767_v37 = vunpack.c.l.s8.bf16 %v3503_v40  ;;  %v3846_v45 = vunpack.c.l.s8.bf16 %v3542_v56 }
 0x4aa   : > { %4596 = vmatpush1.bf16.msra.mxu1 %v3789_v54  ;;  %4569 = vmatpush1.bf16.msra.mxu0 %v4227_v46  ;;  %v3776_v54 = vunpack.c.h.s8.bf16 %v3504_v27  ;;  %v3512_v46 = vld [vmem:[#allocation2 + $0xb8] sm:$0xff]  ;;  %v3527_v27 = vld [vmem:[#allocation2 + $0x130] sm:$0xff] }
 0x4ab   : > { %4597 = vmatprep.subr.bf16.mxu1 %v3798_v38  ;;  %4570 = vmatprep.subr.bf16.mxu0 %v4236_v6  ;;  %v3845_v38 = vunpack.c.l.s8.bf16 %v3541_v23  ;;  %v3854_v6 = vunpack.c.h.s8.bf16 %v3542_v56  ;;  %v3784_v62 = vunpack.c.l.s8.bf16 %v3512_v46  ;;  %v3792_v16 = vunpack.c.h.s8.bf16 %v3512_v46  ;;  %v3535_v46 = vld [vmem:[#allocation2 + $0x170] sm:$0xff] }
 0x4ae   : > { %4598 = vmatpush1.bf16.msra.mxu1 %v3797_v26  ;;  %4571 = vmatpush1.bf16.msra.mxu0 %v4235_v36  ;;  %v3550_v26 = vld [vmem:[#allocation2 + $0x1e8] sm:$0xff]  ;;  %v3853_v36 = vunpack.c.h.s8.bf16 %v3541_v23 }
 0x4af   : > { %4599 = vmatprep.subr.bf16.mxu1 %v3806_v2  ;;  %4572 = vmatprep.subr.bf16.mxu0 %v4244_v7  ;;  %v3783_v2 = vunpack.c.l.s8.bf16 %v3511_v9  ;;  %v3862_v7 = vunpack.c.l.s8.bf16 %v3550_v26 }
 0x4b2   : > { %4600 = vmatpush1.bf16.msra.mxu1 %v3805_v17  ;;  %4573 = vmatpush1.bf16.msra.mxu0 %v4243_v35  ;;  %v3520_v17 = vld [vmem:[#allocation2 + $0xf8] sm:$0xff]  ;;  %v3861_v35 = vunpack.c.l.s8.bf16 %v3549_v59 }
 0x4b3   : > { %4601 = vmatprep.subr.bf16.mxu1 %v3814_v0  ;;  %4574 = vmatprep.subr.bf16.mxu0 %v4252_v21  ;;  %v3791_v0 = vunpack.c.h.s8.bf16 %v3511_v9  ;;  %v3870_v21 = vunpack.c.h.s8.bf16 %v3550_v26  ;;  %v3800_v20 = vunpack.c.l.s8.bf16 %v3520_v17  ;;  %v3808_v44 = vunpack.c.h.s8.bf16 %v3520_v17  ;;  %v3573_v9 = vld [vmem:[#allocation2 + $0x2a0] sm:$0xff]  ;;  %v3543_v17 = vld [vmem:[#allocation2 + $0x1b0] sm:$0xff] }
 0x4b6   : > { %4602 = vmatpush1.bf16.msra.mxu1 %v3813_v19  ;;  %4575 = vmatpush1.bf16.msra.mxu0 %v4251_v1  ;;  %v3558_v19 = vld [vmem:[#allocation2 + $0x228] sm:$0xff]  ;;  %v3869_v1 = vunpack.c.h.s8.bf16 %v3549_v59 }
 0x4b7   : > { %4603 = vmatprep.subr.bf16.mxu1 %v3822_v32  ;;  %4749 = vmatprep.subr.bf16.mxu0 %v3752_v22  ;;  %v3799_v32 = vunpack.c.l.s8.bf16 %v3519_v42  ;;  %v3878_v22 = vunpack.c.l.s8.bf16 %v3558_v19  ;;  %v3886_v43 = vunpack.c.h.s8.bf16 %v3558_v19 }
 0x4b9   : > { %4577 = vmatmul.mubr.bf16.vlgmr.msra.gmra.mrb[16].mxu0 %v8429_v58 }
 0x4ba   : > { %4604 = vmatpush1.bf16.msra.mxu1 %v3821_v18  ;;  %4750 = vmatpush1.bf16.msra.mxu0 %v3751_v3  ;;  %v3528_v18 = vld [vmem:[#allocation2 + $0x138] sm:$0xff]  ;;  %v3877_v3 = vunpack.c.l.s8.bf16 %v3557_v55 }
 0x4bb   : > { %4781 = vmatprep.mubr.bf16.mxu0 %v8026_v61  ;;  %4605 = vmatprep.subr.bf16.mxu1 %v3830_v53  ;;  %v3775_v61 = vunpack.c.h.s8.bf16 %v3503_v40  ;;  %v3807_v53 = vunpack.c.h.s8.bf16 %v3519_v42  ;;  %v3565_v40 = vld [vmem:[#allocation2 + $0x260] sm:$0xff]  ;;  %v3824_v56 = vunpack.c.h.s8.bf16 %v3528_v18 }
 0x4bc   : > { %4751 = vmatprep.subr.bf16.mxu0 %v3760_v25  ;;  %v3816_v25 = vunpack.c.l.s8.bf16 %v3528_v18  ;;  %v3581_v42 = vld [vmem:[#allocation2 + $0x2e0] sm:$0xff]  ;;  %v3551_v18 = vld [vmem:[#allocation2 + $0x1f0] sm:$0xff] }
 0x4be   : > { %4606 = vmatpush1.bf16.msra.mxu1 %v3829_v63  ;;  %4752 = vmatpush1.bf16.msra.mxu0 %v3759_v60  ;;  %v3566_v63 = vld [vmem:[#allocation2 + $0x268] sm:$0xff]  ;;  %v3885_v60 = vunpack.c.h.s8.bf16 %v3557_v55 }
 0x4bf   : > { %4607 = vmatprep.subr.bf16.mxu1 %v3838_v12  ;;  %4753 = vmatprep.subr.bf16.mxu0 %v3768_v57  ;;  %v3815_v12 = vunpack.c.l.s8.bf16 %v3527_v27  ;;  %v3894_v57 = vunpack.c.l.s8.bf16 %v3566_v63  ;;  %v3902_v23 = vunpack.c.h.s8.bf16 %v3566_v63 }
 0x4c2   : > { %4608 = vmatpush1.bf16.msra.mxu1 %v3837_v39  ;;  %4754 = vmatpush1.bf16.msra.mxu0 %v3767_v37  ;;  %v3536_v39 = vld [vmem:[#allocation2 + $0x178] sm:$0xff]  ;;  %v3893_v37 = vunpack.c.l.s8.bf16 %v3565_v40 }
 0x4c3   : > { %4609 = vmatprep.subr.bf16.mxu1 %v3846_v45  ;;  %4755 = vmatprep.subr.bf16.mxu0 %v3776_v54  ;;  %v3823_v45 = vunpack.c.h.s8.bf16 %v3527_v27  ;;  %v3832_v54 = vunpack.c.l.s8.bf16 %v3536_v39  ;;  %v3840_v26 = vunpack.c.h.s8.bf16 %v3536_v39  ;;  %v3589_v27 = vld [vmem:[#allocation2 + $0x320] sm:$0xff]  ;;  %v3559_v39 = vld [vmem:[#allocation2 + $0x230] sm:$0xff] }
 0x4c6   : > { %4610 = vmatpush1.bf16.msra.mxu1 %v3845_v38  ;;  %4756 = vmatpush1.bf16.msra.mxu0 %v3775_v61  ;;  %v3574_v38 = vld [vmem:[#allocation2 + $0x2a8] sm:$0xff]  ;;  %v3901_v61 = vunpack.c.h.s8.bf16 %v3565_v40 }
 0x4c7   : > { %4611 = vmatprep.subr.bf16.mxu1 %v3854_v6  ;;  %4757 = vmatprep.subr.bf16.mxu0 %v3784_v62  ;;  %v3831_v6 = vunpack.c.l.s8.bf16 %v3535_v46  ;;  %v3910_v62 = vunpack.c.l.s8.bf16 %v3574_v38  ;;  %v3918_v59 = vunpack.c.h.s8.bf16 %v3574_v38 }
 0x4ca   : > { %4612 = vmatpush1.bf16.msra.mxu1 %v3853_v36  ;;  %4758 = vmatpush1.bf16.msra.mxu0 %v3783_v2  ;;  %v3544_v36 = vld [vmem:[#allocation2 + $0x1b8] sm:$0xff]  ;;  %v3909_v2 = vunpack.c.l.s8.bf16 %v3573_v9 }
 0x4cb   : > { %4613 = vmatprep.subr.bf16.mxu1 %v3862_v7  ;;  %4759 = vmatprep.subr.bf16.mxu0 %v3792_v16  ;;  %v3839_v7 = vunpack.c.h.s8.bf16 %v3535_v46  ;;  %v3848_v16 = vunpack.c.l.s8.bf16 %v3544_v36  ;;  %v3856_v19 = vunpack.c.h.s8.bf16 %v3544_v36  ;;  %v3567_v36 = vld [vmem:[#allocation2 + $0x270] sm:$0xff] }
 0x4ce   : > { %4614 = vmatpush1.bf16.msra.mxu1 %v3861_v35  ;;  %4760 = vmatpush1.bf16.msra.mxu0 %v3791_v0  ;;  %v3582_v35 = vld [vmem:[#allocation2 + $0x2e8] sm:$0xff]  ;;  %v3917_v0 = vunpack.c.h.s8.bf16 %v3573_v9 }
 0x4cf   : > { %4615 = vmatprep.subr.bf16.mxu1 %v3870_v21  ;;  %4761 = vmatprep.subr.bf16.mxu0 %v3800_v20  ;;  %v3847_v21 = vunpack.c.l.s8.bf16 %v3543_v17  ;;  %v3926_v20 = vunpack.c.l.s8.bf16 %v3582_v35  ;;  %v3934_v55 = vunpack.c.h.s8.bf16 %v3582_v35  ;;  %v3576_v35 = vld [vmem:[#allocation2 + $0x2b8] sm:$0xff] }
 0x4d2   : > { %4616 = vmatpush1.bf16.msra.mxu1 %v3869_v1  ;;  %4762 = vmatpush1.bf16.msra.mxu0 %v3799_v32  ;;  %v3552_v1 = vld [vmem:[#allocation2 + $0x1f8] sm:$0xff]  ;;  %v3925_v32 = vunpack.c.l.s8.bf16 %v3581_v42 }
 0x4d3   : > { %4626 = vmatprep.subr.bf16.mxu1 %v3878_v22  ;;  %4763 = vmatprep.subr.bf16.mxu0 %v3808_v44  ;;  %v3855_v22 = vunpack.c.h.s8.bf16 %v3543_v17  ;;  %v3864_v44 = vunpack.c.l.s8.bf16 %v3552_v1  ;;  %v3872_v63 = vunpack.c.h.s8.bf16 %v3552_v1  ;;  %v3605_v17 = vld [vmem:[#allocation2 + $0x3a0] sm:$0xff] }
 0x4d4   : > { %v3981_v1 = vunpack.c.h.s8.bf16 %v3605_v17 }
 0x4d5   : > { %4618 = vmatmul.mubr.bf16.vlgmr.msra.gmra.mrb[12].mxu1 %v8103_v11 }
 0x4d6   : > { %4627 = vmatpush1.bf16.msra.mxu1 %v3877_v3  ;;  %4658 = vmatprep.mubr.bf16.mxu1 %v8343_v30  ;;  %v3590_v3 = vld [vmem:[#allocation2 + $0x328] sm:$0xff] }
 0x4d7   : > { %4764 = vmatpush1.bf16.msra.mxu0 %v3807_v53  ;;  %4628 = vmatprep.subr.bf16.mxu1 %v3886_v43  ;;  %v3933_v53 = vunpack.c.h.s8.bf16 %v3581_v42  ;;  %v3863_v43 = vunpack.c.l.s8.bf16 %v3551_v18  ;;  %v3950_v40 = vunpack.c.h.s8.bf16 %v3590_v3  ;;  %v3575_v42 = vld [vmem:[#allocation2 + $0x2b0] sm:$0xff] }
 0x4d8   : > { %4765 = vmatprep.subr.bf16.mxu0 %v3816_v25  ;;  %v3942_v25 = vunpack.c.l.s8.bf16 %v3590_v3 }
 0x4da   : > { %4629 = vmatpush1.bf16.msra.mxu1 %v3885_v60  ;;  %v3560_v60 = vld [vmem:[#allocation2 + $0x238] sm:$0xff] }
 0x4db   : > { %4766 = vmatpush1.bf16.msra.mxu0 %v3815_v12  ;;  %4630 = vmatprep.subr.bf16.mxu1 %v3894_v57  ;;  %v3941_v12 = vunpack.c.l.s8.bf16 %v3589_v27  ;;  %v3871_v57 = vunpack.c.h.s8.bf16 %v3551_v18  ;;  %v3888_v38 = vunpack.c.h.s8.bf16 %v3560_v60  ;;  %v3584_v18 = vld [vmem:[#allocation2 + $0x2f8] sm:$0xff] }
 0x4dc   : > { %4767 = vmatprep.subr.bf16.mxu0 %v3824_v56  ;;  %v3880_v56 = vunpack.c.l.s8.bf16 %v3560_v60 }
 0x4de   : > { %4631 = vmatpush1.bf16.msra.mxu1 %v3893_v37  ;;  %v3598_v37 = vld [vmem:[#allocation2 + $0x368] sm:$0xff] }
 0x4df   : > { %4768 = vmatpush1.bf16.msra.mxu0 %v3823_v45  ;;  %4632 = vmatprep.subr.bf16.mxu1 %v3902_v23  ;;  %v3949_v45 = vunpack.c.h.s8.bf16 %v3589_v27  ;;  %v3879_v23 = vunpack.c.l.s8.bf16 %v3559_v39  ;;  %v3958_v46 = vunpack.c.l.s8.bf16 %v3598_v37  ;;  %v3966_v9 = vunpack.c.h.s8.bf16 %v3598_v37  ;;  %v3583_v27 = vld [vmem:[#allocation2 + $0x2f0] sm:$0xff] }
 0x4e0   : > { %4769 = vmatprep.subr.bf16.mxu0 %v3832_v54  ;;  %v3597_v54 = vld [vmem:[#allocation2 + $0x360] sm:$0xff] }
 0x4e2   : > { %4633 = vmatpush1.bf16.msra.mxu1 %v3901_v61  ;;  %v3568_v61 = vld [vmem:[#allocation2 + $0x278] sm:$0xff] }
 0x4e3   : > { %4770 = vmatpush1.bf16.msra.mxu0 %v3831_v6  ;;  %4634 = vmatprep.subr.bf16.mxu1 %v3910_v62  ;;  %v3957_v6 = vunpack.c.l.s8.bf16 %v3597_v54  ;;  %v3887_v62 = vunpack.c.h.s8.bf16 %v3559_v39  ;;  %v3592_v39 = vld [vmem:[#allocation2 + $0x338] sm:$0xff] }
 0x4e4   : > { %4771 = vmatprep.subr.bf16.mxu0 %v3840_v26  ;;  %v3896_v26 = vunpack.c.l.s8.bf16 %v3568_v61 }
 0x4e6   : > { %4635 = vmatpush1.bf16.msra.mxu1 %v3909_v2  ;;  %v3606_v2 = vld [vmem:[#allocation2 + $0x3a8] sm:$0xff] }
 0x4e7   : > { %4772 = vmatpush1.bf16.msra.mxu0 %v3839_v7  ;;  %4636 = vmatprep.subr.bf16.mxu1 %v3918_v59  ;;  %v3965_v7 = vunpack.c.h.s8.bf16 %v3597_v54  ;;  %v3895_v59 = vunpack.c.l.s8.bf16 %v3567_v36  ;;  %v3944_v54 = vunpack.c.l.s8.bf16 %v3592_v39 }
 0x4e8   : > { %4773 = vmatprep.subr.bf16.mxu0 %v3848_v16  ;;  %v3974_v16 = vunpack.c.l.s8.bf16 %v3606_v2 }
 0x4ea   : > { %4637 = vmatpush1.bf16.msra.mxu1 %v3917_v0  ;;  %v3973_v0 = vunpack.c.l.s8.bf16 %v3605_v17  ;;  %v3599_v17 = vld [vmem:[#allocation2 + $0x370] sm:$0xff] }
 0x4eb   : > { %4774 = vmatpush1.bf16.msra.mxu0 %v3847_v21  ;;  %4638 = vmatprep.subr.bf16.mxu1 %v3926_v20  ;;  %v3982_v21 = vunpack.c.h.s8.bf16 %v3606_v2  ;;  %v3912_v20 = vunpack.c.l.s8.bf16 %v3576_v35 }
 0x4ec   : > { %4775 = vmatprep.subr.bf16.mxu0 %v3856_v19  ;;  %v3614_v19 = vld [vmem:[#allocation2 + $0x3e8] sm:$0xff] }
 0x4ee   : > { %4639 = vmatpush1.bf16.msra.mxu1 %v3925_v32  ;;  %v3911_v32 = vunpack.c.l.s8.bf16 %v3575_v42 }
 0x4ef   : > { %4776 = vmatpush1.bf16.msra.mxu0 %v3855_v22  ;;  %4640 = vmatprep.subr.bf16.mxu1 %v3934_v55  ;;  %v3990_v22 = vunpack.c.l.s8.bf16 %v3614_v19  ;;  %v3613_v55 = vld [vmem:[#allocation2 + $0x3e0] sm:$0xff] }
 0x4f0   : > { %4777 = vmatprep.subr.bf16.mxu0 %v3864_v44  ;;  %v3920_v44 = vunpack.c.h.s8.bf16 %v3576_v35  ;;  %v3989_v3 = vunpack.c.l.s8.bf16 %v3613_v55  ;;  %v3997_v60 = vunpack.c.h.s8.bf16 %v3613_v55  ;;  %v3607_v55 = vld [vmem:[#allocation2 + $0x3b0] sm:$0xff] }
 0x4f2   : > { %4641 = vmatpush1.bf16.msra.mxu1 %v3933_v53  ;;  %v3919_v53 = vunpack.c.h.s8.bf16 %v3575_v42  ;;  %v3608_v42 = vld [vmem:[#allocation2 + $0x3b8] sm:$0xff] }
 0x4f3   : > { %4778 = vmatpush1.bf16.msra.mxu0 %v3863_v43  ;;  %4642 = vmatprep.subr.bf16.mxu1 %v3942_v25  ;;  %v3998_v43 = vunpack.c.h.s8.bf16 %v3614_v19  ;;  %v3928_v25 = vunpack.c.l.s8.bf16 %v3584_v18 }
 0x4f4   : > { %4779 = vmatprep.subr.bf16.mxu0 %v3872_v63  ;;  %v3622_v63 = vld [vmem:[#allocation2 + $0x428] sm:$0xff] }
 0x4f6   : > { %4643 = vmatpush1.bf16.msra.mxu1 %v3941_v12  ;;  %v3927_v12 = vunpack.c.l.s8.bf16 %v3583_v27 }
 0x4f7   : > { %4780 = vmatpush1.bf16.msra.mxu0 %v3871_v57  ;;  %4644 = vmatprep.subr.bf16.mxu1 %v3950_v40  ;;  %v4006_v57 = vunpack.c.l.s8.bf16 %v3622_v63  ;;  %v3621_v40 = vld [vmem:[#allocation2 + $0x420] sm:$0xff] }
 0x4f8   : > { %4790 = vmatprep.subr.bf16.mxu0 %v3880_v56  ;;  %v3936_v56 = vunpack.c.h.s8.bf16 %v3584_v18  ;;  %v4005_v37 = vunpack.c.l.s8.bf16 %v3621_v40 }
 0x4fa   : > { %4645 = vmatpush1.bf16.msra.mxu1 %v3949_v45  ;;  %4782 = vmatmul.mubr.bf16.vlgmr.msra.gmra.mrb[20].mxu0 %v8103_v11  ;;  %v3904_v11 = vunpack.c.h.s8.bf16 %v3568_v61  ;;  %v3935_v45 = vunpack.c.h.s8.bf16 %v3583_v27  ;;  %v4013_v61 = vunpack.c.h.s8.bf16 %v3621_v40  ;;  %v3616_v27 = vld [vmem:[#allocation2 + $0x3f8] sm:$0xff]  ;;  %v3615_v40 = vld [vmem:[#allocation2 + $0x3f0] sm:$0xff] }
 0x4fb   : > { %4791 = vmatpush1.bf16.msra.mxu0 %v3879_v23  ;;  %4822 = vmatprep.mubr.bf16.mxu0 %v8343_v30  ;;  %v3903_v30 = vunpack.c.h.s8.bf16 %v3567_v36  ;;  %v4014_v23 = vunpack.c.h.s8.bf16 %v3622_v63  ;;  %v3600_v36 = vld [vmem:[#allocation2 + $0x378] sm:$0xff] }
 0x4fc   : > { %4646 = vmatprep.subr.bf16.mxu1 %v3958_v46  ;;  %4792 = vmatprep.subr.bf16.mxu0 %v3888_v38  ;;  %v3591_v46 = vld [vmem:[#allocation2 + $0x330] sm:$0xff]  ;;  %v3630_v38 = vld [vmem:[#allocation2 + $0x468] sm:$0xff] }
 0x4fe   : > { %4647 = vmatpush1.bf16.msra.mxu1 %v3957_v6  ;;  %v3943_v6 = vunpack.c.l.s8.bf16 %v3591_v46 }
 0x4ff   : > { %4793 = vmatpush1.bf16.msra.mxu0 %v3887_v62  ;;  %4648 = vmatprep.subr.bf16.mxu1 %v3966_v9  ;;  %v4022_v62 = vunpack.c.l.s8.bf16 %v3630_v38  ;;  %v3629_v9 = vld [vmem:[#allocation2 + $0x460] sm:$0xff] }
 0x500   : > { %4794 = vmatprep.subr.bf16.mxu0 %v3896_v26  ;;  %v3952_v26 = vunpack.c.h.s8.bf16 %v3592_v39  ;;  %v4021_v2 = vunpack.c.l.s8.bf16 %v3629_v9  ;;  %v4029_v35 = vunpack.c.h.s8.bf16 %v3629_v9  ;;  %v3623_v9 = vld [vmem:[#allocation2 + $0x430] sm:$0xff] }
 0x502   : > { %4649 = vmatpush1.bf16.msra.mxu1 %v3965_v7  ;;  %v3951_v7 = vunpack.c.h.s8.bf16 %v3591_v46  ;;  %v3624_v46 = vld [vmem:[#allocation2 + $0x438] sm:$0xff] }
 0x503   : > { %4795 = vmatpush1.bf16.msra.mxu0 %v3895_v59  ;;  %4650 = vmatprep.subr.bf16.mxu1 %v3974_v16  ;;  %v4030_v59 = vunpack.c.h.s8.bf16 %v3630_v38  ;;  %v3960_v16 = vunpack.c.l.s8.bf16 %v3600_v36 }
 0x504   : > { %4796 = vmatprep.subr.bf16.mxu0 %v3904_v11  ;;  %v3638_v11 = vld [vmem:[#allocation2 + $0x4a8] sm:$0xff] }
 0x506   : > { %4651 = vmatpush1.bf16.msra.mxu1 %v3973_v0  ;;  %v3959_v0 = vunpack.c.l.s8.bf16 %v3599_v17 }
 0x507   : > { %4797 = vmatpush1.bf16.msra.mxu0 %v3903_v30  ;;  %4652 = vmatprep.subr.bf16.mxu1 %v3982_v21  ;;  %v4038_v30 = vunpack.c.l.s8.bf16 %v3638_v11  ;;  %v3637_v21 = vld [vmem:[#allocation2 + $0x4a0] sm:$0xff] }
 0x508   : > { %4798 = vmatprep.subr.bf16.mxu0 %v3912_v20  ;;  %v3968_v20 = vunpack.c.h.s8.bf16 %v3600_v36  ;;  %v4037_v19 = vunpack.c.l.s8.bf16 %v3637_v21  ;;  %v4045_v18 = vunpack.c.h.s8.bf16 %v3637_v21  ;;  %v3631_v21 = vld [vmem:[#allocation2 + $0x470] sm:$0xff] }
 0x50a   : > { %4653 = vmatpush1.bf16.msra.mxu1 %v3981_v1  ;;  %v3967_v1 = vunpack.c.h.s8.bf16 %v3599_v17  ;;  %v3632_v17 = vld [vmem:[#allocation2 + $0x478] sm:$0xff] }
 0x50b   : > { %4799 = vmatpush1.bf16.msra.mxu0 %v3911_v32  ;;  %4654 = vmatprep.subr.bf16.mxu1 %v3990_v22  ;;  %v4046_v32 = vunpack.c.h.s8.bf16 %v3638_v11  ;;  %v3976_v22 = vunpack.c.l.s8.bf16 %v3608_v42 }
 0x50c   : > { %4800 = vmatprep.subr.bf16.mxu0 %v3920_v44  ;;  %v3646_v44 = vld [vmem:[#allocation2 + $0x4e8] sm:$0xff] }
 0x50e   : > { %4655 = vmatpush1.bf16.msra.mxu1 %v3989_v3  ;;  %v3975_v3 = vunpack.c.l.s8.bf16 %v3607_v55 }
 0x50f   : > { %4801 = vmatpush1.bf16.msra.mxu0 %v3919_v53  ;;  %4656 = vmatprep.subr.bf16.mxu1 %v3998_v43  ;;  %v4054_v53 = vunpack.c.l.s8.bf16 %v3646_v44  ;;  %v3645_v43 = vld [vmem:[#allocation2 + $0x4e0] sm:$0xff] }
 0x510   : > { %4802 = vmatprep.subr.bf16.mxu0 %v3928_v25  ;;  %v3984_v25 = vunpack.c.h.s8.bf16 %v3608_v42  ;;  %v4053_v63 = vunpack.c.l.s8.bf16 %v3645_v43  ;;  %v4061_v39 = vunpack.c.h.s8.bf16 %v3645_v43 }
 0x512   : > { %4657 = vmatpush1.bf16.msra.mxu1 %v3997_v60  ;;  %v3983_v60 = vunpack.c.h.s8.bf16 %v3607_v55 }
 0x513   : > { %4803 = vmatpush1.bf16.msra.mxu0 %v3927_v12  ;;  %4667 = vmatprep.subr.bf16.mxu1 %v4006_v57  ;;  %v4062_v12 = vunpack.c.h.s8.bf16 %v3646_v44  ;;  %v3992_v57 = vunpack.c.l.s8.bf16 %v3616_v27 }
 0x514   : > { %4804 = vmatprep.subr.bf16.mxu0 %v3936_v56  ;;  %v3654_v56 = vld [vmem:[#allocation2 + $0x528] sm:$0xff] }
 0x515   : > { %4659 = vmatmul.mubr.bf16.vlgmr.msra.gmra.mrb[12].mxu1 %v8347_v29 }
 0x516   : > { %4668 = vmatpush1.bf16.msra.mxu1 %v4005_v37  ;;  %4699 = vmatprep.mubr.bf16.mxu1 %v8356_v33  ;;  %v3991_v37 = vunpack.c.l.s8.bf16 %v3615_v40 }
 0x517   : > { %4805 = vmatpush1.bf16.msra.mxu0 %v3935_v45  ;;  %4669 = vmatprep.subr.bf16.mxu1 %v4014_v23  ;;  %v4070_v45 = vunpack.c.l.s8.bf16 %v3654_v56  ;;  %v3653_v23 = vld [vmem:[#allocation2 + $0x520] sm:$0xff] }
 0x518   : > { %4806 = vmatprep.subr.bf16.mxu0 %v3944_v54  ;;  %v4000_v54 = vunpack.c.h.s8.bf16 %v3616_v27  ;;  %v4069_v38 = vunpack.c.l.s8.bf16 %v3653_v23  ;;  %v4077_v36 = vunpack.c.h.s8.bf16 %v3653_v23 }
 0x51a   : > { %4670 = vmatpush1.bf16.msra.mxu1 %v4013_v61  ;;  %v3999_v61 = vunpack.c.h.s8.bf16 %v3615_v40 }
 0x51b   : > { %4807 = vmatpush1.bf16.msra.mxu0 %v3943_v6  ;;  %4671 = vmatprep.subr.bf16.mxu1 %v4022_v62  ;;  %v4078_v6 = vunpack.c.h.s8.bf16 %v3654_v56  ;;  %v4008_v62 = vunpack.c.l.s8.bf16 %v3624_v46 }
 0x51c   : > { %4808 = vmatprep.subr.bf16.mxu0 %v3952_v26  ;;  %v3662_v26 = vld [vmem:[#allocation2 + $0x568] sm:$0xff] }
 0x51e   : > { %4672 = vmatpush1.bf16.msra.mxu1 %v4021_v2  ;;  %v4007_v2 = vunpack.c.l.s8.bf16 %v3623_v9 }
 0x51f   : > { %4809 = vmatpush1.bf16.msra.mxu0 %v3951_v7  ;;  %4673 = vmatprep.subr.bf16.mxu1 %v4030_v59  ;;  %v3661_v7 = vld [vmem:[#allocation2 + $0x560] sm:$0xff]  ;;  %v4086_v59 = vunpack.c.l.s8.bf16 %v3662_v26 }
 0x520   : > { %4810 = vmatprep.subr.bf16.mxu0 %v3960_v16  ;;  %v4016_v16 = vunpack.c.h.s8.bf16 %v3624_v46  ;;  %v4085_v11 = vunpack.c.l.s8.bf16 %v3661_v7  ;;  %v4093_v42 = vunpack.c.h.s8.bf16 %v3661_v7  ;;  %v3694_v7 = vld [vmem:[#allocation2 + $0x668] sm:$0xff] }
 0x522   : > { %4674 = vmatpush1.bf16.msra.mxu1 %v4029_v35  ;;  %v4015_v35 = vunpack.c.h.s8.bf16 %v3623_v9 }
 0x523   : > { %4811 = vmatpush1.bf16.msra.mxu0 %v3959_v0  ;;  %4675 = vmatprep.subr.bf16.mxu1 %v4038_v30  ;;  %v4094_v0 = vunpack.c.h.s8.bf16 %v3662_v26  ;;  %v4024_v30 = vunpack.c.l.s8.bf16 %v3632_v17 }
 0x524   : > { %4812 = vmatprep.subr.bf16.mxu0 %v3968_v20  ;;  %v3670_v20 = vld [vmem:[#allocation2 + $0x5a8] sm:$0xff] }
 0x525   : > { %v4110_v44 = vunpack.c.h.s8.bf16 %v3670_v20 }
 0x526   : > { %4676 = vmatpush1.bf16.msra.mxu1 %v4037_v19  ;;  %v4023_v19 = vunpack.c.l.s8.bf16 %v3631_v21 }
 0x527   : > { %4813 = vmatpush1.bf16.msra.mxu0 %v3967_v1  ;;  %4677 = vmatprep.subr.bf16.mxu1 %v4046_v32  ;;  %v4102_v1 = vunpack.c.l.s8.bf16 %v3670_v20  ;;  %v3669_v32 = vld [vmem:[#allocation2 + $0x5a0] sm:$0xff]  ;;  %v4158_v20 = vunpack.c.h.s8.bf16 %v3694_v7 }
 0x528   : > { %4814 = vmatprep.subr.bf16.mxu0 %v3976_v22  ;;  %v3640_v22 = vld [vmem:[#allocation2 + $0x4b8] sm:$0xff]  ;;  %v4101_v55 = vunpack.c.l.s8.bf16 %v3669_v32  ;;  %v4109_v43 = vunpack.c.h.s8.bf16 %v3669_v32 }
 0x52a   : > { %4678 = vmatpush1.bf16.msra.mxu1 %v4045_v18  ;;  %v4040_v18 = vunpack.c.l.s8.bf16 %v3640_v22 }
 0x52b   : > { %4815 = vmatpush1.bf16.msra.mxu0 %v3975_v3  ;;  %4679 = vmatprep.subr.bf16.mxu1 %v4054_v53  ;;  %v3639_v3 = vld [vmem:[#allocation2 + $0x4b0] sm:$0xff]  ;;  %v3678_v53 = vld [vmem:[#allocation2 + $0x5e8] sm:$0xff] }
 0x52c   : > { %4816 = vmatprep.subr.bf16.mxu0 %v3984_v25  ;;  %v4039_v25 = vunpack.c.l.s8.bf16 %v3639_v3  ;;  %v4118_v27 = vunpack.c.l.s8.bf16 %v3678_v53  ;;  %v4047_v40 = vunpack.c.h.s8.bf16 %v3639_v3  ;;  %v4126_v56 = vunpack.c.h.s8.bf16 %v3678_v53  ;;  %v8451_v53 = vld [vmem:[%s8806_s12] sm:$0xff] }
 0x52e   : > { %4680 = vmatpush1.bf16.msra.mxu1 %v4053_v63  ;;  %v3677_v63 = vld [vmem:[#allocation2 + $0x5e0] sm:$0xff] }
 0x52f   : > { %4817 = vmatpush1.bf16.msra.mxu0 %v3983_v60  ;;  %4681 = vmatprep.subr.bf16.mxu1 %v4062_v12  ;;  %v4048_v60 = vunpack.c.h.s8.bf16 %v3640_v22  ;;  %v3648_v12 = vld [vmem:[#allocation2 + $0x4f8] sm:$0xff]  ;;  %v4125_v23 = vunpack.c.h.s8.bf16 %v3677_v63 }
 0x530   : > { %4818 = vmatprep.subr.bf16.mxu0 %v3992_v57  ;;  %v4117_v57 = vunpack.c.l.s8.bf16 %v3677_v63  ;;  %v3710_v63 = vld [vmem:[#allocation2 + $0x6e8] sm:$0xff] }
 0x532   : > { %4682 = vmatpush1.bf16.msra.mxu1 %v4061_v39  ;;  %v4056_v39 = vunpack.c.l.s8.bf16 %v3648_v12 }
 0x533   : > { %4819 = vmatpush1.bf16.msra.mxu0 %v3991_v37  ;;  %4683 = vmatprep.subr.bf16.mxu1 %v4070_v45  ;;  %v3647_v37 = vld [vmem:[#allocation2 + $0x4f0] sm:$0xff]  ;;  %v3686_v45 = vld [vmem:[#allocation2 + $0x628] sm:$0xff] }
 0x534   : > { %4820 = vmatprep.subr.bf16.mxu0 %v4000_v54  ;;  %v4055_v54 = vunpack.c.l.s8.bf16 %v3647_v37  ;;  %v4134_v46 = vunpack.c.l.s8.bf16 %v3686_v45  ;;  %v4063_v9 = vunpack.c.h.s8.bf16 %v3647_v37  ;;  %v4142_v26 = vunpack.c.h.s8.bf16 %v3686_v45 }
 0x536   : > { %4684 = vmatpush1.bf16.msra.mxu1 %v4069_v38  ;;  %v3685_v38 = vld [vmem:[#allocation2 + $0x620] sm:$0xff] }
 0x537   : > { %4821 = vmatpush1.bf16.msra.mxu0 %v3999_v61  ;;  %4685 = vmatprep.subr.bf16.mxu1 %v4078_v6  ;;  %v4064_v61 = vunpack.c.h.s8.bf16 %v3648_v12  ;;  %v3656_v6 = vld [vmem:[#allocation2 + $0x538] sm:$0xff]  ;;  %v4922_v12 = vrot.slane %v8451_v53, %v7701_v41 }
 0x538   : > { %4831 = vmatprep.subr.bf16.mxu0 %v4008_v62  ;;  %v4133_v62 = vunpack.c.l.s8.bf16 %v3685_v38 }
 0x53a   : > { %4686 = vmatpush1.bf16.msra.mxu1 %v4077_v36  ;;  %4823 = vmatmul.mubr.bf16.vlgmr.msra.gmra.mrb[20].mxu0 %v8347_v29  ;;  %v4032_v29 = vunpack.c.h.s8.bf16 %v3632_v17  ;;  %v4072_v36 = vunpack.c.l.s8.bf16 %v3656_v6  ;;  %v4150_v17 = vunpack.c.l.s8.bf16 %v3694_v7  ;;  %v3679_v7 = vld [vmem:[#allocation2 + $0x5f0] sm:$0xff] }
 0x53b   : > { %4832 = vmatpush1.bf16.msra.mxu0 %v4007_v2  ;;  %4863 = vmatprep.mubr.bf16.mxu0 %v8356_v33  ;;  %v4031_v33 = vunpack.c.h.s8.bf16 %v3631_v21  ;;  %v3655_v2 = vld [vmem:[#allocation2 + $0x530] sm:$0xff] }
 0x53c   : > { %4687 = vmatprep.subr.bf16.mxu1 %v4086_v59  ;;  %4833 = vmatprep.subr.bf16.mxu0 %v4016_v16  ;;  %v4141_v59 = vunpack.c.h.s8.bf16 %v3685_v38  ;;  %v4071_v16 = vunpack.c.l.s8.bf16 %v3655_v2  ;;  %v4079_v21 = vunpack.c.h.s8.bf16 %v3655_v2 }
 0x53e   : > { %4688 = vmatpush1.bf16.msra.mxu1 %v4085_v11  ;;  %v3693_v11 = vld [vmem:[#allocation2 + $0x660] sm:$0xff] }
 0x53f   : > { %4834 = vmatpush1.bf16.msra.mxu0 %v4015_v35  ;;  %4689 = vmatprep.subr.bf16.mxu1 %v4094_v0  ;;  %v4080_v35 = vunpack.c.h.s8.bf16 %v3656_v6  ;;  %v3664_v0 = vld [vmem:[#allocation2 + $0x578] sm:$0xff]  ;;  %v4157_v32 = vunpack.c.h.s8.bf16 %v3693_v11 }
 0x540   : > { %4835 = vmatprep.subr.bf16.mxu0 %v4024_v30  ;;  %v4149_v30 = vunpack.c.l.s8.bf16 %v3693_v11  ;;  %v4119_v11 = vunpack.c.l.s8.bf16 %v3679_v7 }
 0x542   : > { %4690 = vmatpush1.bf16.msra.mxu1 %v4093_v42  ;;  %v4088_v42 = vunpack.c.l.s8.bf16 %v3664_v0 }
 0x543   : > { %4836 = vmatpush1.bf16.msra.mxu0 %v4023_v19  ;;  %4691 = vmatprep.subr.bf16.mxu1 %v4102_v1  ;;  %v3663_v19 = vld [vmem:[#allocation2 + $0x570] sm:$0xff]  ;;  %v3702_v1 = vld [vmem:[#allocation2 + $0x6a8] sm:$0xff] }
 0x544   : > { %4837 = vmatprep.subr.bf16.mxu0 %v4032_v29  ;;  %v4087_v29 = vunpack.c.l.s8.bf16 %v3663_v19  ;;  %v4166_v22 = vunpack.c.l.s8.bf16 %v3702_v1  ;;  %v4095_v3 = vunpack.c.h.s8.bf16 %v3663_v19 }
 0x546   : > { %4692 = vmatpush1.bf16.msra.mxu1 %v4101_v55  ;;  %v3701_v55 = vld [vmem:[#allocation2 + $0x6a0] sm:$0xff] }
 0x547   : > { %4838 = vmatpush1.bf16.msra.mxu0 %v4031_v33  ;;  %4693 = vmatprep.subr.bf16.mxu1 %v4110_v44  ;;  %v4096_v33 = vunpack.c.h.s8.bf16 %v3664_v0  ;;  %v3672_v44 = vld [vmem:[#allocation2 + $0x5b8] sm:$0xff]  ;;  %v3717_v0 = vld [vmem:[#allocation2 + $0x720] sm:$0xff] }
 0x548   : > { %4839 = vmatprep.subr.bf16.mxu0 %v4040_v18  ;;  %v4165_v18 = vunpack.c.l.s8.bf16 %v3701_v55 }
 0x54a   : > { %4694 = vmatpush1.bf16.msra.mxu1 %v4109_v43  ;;  %v4174_v43 = vunpack.c.h.s8.bf16 %v3702_v1 }
 0x54b   : > { %4840 = vmatpush1.bf16.msra.mxu0 %v4039_v25  ;;  %4695 = vmatprep.subr.bf16.mxu1 %v4118_v27  ;;  %v4104_v25 = vunpack.c.l.s8.bf16 %v3672_v44  ;;  %v3671_v27 = vld [vmem:[#allocation2 + $0x5b0] sm:$0xff] }
 0x54c   : > { %4841 = vmatprep.subr.bf16.mxu0 %v4048_v60  ;;  %v8456_v60 = vld [vmem:[%s8807_s13] sm:$0xff] }
 0x54d   : > { %v4972_v45 = vrot.slane %v8456_v60, %v7701_v41 }
 0x54e   : > { %4696 = vmatpush1.bf16.msra.mxu1 %v4117_v57  ;;  %v4173_v57 = vunpack.c.h.s8.bf16 %v3701_v55 }
 0x54f   : > { %4842 = vmatpush1.bf16.msra.mxu0 %v4047_v40  ;;  %4697 = vmatprep.subr.bf16.mxu1 %v4126_v56  ;;  %v4103_v40 = vunpack.c.l.s8.bf16 %v3671_v27  ;;  %v4182_v56 = vunpack.c.l.s8.bf16 %v3710_v63 }
 0x550   : > { %4843 = vmatprep.subr.bf16.mxu0 %v4056_v39  ;;  %v3709_v39 = vld [vmem:[#allocation2 + $0x6e0] sm:$0xff] }
 0x551   : > { %v4181_v6 = vunpack.c.l.s8.bf16 %v3709_v39 }
 0x552   : > { %4698 = vmatpush1.bf16.msra.mxu1 %v4125_v23  ;;  %v4112_v23 = vunpack.c.h.s8.bf16 %v3672_v44 }
 0x553   : > { %4844 = vmatpush1.bf16.msra.mxu0 %v4055_v54  ;;  %4708 = vmatprep.subr.bf16.mxu1 %v4134_v46  ;;  %v3680_v46 = vld [vmem:[#allocation2 + $0x5f8] sm:$0xff] }
 0x554   : > { %4845 = vmatprep.subr.bf16.mxu0 %v4064_v61  ;;  %v4120_v2 = vunpack.c.l.s8.bf16 %v3680_v46 }
 0x555   : > { %4700 = vmatmul.mubr.bf16.vlgmr.msra.gmra.mrb[12].mxu1 %v8392_v52 }
 0x556   : > { %4709 = vmatpush1.bf16.msra.mxu1 %v4133_v62  ;;  %4740 = vmatprep.mubr.bf16.mxu1 %v8425_v13 }
 0x557   : > { %4846 = vmatpush1.bf16.msra.mxu0 %v4063_v9  ;;  %4710 = vmatprep.subr.bf16.mxu1 %v4142_v26  ;;  %v4111_v9 = vunpack.c.h.s8.bf16 %v3671_v27  ;;  %v4190_v26 = vunpack.c.h.s8.bf16 %v3710_v63 }
 0x558   : > { %4847 = vmatprep.subr.bf16.mxu0 %v4072_v36 }
 0x55a   : > { %4711 = vmatpush1.bf16.msra.mxu1 %v4141_v59  ;;  %v3718_v59 = vld [vmem:[#allocation2 + $0x728] sm:$0xff] }
 0x55b   : > { %4848 = vmatpush1.bf16.msra.mxu0 %v4071_v16  ;;  %4712 = vmatprep.subr.bf16.mxu1 %v4150_v17  ;;  %v4189_v17 = vunpack.c.h.s8.bf16 %v3709_v39  ;;  %v4206_v19 = vunpack.c.h.s8.bf16 %v3718_v59 }
 0x55c   : > { %4849 = vmatprep.subr.bf16.mxu0 %v4080_v35  ;;  %v4198_v35 = vunpack.c.l.s8.bf16 %v3718_v59 }
 0x55e   : > { %4713 = vmatpush1.bf16.msra.mxu1 %v4149_v30  ;;  %v4128_v30 = vunpack.c.h.s8.bf16 %v3680_v46  ;;  %v3704_v46 = vld [vmem:[#allocation2 + $0x6b8] sm:$0xff] }
 0x55f   : > { %4850 = vmatpush1.bf16.msra.mxu0 %v4079_v21  ;;  %4714 = vmatprep.subr.bf16.mxu1 %v4158_v20  ;;  %v3688_v21 = vld [vmem:[#allocation2 + $0x638] sm:$0xff]  ;;  %v4197_v20 = vunpack.c.l.s8.bf16 %v3717_v0  ;;  %v4176_v59 = vunpack.c.h.s8.bf16 %v3704_v46 }
 0x560   : > { %4851 = vmatprep.subr.bf16.mxu0 %v4088_v42  ;;  %v4127_v42 = vunpack.c.h.s8.bf16 %v3679_v7  ;;  %v4136_v1 = vunpack.c.l.s8.bf16 %v3688_v21  ;;  %v3741_v7 = vld [vmem:[#allocation2 + $0x7e0] sm:$0xff] }
 0x562   : > { %4715 = vmatpush1.bf16.msra.mxu1 %v4157_v32  ;;  %v3687_v32 = vld [vmem:[#allocation2 + $0x630] sm:$0xff] }
 0x563   : > { %4852 = vmatpush1.bf16.msra.mxu0 %v4087_v29  ;;  %4716 = vmatprep.subr.bf16.mxu1 %v4166_v22  ;;  %v3726_v29 = vld [vmem:[#allocation2 + $0x768] sm:$0xff]  ;;  %v4205_v22 = vunpack.c.h.s8.bf16 %v3717_v0  ;;  %v4135_v55 = vunpack.c.l.s8.bf16 %v3687_v32 }
 0x564   : > { %4853 = vmatprep.subr.bf16.mxu0 %v4096_v33  ;;  %v3725_v33 = vld [vmem:[#allocation2 + $0x760] sm:$0xff]  ;;  %v4214_v44 = vunpack.c.l.s8.bf16 %v3726_v29  ;;  %v4222_v27 = vunpack.c.h.s8.bf16 %v3726_v29 }
 0x566   : > { %4717 = vmatpush1.bf16.msra.mxu1 %v4165_v18  ;;  %v4144_v18 = vunpack.c.h.s8.bf16 %v3688_v21  ;;  %v3711_v21 = vld [vmem:[#allocation2 + $0x6f0] sm:$0xff] }
 0x567   : > { %4854 = vmatpush1.bf16.msra.mxu0 %v4095_v3  ;;  %4718 = vmatprep.subr.bf16.mxu1 %v4174_v43  ;;  %v3696_v3 = vld [vmem:[#allocation2 + $0x678] sm:$0xff]  ;;  %v4213_v43 = vunpack.c.l.s8.bf16 %v3725_v33 }
 0x568   : > { %v8460_v37 = vpop.f32.mrb[8].mxu1  ;;  %4855 = vmatprep.subr.bf16.mxu0 %v4104_v25  ;;  %v4143_v25 = vunpack.c.h.s8.bf16 %v3687_v32  ;;  %v4253_v32 = vunpack.c.h.s8.bf16 %v3741_v7 }
 0x569   : > { %v4416_v54 = vpop.f32.mrb[9].mxu1 }
 0x56a   : > { %v4956_v38 = vmul.f32 %v4922_v12, %v4416_v54  ;;  %4719 = vmatpush1.bf16.msra.mxu1 %v4173_v57  ;;  %v4418_v61 = vpop.f32.mrb[10].mxu1  ;;  %v4152_v12 = vunpack.c.l.s8.bf16 %v3696_v3  ;;  %v3695_v57 = vld [vmem:[#allocation2 + $0x670] sm:$0xff]  ;;  %v4160_v54 = vunpack.c.h.s8.bf16 %v3696_v3  ;;  %v3720_v3 = vld [vmem:[#allocation2 + $0x738] sm:$0xff] }
 0x56b   : > { %4856 = vmatpush1.bf16.msra.mxu0 %v4103_v40  ;;  %v4419_v62 = vpop.f32.mrb[11].mxu1  ;;  %4720 = vmatprep.subr.bf16.mxu1 %v4182_v56  ;;  %v3734_v40 = vld [vmem:[#allocation2 + $0x7a8] sm:$0xff]  ;;  %v4221_v56 = vunpack.c.h.s8.bf16 %v3725_v33  ;;  %v5077_v33 = vld [vmem:[%s8808_s14] sm:$0xff] }
 0x56c   : > { %v5006_v36 = vadd.f32 %v4972_v45, %v4956_v38  ;;  %4857 = vmatprep.subr.bf16.mxu0 %v4112_v23  ;;  %v4151_v45 = vunpack.c.l.s8.bf16 %v3695_v57  ;;  %v4230_v23 = vunpack.c.l.s8.bf16 %v3734_v40  ;;  %v4159_v38 = vunpack.c.h.s8.bf16 %v3695_v57  ;;  %v3703_v62 = vld [vmem:[#allocation2 + $0x6b0] sm:$0xff] }
 0x56d   : > { %v4238_v61 = vunpack.c.h.s8.bf16 %v3734_v40  ;;  %v3719_v57 = vld [vmem:[#allocation2 + $0x730] sm:$0xff]  ;;  %v5080_v40 = vld [vmem:[%s8808_s14 + $0x18] sm:$0xff] }
 0x56e   : > { %v5632_v16 = vmul.f32 -1.442695, %v5006_v36  ;;  %4721 = vmatpush1.bf16.msra.mxu1 %v4181_v6  ;;  %v4168_v6 = vunpack.c.l.s8.bf16 %v3704_v46  ;;  %v4167_v36 = vunpack.c.l.s8.bf16 %v3703_v62  ;;  %v4207_v46 = vunpack.c.h.s8.bf16 %v3719_v57 }
 0x56f   : > { %4858 = vmatpush1.bf16.msra.mxu0 %v4111_v9  ;;  %4722 = vmatprep.subr.bf16.mxu1 %v4190_v26  ;;  %v3742_v9 = vld [vmem:[#allocation2 + $0x7e8] sm:$0xff] }
 0x570   : > { %4859 = vmatprep.subr.bf16.mxu0 %v4120_v2  ;;  %5832 = vpow2.f32 %v5632_v16  ;;  %v4246_v2 = vunpack.c.l.s8.bf16 %v3742_v9  ;;  %v3712_v16 = vld [vmem:[#allocation2 + $0x6f8] sm:$0xff] }
 0x572   : > { %4723 = vmatpush1.bf16.msra.mxu1 %v4189_v17  ;;  %v4245_v17 = vunpack.c.l.s8.bf16 %v3741_v7  ;;  %v4918_v7 = vrot.slane %v8451_v53, %v7692_v10 }
 0x573   : > { %4860 = vmatpush1.bf16.msra.mxu0 %v4119_v11  ;;  %4724 = vmatprep.subr.bf16.mxu1 %v4198_v35  ;;  %v4175_v11 = vunpack.c.h.s8.bf16 %v3703_v62  ;;  %v4254_v35 = vunpack.c.h.s8.bf16 %v3742_v9 }
 0x574   : > { %4861 = vmatprep.subr.bf16.mxu0 %v4128_v30  ;;  %v4184_v30 = vunpack.c.l.s8.bf16 %v3712_v16 }
 0x576   : > { %4725 = vmatpush1.bf16.msra.mxu1 %v4197_v20  ;;  %v5078_v20 = vld [vmem:[%s8808_s14 + $0x8] sm:$0xff] }
 0x577   : > { %4862 = vmatpush1.bf16.msra.mxu0 %v4127_v42  ;;  %4726 = vmatprep.subr.bf16.mxu1 %v4206_v19 }
 0x578   : > { %4872 = vmatprep.subr.bf16.mxu0 %v4136_v1 }
 0x57a   : > { %4727 = vmatpush1.bf16.msra.mxu1 %v4205_v22  ;;  %4864 = vmatmul.mubr.bf16.vlgmr.msra.gmra.mrb[20].mxu0 %v8392_v52  ;;  %v5833_v63 = vpop.eup %5832  ;;  %v3733_v52 = vld [vmem:[#allocation2 + $0x7a0] sm:$0xff]  ;;  %v4183_v22 = vunpack.c.l.s8.bf16 %v3711_v21 }
 0x57b   : > { %4873 = vmatpush1.bf16.msra.mxu0 %v4135_v55  ;;  %4904 = vmatprep.mubr.bf16.mxu0 %v8425_v13  ;;  %v5038_v39 = vadd.f32 1.0, %v5833_v63  ;;  %v4229_v13 = vunpack.c.l.s8.bf16 %v3733_v52  ;;  %v4237_v26 = vunpack.c.h.s8.bf16 %v3733_v52  ;;  %v5142_v55 = vunpack.c.l.s8.bf16 %v5078_v20  ;;  %v3728_v52 = vld [vmem:[#allocation2 + $0x778] sm:$0xff] }
 0x57c   : > { %4728 = vmatprep.subr.bf16.mxu1 %v4214_v44  ;;  %4874 = vmatprep.subr.bf16.mxu0 %v4144_v18  ;;  %v4192_v44 = vunpack.c.h.s8.bf16 %v3712_v16  ;;  %v4930_v16 = vrot.slane %v8451_v53, %v8301_v49 }
 0x57d   : > { %5834 = vrcp.f32 %v5038_v39  ;;  %v5146_v39 = vunpack.c.l.s8.bf16 %v5080_v40 }
 0x57e   : > { %4729 = vmatpush1.bf16.msra.mxu1 %v4213_v43  ;;  %v5141_v43 = vunpack.c.l.s8.bf16 %v5077_v33 }
 0x57f   : > { %4875 = vmatpush1.bf16.msra.mxu0 %v4143_v25  ;;  %4730 = vmatprep.subr.bf16.mxu1 %v4222_v27  ;;  %v4191_v25 = vunpack.c.h.s8.bf16 %v3711_v21  ;;  %v5144_v27 = vunpack.c.h.s8.bf16 %v5078_v20  ;;  %v3735_v21 = vld [vmem:[#allocation2 + $0x7b0] sm:$0xff]  ;;  %v5084_v20 = vld [vmem:[%s8808_s14 + $0x38] sm:$0xff] }
 0x580   : > { %4876 = vmatprep.subr.bf16.mxu0 %v4152_v12  ;;  %v4200_v12 = vunpack.c.l.s8.bf16 %v3720_v3 }
 0x582   : > { %4731 = vmatpush1.bf16.msra.mxu1 %v4221_v56  ;;  %v4199_v56 = vunpack.c.l.s8.bf16 %v3719_v57 }
 0x583   : > { %4877 = vmatpush1.bf16.msra.mxu0 %v4151_v45  ;;  %4732 = vmatprep.subr.bf16.mxu1 %v4230_v23  ;;  %v5079_v45 = vld [vmem:[%s8808_s14 + $0x10] sm:$0xff]  ;;  %v4208_v23 = vunpack.c.h.s8.bf16 %v3720_v3  ;;  %v3744_v3 = vld [vmem:[#allocation2 + $0x7f8] sm:$0xff] }
 0x584   : > { %4878 = vmatprep.subr.bf16.mxu0 %v4160_v54  ;;  %v5145_v54 = vunpack.c.l.s8.bf16 %v5079_v45  ;;  %v5147_v62 = vunpack.c.h.s8.bf16 %v5079_v45  ;;  %v5085_v45 = vld [vmem:[%s8808_s14 + $0x40] sm:$0xff] }
 0x586   : > { %4733 = vmatpush1.bf16.msra.mxu1 %v4229_v13  ;;  %v5148_v13 = vunpack.c.h.s8.bf16 %v5080_v40 }
 0x587   : > { %4879 = vmatpush1.bf16.msra.mxu0 %v4159_v38  ;;  %4734 = vmatprep.subr.bf16.mxu1 %v4238_v61  ;;  %v5835_v42 = vpop.eup %5834  ;;  %v4216_v38 = vunpack.c.l.s8.bf16 %v3728_v52  ;;  %v3727_v61 = vld [vmem:[#allocation2 + $0x770] sm:$0xff] }
 0x588   : > { %4880 = vmatprep.subr.bf16.mxu0 %v4168_v6  ;;  %v5062_v18 = vmul.f32 %v5835_v42, %v8019_v47  ;;  %v5143_v47 = vunpack.c.h.s8.bf16 %v5077_v33  ;;  %v5082_v6 = vld [vmem:[%s8808_s14 + $0x28] sm:$0xff]  ;;  %v4215_v9 = vunpack.c.l.s8.bf16 %v3727_v61  ;;  %v4955_v42 = vmul.f32 %v4918_v7, %v8460_v37 }
 0x589   : > { %v5154_v33 = vunpack.c.l.s8.bf16 %v5084_v20 }
 0x58a   : > { %4735 = vmatpush1.bf16.msra.mxu1 %v4237_v26  ;;  %v5070_v63 = vpack.c.bf16 %v5062_v18, %v5062_v18  ;;  %v5150_v26 = vunpack.c.l.s8.bf16 %v5082_v6 }
 0x58b   : > { %4881 = vmatpush1.bf16.msra.mxu0 %v4167_v36  ;;  %4736 = vmatprep.subr.bf16.mxu1 %v4246_v2  ;;  %v5081_v36 = vld [vmem:[%s8808_s14 + $0x20] sm:$0xff]  ;;  %v4224_v2 = vunpack.c.h.s8.bf16 %v3728_v52  ;;  %v5157_v52 = vunpack.c.l.s8.bf16 %v5085_v45 }
 0x58c   : > { %v8466_v0 = vpop.f32.mrb[16].mxu0  ;;  %4882 = vmatprep.subr.bf16.mxu0 %v4176_v59  ;;  %v3736_v59 = vld [vmem:[#allocation2 + $0x7b8] sm:$0xff] }
 0x58d   : > { %v8471_v19 = vpop.f32.mrb[17].mxu0  ;;  %v4240_v37 = vunpack.c.h.s8.bf16 %v3736_v59 }
 0x58e   : > { %4737 = vmatpush1.bf16.msra.mxu1 %v4245_v17  ;;  %v4582_v1 = vpop.f32.mrb[18].mxu0  ;;  %v5149_v17 = vunpack.c.l.s8.bf16 %v5081_v36 }
 0x58f   : > { %4883 = vmatpush1.bf16.msra.mxu0 %v4175_v11  ;;  %v4583_v29 = vpop.f32.mrb[19].mxu0  ;;  %4738 = vmatprep.subr.bf16.mxu1 %v4254_v35  ;;  %v4223_v11 = vunpack.c.h.s8.bf16 %v3727_v61  ;;  %v5152_v35 = vunpack.c.h.s8.bf16 %v5082_v6  ;;  %v4968_v1 = vrot.slane %v8456_v60, %v7692_v10  ;;  %v5087_v6 = vld [vmem:[%s8808_s14 + $0x50] sm:$0xff] }
 0x590   : > { %4884 = vmatprep.subr.bf16.mxu0 %v4184_v30  ;;  %v4232_v30 = vunpack.c.l.s8.bf16 %v3736_v59  ;;  %v4980_v29 = vrot.slane %v8456_v60, %v8301_v49  ;;  %v4239_v49 = vunpack.c.h.s8.bf16 %v3735_v21  ;;  %v5163_v59 = vunpack.c.h.s8.bf16 %v5087_v6 }
 0x591   : > { %v5005_v18 = vadd.f32 %v4968_v1, %v4955_v42  ;;  %v5091_v42 = vld [vmem:[%s8808_s14 + $0x70] sm:$0xff] }
 0x592   : > { %4739 = vmatpush1.bf16.msra.mxu1 %v4253_v32  ;;  %v4958_v32 = vmul.f32 %v4930_v16, %v8471_v19  ;;  %v5169_v1 = vunpack.c.l.s8.bf16 %v5091_v42 }
 0x593   : > { %4885 = vmatpush1.bf16.msra.mxu0 %v4183_v22  ;;  %5269 = vmatprep.subr.bf16.mxu1 %v5142_v55  ;;  %v5151_v22 = vunpack.c.h.s8.bf16 %v5081_v36  ;;  %v4231_v55 = vunpack.c.l.s8.bf16 %v3735_v21  ;;  %v5631_v57 = vmul.f32 -1.442695, %v5005_v18  ;;  %v5093_v18 = vld [vmem:[%s8808_s14 + $0x80] sm:$0xff] }
 0x594   : > { %4886 = vmatprep.subr.bf16.mxu0 %v4192_v44  ;;  %v5083_v44 = vld [vmem:[%s8808_s14 + $0x30] sm:$0xff] }
 0x595   : > { %4741 = vmatmul.mubr.bf16.vlgmr.msra.gmra.mrb[12].mxu1 %v8429_v58  ;;  %v5153_v19 = vunpack.c.l.s8.bf16 %v5083_v44  ;;  %5836 = vpow2.f32 %v5631_v57 }
 0x596   : > { %5270 = vmatpush1.bf16.msra.mxu1 %v5141_v43  ;;  %5301 = vmatprep.mubr.bf16.mxu1 %v5070_v63  ;;  %v5008_v43 = vadd.f32 %v4980_v29, %v4958_v32  ;;  %v3743_v63 = vld [vmem:[#allocation2 + $0x7f0] sm:$0xff] }
 0x597   : > { %4887 = vmatpush1.bf16.msra.mxu0 %v4191_v25  ;;  %5271 = vmatprep.subr.bf16.mxu1 %v5144_v27  ;;  %v5156_v25 = vunpack.c.h.s8.bf16 %v5084_v20  ;;  %v4248_v27 = vunpack.c.l.s8.bf16 %v3744_v3 }
 0x598   : > { %4888 = vmatprep.subr.bf16.mxu0 %v4200_v12  ;;  %v5086_v12 = vld [vmem:[%s8808_s14 + $0x48] sm:$0xff]  ;;  %v5634_v40 = vmul.f32 -1.442695, %v5008_v43  ;;  %v5173_v43 = vunpack.c.l.s8.bf16 %v5093_v18 }
 0x59a   : > { %5272 = vmatpush1.bf16.msra.mxu1 %v5143_v47  ;;  %v5155_v47 = vunpack.c.h.s8.bf16 %v5083_v44  ;;  %5838 = vpow2.f32 %v5634_v40  ;;  %v5098_v40 = vld [vmem:[%s8808_s14 + $0xa8] sm:$0xff] }
 0x59b   : > { %4889 = vmatpush1.bf16.msra.mxu0 %v4199_v56  ;;  %5273 = vmatprep.subr.bf16.mxu1 %v5146_v39  ;;  %v4247_v56 = vunpack.c.l.s8.bf16 %v3743_v63  ;;  %v5158_v39 = vunpack.c.l.s8.bf16 %v5086_v12 }
 0x59c   : > { %4890 = vmatprep.subr.bf16.mxu0 %v4208_v23  ;;  %v4256_v23 = vunpack.c.h.s8.bf16 %v3744_v3 }
 0x59e   : > { %5274 = vmatpush1.bf16.msra.mxu1 %v5145_v54  ;;  %v4255_v54 = vunpack.c.h.s8.bf16 %v3743_v63 }
 0x59f   : > { %4891 = vmatpush1.bf16.msra.mxu0 %v4207_v46  ;;  %5275 = vmatprep.subr.bf16.mxu1 %v5148_v13  ;;  %v5160_v46 = vunpack.c.h.s8.bf16 %v5086_v12  ;;  %v5088_v13 = vld [vmem:[%s8808_s14 + $0x58] sm:$0xff] }
 0x5a0   : > { %4892 = vmatprep.subr.bf16.mxu0 %v4216_v38  ;;  %v5159_v38 = vunpack.c.h.s8.bf16 %v5085_v45  ;;  %v5162_v61 = vunpack.c.l.s8.bf16 %v5088_v13  ;;  %v4926_v45 = vrot.slane %v8451_v53, %v8298_v51 }
 0x5a2   : > { %5276 = vmatpush1.bf16.msra.mxu1 %v5147_v62  ;;  %v5161_v62 = vunpack.c.l.s8.bf16 %v5087_v6  ;;  %v5099_v6 = vld [vmem:[%s8808_s14 + $0xb0] sm:$0xff] }
 0x5a3   : > { %4893 = vmatpush1.bf16.msra.mxu0 %v4215_v9  ;;  %5277 = vmatprep.subr.bf16.mxu1 %v5150_v26  ;;  %v5837_v9 = vpop.eup %5836  ;;  %v5164_v26 = vunpack.c.h.s8.bf16 %v5088_v13  ;;  %v4976_v13 = vrot.slane %v8456_v60, %v8298_v51  ;;  %v5187_v51 = vunpack.c.h.s8.bf16 %v5099_v6 }
 0x5a4   : > { %4894 = vmatprep.subr.bf16.mxu0 %v4224_v2  ;;  %v5839_v36 = vpop.eup %5838  ;;  %v5090_v2 = vld [vmem:[%s8808_s14 + $0x68] sm:$0xff]  ;;  %v5037_v7 = vadd.f32 1.0, %v5837_v9  ;;  %v5185_v9 = vunpack.c.l.s8.bf16 %v5099_v6  ;;  %v5116_v6 = vld [vmem:[%s8808_s14 + $0x138] sm:$0xff] }
 0x5a5   : > { %v5040_v16 = vadd.f32 1.0, %v5839_v36 }
 0x5a6   : > { %5278 = vmatpush1.bf16.msra.mxu1 %v5149_v17  ;;  %v5166_v17 = vunpack.c.l.s8.bf16 %v5090_v2  ;;  %5840 = vrcp.f32 %v5037_v7  ;;  %v5101_v7 = vld [vmem:[%s8808_s14 + $0xc0] sm:$0xff] }
 0x5a7   : > { %4895 = vmatpush1.bf16.msra.mxu0 %v4223_v11  ;;  %5279 = vmatprep.subr.bf16.mxu1 %v5152_v35  ;;  %5842 = vrcp.f32 %v5040_v16  ;;  %v5168_v35 = vunpack.c.h.s8.bf16 %v5090_v2 }
 0x5a8   : > { %4896 = vmatprep.subr.bf16.mxu0 %v4232_v30  ;;  %v5092_v30 = vld [vmem:[%s8808_s14 + $0x78] sm:$0xff] }
 0x5a9   : > { %v5170_v20 = vunpack.c.l.s8.bf16 %v5092_v30  ;;  %v5172_v32 = vunpack.c.h.s8.bf16 %v5092_v30 }
 0x5aa   : > { %5280 = vmatpush1.bf16.msra.mxu1 %v5151_v22  ;;  %v5094_v22 = vld [vmem:[%s8808_s14 + $0x88] sm:$0xff] }
 0x5ab   : > { %4897 = vmatpush1.bf16.msra.mxu0 %v4231_v55  ;;  %5281 = vmatprep.subr.bf16.mxu1 %v5154_v33  ;;  %v5171_v33 = vunpack.c.h.s8.bf16 %v5091_v42  ;;  %v5106_v42 = vld [vmem:[%s8808_s14 + $0xe8] sm:$0xff] }
 0x5ac   : > { %4898 = vmatprep.subr.bf16.mxu0 %v4240_v37  ;;  %v5174_v37 = vunpack.c.l.s8.bf16 %v5094_v22 }
 0x5ae   : > { %5282 = vmatpush1.bf16.msra.mxu1 %v5153_v19 }
 0x5af   : > { %4899 = vmatpush1.bf16.msra.mxu0 %v4239_v49  ;;  %5283 = vmatprep.subr.bf16.mxu1 %v5156_v25  ;;  %v5176_v49 = vunpack.c.h.s8.bf16 %v5094_v22  ;;  %v5105_v22 = vld [vmem:[%s8808_s14 + $0xe0] sm:$0xff] }
 0x5b0   : > { %4900 = vmatprep.subr.bf16.mxu0 %v4248_v27  ;;  %v5841_v29 = vpop.eup %5840  ;;  %v5096_v27 = vld [vmem:[%s8808_s14 + $0x98] sm:$0xff] }
 0x5b1   : > { %v5843_v55 = vpop.eup %5842  ;;  %v5061_v44 = vmul.f32 %v5841_v29, %v8095_v48  ;;  %v5175_v48 = vunpack.c.h.s8.bf16 %v5093_v18  ;;  %v5178_v63 = vunpack.c.l.s8.bf16 %v5096_v27  ;;  %v5180_v57 = vunpack.c.h.s8.bf16 %v5096_v27 }
 0x5b2   : > { %5284 = vmatpush1.bf16.msra.mxu1 %v5155_v47  ;;  %v5064_v3 = vmul.f32 %v5843_v55, %v8334_v31  ;;  %v5095_v31 = vld [vmem:[%s8808_s14 + $0x90] sm:$0xff]  ;;  %v5198_v29 = vunpack.c.l.s8.bf16 %v5106_v42  ;;  %v5197_v55 = vunpack.c.l.s8.bf16 %v5105_v22 }
 0x5b3   : > { %4901 = vmatpush1.bf16.msra.mxu0 %v4247_v56  ;;  %5285 = vmatprep.subr.bf16.mxu1 %v5158_v39  ;;  %v5069_v19 = vpack.c.bf16 %v5061_v44, %v5061_v44  ;;  %v5177_v12 = vunpack.c.l.s8.bf16 %v5095_v31  ;;  %v5179_v47 = vunpack.c.h.s8.bf16 %v5095_v31  ;;  %v5182_v56 = vunpack.c.l.s8.bf16 %v5098_v40  ;;  %v5097_v39 = vld [vmem:[%s8808_s14 + $0xa0] sm:$0xff]  ;;  %v5108_v44 = vld [vmem:[%s8808_s14 + $0xf8] sm:$0xff] }
 0x5b4   : > { %4902 = vmatprep.subr.bf16.mxu0 %v4256_v23  ;;  %v5072_v25 = vpack.c.bf16 %v5064_v3, %v5064_v3  ;;  %v5181_v23 = vunpack.c.l.s8.bf16 %v5097_v39  ;;  %v5202_v18 = vunpack.c.l.s8.bf16 %v5108_v44  ;;  %v5107_v3 = vld [vmem:[%s8808_s14 + $0xf0] sm:$0xff]  ;;  %v5109_v31 = vld [vmem:[%s8808_s14 + $0x100] sm:$0xff] }
 0x5b5   : > { %v5203_v27 = vunpack.c.h.s8.bf16 %v5107_v3 }
 0x5b6   : > { %5286 = vmatpush1.bf16.msra.mxu1 %v5157_v52  ;;  %v5184_v52 = vunpack.c.h.s8.bf16 %v5098_v40 }
 0x5b7   : > { %4903 = vmatpush1.bf16.msra.mxu0 %v4255_v54  ;;  %5287 = vmatprep.subr.bf16.mxu1 %v5160_v46  ;;  %v5100_v54 = vld [vmem:[%s8808_s14 + $0xb8] sm:$0xff]  ;;  %v4957_v46 = vmul.f32 %v4926_v45, %v8466_v0  ;;  %v5102_v0 = vld [vmem:[%s8808_s14 + $0xc8] sm:$0xff] }
 0x5b8   : > { %v5190_v2 = vunpack.c.l.s8.bf16 %v5102_v0  ;;  %v5192_v16 = vunpack.c.h.s8.bf16 %v5102_v0 }
 0x5ba   : > { %4905 = vmatmul.mubr.bf16.vlgmr.msra.gmra.mrb[20].mxu0 %v8429_v58  ;;  %5288 = vmatpush1.bf16.msra.mxu1 %v5159_v38  ;;  %v5089_v58 = vld [vmem:[%s8808_s14 + $0x60] sm:$0xff]  ;;  %v5183_v38 = vunpack.c.h.s8.bf16 %v5097_v39 }
 0x5bb   : > { %5289 = vmatprep.subr.bf16.mxu1 %v5162_v61  ;;  %v5165_v11 = vunpack.c.l.s8.bf16 %v5089_v58  ;;  %v5167_v21 = vunpack.c.h.s8.bf16 %v5089_v58  ;;  %v5186_v61 = vunpack.c.l.s8.bf16 %v5100_v54  ;;  %v5191_v58 = vunpack.c.h.s8.bf16 %v5101_v7 }
 0x5be   : > { %5290 = vmatpush1.bf16.msra.mxu1 %v5161_v62  ;;  %v5007_v62 = vadd.f32 %v4976_v13, %v4957_v46  ;;  %v5113_v13 = vld [vmem:[%s8808_s14 + $0x120] sm:$0xff] }
 0x5bf   : > { %5291 = vmatprep.subr.bf16.mxu1 %v5164_v26  ;;  %v5188_v26 = vunpack.c.h.s8.bf16 %v5100_v54 }
 0x5c0   : > { %v5633_v36 = vmul.f32 -1.442695, %v5007_v62  ;;  %v5215_v62 = vunpack.c.h.s8.bf16 %v5113_v13 }
 0x5c2   : > { %5292 = vmatpush1.bf16.msra.mxu1 %v5163_v59  ;;  %5844 = vpow2.f32 %v5633_v36  ;;  %v5189_v59 = vunpack.c.l.s8.bf16 %v5101_v7  ;;  %v5220_v36 = vunpack.c.h.s8.bf16 %v5116_v6 }
 0x5c3   : > { %5293 = vmatprep.subr.bf16.mxu1 %v5166_v17  ;;  %v5104_v17 = vld [vmem:[%s8808_s14 + $0xd8] sm:$0xff] }
 0x5c6   : > { %5294 = vmatpush1.bf16.msra.mxu1 %v5165_v11  ;;  %v5194_v11 = vunpack.c.l.s8.bf16 %v5104_v17 }
 0x5c7   : > { %5295 = vmatprep.subr.bf16.mxu1 %v5168_v35  ;;  %v5103_v35 = vld [vmem:[%s8808_s14 + $0xd0] sm:$0xff] }
 0x5c8   : > { %v5193_v30 = vunpack.c.l.s8.bf16 %v5103_v35 }
 0x5ca   : > { %5296 = vmatpush1.bf16.msra.mxu1 %v5167_v21 }
 0x5cb   : > { %5297 = vmatprep.subr.bf16.mxu1 %v5170_v20  ;;  %v5196_v20 = vunpack.c.h.s8.bf16 %v5104_v17 }
 0x5cc   : > { %v5845_v21 = vpop.eup %5844 }
 0x5ce   : > { %5298 = vmatpush1.bf16.msra.mxu1 %v5169_v1  ;;  %v5039_v1 = vadd.f32 1.0, %v5845_v21 }
 0x5cf   : > { %5299 = vmatprep.subr.bf16.mxu1 %v5172_v32  ;;  %v5195_v32 = vunpack.c.h.s8.bf16 %v5103_v35 }
 0x5d0   : > { %5846 = vrcp.f32 %v5039_v1 }
 0x5d2   : > { %5300 = vmatpush1.bf16.msra.mxu1 %v5171_v33  ;;  %v5200_v33 = vunpack.c.h.s8.bf16 %v5106_v42  ;;  %v5122_v42 = vld [vmem:[%s8808_s14 + $0x168] sm:$0xff] }
 0x5d3   : > { %5310 = vmatprep.subr.bf16.mxu1 %v5174_v37  ;;  %v5199_v37 = vunpack.c.h.s8.bf16 %v5105_v22 }
 0x5d5   : > { %5302 = vmatmul.mubr.bf16.vlgmr.msra.gmra.mrb[16].mxu1 %v5069_v19  ;;  %v5204_v19 = vunpack.c.h.s8.bf16 %v5108_v44 }
 0x5d6   : > { %5311 = vmatpush1.bf16.msra.mxu1 %v5173_v43  ;;  %5342 = vmatprep.mubr.bf16.mxu1 %v5072_v25  ;;  %v5201_v43 = vunpack.c.l.s8.bf16 %v5107_v3  ;;  %v5110_v25 = vld [vmem:[%s8808_s14 + $0x108] sm:$0xff] }
 0x5d7   : > { %5312 = vmatprep.subr.bf16.mxu1 %v5176_v49  ;;  %v5208_v40 = vunpack.c.h.s8.bf16 %v5110_v25 }
 0x5da   : > { %5313 = vmatpush1.bf16.msra.mxu1 %v5175_v48  ;;  %v5847_v49 = vpop.eup %5846 }
 0x5db   : > { %5314 = vmatprep.subr.bf16.mxu1 %v5178_v63  ;;  %v5063_v48 = vmul.f32 %v5847_v49, %v8332_v50  ;;  %v5206_v63 = vunpack.c.l.s8.bf16 %v5110_v25  ;;  %v5111_v50 = vld [vmem:[%s8808_s14 + $0x110] sm:$0xff] }
 0x5dc   : > { %v5209_v45 = vunpack.c.l.s8.bf16 %v5111_v50  ;;  %v5211_v54 = vunpack.c.h.s8.bf16 %v5111_v50 }
 0x5de   : > { %5315 = vmatpush1.bf16.msra.mxu1 %v5177_v12  ;;  %v5205_v12 = vunpack.c.l.s8.bf16 %v5109_v31 }
 0x5df   : > { %5316 = vmatprep.subr.bf16.mxu1 %v5180_v57  ;;  %v5071_v57 = vpack.c.bf16 %v5063_v48, %v5063_v48  ;;  %v4938_v48 = vrot.slane %v8451_v53, %v8295_v5 }
 0x5e2   : > { %5317 = vmatpush1.bf16.msra.mxu1 %v5179_v47  ;;  %v5112_v47 = vld [vmem:[%s8808_s14 + $0x118] sm:$0xff] }
 0x5e3   : > { %5318 = vmatprep.subr.bf16.mxu1 %v5182_v56  ;;  %v5207_v56 = vunpack.c.h.s8.bf16 %v5109_v31  ;;  %v5210_v39 = vunpack.c.l.s8.bf16 %v5112_v47 }
 0x5e6   : > { %5319 = vmatpush1.bf16.msra.mxu1 %v5181_v23  ;;  %v5212_v23 = vunpack.c.h.s8.bf16 %v5112_v47 }
 0x5e7   : > { %5320 = vmatprep.subr.bf16.mxu1 %v5184_v52  ;;  %v5114_v52 = vld [vmem:[%s8808_s14 + $0x128] sm:$0xff] }
 0x5e8   : > { %v5214_v46 = vunpack.c.l.s8.bf16 %v5114_v52 }
 0x5ea   : > { %5321 = vmatpush1.bf16.msra.mxu1 %v5183_v38  ;;  %v5213_v38 = vunpack.c.l.s8.bf16 %v5113_v13 }
 0x5eb   : > { %5322 = vmatprep.subr.bf16.mxu1 %v5186_v61  ;;  %v5216_v61 = vunpack.c.h.s8.bf16 %v5114_v52 }
 0x5ee   : > { %5323 = vmatpush1.bf16.msra.mxu1 %v5185_v9  ;;  %v5218_v9 = vunpack.c.l.s8.bf16 %v5116_v6  ;;  %v5125_v6 = vld [vmem:[%s8808_s14 + $0x180] sm:$0xff] }
 0x5ef   : > { %5324 = vmatprep.subr.bf16.mxu1 %v5188_v26  ;;  %v5115_v26 = vld [vmem:[%s8808_s14 + $0x130] sm:$0xff] }
 0x5f0   : > { %v5217_v0 = vunpack.c.l.s8.bf16 %v5115_v26 }
 0x5f2   : > { %5325 = vmatpush1.bf16.msra.mxu1 %v5187_v51  ;;  %v5118_v51 = vld [vmem:[%s8808_s14 + $0x148] sm:$0xff] }
 0x5f3   : > { %5326 = vmatprep.subr.bf16.mxu1 %v5190_v2  ;;  %v5219_v2 = vunpack.c.h.s8.bf16 %v5115_v26  ;;  %v5222_v7 = vunpack.c.l.s8.bf16 %v5118_v51  ;;  %v5224_v17 = vunpack.c.h.s8.bf16 %v5118_v51  ;;  %v5237_v26 = vunpack.c.l.s8.bf16 %v5125_v6 }
 0x5f6   : > { %5327 = vmatpush1.bf16.msra.mxu1 %v5189_v59  ;;  %v5117_v59 = vld [vmem:[%s8808_s14 + $0x140] sm:$0xff] }
 0x5f7   : > { %5328 = vmatprep.subr.bf16.mxu1 %v5192_v16  ;;  %v5221_v16 = vunpack.c.l.s8.bf16 %v5117_v59 }
 0x5fa   : > { %5329 = vmatpush1.bf16.msra.mxu1 %v5191_v58  ;;  %v5120_v58 = vld [vmem:[%s8808_s14 + $0x158] sm:$0xff] }
 0x5fb   : > { %5330 = vmatprep.subr.bf16.mxu1 %v5194_v11  ;;  %v5223_v11 = vunpack.c.h.s8.bf16 %v5117_v59  ;;  %v5226_v35 = vunpack.c.l.s8.bf16 %v5120_v58 }
 0x5fe   : > { %5331 = vmatpush1.bf16.msra.mxu1 %v5193_v30  ;;  %v5119_v30 = vld [vmem:[%s8808_s14 + $0x150] sm:$0xff] }
 0x5ff   : > { %5332 = vmatprep.subr.bf16.mxu1 %v5196_v20  ;;  %v5225_v21 = vunpack.c.l.s8.bf16 %v5119_v30  ;;  %v5228_v20 = vunpack.c.h.s8.bf16 %v5120_v58  ;;  %v5227_v1 = vunpack.c.h.s8.bf16 %v5119_v30 }
 0x602   : > { %5333 = vmatpush1.bf16.msra.mxu1 %v5195_v32  ;;  %v5230_v32 = vunpack.c.l.s8.bf16 %v5122_v42 }
 0x603   : > { %5334 = vmatprep.subr.bf16.mxu1 %v5198_v29  ;;  %v5121_v29 = vld [vmem:[%s8808_s14 + $0x160] sm:$0xff] }
 0x604   : > { %v5229_v22 = vunpack.c.l.s8.bf16 %v5121_v29  ;;  %v5231_v44 = vunpack.c.h.s8.bf16 %v5121_v29 }
 0x606   : > { %5335 = vmatpush1.bf16.msra.mxu1 %v5197_v55  ;;  %v5232_v55 = vunpack.c.h.s8.bf16 %v5122_v42 }
 0x607   : > { %5336 = vmatprep.subr.bf16.mxu1 %v5200_v33  ;;  %v5124_v33 = vld [vmem:[%s8808_s14 + $0x178] sm:$0xff] }
 0x60a   : > { %5337 = vmatpush1.bf16.msra.mxu1 %v5199_v37  ;;  %v5234_v37 = vunpack.c.l.s8.bf16 %v5124_v33 }
 0x60b   : > { %5338 = vmatprep.subr.bf16.mxu1 %v5202_v18  ;;  %v5123_v18 = vld [vmem:[%s8808_s14 + $0x170] sm:$0xff] }
 0x60c   : > { %v5233_v3 = vunpack.c.l.s8.bf16 %v5123_v18  ;;  %v5235_v49 = vunpack.c.h.s8.bf16 %v5123_v18 }
 0x60e   : > { %5339 = vmatpush1.bf16.msra.mxu1 %v5201_v43  ;;  %v5236_v43 = vunpack.c.h.s8.bf16 %v5124_v33  ;;  %v5132_v33 = vld [vmem:[%s8808_s14 + $0x1b8] sm:$0xff] }
 0x60f   : > { %5340 = vmatprep.subr.bf16.mxu1 %v5204_v19  ;;  %v5126_v19 = vld [vmem:[%s8808_s14 + $0x188] sm:$0xff] }
 0x610   : > { %v5238_v25 = vunpack.c.l.s8.bf16 %v5126_v19  ;;  %v5240_v51 = vunpack.c.h.s8.bf16 %v5126_v19  ;;  %v5250_v19 = vunpack.c.l.s8.bf16 %v5132_v33 }
 0x612   : > { %5341 = vmatpush1.bf16.msra.mxu1 %v5203_v27  ;;  %v4934_v27 = vrot.slane %v8451_v53, %v8381_v14 }
 0x613   : > { %5351 = vmatprep.subr.bf16.mxu1 %v5206_v63  ;;  %v4984_v63 = vrot.slane %v8456_v60, %v8381_v14 }
 0x615   : > { %5343 = vmatmul.mubr.bf16.vlgmr.msra.gmra.mrb[16].mxu1 %v5071_v57 }
 0x616   : > { %5352 = vmatpush1.bf16.msra.mxu1 %v5205_v12  ;;  %v4988_v12 = vrot.slane %v8456_v60, %v8295_v5 }
 0x617   : > { %5353 = vmatprep.subr.bf16.mxu1 %v5208_v40 }
 0x61a   : > { %5354 = vmatpush1.bf16.msra.mxu1 %v5207_v56 }
 0x61b   : > { %5355 = vmatprep.subr.bf16.mxu1 %v5210_v39 }
 0x61e   : > { %5356 = vmatpush1.bf16.msra.mxu1 %v5209_v45 }
 0x61f   : > { %5357 = vmatprep.subr.bf16.mxu1 %v5212_v23 }
 0x622   : > { %5358 = vmatpush1.bf16.msra.mxu1 %v5211_v54 }
 0x623   : > { %5359 = vmatprep.subr.bf16.mxu1 %v5214_v46 }
 0x626   : > { %5360 = vmatpush1.bf16.msra.mxu1 %v5213_v38 }
 0x627   : > { %5361 = vmatprep.subr.bf16.mxu1 %v5216_v61 }
 0x62a   : > { %5362 = vmatpush1.bf16.msra.mxu1 %v5215_v62 }
 0x62b   : > { %5363 = vmatprep.subr.bf16.mxu1 %v5218_v9 }
 0x62e   : > { %5364 = vmatpush1.bf16.msra.mxu1 %v5217_v0 }
 0x62f   : > { %5365 = vmatprep.subr.bf16.mxu1 %v5220_v36  ;;  %v4946_v36 = vrot.slane %v8451_v53, %v8407_v15  ;;  %v5127_v53 = vld [vmem:[%s8808_s14 + $0x190] sm:$0xff] }
 0x630   : > { %v5241_v30 = vunpack.c.l.s8.bf16 %v5127_v53 }
 0x632   : > { %5366 = vmatpush1.bf16.msra.mxu1 %v5219_v2  ;;  %v5128_v2 = vld [vmem:[%s8808_s14 + $0x198] sm:$0xff] }
 0x633   : > { %5367 = vmatprep.subr.bf16.mxu1 %v5222_v7  ;;  %v5242_v58 = vunpack.c.l.s8.bf16 %v5128_v2 }
 0x636   : > { %5368 = vmatpush1.bf16.msra.mxu1 %v5221_v16 }
 0x637   : > { %5369 = vmatprep.subr.bf16.mxu1 %v5224_v17 }
 0x63a   : > { %5370 = vmatpush1.bf16.msra.mxu1 %v5223_v11 }
 0x63b   : > { %5371 = vmatprep.subr.bf16.mxu1 %v5226_v35 }
 0x63e   : > { %5372 = vmatpush1.bf16.msra.mxu1 %v5225_v21 }
 0x63f   : > { %5373 = vmatprep.subr.bf16.mxu1 %v5228_v20  ;;  %v5244_v20 = vunpack.c.h.s8.bf16 %v5128_v2  ;;  %v5139_v2 = vld [vmem:[%s8808_s14 + $0x1f0] sm:$0xff] }
 0x642   : > { %5374 = vmatpush1.bf16.msra.mxu1 %v5227_v1  ;;  %v5129_v1 = vld [vmem:[%s8808_s14 + $0x1a0] sm:$0xff] }
 0x643   : > { %5375 = vmatprep.subr.bf16.mxu1 %v5230_v32  ;;  %v5868_v32 = vld [vmem:[%s8806_s12] sm:$0xff] }
 0x644   : > { %v4942_v29 = vrot.slane %v5868_v32, %v8404_v24 }
 0x646   : > { %5376 = vmatpush1.bf16.msra.mxu1 %v5229_v22  ;;  %v5245_v22 = vunpack.c.l.s8.bf16 %v5129_v1 }
 0x647   : > { %5377 = vmatprep.subr.bf16.mxu1 %v5232_v55 }
 0x64a   : > { %5378 = vmatpush1.bf16.msra.mxu1 %v5231_v44 }
 0x64b   : > { %5379 = vmatprep.subr.bf16.mxu1 %v5234_v37  ;;  %v5869_v37 = vld [vmem:[%s8807_s13] sm:$0xff] }
 0x64c   : > { %v4992_v18 = vrot.slane %v5869_v37, %v8404_v24  ;;  %v5134_v24 = vld [vmem:[%s8808_s14 + $0x1c8] sm:$0xff] }
 0x64e   : > { %5380 = vmatpush1.bf16.msra.mxu1 %v5233_v3  ;;  %v5247_v3 = vunpack.c.h.s8.bf16 %v5129_v1 }
 0x64f   : > { %5381 = vmatprep.subr.bf16.mxu1 %v5236_v43 }
 0x652   : > { %5382 = vmatpush1.bf16.msra.mxu1 %v5235_v49  ;;  %v5131_v49 = vld [vmem:[%s8808_s14 + $0x1b0] sm:$0xff] }
 0x653   : > { %5392 = vmatprep.subr.bf16.mxu1 %v5238_v25 }
 0x668   : > { %v4742_v31 = vpop.f32.mrb[12].mxu1 }
 0x669   : > { %v4959_v57 = vmul.f32 %v4934_v27, %v4742_v31  ;;  %v4744_v40 = vpop.f32.mrb[13].mxu1 }
 0x66a   : > { %v4960_v47 = vmul.f32 %v4938_v48, %v4744_v40  ;;  %v4746_v56 = vpop.f32.mrb[14].mxu1  ;;  %v5249_v48 = vunpack.c.l.s8.bf16 %v5131_v49  ;;  %v5133_v40 = vld [vmem:[%s8808_s14 + $0x1c0] sm:$0xff] }
 0x66b   : > { %v5009_v39 = vadd.f32 %v4984_v63, %v4959_v57  ;;  %v4747_v50 = vpop.f32.mrb[15].mxu1  ;;  %v5252_v63 = vunpack.c.h.s8.bf16 %v5132_v33  ;;  %v5254_v57 = vunpack.c.l.s8.bf16 %v5134_v24  ;;  %v5256_v56 = vunpack.c.h.s8.bf16 %v5134_v24 }
 0x66c   : > { %v5010_v45 = vadd.f32 %v4988_v12, %v4960_v47  ;;  %v5251_v12 = vunpack.c.h.s8.bf16 %v5131_v49  ;;  %v5253_v47 = vunpack.c.l.s8.bf16 %v5133_v40  ;;  %v5136_v50 = vld [vmem:[%s8808_s14 + $0x1d8] sm:$0xff] }
 0x66d   : > { %v5635_v23 = vmul.f32 -1.442695, %v5009_v39 }
 0x66e   : > { %v5636_v52 = vmul.f32 -1.442695, %v5010_v45 }
 0x66f   : > { %5848 = vpow2.f32 %v5635_v23  ;;  %v5255_v23 = vunpack.c.h.s8.bf16 %v5133_v40 }
 0x670   : > { %5850 = vpow2.f32 %v5636_v52 }
 0x679   : > { %v5849_v54 = vpop.eup %5848 }
 0x67a   : > { %v5851_v46 = vpop.eup %5850  ;;  %v5041_v13 = vadd.f32 1.0, %v5849_v54  ;;  %v5258_v54 = vunpack.c.l.s8.bf16 %v5136_v50 }
 0x67b   : > { %v5042_v38 = vadd.f32 1.0, %v5851_v46  ;;  %v5135_v46 = vld [vmem:[%s8808_s14 + $0x1d0] sm:$0xff] }
 0x67c   : > { %5852 = vrcp.f32 %v5041_v13  ;;  %v5257_v13 = vunpack.c.l.s8.bf16 %v5135_v46 }
 0x67d   : > { %5854 = vrcp.f32 %v5042_v38 }
 0x686   : > { %v5853_v14 = vpop.eup %5852 }
 0x687   : > { %v5855_v61 = vpop.eup %5854  ;;  %v5065_v5 = vmul.f32 %v5853_v14, %v8388_v28  ;;  %v4996_v28 = vrot.slane %v8456_v60, %v8407_v15  ;;  %v5130_v15 = vld [vmem:[%s8808_s14 + $0x1a8] sm:$0xff]  ;;  %v5243_v60 = vunpack.c.h.s8.bf16 %v5127_v53  ;;  %v5260_v14 = vunpack.c.h.s8.bf16 %v5136_v50 }
 0x688   : > { %v5066_v62 = vmul.f32 %v5855_v61, %v8336_v34  ;;  %v5239_v34 = vunpack.c.h.s8.bf16 %v5125_v6  ;;  %v5246_v42 = vunpack.c.l.s8.bf16 %v5130_v15  ;;  %v5248_v55 = vunpack.c.h.s8.bf16 %v5130_v15  ;;  %v5138_v61 = vld [vmem:[%s8808_s14 + $0x1e8] sm:$0xff] }
 0x689   : > { %v5073_v0 = vpack.c.bf16 %v5065_v5, %v5065_v5  ;;  %v5259_v5 = vunpack.c.h.s8.bf16 %v5135_v46  ;;  %v5262_v6 = vunpack.c.l.s8.bf16 %v5138_v61 }
 0x68a   : > { %v5074_v9 = vpack.c.bf16 %v5066_v62, %v5066_v62  ;;  %v5137_v62 = vld [vmem:[%s8808_s14 + $0x1e0] sm:$0xff] }
 0x68c   : > { %5383 = vmatprep.mubr.bf16.mxu1 %v5074_v9  ;;  %v5261_v9 = vunpack.c.l.s8.bf16 %v5137_v62 }
 0x68d   : > { %v4906_v7 = vpop.f32.mrb[20].mxu0  ;;  %5384 = vmatmul.mubr.bf16.vlgmr.msra.gmra.mrb[16].mxu1 %v5073_v0  ;;  %v5140_v0 = vld [vmem:[%s8808_s14 + $0x1f8] sm:$0xff] }
 0x68e   : > { %5393 = vmatpush1.bf16.msra.mxu1 %v5237_v26  ;;  %v4908_v59 = vpop.f32.mrb[21].mxu0  ;;  %v4961_v44 = vmul.f32 %v4942_v29, %v4906_v7  ;;  %v5264_v26 = vunpack.c.h.s8.bf16 %v5138_v61  ;;  %v5265_v7 = vunpack.c.l.s8.bf16 %v5139_v2 }
 0x68f   : > { %v4962_v16 = vmul.f32 %v4946_v36, %v4908_v59  ;;  %v4910_v17 = vpop.f32.mrb[22].mxu0  ;;  %5394 = vmatprep.subr.bf16.mxu1 %v5240_v51  ;;  %v5263_v36 = vunpack.c.h.s8.bf16 %v5137_v62  ;;  %v5266_v51 = vunpack.c.l.s8.bf16 %v5140_v0 }
 0x690   : > { %v4911_v11 = vpop.f32.mrb[23].mxu0  ;;  %v5011_v27 = vadd.f32 %v4992_v18, %v4961_v44 }
 0x691   : > { %v5012_v35 = vadd.f32 %v4996_v28, %v4962_v16  ;;  %v5268_v28 = vunpack.c.h.s8.bf16 %v5140_v0 }
 0x692   : > { %5395 = vmatpush1.bf16.msra.mxu1 %v5239_v34  ;;  %v5637_v31 = vmul.f32 -1.442695, %v5011_v27  ;;  %v5267_v34 = vunpack.c.h.s8.bf16 %v5139_v2 }
 0x693   : > { %v5638_v21 = vmul.f32 -1.442695, %v5012_v35  ;;  %5396 = vmatprep.subr.bf16.mxu1 %v5242_v58 }
 0x695   : > { %5856 = vpow2.f32 %v5638_v21 }
 0x696   : > { %5397 = vmatpush1.bf16.msra.mxu1 %v5241_v30 }
 0x697   : > { %5398 = vmatprep.subr.bf16.mxu1 %v5244_v20 }
 0x69a   : > { %5399 = vmatpush1.bf16.msra.mxu1 %v5243_v60 }
 0x69b   : > { %5400 = vmatprep.subr.bf16.mxu1 %v5246_v42 }
 0x69e   : > { %5401 = vmatpush1.bf16.msra.mxu1 %v5245_v22 }
 0x69f   : > { %v5857_v43 = vpop.eup %5856  ;;  %5402 = vmatprep.subr.bf16.mxu1 %v5248_v55 }
 0x6a0   : > { %v5044_v25 = vadd.f32 1.0, %v5857_v43 }
 0x6a2   : > { %5858 = vrcp.f32 %v5044_v25  ;;  %5403 = vmatpush1.bf16.msra.mxu1 %v5247_v3 }
 0x6a3   : > { %5404 = vmatprep.subr.bf16.mxu1 %v5250_v19  ;;  %5860 = vpow2.f32 %v5637_v31 }
 0x6a6   : > { %5405 = vmatpush1.bf16.msra.mxu1 %v5249_v48 }
 0x6a7   : > { %5406 = vmatprep.subr.bf16.mxu1 %v5252_v63 }
 0x6aa   : > { %5407 = vmatpush1.bf16.msra.mxu1 %v5251_v12 }
 0x6ab   : > { %5408 = vmatprep.subr.bf16.mxu1 %v5254_v57 }
 0x6ac   : > { %v5859_v39 = vpop.eup %5858 }
 0x6ad   : > { %v5068_v45 = vmul.f32 %v5859_v39, %v8421_v4  ;;  %v5861_v38 = vpop.eup %5860 }
 0x6ae   : > { %5409 = vmatpush1.bf16.msra.mxu1 %v5253_v47  ;;  %v5043_v4 = vadd.f32 1.0, %v5861_v38 }
 0x6af   : > { %5410 = vmatprep.subr.bf16.mxu1 %v5256_v56  ;;  %v5076_v52 = vpack.c.bf16 %v5068_v45, %v5068_v45 }
 0x6b0   : > { %5862 = vrcp.f32 %v5043_v4 }
 0x6b1   : > { %5424 = vmatprep.mubr.bf16.mxu1 %v5076_v52 }
 0x6b2   : > { %5411 = vmatpush1.bf16.msra.mxu1 %v5255_v23 }
 0x6b3   : > { %5412 = vmatprep.subr.bf16.mxu1 %v5258_v54 }
 0x6b6   : > { %5413 = vmatpush1.bf16.msra.mxu1 %v5257_v13 }
 0x6b7   : > { %5414 = vmatprep.subr.bf16.mxu1 %v5260_v14 }
 0x6ba   : > { %5415 = vmatpush1.bf16.msra.mxu1 %v5259_v5  ;;  %v5863_v59 = vpop.eup %5862 }
 0x6bb   : > { %5416 = vmatprep.subr.bf16.mxu1 %v5262_v6  ;;  %v5067_v16 = vmul.f32 %v5863_v59, %v8419_v8 }
 0x6bd   : > { %v5075_v17 = vpack.c.bf16 %v5067_v16, %v5067_v16 }
 0x6be   : > { %5417 = vmatpush1.bf16.msra.mxu1 %v5261_v9 }
 0x6bf   : > { %5418 = vmatprep.subr.bf16.mxu1 %v5264_v26 }
 0x6c2   : > { %5419 = vmatpush1.bf16.msra.mxu1 %v5263_v36 }
 0x6c3   : > { %5420 = vmatprep.subr.bf16.mxu1 %v5266_v51 }
 0x6c6   : > { %5421 = vmatpush1.bf16.msra.mxu1 %v5265_v7 }
 0x6c7   : > { %5422 = vmatprep.subr.bf16.mxu1 %v5268_v28 }
 0x6ca   : > { %5423 = vmatpush1.bf16.msra.mxu1 %v5267_v34 }
 0x6cd   : > { %5425 = vmatmul.mubr.bf16.vlgmr.msra.gmra.mrb[16].mxu1 %v5075_v17 }
 0x6ce   : > { %5911 = shalt.err (!%p5908_p8)
}
 0x6cf   : > { %s5912_s23 = scalar_lea.hbm %s8713_s21, 256  ;;  %s5916_s30 = scalar_lea.hbm %s8812_s18, 512 }
 0x6d0   : > { %p5913_p11 = scmp.ne.s32.totalorder %s8713_s21, %s5912_s23  ;;  %p5917_p0 = scmp.lt.u32.totalorder %s8713_s21, %s8812_s18 }
 0x6d1   : > { %p5918_p5 = scmp.lt.u32.totalorder %s5916_s30, %s5912_s23  ;;  %p5920_p9 = scmp.lt.u32.totalorder %s5912_s23, %s8713_s21 }
 0x6d2   : > { %p5914_p13 = pnand %p5913_p11, %p9048_p10 }
 0x6d3   : > { %p5919_p6 = por %p5918_p5, %p5917_p0 }
 0x6d4   : > { %p5915_p1 = pneg %p5914_p13 }
 0x6d5   : > { %p5921_p12 = por %p5920_p9, %p5919_p6 }
 0x6d7   : > { %p5922_p2 = pnand %p5921_p12, %p5915_p1 }
 0x6d9   : > { %5925 = shalt.err (!%p5922_p2)
}
 0x6da   : > { %5768 = dma.vmem_to_hbm [thread:$0]  (%p9048_p10), %s5498_s1, 256, %s8713_s21, %s5469_s22  }
 0x6db   : > { %s9049_s15 = sld [smem:[#allocation30_spill]]  ;;  %s9050_s27 = sld [smem:[#allocation31_spill]] }
 0x6dc   : > { %s605_s21 = scalar_lea.vmem [#allocation5], %s5618_s25  ;;  %s9052_s30 = sld [smem:[#allocation32_spill]] }
 0x6dd   : > { %s5483_s1 = sshll.u32 %s605_s21, 4  ;;  %s5464_s25 = scalar_lea.sflag [#allocation4], %s8093_s19  ;;  %s8753_s1 = int_to_ptr.vmem [resolvable:$true] %s5483_s1 }
 0x6de   : > { %s5926_s20 = scalar_lea.vmem %s8753_s1, 256  ;;  %s6002_s29 = smov [#allocation5]  }
 0x6df   : > { %p5927_p3 = scmp.ne.s32.totalorder %s8753_s1, %s5926_s20 }
 0x6e1   : > { %v5433_v8 = vld [vmem:[%s9049_s15] sm:$0x3]  ;;  %p5928_p4 = pnand %p5927_p3, %p9048_p10 }
 0x6e2   : > { %v5447_v58 = vld [vmem:[%s9050_s27] sm:$0x3]  ;;  %v5438_v53 = vrot.slane %v5433_v8, %v7692_v10  ;;  %v5442_v11 = vrot.slane %v5433_v8, %v7701_v41  ;;  %s9051_s27 = sshll.u32 %s6119_s0, 8  ;;  %s9053_s24 = smov %s9052_s30 }
 0x6e3   : > { %v5452_v35 = vrot.slane %v5447_v58, %v7692_v10  ;;  %v5456_v21 = vrot.slane %v5447_v58, %v7701_v41  ;;  %s8751_s11 = scalar_lea.hbm %s9052_s30, %s9051_s27  ;;  %p5929_p7 = pneg %p5928_p4 }
 0x6e4   : > { %s5930_s0 = sshll.u32 %s6002_s29, 4  ;;  %s5931_s0 = int_to_ptr.vmem [resolvable:$false] %s5930_s0 }
 0x6e5   : > { %s5932_s15 = scalar_lea.vmem %s5931_s0, 512  ;;  %p5933_p8 = scmp.lt.s32.totalorder %s8753_s1, %s5931_s0 }
 0x6e6   : > { %p5934_p11 = scmp.lt.s32.totalorder %s5932_s15, %s5926_s20 }
 0x6e8   : > { %p5935_p13 = por %p5934_p11, %p5933_p8 }
 0x6ea   : > { %p5936_p1 = pnand %p5935_p13, %p5929_p7 }
 0x7a0   : > { %v5426_v30 = vpop.f32.mrb[16].mxu1 }
 0x7a1   : > { %v5445_v20 = vmul.f32 %v5438_v53, %v5426_v30  ;;  %v5428_v15 = vpop.f32.mrb[17].mxu1 }
 0x7a2   : > { %v5446_v60 = vmul.f32 %v5442_v11, %v5428_v15  ;;  %v5430_v42 = vpop.f32.mrb[18].mxu1 }
 0x7a3   : > { %v5459_v1 = vadd.f32 %v5452_v35, %v5445_v20  ;;  %v5431_v32 = vpop.f32.mrb[19].mxu1 }
 0x7a4   : > { %v5460_v29 = vadd.f32 %v5456_v21, %v5446_v60 }
 0x7a5   : > { %5461 = vst [vmem:[%s605_s21] sm:$0xff] %v5459_v1 }
 0x7a6   : > { %5462 = vst [vmem:[%s605_s21 + $0x8] sm:$0xff] %v5460_v29 }
 0x7a7   : > { %5939 = shalt.err (!%p5936_p1)
}
 0x7a8   : > { %s5940_s19 = scalar_lea.hbm %s8751_s11, 256  ;;  %s5944_s21 = scalar_lea.hbm %s9053_s24, 512 }
 0x7a9   : > { %p5941_p0 = scmp.ne.s32.totalorder %s8751_s11, %s5940_s19  ;;  %p5945_p9 = scmp.lt.u32.totalorder %s8751_s11, %s9053_s24 }
 0x7aa   : > { %p5946_p12 = scmp.lt.u32.totalorder %s5944_s21, %s5940_s19  ;;  %p5948_p3 = scmp.lt.u32.totalorder %s5940_s19, %s8751_s11 }
 0x7ab   : > { %p5942_p5 = pnand %p5941_p0, %p9048_p10 }
 0x7ac   : > { %p5947_p2 = por %p5946_p12, %p5945_p9 }
 0x7ad   : > { %p5943_p6 = pneg %p5942_p5 }
 0x7ae   : > { %p5949_p4 = por %p5948_p3, %p5947_p2 }
 0x7b0   : > { %p5950_p7 = pnand %p5949_p4, %p5943_p6 }
 0x7b2   : > { %5953 = shalt.err (!%p5950_p7)
}
 0x7b3   : > { %5767 = dma.vmem_to_hbm [thread:$0]  (%p9048_p10), %s8753_s1, 256, %s8751_s11, %s5464_s25  }
 0x7b4 PF: > { %s9054_s23 = sld [smem:[#allocation13_spill]]  ;;  %s9055_s30 = sld [smem:[#allocation11_spill]] }
 0x7b5   : > { %s9056_s20 = sld [smem:[#allocation16_spill]] }
 0x7ba   : > { %p5784_p8 = scmp.ge.s32.totalorder %s9054_s23, 2  ;;  %s5509_s29 = sand.u32 1, %s9055_s30  }
 0x7bb   : > { %p9057_p11 = scmp.ne.s32.totalorder %s9056_s20, 0  ;;  %s5510_s0 = scalar_lea.sflag [#allocation4], %s5509_s29 }
 0x7bd   : > { %p5776_p13 = pnand %p5784_p8, %p9057_p11 }
 0x7bf   : > { %5975 = dma.done.wait (!%p5776_p13), %s5510_s0, 256  }
 0x7c0   : > { %5977 = vsyncadd (!%p5776_p13), %s5510_s0, 4294967040  ;;  %s5519_s15 = scalar_lea.sflag [#allocation7], %s5509_s29 }
 0x7c1   : > { %5979 = dma.done.wait (!%p5776_p13), %s5519_s15, 256  }
 0x7c2   : > { %5981 = vsyncadd (!%p5776_p13), %s5519_s15, 4294967040  ;;  %s9058_s30 = sld [smem:[#allocation14_spill]]  ;;  %s9059_s2 = sld [smem:[#allocation12_spill]] }
 0x7c3   : > { %s9060_s29 = sld [smem:[#allocation15_spill]]  ;;  %s9061_s27 = smov %s5988_s28 }
 0x7c8   : > { %p33_p10 = scmp.ge.s32.totalorder %s9058_s30, 4   ;;  %s9062_s28 = smov %s9059_s2 }
 0x7ca   :  { %35 = sbr.rel (!%p33_p10) target bundleno = 14 (0xe), region = 148 }
 0x7d1   :  { %5524 = vsyncpa [#allocation3], 1 }
 0x7d2   :  { %5526 = vsyncpa [#allocation3 + $0x1], 1 }
 0x7d3   :  { %5527 = vsyncpa [#allocation4], 1 }
 0x7d4   :  { %5529 = vsyncpa [#allocation4 + $0x1], 1 }
 0x7d5   :  { %5530 = vsyncpa [#allocation7], 1 }
 0x7d6   :  { %5532 = vsyncpa [#allocation7 + $0x1], 1 }

</bundles_post_ra>
